<compile_context>
chip_gen: v5e
topology: v5e:2x2
jax: 0.10.0
libtpu: 0.0.40
codegen_flags: <defaults>
</compile_context>

<pallas_src>
import functools

import jax
import jax.numpy as jnp
from jax.experimental import pallas as pl
from jax.experimental.pallas import tpu as pltpu

_VMEM = pl.BlockSpec(memory_space=pltpu.MemorySpace.VMEM)


def _round_up(x, m):
    return (x + m - 1) // m * m


# ----------------------------------------------------------------------------
# Pallas kernel 1: row-tiled matmul + bias + activation (conv GEMM hot path)
# ----------------------------------------------------------------------------
def _mm_bias_act_kernel(x_ref, w_ref, b_ref, o_ref, *, act):
    y = jnp.dot(x_ref[...], w_ref[...], preferred_element_type=jnp.float32)
    y = y + b_ref[...]
    if act == "relu":
        y = jnp.maximum(y, 0.0)
    elif act == "sigmoid":
        y = jax.nn.sigmoid(y)
    o_ref[...] = y


def matmul_bias_act(x, w, b, act="none", tile_m=512):
    """y = act(x @ w + b).  x:[M,K]  w:[K,N]  b:[N].

    Tiled over M so the im2col rows are streamed through VMEM with
    double-buffered DMA while the (small) weight/bias stay resident.
    """
    M, K = x.shape
    N = w.shape[1]
    tm = min(tile_m, _round_up(M, 8))
    Mp = _round_up(M, tm)
    if Mp != M:
        x = jnp.pad(x, ((0, Mp - M), (0, 0)))

    out = pl.pallas_call(
        functools.partial(_mm_bias_act_kernel, act=act),
        out_shape=jax.ShapeDtypeStruct((Mp, N), jnp.float32),
        grid=(Mp // tm,),
        in_specs=[
            pl.BlockSpec((tm, K), lambda i: (i, 0)),   # streamed row tiles
            pl.BlockSpec((K, N), lambda i: (0, 0)),    # resident weight
            pl.BlockSpec((1, N), lambda i: (0, 0)),    # resident bias
        ],
        out_specs=pl.BlockSpec((tm, N), lambda i: (i, 0)),
        compiler_params=pltpu.CompilerParams(
            dimension_semantics=("parallel",)),
    )(x, w, b.reshape(1, N))
    return out[:M] if Mp != M else out


# ----------------------------------------------------------------------------
# Pallas kernel 2: fused CBAM attention tail (CA + SA, one launch)
# ----------------------------------------------------------------------------
def _attention_tail_kernel(x_ref, w1_ref, w2t_ref, wa_ref, wm_ref, o_ref):
    # x: [B, HW, C]  (NHWC with spatial flattened)
    x = x_ref[...]
    w1 = w1_ref[...]      # [C//16, C]  (CA fc1 weight)
    w2t = w2t_ref[...]    # [C//16, C]  (CA fc2 weight, transposed)

    # ---- channel attention: spatial avg/max pool -> shared MLP (on the VPU) ----
    avg_c = jnp.mean(x, axis=1)                        # [B, C]
    max_c = jnp.max(x, axis=1)                         # [B, C]

    def mlp(v):                                        # v: [B, C]
        h = jnp.maximum(jnp.sum(v[:, None, :] * w1[None, :, :], axis=-1), 0.0)  # [B, r]
        return jnp.sum(h[:, :, None] * w2t[None, :, :], axis=1)                 # [B, C]

    ca = jax.nn.sigmoid(mlp(avg_c) + mlp(max_c))       # [B, C]
    y = x * ca[:, None, :]                             # [B, HW, C]

    # ---- spatial attention: channel avg/max, 7x7 conv folded into [HW,HW] mats ----
    avg_s = jnp.mean(y, axis=2)                        # [B, HW]
    max_s = jnp.max(y, axis=2)                         # [B, HW]
    sa = jax.nn.sigmoid(
        jnp.dot(avg_s, wa_ref[...], preferred_element_type=jnp.float32)
        + jnp.dot(max_s, wm_ref[...], preferred_element_type=jnp.float32))      # [B, HW]

    o_ref[...] = y * sa[:, :, None]


def attention_tail(x_bhwc, w1, w2t, wa, wm):
    B, HW, C = x_bhwc.shape
    return pl.pallas_call(
        _attention_tail_kernel,
        out_shape=jax.ShapeDtypeStruct((B, HW, C), jnp.float32),
        in_specs=[_VMEM] * 5,
        out_specs=_VMEM,
    )(x_bhwc, w1, w2t, wa, wm)


# ----------------------------------------------------------------------------
# Pallas kernel 3: fused MLP head (fc1 + relu + fc_out, one launch)
# ----------------------------------------------------------------------------
def _mlp_head_kernel(x_ref, w1_ref, b1_ref, w2_ref, b2_ref, o_ref):
    h = jnp.dot(x_ref[...], w1_ref[...], preferred_element_type=jnp.float32)
    h = jnp.maximum(h + b1_ref[...], 0.0)
    o_ref[...] = (jnp.dot(h, w2_ref[...], preferred_element_type=jnp.float32)
                  + b2_ref[...])


def mlp_head(x, w1t, b1, w2t, b2):
    B = x.shape[0]
    N = w2t.shape[1]
    return pl.pallas_call(
        _mlp_head_kernel,
        out_shape=jax.ShapeDtypeStruct((B, N), jnp.float32),
        in_specs=[_VMEM] * 5,
        out_specs=_VMEM,
    )(x, w1t, b1.reshape(1, -1), w2t, b2.reshape(1, -1))


# ----------------------------------------------------------------------------
# Plain-JAX glue: NHWC im2col / weight repacking (trace-time, no big transposes)
# ----------------------------------------------------------------------------
def conv2d_nhwc(x, w_oihw, b, stride, pad, act="relu"):
    """x: [B,H,W,C] NHWC.  w: [O,C,kh,kw] (PyTorch layout).  Returns [B,Ho,Wo,O]."""
    B, H, W, C = x.shape
    O, _, kh, kw = w_oihw.shape
    Ho = (H + 2 * pad - kh) // stride + 1
    Wo = (W + 2 * pad - kw) // stride + 1
    xp = jnp.pad(x, ((0, 0), (pad, pad), (pad, pad), (0, 0)))
    taps = []
    for ki in range(kh):
        for kj in range(kw):
            taps.append(xp[:, ki:ki + stride * (Ho - 1) + 1:stride,
                           kj:kj + stride * (Wo - 1) + 1:stride, :])
    patches = jnp.concatenate(taps, axis=-1).reshape(B * Ho * Wo, kh * kw * C)
    wmat = w_oihw.transpose(2, 3, 1, 0).reshape(kh * kw * C, O)   # (ki,kj,c) order
    y = matmul_bias_act(patches, wmat, b, act=act)                # [B*Ho*Wo, O]
    return y.reshape(B, Ho, Wo, O)


def sa_linear_map(w_c, H, W, pad):
    """Fold a KxK 'same' conv kernel (single in-channel) on a fixed HxW map
    into an [H*W, H*W] matrix M with out_flat = in_flat @ M (exact)."""
    K = w_c.shape[0]
    big = jnp.zeros((2 * H - 1, 2 * W - 1), w_c.dtype)
    ki = jnp.arange(K)
    big = big.at[(ki - pad + (H - 1))[:, None],
                 (ki - pad + (W - 1))[None, :]].set(w_c)
    ii = jnp.arange(H)
    jj = jnp.arange(W)
    di = ii[:, None] - ii[None, :] + (H - 1)     # [p, i] -> p - i + H - 1
    dj = jj[:, None] - jj[None, :] + (W - 1)     # [q, j]
    m = big[di[:, None, :, None], dj[None, :, None, :]]   # [p, q, i, j]
    return m.reshape(H * W, H * W)


# ----------------------------------------------------------------------------
# Full forward pass (matches CNN_Model.forward)
# ----------------------------------------------------------------------------
def cnn_model_forward(x_nchw, p):
    x = x_nchw.transpose(0, 2, 3, 1)                      # NHWC, once at input
    x = conv2d_nhwc(x, p["conv1_w"], p["conv1_b"], 2, 1)
    x = conv2d_nhwc(x, p["conv2_w"], p["conv2_b"], 2, 1)
    x = conv2d_nhwc(x, p["conv3_w"], p["conv3_b"], 2, 1)
    x = conv2d_nhwc(x, p["conv4_w"], p["conv4_b"], 2, 1)  # [B, 6, 6, 32]
    B, H, W, C = x.shape

    # --- attention weights repacked at trace time ---
    w1 = p["ca_fc1_w"].reshape(C // 16, C)                # [2, 32]
    w2t = p["ca_fc2_w"].reshape(C, C // 16).T             # [2, 32]
    wa = sa_linear_map(p["sa_conv_w"][0, 0], H, W, 3)     # avg-channel map [36, 36]
    wm = sa_linear_map(p["sa_conv_w"][0, 1], H, W, 3)     # max-channel map [36, 36]

    x_sa = attention_tail(x.reshape(B, H * W, C), w1, w2t, wa, wm)  # [B, 36, 32]

    # --- MLP head: fc1 columns permuted so NHWC flatten == PyTorch NCHW flatten ---
    fc1_wt = (p["fc1_w"].reshape(-1, C, H, W)
              .transpose(2, 3, 1, 0).reshape(H * W * C, -1))        # [1152, 512]
    out = mlp_head(x_sa.reshape(B, H * W * C), fc1_wt, p["fc1_b"],
                   p["fc_out_w"].T, p["fc_out_b"])                   # [B, out]
    return jnp.squeeze(out)                                          # out.squeeze()


# ----------------------------------------------------------------------------
# Deterministic synthetic parameters (same shapes as the PyTorch module)
# ----------------------------------------------------------------------------
def init_params(key, input_channels, output_dim):
    ks = jax.random.split(key, 14)

    def rnd(k, shape, scale=0.05):
        return jax.random.normal(k, shape, jnp.float32) * scale

    return {
        "conv1_w": rnd(ks[0], (32, input_channels, 3, 3)),
        "conv1_b": rnd(ks[1], (32,)),
        "conv2_w": rnd(ks[2], (32, 32, 3, 3)),
        "conv2_b": rnd(ks[3], (32,)),
        "conv3_w": rnd(ks[4], (32, 32, 3, 3)),
        "conv3_b": rnd(ks[5], (32,)),
        "conv4_w": rnd(ks[6], (32, 32, 3, 3)),
        "conv4_b": rnd(ks[7], (32,)),
        "ca_fc1_w": rnd(ks[8], (2, 32, 1, 1)),     # Conv2d(32, 2, 1, bias=False)
        "ca_fc2_w": rnd(ks[9], (32, 2, 1, 1)),     # Conv2d(2, 32, 1, bias=False)
        "sa_conv_w": rnd(ks[10], (1, 2, 7, 7)),    # Conv2d(2, 1, 7, bias=False)
        "fc1_w": rnd(ks[11], (512, 32 * 6 * 6)),
        "fc1_b": rnd(ks[12], (512,)),
        "fc_out_w": rnd(ks[13], (output_dim, 512)),
        "fc_out_b": jnp.zeros((output_dim,), jnp.float32),
    }


if __name__ == "__main__":
    input_channels, output_dim = 4, 6
    batch = 2

    key = jax.random.PRNGKey(0)
    k_in, k_par = jax.random.split(key)
    # spatial size must be 84x84: four stride-2 convs -> 6x6, fc1 = 32*6*6
    x = jax.random.normal(k_in, (batch, input_channels, 84, 84), jnp.float32)
    params = init_params(k_par, input_channels, output_dim)

    fwd = jax.jit(lambda xx: cnn_model_forward(xx, params))
    out = fwd(x)
    jax.block_until_ready(out)
    assert out.shape == (batch, output_dim)
    assert bool(jnp.all(jnp.isfinite(out)))
    print("KERNEL_OK")
</pallas_src>

<mosaic_0001>
module attributes {stable_mosaic.version = 11 : i64} {
  func.func @_mm_bias_act_kernel(%arg0: i32, %arg1: memref<512x36xf32, #tpu.memory_space<vmem>>, %arg2: memref<36x32xf32, #tpu.memory_space<vmem>>, %arg3: memref<1x32xf32, #tpu.memory_space<vmem>>, %arg4: memref<512x32xf32, #tpu.memory_space<vmem>>) attributes {dimension_semantics = [#tpu.dimension_semantics<parallel>], iteration_bounds = array<i64: 7>, scalar_prefetch = 0 : i64, scratch_operands = 0 : i64, tpu.core_type = #tpu.core_type<tc>, window_params = [{transform_indices = @transform_0, window_bounds = array<i64: 512, 36>}, {pipeline_mode = #tpu.pipeline_mode<synchronous>, transform_indices = @transform_1, window_bounds = array<i64: 36, 32>}, {pipeline_mode = #tpu.pipeline_mode<synchronous>, transform_indices = @transform_2, window_bounds = array<i64: 1, 32>}, {transform_indices = @transform_3, window_bounds = array<i64: 512, 32>}]} {
    %c0 = arith.constant 0 : index
    %c0_0 = arith.constant 0 : index
    %0 = vector.load %arg1[%c0, %c0_0] : memref<512x36xf32, #tpu.memory_space<vmem>>, vector<512x36xf32>
    %c0_1 = arith.constant 0 : index
    %c0_2 = arith.constant 0 : index
    %1 = vector.load %arg2[%c0_1, %c0_2] : memref<36x32xf32, #tpu.memory_space<vmem>>, vector<36x32xf32>
    %cst = arith.constant dense<0.000000e+00> : vector<512x32xf32>
    %2 = tpu.matmul %0, %1, %cst {dimension_numbers = #tpu.dot_dimension_numbers<[1], [0], [0], [1], [0, 0, 1, 1], [], []>} : vector<512x36xf32>, vector<36x32xf32>, vector<512x32xf32> -> vector<512x32xf32>
    %c0_3 = arith.constant 0 : index
    %c0_4 = arith.constant 0 : index
    %3 = vector.load %arg3[%c0_3, %c0_4] : memref<1x32xf32, #tpu.memory_space<vmem>>, vector<1x32xf32>
    %4 = vector.broadcast %3 : vector<1x32xf32> to vector<512x32xf32>
    %5 = arith.addf %2, %4 : vector<512x32xf32>
    %cst_5 = arith.constant 0.000000e+00 : f32
    %6 = vector.broadcast %cst_5 : f32 to vector<512x32xf32>
    %7 = arith.maximumf %5, %6 : vector<512x32xf32>
    %c0_6 = arith.constant 0 : index
    %c0_7 = arith.constant 0 : index
    %8 = vector.load %arg4[%c0_6, %c0_7] : memref<512x32xf32, #tpu.memory_space<vmem>>, vector<512x32xf32>
    tpu.vector_store %arg4[%c0_6, %c0_7], %7 {strides = array<i32>} : memref<512x32xf32, #tpu.memory_space<vmem>>, vector<512x32xf32>,
    return
  }
  func.func @transform_0(%arg0: i32) -> (i32, i32) {
    %c0_i32 = arith.constant 0 : i32
    %c0_i32_0 = arith.constant 0 : i32
    return %arg0, %c0_i32 : i32, i32
  }
  func.func @transform_1(%arg0: i32) -> (i32, i32) {
    %c0_i32 = arith.constant 0 : i32
    %c0_i32_0 = arith.constant 0 : i32
    %c0_i32_1 = arith.constant 0 : i32
    return %c0_i32, %c0_i32_0 : i32, i32
  }
  func.func @transform_2(%arg0: i32) -> (i32, i32) {
    %c0_i32 = arith.constant 0 : i32
    %c0_i32_0 = arith.constant 0 : i32
    %c0_i32_1 = arith.constant 0 : i32
    return %c0_i32, %c0_i32_0 : i32, i32
  }
  func.func @transform_3(%arg0: i32) -> (i32, i32) {
    %c0_i32 = arith.constant 0 : i32
    %c0_i32_0 = arith.constant 0 : i32
    return %arg0, %c0_i32 : i32, i32
  }
}

module attributes {stable_mosaic.version = 11 : i64} {
  func.func @_mm_bias_act_kernel(%arg0: i32, %arg1: memref<512x288xf32, #tpu.memory_space<vmem>>, %arg2: memref<288x32xf32, #tpu.memory_space<vmem>>, %arg3: memref<1x32xf32, #tpu.memory_space<vmem>>, %arg4: memref<512x32xf32, #tpu.memory_space<vmem>>) attributes {dimension_semantics = [#tpu.dimension_semantics<parallel>], iteration_bounds = array<i64: 2>, scalar_prefetch = 0 : i64, scratch_operands = 0 : i64, tpu.core_type = #tpu.core_type<tc>, window_params = [{transform_indices = @transform_0, window_bounds = array<i64: 512, 288>}, {pipeline_mode = #tpu.pipeline_mode<synchronous>, transform_indices = @transform_1, window_bounds = array<i64: 288, 32>}, {pipeline_mode = #tpu.pipeline_mode<synchronous>, transform_indices = @transform_2, window_bounds = array<i64: 1, 32>}, {transform_indices = @transform_3, window_bounds = array<i64: 512, 32>}]} {
    %c0 = arith.constant 0 : index
    %c0_0 = arith.constant 0 : index
    %0 = vector.load %arg1[%c0, %c0_0] : memref<512x288xf32, #tpu.memory_space<vmem>>, vector<512x288xf32>
    %c0_1 = arith.constant 0 : index
    %c0_2 = arith.constant 0 : index
    %1 = vector.load %arg2[%c0_1, %c0_2] : memref<288x32xf32, #tpu.memory_space<vmem>>, vector<288x32xf32>
    %cst = arith.constant dense<0.000000e+00> : vector<512x32xf32>
    %2 = tpu.matmul %0, %1, %cst {dimension_numbers = #tpu.dot_dimension_numbers<[1], [0], [0], [1], [0, 0, 1, 1], [], []>} : vector<512x288xf32>, vector<288x32xf32>, vector<512x32xf32> -> vector<512x32xf32>
    %c0_3 = arith.constant 0 : index
    %c0_4 = arith.constant 0 : index
    %3 = vector.load %arg3[%c0_3, %c0_4] : memref<1x32xf32, #tpu.memory_space<vmem>>, vector<1x32xf32>
    %4 = vector.broadcast %3 : vector<1x32xf32> to vector<512x32xf32>
    %5 = arith.addf %2, %4 : vector<512x32xf32>
    %cst_5 = arith.constant 0.000000e+00 : f32
    %6 = vector.broadcast %cst_5 : f32 to vector<512x32xf32>
    %7 = arith.maximumf %5, %6 : vector<512x32xf32>
    %c0_6 = arith.constant 0 : index
    %c0_7 = arith.constant 0 : index
    %8 = vector.load %arg4[%c0_6, %c0_7] : memref<512x32xf32, #tpu.memory_space<vmem>>, vector<512x32xf32>
    tpu.vector_store %arg4[%c0_6, %c0_7], %7 {strides = array<i32>} : memref<512x32xf32, #tpu.memory_space<vmem>>, vector<512x32xf32>,
    return
  }
  func.func @transform_0(%arg0: i32) -> (i32, i32) {
    %c0_i32 = arith.constant 0 : i32
    %c0_i32_0 = arith.constant 0 : i32
    return %arg0, %c0_i32 : i32, i32
  }
  func.func @transform_1(%arg0: i32) -> (i32, i32) {
    %c0_i32 = arith.constant 0 : i32
    %c0_i32_0 = arith.constant 0 : i32
    %c0_i32_1 = arith.constant 0 : i32
    return %c0_i32, %c0_i32_0 : i32, i32
  }
  func.func @transform_2(%arg0: i32) -> (i32, i32) {
    %c0_i32 = arith.constant 0 : i32
    %c0_i32_0 = arith.constant 0 : i32
    %c0_i32_1 = arith.constant 0 : i32
    return %c0_i32, %c0_i32_0 : i32, i32
  }
  func.func @transform_3(%arg0: i32) -> (i32, i32) {
    %c0_i32 = arith.constant 0 : i32
    %c0_i32_0 = arith.constant 0 : i32
    return %arg0, %c0_i32 : i32, i32
  }
}

module attributes {stable_mosaic.version = 11 : i64} {
  func.func @_mm_bias_act_kernel(%arg0: i32, %arg1: memref<248x288xf32, #tpu.memory_space<vmem>>, %arg2: memref<288x32xf32, #tpu.memory_space<vmem>>, %arg3: memref<1x32xf32, #tpu.memory_space<vmem>>, %arg4: memref<248x32xf32, #tpu.memory_space<vmem>>) attributes {dimension_semantics = [#tpu.dimension_semantics<parallel>], iteration_bounds = array<i64: 1>, scalar_prefetch = 0 : i64, scratch_operands = 0 : i64, tpu.core_type = #tpu.core_type<tc>, window_params = [{transform_indices = @transform_0, window_bounds = array<i64: 248, 288>}, {pipeline_mode = #tpu.pipeline_mode<synchronous>, transform_indices = @transform_1, window_bounds = array<i64: 288, 32>}, {pipeline_mode = #tpu.pipeline_mode<synchronous>, transform_indices = @transform_2, window_bounds = array<i64: 1, 32>}, {transform_indices = @transform_3, window_bounds = array<i64: 248, 32>}]} {
    %c0 = arith.constant 0 : index
    %c0_0 = arith.constant 0 : index
    %0 = vector.load %arg1[%c0, %c0_0] : memref<248x288xf32, #tpu.memory_space<vmem>>, vector<248x288xf32>
    %c0_1 = arith.constant 0 : index
    %c0_2 = arith.constant 0 : index
    %1 = vector.load %arg2[%c0_1, %c0_2] : memref<288x32xf32, #tpu.memory_space<vmem>>, vector<288x32xf32>
    %cst = arith.constant dense<0.000000e+00> : vector<248x32xf32>
    %2 = tpu.matmul %0, %1, %cst {dimension_numbers = #tpu.dot_dimension_numbers<[1], [0], [0], [1], [0, 0, 1, 1], [], []>} : vector<248x288xf32>, vector<288x32xf32>, vector<248x32xf32> -> vector<248x32xf32>
    %c0_3 = arith.constant 0 : index
    %c0_4 = arith.constant 0 : index
    %3 = vector.load %arg3[%c0_3, %c0_4] : memref<1x32xf32, #tpu.memory_space<vmem>>, vector<1x32xf32>
    %4 = vector.broadcast %3 : vector<1x32xf32> to vector<248x32xf32>
    %5 = arith.addf %2, %4 : vector<248x32xf32>
    %cst_5 = arith.constant 0.000000e+00 : f32
    %6 = vector.broadcast %cst_5 : f32 to vector<248x32xf32>
    %7 = arith.maximumf %5, %6 : vector<248x32xf32>
    %c0_6 = arith.constant 0 : index
    %c0_7 = arith.constant 0 : index
    %8 = vector.load %arg4[%c0_6, %c0_7] : memref<248x32xf32, #tpu.memory_space<vmem>>, vector<248x32xf32>
    tpu.vector_store %arg4[%c0_6, %c0_7], %7 {strides = array<i32>} : memref<248x32xf32, #tpu.memory_space<vmem>>, vector<248x32xf32>,
    return
  }
  func.func @transform_0(%arg0: i32) -> (i32, i32) {
    %c0_i32 = arith.constant 0 : i32
    %c0_i32_0 = arith.constant 0 : i32
    return %arg0, %c0_i32 : i32, i32
  }
  func.func @transform_1(%arg0: i32) -> (i32, i32) {
    %c0_i32 = arith.constant 0 : i32
    %c0_i32_0 = arith.constant 0 : i32
    %c0_i32_1 = arith.constant 0 : i32
    return %c0_i32, %c0_i32_0 : i32, i32
  }
  func.func @transform_2(%arg0: i32) -> (i32, i32) {
    %c0_i32 = arith.constant 0 : i32
    %c0_i32_0 = arith.constant 0 : i32
    %c0_i32_1 = arith.constant 0 : i32
    return %c0_i32, %c0_i32_0 : i32, i32
  }
  func.func @transform_3(%arg0: i32) -> (i32, i32) {
    %c0_i32 = arith.constant 0 : i32
    %c0_i32_0 = arith.constant 0 : i32
    return %arg0, %c0_i32 : i32, i32
  }
}

module attributes {stable_mosaic.version = 11 : i64} {
  func.func @_mm_bias_act_kernel(%arg0: i32, %arg1: memref<72x288xf32, #tpu.memory_space<vmem>>, %arg2: memref<288x32xf32, #tpu.memory_space<vmem>>, %arg3: memref<1x32xf32, #tpu.memory_space<vmem>>, %arg4: memref<72x32xf32, #tpu.memory_space<vmem>>) attributes {dimension_semantics = [#tpu.dimension_semantics<parallel>], iteration_bounds = array<i64: 1>, scalar_prefetch = 0 : i64, scratch_operands = 0 : i64, tpu.core_type = #tpu.core_type<tc>, window_params = [{transform_indices = @transform_0, window_bounds = array<i64: 72, 288>}, {pipeline_mode = #tpu.pipeline_mode<synchronous>, transform_indices = @transform_1, window_bounds = array<i64: 288, 32>}, {pipeline_mode = #tpu.pipeline_mode<synchronous>, transform_indices = @transform_2, window_bounds = array<i64: 1, 32>}, {transform_indices = @transform_3, window_bounds = array<i64: 72, 32>}]} {
    %c0 = arith.constant 0 : index
    %c0_0 = arith.constant 0 : index
    %0 = vector.load %arg1[%c0, %c0_0] : memref<72x288xf32, #tpu.memory_space<vmem>>, vector<72x288xf32>
    %c0_1 = arith.constant 0 : index
    %c0_2 = arith.constant 0 : index
    %1 = vector.load %arg2[%c0_1, %c0_2] : memref<288x32xf32, #tpu.memory_space<vmem>>, vector<288x32xf32>
    %cst = arith.constant dense<0.000000e+00> : vector<72x32xf32>
    %2 = tpu.matmul %0, %1, %cst {dimension_numbers = #tpu.dot_dimension_numbers<[1], [0], [0], [1], [0, 0, 1, 1], [], []>} : vector<72x288xf32>, vector<288x32xf32>, vector<72x32xf32> -> vector<72x32xf32>
    %c0_3 = arith.constant 0 : index
    %c0_4 = arith.constant 0 : index
    %3 = vector.load %arg3[%c0_3, %c0_4] : memref<1x32xf32, #tpu.memory_space<vmem>>, vector<1x32xf32>
    %4 = vector.broadcast %3 : vector<1x32xf32> to vector<72x32xf32>
    %5 = arith.addf %2, %4 : vector<72x32xf32>
    %cst_5 = arith.constant 0.000000e+00 : f32
    %6 = vector.broadcast %cst_5 : f32 to vector<72x32xf32>
    %7 = arith.maximumf %5, %6 : vector<72x32xf32>
    %c0_6 = arith.constant 0 : index
    %c0_7 = arith.constant 0 : index
    %8 = vector.load %arg4[%c0_6, %c0_7] : memref<72x32xf32, #tpu.memory_space<vmem>>, vector<72x32xf32>
    tpu.vector_store %arg4[%c0_6, %c0_7], %7 {strides = array<i32>} : memref<72x32xf32, #tpu.memory_space<vmem>>, vector<72x32xf32>,
    return
  }
  func.func @transform_0(%arg0: i32) -> (i32, i32) {
    %c0_i32 = arith.constant 0 : i32
    %c0_i32_0 = arith.constant 0 : i32
    return %arg0, %c0_i32 : i32, i32
  }
  func.func @transform_1(%arg0: i32) -> (i32, i32) {
    %c0_i32 = arith.constant 0 : i32
    %c0_i32_0 = arith.constant 0 : i32
    %c0_i32_1 = arith.constant 0 : i32
    return %c0_i32, %c0_i32_0 : i32, i32
  }
  func.func @transform_2(%arg0: i32) -> (i32, i32) {
    %c0_i32 = arith.constant 0 : i32
    %c0_i32_0 = arith.constant 0 : i32
    %c0_i32_1 = arith.constant 0 : i32
    return %c0_i32, %c0_i32_0 : i32, i32
  }
  func.func @transform_3(%arg0: i32) -> (i32, i32) {
    %c0_i32 = arith.constant 0 : i32
    %c0_i32_0 = arith.constant 0 : i32
    return %arg0, %c0_i32 : i32, i32
  }
}

module attributes {stable_mosaic.version = 11 : i64} {
  func.func @_attention_tail_kernel(%arg0: memref<2x36x32xf32, #tpu.memory_space<vmem>>, %arg1: memref<2x32xf32, #tpu.memory_space<vmem>>, %arg2: memref<2x32xf32, #tpu.memory_space<vmem>>, %arg3: memref<36x36xf32, #tpu.memory_space<vmem>>, %arg4: memref<36x36xf32, #tpu.memory_space<vmem>>, %arg5: memref<2x36x32xf32, #tpu.memory_space<vmem>>) attributes {dimension_semantics = [], scalar_prefetch = 0 : i64, scratch_operands = 0 : i64, tpu.core_type = #tpu.core_type<tc>} {
    %c0 = arith.constant 0 : index
    %c0_0 = arith.constant 0 : index
    %c0_1 = arith.constant 0 : index
    %0 = vector.load %arg0[%c0, %c0_0, %c0_1] : memref<2x36x32xf32, #tpu.memory_space<vmem>>, vector<2x36x32xf32>
    %c0_2 = arith.constant 0 : index
    %c0_3 = arith.constant 0 : index
    %1 = vector.load %arg1[%c0_2, %c0_3] : memref<2x32xf32, #tpu.memory_space<vmem>>, vector<2x32xf32>
    %c0_4 = arith.constant 0 : index
    %c0_5 = arith.constant 0 : index
    %2 = vector.load %arg2[%c0_4, %c0_5] : memref<2x32xf32, #tpu.memory_space<vmem>>, vector<2x32xf32>
    %cst = arith.constant dense<0.000000e+00> : vector<2x32xf32>
    %3 = vector.multi_reduction <add>, %0, %cst [1] : vector<2x36x32xf32> to vector<2x32xf32>
    %cst_6 = arith.constant 3.600000e+01 : f32
    %4 = vector.broadcast %cst_6 : f32 to vector<2x32xf32>
    %5 = arith.divf %3, %4 : vector<2x32xf32>
    %cst_7 = arith.constant dense<0xFF800000> : vector<2x32xf32>
    %6 = vector.multi_reduction <maximumf>, %0, %cst_7 [1] : vector<2x36x32xf32> to vector<2x32xf32>
    %7 = vector.shape_cast %5 : vector<2x32xf32> to vector<2x1x32xf32>
    %8 = vector.shape_cast %1 : vector<2x32xf32> to vector<1x2x32xf32>
    %9 = vector.broadcast %7 : vector<2x1x32xf32> to vector<2x2x32xf32>
    %10 = vector.broadcast %8 : vector<1x2x32xf32> to vector<2x2x32xf32>
    %11 = arith.mulf %9, %10 : vector<2x2x32xf32>
    %cst_8 = arith.constant dense<0.000000e+00> : vector<2x2xf32>
    %12 = vector.multi_reduction <add>, %11, %cst_8 [2] : vector<2x2x32xf32> to vector<2x2xf32>
    %cst_9 = arith.constant 0.000000e+00 : f32
    %13 = vector.broadcast %cst_9 : f32 to vector<2x2xf32>
    %14 = arith.maximumf %12, %13 : vector<2x2xf32>
    %15 = vector.shape_cast %14 : vector<2x2xf32> to vector<2x2x1xf32>
    %16 = vector.shape_cast %2 : vector<2x32xf32> to vector<1x2x32xf32>
    %17 = vector.broadcast %15 : vector<2x2x1xf32> to vector<2x2x32xf32>
    %18 = vector.broadcast %16 : vector<1x2x32xf32> to vector<2x2x32xf32>
    %19 = arith.mulf %17, %18 : vector<2x2x32xf32>
    %cst_10 = arith.constant dense<0.000000e+00> : vector<2x32xf32>
    %20 = vector.multi_reduction <add>, %19, %cst_10 [1] : vector<2x2x32xf32> to vector<2x32xf32>
    %21 = vector.shape_cast %6 : vector<2x32xf32> to vector<2x1x32xf32>
    %22 = vector.shape_cast %1 : vector<2x32xf32> to vector<1x2x32xf32>
    %23 = vector.broadcast %21 : vector<2x1x32xf32> to vector<2x2x32xf32>
    %24 = vector.broadcast %22 : vector<1x2x32xf32> to vector<2x2x32xf32>
    %25 = arith.mulf %23, %24 : vector<2x2x32xf32>
    %cst_11 = arith.constant dense<0.000000e+00> : vector<2x2xf32>
    %26 = vector.multi_reduction <add>, %25, %cst_11 [2] : vector<2x2x32xf32> to vector<2x2xf32>
    %cst_12 = arith.constant 0.000000e+00 : f32
    %27 = vector.broadcast %cst_12 : f32 to vector<2x2xf32>
    %28 = arith.maximumf %26, %27 : vector<2x2xf32>
    %29 = vector.shape_cast %28 : vector<2x2xf32> to vector<2x2x1xf32>
    %30 = vector.shape_cast %2 : vector<2x32xf32> to vector<1x2x32xf32>
    %31 = vector.broadcast %29 : vector<2x2x1xf32> to vector<2x2x32xf32>
    %32 = vector.broadcast %30 : vector<1x2x32xf32> to vector<2x2x32xf32>
    %33 = arith.mulf %31, %32 : vector<2x2x32xf32>
    %cst_13 = arith.constant dense<0.000000e+00> : vector<2x32xf32>
    %34 = vector.multi_reduction <add>, %33, %cst_13 [1] : vector<2x2x32xf32> to vector<2x32xf32>
    %35 = arith.addf %20, %34 : vector<2x32xf32>
    %36 = arith.negf %35 : vector<2x32xf32>
    %37 = math.exp %36 : vector<2x32xf32>
    %cst_14 = arith.constant 1.000000e+00 : f32
    %38 = vector.broadcast %cst_14 : f32 to vector<2x32xf32>
    %39 = arith.addf %38, %37 : vector<2x32xf32>
    %40 = arith.divf %38, %39 : vector<2x32xf32>
    %41 = vector.shape_cast %40 : vector<2x32xf32> to vector<2x1x32xf32>
    %42 = vector.broadcast %41 : vector<2x1x32xf32> to vector<2x36x32xf32>
    %43 = arith.mulf %0, %42 : vector<2x36x32xf32>
    %cst_15 = arith.constant dense<0.000000e+00> : vector<2x36xf32>
    %44 = vector.multi_reduction <add>, %43, %cst_15 [2] : vector<2x36x32xf32> to vector<2x36xf32>
    %cst_16 = arith.constant 3.200000e+01 : f32
    %45 = vector.broadcast %cst_16 : f32 to vector<2x36xf32>
    %46 = arith.divf %44, %45 : vector<2x36xf32>
    %cst_17 = arith.constant dense<0xFF800000> : vector<2x36xf32>
    %47 = vector.multi_reduction <maximumf>, %43, %cst_17 [2] : vector<2x36x32xf32> to vector<2x36xf32>
    %c0_18 = arith.constant 0 : index
    %c0_19 = arith.constant 0 : index
    %48 = vector.load %arg3[%c0_18, %c0_19] : memref<36x36xf32, #tpu.memory_space<vmem>>, vector<36x36xf32>
    %cst_20 = arith.constant dense<0.000000e+00> : vector<2x36xf32>
    %49 = tpu.matmul %46, %48, %cst_20 {dimension_numbers = #tpu.dot_dimension_numbers<[1], [0], [0], [1], [0, 0, 1, 1], [], []>} : vector<2x36xf32>, vector<36x36xf32>, vector<2x36xf32> -> vector<2x36xf32>
    %c0_21 = arith.constant 0 : index
    %c0_22 = arith.constant 0 : index
    %50 = vector.load %arg4[%c0_21, %c0_22] : memref<36x36xf32, #tpu.memory_space<vmem>>, vector<36x36xf32>
    %cst_23 = arith.constant dense<0.000000e+00> : vector<2x36xf32>
    %51 = tpu.matmul %47, %50, %cst_23 {dimension_numbers = #tpu.dot_dimension_numbers<[1], [0], [0], [1], [0, 0, 1, 1], [], []>} : vector<2x36xf32>, vector<36x36xf32>, vector<2x36xf32> -> vector<2x36xf32>
    %52 = arith.addf %49, %51 : vector<2x36xf32>
    %53 = arith.negf %52 : vector<2x36xf32>
    %54 = math.exp %53 : vector<2x36xf32>
    %cst_24 = arith.constant 1.000000e+00 : f32
    %55 = vector.broadcast %cst_24 : f32 to vector<2x36xf32>
    %56 = arith.addf %55, %54 : vector<2x36xf32>
    %57 = arith.divf %55, %56 : vector<2x36xf32>
    %58 = vector.shape_cast %57 : vector<2x36xf32> to vector<2x36x1xf32>
    %59 = vector.broadcast %58 : vector<2x36x1xf32> to vector<2x36x32xf32>
    %60 = arith.mulf %43, %59 : vector<2x36x32xf32>
    %c0_25 = arith.constant 0 : index
    %c0_26 = arith.constant 0 : index
    %c0_27 = arith.constant 0 : index
    %61 = vector.load %arg5[%c0_25, %c0_26, %c0_27] : memref<2x36x32xf32, #tpu.memory_space<vmem>>, vector<2x36x32xf32>
    tpu.vector_store %arg5[%c0_25, %c0_26, %c0_27], %60 {strides = array<i32>} : memref<2x36x32xf32, #tpu.memory_space<vmem>>, vector<2x36x32xf32>,
    return
  }
}

module attributes {stable_mosaic.version = 11 : i64} {
  func.func @_mlp_head_kernel(%arg0: memref<2x1152xf32, #tpu.memory_space<vmem>>, %arg1: memref<1152x512xf32, #tpu.memory_space<vmem>>, %arg2: memref<1x512xf32, #tpu.memory_space<vmem>>, %arg3: memref<512x6xf32, #tpu.memory_space<vmem>>, %arg4: memref<1x6xf32, #tpu.memory_space<vmem>>, %arg5: memref<2x6xf32, #tpu.memory_space<vmem>>) attributes {dimension_semantics = [], scalar_prefetch = 0 : i64, scratch_operands = 0 : i64, tpu.core_type = #tpu.core_type<tc>} {
    %c0 = arith.constant 0 : index
    %c0_0 = arith.constant 0 : index
    %0 = vector.load %arg0[%c0, %c0_0] : memref<2x1152xf32, #tpu.memory_space<vmem>>, vector<2x1152xf32>
    %c0_1 = arith.constant 0 : index
    %c0_2 = arith.constant 0 : index
    %1 = vector.load %arg1[%c0_1, %c0_2] : memref<1152x512xf32, #tpu.memory_space<vmem>>, vector<1152x512xf32>
    %cst = arith.constant dense<0.000000e+00> : vector<2x512xf32>
    %2 = tpu.matmul %0, %1, %cst {dimension_numbers = #tpu.dot_dimension_numbers<[1], [0], [0], [1], [0, 0, 1, 1], [], []>} : vector<2x1152xf32>, vector<1152x512xf32>, vector<2x512xf32> -> vector<2x512xf32>
    %c0_3 = arith.constant 0 : index
    %c0_4 = arith.constant 0 : index
    %3 = vector.load %arg2[%c0_3, %c0_4] : memref<1x512xf32, #tpu.memory_space<vmem>>, vector<1x512xf32>
    %4 = vector.broadcast %3 : vector<1x512xf32> to vector<2x512xf32>
    %5 = arith.addf %2, %4 : vector<2x512xf32>
    %cst_5 = arith.constant 0.000000e+00 : f32
    %6 = vector.broadcast %cst_5 : f32 to vector<2x512xf32>
    %7 = arith.maximumf %5, %6 : vector<2x512xf32>
    %c0_6 = arith.constant 0 : index
    %c0_7 = arith.constant 0 : index
    %8 = vector.load %arg3[%c0_6, %c0_7] : memref<512x6xf32, #tpu.memory_space<vmem>>, vector<512x6xf32>
    %cst_8 = arith.constant dense<0.000000e+00> : vector<2x6xf32>
    %9 = tpu.matmul %7, %8, %cst_8 {dimension_numbers = #tpu.dot_dimension_numbers<[1], [0], [0], [1], [0, 0, 1, 1], [], []>} : vector<2x512xf32>, vector<512x6xf32>, vector<2x6xf32> -> vector<2x6xf32>
    %c0_9 = arith.constant 0 : index
    %c0_10 = arith.constant 0 : index
    %10 = vector.load %arg4[%c0_9, %c0_10] : memref<1x6xf32, #tpu.memory_space<vmem>>, vector<1x6xf32>
    %11 = vector.broadcast %10 : vector<1x6xf32> to vector<2x6xf32>
    %12 = arith.addf %9, %11 : vector<2x6xf32>
    %c0_11 = arith.constant 0 : index
    %c0_12 = arith.constant 0 : index
    %13 = vector.load %arg5[%c0_11, %c0_12] : memref<2x6xf32, #tpu.memory_space<vmem>>, vector<2x6xf32>
    tpu.vector_store %arg5[%c0_11, %c0_12], %12 {strides = array<i32>} : memref<2x6xf32, #tpu.memory_space<vmem>>, vector<2x6xf32>,
    return
  }
}

</mosaic_0001>

<bundles_post_ra>
// kernel: _lambda_.6
= control target key start
LH: loop header
LB: loop body
LE: loop exit
PB: predicated region body
PF: predicated region fallthrough
CT: control target
= control target key end

     0   :  { %s966_s12 = smov 0   ;;  %s1334_s0 = inlined_call_operand.vmem [shape: f32[3584,36], index: 0, kind: input, shape index: {}]   ;;  %s1335_s1 = inlined_call_operand.vmem [shape: f32[36,32], index: 1, kind: input, shape index: {}]   ;;  %s1336_s2 = inlined_call_operand.vmem [shape: f32[1,32], index: 2, kind: input, shape index: {}]   ;;  %s1337_s3 = inlined_call_operand.vmem [shape: f32[3584,32], index: 3, kind: output, shape index: {}]  }
   0x1 LB: > { %s838_s13 = sadd.s32 4294967295, %s944_s12   ;;  %p842_p0 = scmp.ge.s32.totalorder %s944_s12, 1  ;;  %s944_s12 = sphi %s966_s12, %s13_s12  }
   0x2   : > { %p138_p1 = scmp.lt.s32.totalorder %s944_s12, 8 }
   0x4   : > { %p139_p2 = pnand %p842_p0, %p138_p1 }
   0x5   : > { %s843_s18 = sshll.u32 (!%p139_p2), %s838_s13, 6 }
   0x6   : > { %142 = sbr.rel (%p139_p2) target bundleno = 279 (0x117), region = 32  ;;  %p163_p3 = scmp.lt.s32.totalorder (!%p139_p2), %s843_s18, 447 }
   0xb   : > { %v242_v0 = vld [vmem:[%s1335_s1 + $0x20] sm:$0xf]  ;;  %vm440_vm0 = vcmask 1043456   ;;  %v241_v1 = vld [vmem:[%s1335_s1 + $0x18] sm:$0xff]  ;;  %v240_v2 = vld [vmem:[%s1335_s1 + $0x10] sm:$0xff]  ;;  %s1339_s18 = smov (!%p163_p3, %s843_s18), 447 }
   0xc   : > { %915 = vmatpush.msk.msra.mxu2 %vm440_vm0, %v242_v0  ;;  %916 = vmatpush.msk.msra.mxu3 %vm440_vm0, %v242_v0  ;;  %v239_v3 = vld [vmem:[%s1335_s1 + $0x8] sm:$0xff]  ;;  %s844_s23 = sshll.u32 %s1339_s18, 3  ;;  %v238_v4 = vld [vmem:[%s1335_s1] sm:$0xff]  ;;  %vm247_vm1 = vcmask 293888   ;;  %vm717_vm2 = vcmask 261120  }
   0xd   : > { %847 = vmatpush.msk.msra.mxu0 %vm440_vm0, %v242_v0  ;;  %914 = vmatpush.msk.msra.mxu1 %vm440_vm0, %v242_v0  ;;  %s997_s28 = scalar_lea.vmem %s1334_s0, %s844_s23  ;;  %s1139_s6 = scalar_lea.vmem %s1337_s3, %s844_s23 }
   0xe   : > { %918 = vmatpush.msra.mxu2 %v241_v1  ;;  %919 = vmatpush.msra.mxu3 %v241_v1  ;;  %v206_v5 = vld [vmem:[%s997_s28 + $0x100] sm:$0xff]  ;;  %v207_v9 = vld [vmem:[%s997_s28 + $0x108] sm:$0xff]  ;;  %v208_v13 = vld [vmem:[%s997_s28 + $0x110] sm:$0xff] }
   0xf   : > { %456 = vmatpush.msra.mxu0 %v241_v1  ;;  %917 = vmatpush.msra.mxu1 %v241_v1  ;;  %v222_v6 = vld [vmem:[%s997_s28 + $0x180] sm:$0xff]  ;;  %v223_v10 = vld [vmem:[%s997_s28 + $0x188] sm:$0xff]  ;;  %v224_v14 = vld [vmem:[%s997_s28 + $0x190] sm:$0xff] }
  0x10   : > { %921 = vmatpush.msra.mxu2 %v240_v2  ;;  %922 = vmatpush.msra.mxu3 %v240_v2  ;;  %v174_v7 = vld [vmem:[%s997_s28] sm:$0xff]  ;;  %v175_v11 = vld [vmem:[%s997_s28 + $0x8] sm:$0xff]  ;;  %v176_v15 = vld [vmem:[%s997_s28 + $0x10] sm:$0xff] }
  0x11   : > { %457 = vmatpush.msra.mxu0 %v240_v2  ;;  %920 = vmatpush.msra.mxu1 %v240_v2  ;;  %v190_v8 = vld [vmem:[%s997_s28 + $0x80] sm:$0xff]  ;;  %v191_v12 = vld [vmem:[%s997_s28 + $0x88] sm:$0xff]  ;;  %v192_v16 = vld [vmem:[%s997_s28 + $0x90] sm:$0xff] }
  0x12   : > { %924 = vmatpush.msra.mxu2 %v239_v3  ;;  %925 = vmatpush.msra.mxu3 %v239_v3  ;;  %v209_v17 = vld [vmem:[%s997_s28 + $0x118] sm:$0xff]  ;;  %v210_v21 = vld [vmem:[%s997_s28 + $0x120] sm:$0xff]  ;;  %v211_v25 = vld [vmem:[%s997_s28 + $0x128] sm:$0xff] }
  0x13   : > { %458 = vmatpush.msra.mxu0 %v239_v3  ;;  %923 = vmatpush.msra.mxu1 %v239_v3  ;;  %v225_v18 = vld [vmem:[%s997_s28 + $0x198] sm:$0xff]  ;;  %v226_v22 = vld [vmem:[%s997_s28 + $0x1a0] sm:$0xff]  ;;  %v227_v26 = vld [vmem:[%s997_s28 + $0x1a8] sm:$0xff] }
  0x14   : > { %927 = vmatpush.msra.mxu2 %v238_v4  ;;  %928 = vmatpush.msra.mxu3 %v238_v4  ;;  %v177_v19 = vld [vmem:[%s997_s28 + $0x18] sm:$0xff]  ;;  %v178_v23 = vld [vmem:[%s997_s28 + $0x20] sm:$0xff]  ;;  %v179_v27 = vld [vmem:[%s997_s28 + $0x28] sm:$0xff] }
  0x15   : > { %880 = vmatmul.msk.f32.vlgmr.msra.gmra.mxu2 %vm247_vm1, %v206_v5  ;;  %896 = vmatmul.msk.f32.vlgmr.msra.gmra.mxu3 %vm247_vm1, %v222_v6  ;;  %v193_v20 = vld [vmem:[%s997_s28 + $0x98] sm:$0xff]  ;;  %v194_v24 = vld [vmem:[%s997_s28 + $0xa0] sm:$0xff]  ;;  %v195_v28 = vld [vmem:[%s997_s28 + $0xa8] sm:$0xff] }
  0x16   : > { %459 = vmatpush.msra.mxu0 %v238_v4  ;;  %926 = vmatpush.msra.mxu1 %v238_v4  ;;  %v212_v29 = vld [vmem:[%s997_s28 + $0x130] sm:$0xff]  ;;  %v213_v33 = vld [vmem:[%s997_s28 + $0x138] sm:$0xff]  ;;  %v214_v37 = vld [vmem:[%s997_s28 + $0x140] sm:$0xff] }
  0x17   : > { %848 = vmatmul.msk.f32.vlgmr.msra.gmra.mxu0 %vm247_vm1, %v174_v7  ;;  %864 = vmatmul.msk.f32.vlgmr.msra.gmra.mxu1 %vm247_vm1, %v190_v8  ;;  %v228_v30 = vld [vmem:[%s997_s28 + $0x1b0] sm:$0xff]  ;;  %v229_v34 = vld [vmem:[%s997_s28 + $0x1b8] sm:$0xff]  ;;  %v230_v38 = vld [vmem:[%s997_s28 + $0x1c0] sm:$0xff] }
  0x18   : > { %v180_v31 = vld [vmem:[%s997_s28 + $0x30] sm:$0xff]  ;;  %v181_v35 = vld [vmem:[%s997_s28 + $0x38] sm:$0xff]  ;;  %v182_v39 = vld [vmem:[%s997_s28 + $0x40] sm:$0xff] }
  0x19   : > { %v196_v32 = vld [vmem:[%s997_s28 + $0xb0] sm:$0xff]  ;;  %v197_v36 = vld [vmem:[%s997_s28 + $0xb8] sm:$0xff]  ;;  %v198_v40 = vld [vmem:[%s997_s28 + $0xc0] sm:$0xff] }
  0x1a   : > { %v215_v41 = vld [vmem:[%s997_s28 + $0x148] sm:$0xff]  ;;  %v216_v45 = vld [vmem:[%s997_s28 + $0x150] sm:$0xff]  ;;  %v217_v49 = vld [vmem:[%s997_s28 + $0x158] sm:$0xff] }
  0x1b   : > { %v231_v42 = vld [vmem:[%s997_s28 + $0x1c8] sm:$0xff]  ;;  %v232_v46 = vld [vmem:[%s997_s28 + $0x1d0] sm:$0xff]  ;;  %v233_v50 = vld [vmem:[%s997_s28 + $0x1d8] sm:$0xff] }
  0x1c   : > { %v183_v43 = vld [vmem:[%s997_s28 + $0x48] sm:$0xff]  ;;  %v184_v47 = vld [vmem:[%s997_s28 + $0x50] sm:$0xff]  ;;  %v185_v51 = vld [vmem:[%s997_s28 + $0x58] sm:$0xff] }
  0x1d   : > { %881 = vmatmul.msk.f32.gmra.mxu2 %vm247_vm1, %v207_v9  ;;  %897 = vmatmul.msk.f32.gmra.mxu3 %vm247_vm1, %v223_v10  ;;  %v199_v44 = vld [vmem:[%s997_s28 + $0xc8] sm:$0xff]  ;;  %v200_v48 = vld [vmem:[%s997_s28 + $0xd0] sm:$0xff]  ;;  %v201_v52 = vld [vmem:[%s997_s28 + $0xd8] sm:$0xff] }
  0x1e   : > { %v218_v53 = vld [vmem:[%s997_s28 + $0x160] sm:$0xff]  ;;  %v219_v57 = vld [vmem:[%s997_s28 + $0x168] sm:$0xff]  ;;  %v220_v61 = vld [vmem:[%s997_s28 + $0x170] sm:$0xff] }
  0x1f   : > { %849 = vmatmul.msk.f32.gmra.mxu0 %vm247_vm1, %v175_v11  ;;  %865 = vmatmul.msk.f32.gmra.mxu1 %vm247_vm1, %v191_v12  ;;  %v234_v54 = vld [vmem:[%s997_s28 + $0x1e0] sm:$0xff]  ;;  %v235_v58 = vld [vmem:[%s997_s28 + $0x1e8] sm:$0xff]  ;;  %v236_v62 = vld [vmem:[%s997_s28 + $0x1f0] sm:$0xff] }
  0x20   : > { %v186_v55 = vld [vmem:[%s997_s28 + $0x60] sm:$0xff]  ;;  %v187_v59 = vld [vmem:[%s997_s28 + $0x68] sm:$0xff]  ;;  %v188_v63 = vld [vmem:[%s997_s28 + $0x70] sm:$0xff] }
  0x21   : > { %v202_v56 = vld [vmem:[%s997_s28 + $0xe0] sm:$0xff]  ;;  %v203_v60 = vld [vmem:[%s997_s28 + $0xe8] sm:$0xff]  ;;  %v204_v0 = vld [vmem:[%s997_s28 + $0xf0] sm:$0xff] }
  0x22   : > { %v221_v1 = vld [vmem:[%s997_s28 + $0x178] sm:$0xff]  ;;  %v1130_v5 = vld [vmem:[%s1336_s2] ss:$0 sm:$0xff] }
  0x23   : > { %v237_v2 = vld [vmem:[%s997_s28 + $0x1f8] sm:$0xff] }
  0x24   : > { %v189_v3 = vld [vmem:[%s997_s28 + $0x78] sm:$0xff] }
  0x25   : > { %882 = vmatmul.msk.f32.gmra.mxu2 %vm247_vm1, %v208_v13  ;;  %898 = vmatmul.msk.f32.gmra.mxu3 %vm247_vm1, %v224_v14  ;;  %v205_v4 = vld [vmem:[%s997_s28 + $0xf8] sm:$0xff] }
  0x27   : > { %850 = vmatmul.msk.f32.gmra.mxu0 %vm247_vm1, %v176_v15  ;;  %866 = vmatmul.msk.f32.gmra.mxu1 %vm247_vm1, %v192_v16 }
  0x2d   : > { %883 = vmatmul.msk.f32.gmra.mxu2 %vm247_vm1, %v209_v17  ;;  %899 = vmatmul.msk.f32.gmra.mxu3 %vm247_vm1, %v225_v18 }
  0x2f   : > { %851 = vmatmul.msk.f32.gmra.mxu0 %vm247_vm1, %v177_v19  ;;  %867 = vmatmul.msk.f32.gmra.mxu1 %vm247_vm1, %v193_v20 }
  0x35   : > { %884 = vmatmul.msk.f32.gmra.mxu2 %vm247_vm1, %v210_v21  ;;  %900 = vmatmul.msk.f32.gmra.mxu3 %vm247_vm1, %v226_v22 }
  0x37   : > { %852 = vmatmul.msk.f32.gmra.mxu0 %vm247_vm1, %v178_v23  ;;  %868 = vmatmul.msk.f32.gmra.mxu1 %vm247_vm1, %v194_v24 }
  0x3d   : > { %885 = vmatmul.msk.f32.gmra.mxu2 %vm247_vm1, %v211_v25  ;;  %901 = vmatmul.msk.f32.gmra.mxu3 %vm247_vm1, %v227_v26 }
  0x3f   : > { %853 = vmatmul.msk.f32.gmra.mxu0 %vm247_vm1, %v179_v27  ;;  %869 = vmatmul.msk.f32.gmra.mxu1 %vm247_vm1, %v195_v28 }
  0x45   : > { %886 = vmatmul.msk.f32.gmra.mxu2 %vm247_vm1, %v212_v29  ;;  %902 = vmatmul.msk.f32.gmra.mxu3 %vm247_vm1, %v228_v30 }
  0x47   : > { %854 = vmatmul.msk.f32.gmra.mxu0 %vm247_vm1, %v180_v31  ;;  %870 = vmatmul.msk.f32.gmra.mxu1 %vm247_vm1, %v196_v32 }
  0x4d   : > { %887 = vmatmul.msk.f32.gmra.mxu2 %vm247_vm1, %v213_v33  ;;  %903 = vmatmul.msk.f32.gmra.mxu3 %vm247_vm1, %v229_v34 }
  0x4f   : > { %855 = vmatmul.msk.f32.gmra.mxu0 %vm247_vm1, %v181_v35  ;;  %871 = vmatmul.msk.f32.gmra.mxu1 %vm247_vm1, %v197_v36 }
  0x55   : > { %888 = vmatmul.msk.f32.gmra.mxu2 %vm247_vm1, %v214_v37  ;;  %904 = vmatmul.msk.f32.gmra.mxu3 %vm247_vm1, %v230_v38 }
  0x57   : > { %856 = vmatmul.msk.f32.gmra.mxu0 %vm247_vm1, %v182_v39  ;;  %872 = vmatmul.msk.f32.gmra.mxu1 %vm247_vm1, %v198_v40 }
  0x5d   : > { %889 = vmatmul.msk.f32.gmra.mxu2 %vm247_vm1, %v215_v41  ;;  %905 = vmatmul.msk.f32.gmra.mxu3 %vm247_vm1, %v231_v42 }
  0x5f   : > { %857 = vmatmul.msk.f32.gmra.mxu0 %vm247_vm1, %v183_v43  ;;  %873 = vmatmul.msk.f32.gmra.mxu1 %vm247_vm1, %v199_v44 }
  0x65   : > { %890 = vmatmul.msk.f32.gmra.mxu2 %vm247_vm1, %v216_v45  ;;  %906 = vmatmul.msk.f32.gmra.mxu3 %vm247_vm1, %v232_v46 }
  0x67   : > { %858 = vmatmul.msk.f32.gmra.mxu0 %vm247_vm1, %v184_v47  ;;  %874 = vmatmul.msk.f32.gmra.mxu1 %vm247_vm1, %v200_v48 }
  0x6d   : > { %891 = vmatmul.msk.f32.gmra.mxu2 %vm247_vm1, %v217_v49  ;;  %907 = vmatmul.msk.f32.gmra.mxu3 %vm247_vm1, %v233_v50 }
  0x6f   : > { %859 = vmatmul.msk.f32.gmra.mxu0 %vm247_vm1, %v185_v51  ;;  %875 = vmatmul.msk.f32.gmra.mxu1 %vm247_vm1, %v201_v52 }
  0x75   : > { %892 = vmatmul.msk.f32.gmra.mxu2 %vm247_vm1, %v218_v53  ;;  %908 = vmatmul.msk.f32.gmra.mxu3 %vm247_vm1, %v234_v54 }
  0x77   : > { %860 = vmatmul.msk.f32.gmra.mxu0 %vm247_vm1, %v186_v55  ;;  %876 = vmatmul.msk.f32.gmra.mxu1 %vm247_vm1, %v202_v56 }
  0x7d   : > { %893 = vmatmul.msk.f32.gmra.mxu2 %vm247_vm1, %v219_v57  ;;  %909 = vmatmul.msk.f32.gmra.mxu3 %vm247_vm1, %v235_v58 }
  0x7f   : > { %861 = vmatmul.msk.f32.gmra.mxu0 %vm247_vm1, %v187_v59  ;;  %877 = vmatmul.msk.f32.gmra.mxu1 %vm247_vm1, %v203_v60 }
  0x85   : > { %894 = vmatmul.msk.f32.gmra.mxu2 %vm247_vm1, %v220_v61  ;;  %910 = vmatmul.msk.f32.gmra.mxu3 %vm247_vm1, %v236_v62 }
  0x87   : > { %862 = vmatmul.msk.f32.gmra.mxu0 %vm247_vm1, %v188_v63  ;;  %878 = vmatmul.msk.f32.gmra.mxu1 %vm247_vm1, %v204_v0 }
  0x8d   : > { %895 = vmatmul.msk.f32.gmra.mxu2 %vm247_vm1, %v221_v1  ;;  %911 = vmatmul.msk.f32.gmra.mxu3 %vm247_vm1, %v237_v2 }
  0x8f   : > { %863 = vmatmul.msk.f32.gmra.mxu0 %vm247_vm1, %v189_v3  ;;  %879 = vmatmul.msk.f32.gmra.mxu1 %vm247_vm1, %v205_v4 }
  0x94   : > { %v461_v6 = vpop.f32.mrf.mxu0  ;;  %v509_v7 = vpop.f32.mrf.mxu1 }
  0x95   : > { %v462_v8 = vadd.f32 %v1130_v5, %v461_v6  ;;  %v510_v9 = vadd.f32 %v1130_v5, %v509_v7 }
  0x97   : > { %v653_v10 = vmax.f32 %v462_v8, 0.0  ;;  %v669_v11 = vmax.f32 %v510_v9, 0.0 }
  0x98   : > { %v557_v12 = vpop.f32.mrf.mxu2  ;;  %v605_v13 = vpop.f32.mrf.mxu3 }
  0x99   : > { %718 = vst.msk [vmem:[%s1139_s6] sm:$0xff] %vm717_vm2, %v653_v10  ;;  %v558_v14 = vadd.f32 %v1130_v5, %v557_v12  ;;  %v606_v15 = vadd.f32 %v1130_v5, %v605_v13 }
  0x9a   : > { %734 = vst.msk [vmem:[%s1139_s6 + $0x80] sm:$0xff] %vm717_vm2, %v669_v11 }
  0x9b   : > { %v685_v16 = vmax.f32 %v558_v14, 0.0  ;;  %v701_v17 = vmax.f32 %v606_v15, 0.0 }
  0x9c   : > { %v464_v18 = vpop.f32.mrf.mxu0  ;;  %v512_v19 = vpop.f32.mrf.mxu1 }
  0x9d   : > { %750 = vst.msk [vmem:[%s1139_s6 + $0x100] sm:$0xff] %vm717_vm2, %v685_v16  ;;  %v465_v20 = vadd.f32 %v1130_v5, %v464_v18  ;;  %v513_v21 = vadd.f32 %v1130_v5, %v512_v19 }
  0x9e   : > { %766 = vst.msk [vmem:[%s1139_s6 + $0x180] sm:$0xff] %vm717_vm2, %v701_v17 }
  0x9f   : > { %v654_v22 = vmax.f32 %v465_v20, 0.0  ;;  %v670_v23 = vmax.f32 %v513_v21, 0.0 }
  0xa0   : > { %v560_v24 = vpop.f32.mrf.mxu2  ;;  %v608_v25 = vpop.f32.mrf.mxu3 }
  0xa1   : > { %719 = vst.msk [vmem:[%s1139_s6 + $0x8] sm:$0xff] %vm717_vm2, %v654_v22  ;;  %v561_v26 = vadd.f32 %v1130_v5, %v560_v24  ;;  %v609_v27 = vadd.f32 %v1130_v5, %v608_v25 }
  0xa2   : > { %735 = vst.msk [vmem:[%s1139_s6 + $0x88] sm:$0xff] %vm717_vm2, %v670_v23 }
  0xa3   : > { %v686_v28 = vmax.f32 %v561_v26, 0.0  ;;  %v702_v29 = vmax.f32 %v609_v27, 0.0 }
  0xa4   : > { %v467_v30 = vpop.f32.mrf.mxu0  ;;  %v515_v31 = vpop.f32.mrf.mxu1 }
  0xa5   : > { %751 = vst.msk [vmem:[%s1139_s6 + $0x108] sm:$0xff] %vm717_vm2, %v686_v28  ;;  %v468_v32 = vadd.f32 %v1130_v5, %v467_v30  ;;  %v516_v33 = vadd.f32 %v1130_v5, %v515_v31 }
  0xa6   : > { %767 = vst.msk [vmem:[%s1139_s6 + $0x188] sm:$0xff] %vm717_vm2, %v702_v29 }
  0xa7   : > { %v655_v34 = vmax.f32 %v468_v32, 0.0  ;;  %v671_v35 = vmax.f32 %v516_v33, 0.0 }
  0xa8   : > { %v563_v36 = vpop.f32.mrf.mxu2  ;;  %v611_v37 = vpop.f32.mrf.mxu3 }
  0xa9   : > { %720 = vst.msk [vmem:[%s1139_s6 + $0x10] sm:$0xff] %vm717_vm2, %v655_v34  ;;  %v564_v38 = vadd.f32 %v1130_v5, %v563_v36  ;;  %v612_v39 = vadd.f32 %v1130_v5, %v611_v37 }
  0xaa   : > { %736 = vst.msk [vmem:[%s1139_s6 + $0x90] sm:$0xff] %vm717_vm2, %v671_v35 }
  0xab   : > { %v687_v40 = vmax.f32 %v564_v38, 0.0  ;;  %v703_v41 = vmax.f32 %v612_v39, 0.0 }
  0xac   : > { %v470_v42 = vpop.f32.mrf.mxu0  ;;  %v518_v43 = vpop.f32.mrf.mxu1 }
  0xad   : > { %752 = vst.msk [vmem:[%s1139_s6 + $0x110] sm:$0xff] %vm717_vm2, %v687_v40  ;;  %v471_v44 = vadd.f32 %v1130_v5, %v470_v42  ;;  %v519_v45 = vadd.f32 %v1130_v5, %v518_v43 }
  0xae   : > { %768 = vst.msk [vmem:[%s1139_s6 + $0x190] sm:$0xff] %vm717_vm2, %v703_v41 }
  0xaf   : > { %v656_v46 = vmax.f32 %v471_v44, 0.0  ;;  %v672_v47 = vmax.f32 %v519_v45, 0.0 }
  0xb0   : > { %v566_v48 = vpop.f32.mrf.mxu2  ;;  %v614_v49 = vpop.f32.mrf.mxu3 }
  0xb1   : > { %721 = vst.msk [vmem:[%s1139_s6 + $0x18] sm:$0xff] %vm717_vm2, %v656_v46  ;;  %v567_v50 = vadd.f32 %v1130_v5, %v566_v48  ;;  %v615_v51 = vadd.f32 %v1130_v5, %v614_v49 }
  0xb2   : > { %737 = vst.msk [vmem:[%s1139_s6 + $0x98] sm:$0xff] %vm717_vm2, %v672_v47 }
  0xb3   : > { %v688_v52 = vmax.f32 %v567_v50, 0.0  ;;  %v704_v53 = vmax.f32 %v615_v51, 0.0 }
  0xb4   : > { %v473_v54 = vpop.f32.mrf.mxu0  ;;  %v521_v55 = vpop.f32.mrf.mxu1 }
  0xb5   : > { %753 = vst.msk [vmem:[%s1139_s6 + $0x118] sm:$0xff] %vm717_vm2, %v688_v52  ;;  %v474_v56 = vadd.f32 %v1130_v5, %v473_v54  ;;  %v522_v57 = vadd.f32 %v1130_v5, %v521_v55 }
  0xb6   : > { %769 = vst.msk [vmem:[%s1139_s6 + $0x198] sm:$0xff] %vm717_vm2, %v704_v53 }
  0xb7   : > { %v657_v58 = vmax.f32 %v474_v56, 0.0  ;;  %v673_v59 = vmax.f32 %v522_v57, 0.0 }
  0xb8   : > { %v569_v60 = vpop.f32.mrf.mxu2  ;;  %v617_v61 = vpop.f32.mrf.mxu3 }
  0xb9   : > { %722 = vst.msk [vmem:[%s1139_s6 + $0x20] sm:$0xff] %vm717_vm2, %v657_v58  ;;  %v570_v62 = vadd.f32 %v1130_v5, %v569_v60  ;;  %v618_v63 = vadd.f32 %v1130_v5, %v617_v61 }
  0xba   : > { %738 = vst.msk [vmem:[%s1139_s6 + $0xa0] sm:$0xff] %vm717_vm2, %v673_v59 }
  0xbb   : > { %v689_v0 = vmax.f32 %v570_v62, 0.0  ;;  %v705_v1 = vmax.f32 %v618_v63, 0.0 }
  0xbc   : > { %v476_v2 = vpop.f32.mrf.mxu0  ;;  %v524_v3 = vpop.f32.mrf.mxu1 }
  0xbd   : > { %754 = vst.msk [vmem:[%s1139_s6 + $0x120] sm:$0xff] %vm717_vm2, %v689_v0  ;;  %v477_v4 = vadd.f32 %v1130_v5, %v476_v2  ;;  %v525_v6 = vadd.f32 %v1130_v5, %v524_v3 }
  0xbe   : > { %770 = vst.msk [vmem:[%s1139_s6 + $0x1a0] sm:$0xff] %vm717_vm2, %v705_v1 }
  0xbf   : > { %v658_v7 = vmax.f32 %v477_v4, 0.0  ;;  %v674_v8 = vmax.f32 %v525_v6, 0.0 }
  0xc0   : > { %v572_v9 = vpop.f32.mrf.mxu2  ;;  %v620_v10 = vpop.f32.mrf.mxu3 }
  0xc1   : > { %723 = vst.msk [vmem:[%s1139_s6 + $0x28] sm:$0xff] %vm717_vm2, %v658_v7  ;;  %v573_v11 = vadd.f32 %v1130_v5, %v572_v9  ;;  %v621_v12 = vadd.f32 %v1130_v5, %v620_v10 }
  0xc2   : > { %739 = vst.msk [vmem:[%s1139_s6 + $0xa8] sm:$0xff] %vm717_vm2, %v674_v8 }
  0xc3   : > { %v690_v13 = vmax.f32 %v573_v11, 0.0  ;;  %v706_v14 = vmax.f32 %v621_v12, 0.0 }
  0xc4   : > { %v479_v15 = vpop.f32.mrf.mxu0  ;;  %v527_v16 = vpop.f32.mrf.mxu1 }
  0xc5   : > { %755 = vst.msk [vmem:[%s1139_s6 + $0x128] sm:$0xff] %vm717_vm2, %v690_v13  ;;  %v480_v17 = vadd.f32 %v1130_v5, %v479_v15  ;;  %v528_v18 = vadd.f32 %v1130_v5, %v527_v16 }
  0xc6   : > { %771 = vst.msk [vmem:[%s1139_s6 + $0x1a8] sm:$0xff] %vm717_vm2, %v706_v14 }
  0xc7   : > { %v659_v19 = vmax.f32 %v480_v17, 0.0  ;;  %v675_v20 = vmax.f32 %v528_v18, 0.0 }
  0xc8   : > { %v575_v21 = vpop.f32.mrf.mxu2  ;;  %v623_v22 = vpop.f32.mrf.mxu3 }
  0xc9   : > { %724 = vst.msk [vmem:[%s1139_s6 + $0x30] sm:$0xff] %vm717_vm2, %v659_v19  ;;  %v576_v23 = vadd.f32 %v1130_v5, %v575_v21  ;;  %v624_v24 = vadd.f32 %v1130_v5, %v623_v22 }
  0xca   : > { %740 = vst.msk [vmem:[%s1139_s6 + $0xb0] sm:$0xff] %vm717_vm2, %v675_v20 }
  0xcb   : > { %v691_v25 = vmax.f32 %v576_v23, 0.0  ;;  %v707_v26 = vmax.f32 %v624_v24, 0.0 }
  0xcc   : > { %v482_v27 = vpop.f32.mrf.mxu0  ;;  %v530_v28 = vpop.f32.mrf.mxu1 }
  0xcd   : > { %756 = vst.msk [vmem:[%s1139_s6 + $0x130] sm:$0xff] %vm717_vm2, %v691_v25  ;;  %v483_v29 = vadd.f32 %v1130_v5, %v482_v27  ;;  %v531_v30 = vadd.f32 %v1130_v5, %v530_v28 }
  0xce   : > { %772 = vst.msk [vmem:[%s1139_s6 + $0x1b0] sm:$0xff] %vm717_vm2, %v707_v26 }
  0xcf   : > { %v660_v31 = vmax.f32 %v483_v29, 0.0  ;;  %v676_v32 = vmax.f32 %v531_v30, 0.0 }
  0xd0   : > { %v578_v33 = vpop.f32.mrf.mxu2  ;;  %v626_v34 = vpop.f32.mrf.mxu3 }
  0xd1   : > { %725 = vst.msk [vmem:[%s1139_s6 + $0x38] sm:$0xff] %vm717_vm2, %v660_v31  ;;  %v579_v35 = vadd.f32 %v1130_v5, %v578_v33  ;;  %v627_v36 = vadd.f32 %v1130_v5, %v626_v34 }
  0xd2   : > { %741 = vst.msk [vmem:[%s1139_s6 + $0xb8] sm:$0xff] %vm717_vm2, %v676_v32 }
  0xd3   : > { %v692_v37 = vmax.f32 %v579_v35, 0.0  ;;  %v708_v38 = vmax.f32 %v627_v36, 0.0 }
  0xd4   : > { %v485_v39 = vpop.f32.mrf.mxu0  ;;  %v533_v40 = vpop.f32.mrf.mxu1 }
  0xd5   : > { %757 = vst.msk [vmem:[%s1139_s6 + $0x138] sm:$0xff] %vm717_vm2, %v692_v37  ;;  %v486_v41 = vadd.f32 %v1130_v5, %v485_v39  ;;  %v534_v42 = vadd.f32 %v1130_v5, %v533_v40 }
  0xd6   : > { %773 = vst.msk [vmem:[%s1139_s6 + $0x1b8] sm:$0xff] %vm717_vm2, %v708_v38 }
  0xd7   : > { %v661_v43 = vmax.f32 %v486_v41, 0.0  ;;  %v677_v44 = vmax.f32 %v534_v42, 0.0 }
  0xd8   : > { %v581_v45 = vpop.f32.mrf.mxu2  ;;  %v629_v46 = vpop.f32.mrf.mxu3 }
  0xd9   : > { %726 = vst.msk [vmem:[%s1139_s6 + $0x40] sm:$0xff] %vm717_vm2, %v661_v43  ;;  %v582_v47 = vadd.f32 %v1130_v5, %v581_v45  ;;  %v630_v48 = vadd.f32 %v1130_v5, %v629_v46 }
  0xda   : > { %742 = vst.msk [vmem:[%s1139_s6 + $0xc0] sm:$0xff] %vm717_vm2, %v677_v44 }
  0xdb   : > { %v693_v49 = vmax.f32 %v582_v47, 0.0  ;;  %v709_v50 = vmax.f32 %v630_v48, 0.0 }
  0xdc   : > { %v488_v51 = vpop.f32.mrf.mxu0  ;;  %v536_v52 = vpop.f32.mrf.mxu1 }
  0xdd   : > { %758 = vst.msk [vmem:[%s1139_s6 + $0x140] sm:$0xff] %vm717_vm2, %v693_v49  ;;  %v489_v53 = vadd.f32 %v1130_v5, %v488_v51  ;;  %v537_v54 = vadd.f32 %v1130_v5, %v536_v52 }
  0xde   : > { %774 = vst.msk [vmem:[%s1139_s6 + $0x1c0] sm:$0xff] %vm717_vm2, %v709_v50 }
  0xdf   : > { %v662_v55 = vmax.f32 %v489_v53, 0.0  ;;  %v678_v56 = vmax.f32 %v537_v54, 0.0 }
  0xe0   : > { %v584_v57 = vpop.f32.mrf.mxu2  ;;  %v632_v58 = vpop.f32.mrf.mxu3 }
  0xe1   : > { %727 = vst.msk [vmem:[%s1139_s6 + $0x48] sm:$0xff] %vm717_vm2, %v662_v55  ;;  %v585_v59 = vadd.f32 %v1130_v5, %v584_v57  ;;  %v633_v60 = vadd.f32 %v1130_v5, %v632_v58 }
  0xe2   : > { %743 = vst.msk [vmem:[%s1139_s6 + $0xc8] sm:$0xff] %vm717_vm2, %v678_v56 }
  0xe3   : > { %v694_v61 = vmax.f32 %v585_v59, 0.0  ;;  %v710_v62 = vmax.f32 %v633_v60, 0.0 }
  0xe4   : > { %v491_v63 = vpop.f32.mrf.mxu0  ;;  %v539_v0 = vpop.f32.mrf.mxu1 }
  0xe5   : > { %759 = vst.msk [vmem:[%s1139_s6 + $0x148] sm:$0xff] %vm717_vm2, %v694_v61  ;;  %v492_v1 = vadd.f32 %v1130_v5, %v491_v63  ;;  %v540_v2 = vadd.f32 %v1130_v5, %v539_v0 }
  0xe6   : > { %775 = vst.msk [vmem:[%s1139_s6 + $0x1c8] sm:$0xff] %vm717_vm2, %v710_v62 }
  0xe7   : > { %v663_v3 = vmax.f32 %v492_v1, 0.0  ;;  %v679_v4 = vmax.f32 %v540_v2, 0.0 }
  0xe8   : > { %v587_v6 = vpop.f32.mrf.mxu2  ;;  %v635_v7 = vpop.f32.mrf.mxu3 }
  0xe9   : > { %728 = vst.msk [vmem:[%s1139_s6 + $0x50] sm:$0xff] %vm717_vm2, %v663_v3  ;;  %v588_v8 = vadd.f32 %v1130_v5, %v587_v6  ;;  %v636_v9 = vadd.f32 %v1130_v5, %v635_v7 }
  0xea   : > { %744 = vst.msk [vmem:[%s1139_s6 + $0xd0] sm:$0xff] %vm717_vm2, %v679_v4 }
  0xeb   : > { %v695_v10 = vmax.f32 %v588_v8, 0.0  ;;  %v711_v11 = vmax.f32 %v636_v9, 0.0 }
  0xec   : > { %v494_v12 = vpop.f32.mrf.mxu0  ;;  %v542_v13 = vpop.f32.mrf.mxu1 }
  0xed   : > { %760 = vst.msk [vmem:[%s1139_s6 + $0x150] sm:$0xff] %vm717_vm2, %v695_v10  ;;  %v495_v14 = vadd.f32 %v1130_v5, %v494_v12  ;;  %v543_v15 = vadd.f32 %v1130_v5, %v542_v13 }
  0xee   : > { %776 = vst.msk [vmem:[%s1139_s6 + $0x1d0] sm:$0xff] %vm717_vm2, %v711_v11 }
  0xef   : > { %v664_v16 = vmax.f32 %v495_v14, 0.0  ;;  %v680_v17 = vmax.f32 %v543_v15, 0.0 }
  0xf0   : > { %v590_v18 = vpop.f32.mrf.mxu2  ;;  %v638_v19 = vpop.f32.mrf.mxu3 }
  0xf1   : > { %729 = vst.msk [vmem:[%s1139_s6 + $0x58] sm:$0xff] %vm717_vm2, %v664_v16  ;;  %v591_v20 = vadd.f32 %v1130_v5, %v590_v18  ;;  %v639_v21 = vadd.f32 %v1130_v5, %v638_v19 }
  0xf2   : > { %745 = vst.msk [vmem:[%s1139_s6 + $0xd8] sm:$0xff] %vm717_vm2, %v680_v17 }
  0xf3   : > { %v696_v22 = vmax.f32 %v591_v20, 0.0  ;;  %v712_v23 = vmax.f32 %v639_v21, 0.0 }
  0xf4   : > { %v497_v24 = vpop.f32.mrf.mxu0  ;;  %v545_v25 = vpop.f32.mrf.mxu1 }
  0xf5   : > { %761 = vst.msk [vmem:[%s1139_s6 + $0x158] sm:$0xff] %vm717_vm2, %v696_v22  ;;  %v498_v26 = vadd.f32 %v1130_v5, %v497_v24  ;;  %v546_v27 = vadd.f32 %v1130_v5, %v545_v25 }
  0xf6   : > { %777 = vst.msk [vmem:[%s1139_s6 + $0x1d8] sm:$0xff] %vm717_vm2, %v712_v23 }
  0xf7   : > { %v665_v28 = vmax.f32 %v498_v26, 0.0  ;;  %v681_v29 = vmax.f32 %v546_v27, 0.0 }
  0xf8   : > { %v593_v30 = vpop.f32.mrf.mxu2  ;;  %v641_v31 = vpop.f32.mrf.mxu3 }
  0xf9   : > { %730 = vst.msk [vmem:[%s1139_s6 + $0x60] sm:$0xff] %vm717_vm2, %v665_v28  ;;  %v594_v32 = vadd.f32 %v1130_v5, %v593_v30  ;;  %v642_v33 = vadd.f32 %v1130_v5, %v641_v31 }
  0xfa   : > { %746 = vst.msk [vmem:[%s1139_s6 + $0xe0] sm:$0xff] %vm717_vm2, %v681_v29 }
  0xfb   : > { %v697_v34 = vmax.f32 %v594_v32, 0.0  ;;  %v713_v35 = vmax.f32 %v642_v33, 0.0 }
  0xfc   : > { %v500_v36 = vpop.f32.mrf.mxu0  ;;  %v548_v37 = vpop.f32.mrf.mxu1 }
  0xfd   : > { %762 = vst.msk [vmem:[%s1139_s6 + $0x160] sm:$0xff] %vm717_vm2, %v697_v34  ;;  %v501_v38 = vadd.f32 %v1130_v5, %v500_v36  ;;  %v549_v39 = vadd.f32 %v1130_v5, %v548_v37 }
  0xfe   : > { %778 = vst.msk [vmem:[%s1139_s6 + $0x1e0] sm:$0xff] %vm717_vm2, %v713_v35 }
  0xff   : > { %v666_v40 = vmax.f32 %v501_v38, 0.0  ;;  %v682_v41 = vmax.f32 %v549_v39, 0.0 }
 0x100   : > { %v596_v42 = vpop.f32.mrf.mxu2  ;;  %v644_v43 = vpop.f32.mrf.mxu3 }
 0x101   : > { %731 = vst.msk [vmem:[%s1139_s6 + $0x68] sm:$0xff] %vm717_vm2, %v666_v40  ;;  %v597_v44 = vadd.f32 %v1130_v5, %v596_v42  ;;  %v645_v45 = vadd.f32 %v1130_v5, %v644_v43 }
 0x102   : > { %747 = vst.msk [vmem:[%s1139_s6 + $0xe8] sm:$0xff] %vm717_vm2, %v682_v41 }
 0x103   : > { %v698_v46 = vmax.f32 %v597_v44, 0.0  ;;  %v714_v47 = vmax.f32 %v645_v45, 0.0 }
 0x104   : > { %v503_v48 = vpop.f32.mrf.mxu0  ;;  %v551_v49 = vpop.f32.mrf.mxu1 }
 0x105   : > { %763 = vst.msk [vmem:[%s1139_s6 + $0x168] sm:$0xff] %vm717_vm2, %v698_v46  ;;  %v504_v50 = vadd.f32 %v1130_v5, %v503_v48  ;;  %v552_v51 = vadd.f32 %v1130_v5, %v551_v49 }
 0x106   : > { %779 = vst.msk [vmem:[%s1139_s6 + $0x1e8] sm:$0xff] %vm717_vm2, %v714_v47 }
 0x107   : > { %v667_v52 = vmax.f32 %v504_v50, 0.0  ;;  %v683_v53 = vmax.f32 %v552_v51, 0.0 }
 0x108   : > { %v599_v54 = vpop.f32.mrf.mxu2  ;;  %v647_v55 = vpop.f32.mrf.mxu3 }
 0x109   : > { %732 = vst.msk [vmem:[%s1139_s6 + $0x70] sm:$0xff] %vm717_vm2, %v667_v52  ;;  %v600_v56 = vadd.f32 %v1130_v5, %v599_v54  ;;  %v648_v57 = vadd.f32 %v1130_v5, %v647_v55 }
 0x10a   : > { %748 = vst.msk [vmem:[%s1139_s6 + $0xf0] sm:$0xff] %vm717_vm2, %v683_v53 }
 0x10b   : > { %v699_v58 = vmax.f32 %v600_v56, 0.0  ;;  %v715_v59 = vmax.f32 %v648_v57, 0.0 }
 0x10c   : > { %v506_v60 = vpop.f32.mrf.mxu0  ;;  %v554_v61 = vpop.f32.mrf.mxu1 }
 0x10d   : > { %764 = vst.msk [vmem:[%s1139_s6 + $0x170] sm:$0xff] %vm717_vm2, %v699_v58  ;;  %v507_v62 = vadd.f32 %v1130_v5, %v506_v60  ;;  %v555_v63 = vadd.f32 %v1130_v5, %v554_v61 }
 0x10e   : > { %780 = vst.msk [vmem:[%s1139_s6 + $0x1f0] sm:$0xff] %vm717_vm2, %v715_v59 }
 0x10f   : > { %v668_v0 = vmax.f32 %v507_v62, 0.0  ;;  %v684_v1 = vmax.f32 %v555_v63, 0.0 }
 0x110   : > { %v602_v2 = vpop.f32.mrf.mxu2  ;;  %v650_v3 = vpop.f32.mrf.mxu3 }
 0x111   : > { %733 = vst.msk [vmem:[%s1139_s6 + $0x78] sm:$0xff] %vm717_vm2, %v668_v0  ;;  %v603_v4 = vadd.f32 %v1130_v5, %v602_v2  ;;  %v651_v6 = vadd.f32 %v1130_v5, %v650_v3 }
 0x112   : > { %749 = vst.msk [vmem:[%s1139_s6 + $0xf8] sm:$0xff] %vm717_vm2, %v684_v1 }
 0x113   : > { %v700_v7 = vmax.f32 %v603_v4, 0.0  ;;  %v716_v8 = vmax.f32 %v651_v6, 0.0 }
 0x115   : > { %765 = vst.msk [vmem:[%s1139_s6 + $0x178] sm:$0xff] %vm717_vm2, %v700_v7 }
 0x116   : > { %781 = vst.msk [vmem:[%s1139_s6 + $0x1f8] sm:$0xff] %vm717_vm2, %v716_v8 }
 0x117 PF: > { %s13_s12 = sadd.s32 1, %s944_s12  }
 0x118   : > { %p10_p4 = scmp.ge.s32.totalorder %s13_s12, 9  }
 0x11a   :  { %12 = sbr.rel (!%p10_p4) target bundleno = 1 (0x1), region = 62 }

// kernel: _lambda_.7
= control target key start
LH: loop header
LB: loop body
LE: loop exit
PB: predicated region body
PF: predicated region fallthrough
CT: control target
= control target key end

     0   :  { %s1563_s12 = smov 0   ;;  %s2314_s0 = inlined_call_operand.vmem [shape: f32[1024,288], index: 0, kind: input, shape index: {}]   ;;  %s2315_s1 = inlined_call_operand.vmem [shape: f32[288,32], index: 1, kind: input, shape index: {}]   ;;  %s2316_s2 = inlined_call_operand.vmem [shape: f32[1,32], index: 2, kind: input, shape index: {}]   ;;  %s2317_s3 = inlined_call_operand.vmem [shape: f32[1024,32], index: 3, kind: output, shape index: {}]  }
   0x1 LB: > { %s1413_s13 = sadd.s32 4294967295, %s1541_s12   ;;  %p1417_p0 = scmp.ge.s32.totalorder %s1541_s12, 1  ;;  %s1541_s12 = sphi %s1563_s12, %s13_s12  }
   0x2   : > { %p139_p1 = scmp.lt.s32.totalorder %s1541_s12, 3 }
   0x4   : > { %p140_p2 = pnand %p1417_p0, %p139_p1 }
   0x5   : > { %s1418_s20 = sshll.u32 (!%p140_p2), %s1413_s13, 6 }
   0x6   : > { %143 = sbr.rel (%p140_p2) target bundleno = 558 (0x22e), region = 32  ;;  %p165_p3 = scmp.lt.s32.totalorder (!%p140_p2), %s1418_s20, 127 }
   0xb   : > { %v384_v0 = vld [vmem:[%s2315_s1 + $0x78] sm:$0xff]  ;;  %v383_v2 = vld [vmem:[%s2315_s1 + $0x70] sm:$0xff]  ;;  %v382_v5 = vld [vmem:[%s2315_s1 + $0x68] sm:$0xff]  ;;  %s2319_s20 = smov (!%p165_p3, %s1418_s20), 127  ;;  %vm409_vm0 = vcmask 261120  }
   0xc   : > { %v1577_v1 = vld [vmem:[%s2315_s1 + $0x118] sm:$0xff]  ;;  %602 = vmatpush.msra.mxu0 %v384_v0  ;;  %1488 = vmatpush.msra.mxu3 %v384_v0  ;;  %v1590_v4 = vld [vmem:[%s2315_s1 + $0x110] sm:$0xff]  ;;  %v1605_v7 = vld [vmem:[%s2315_s1 + $0x108] sm:$0xff]  ;;  %s1524_s13 = smul.u32 24, %s2319_s20  ;;  %s1421_s19 = sshll.u32 %s2319_s20, 3 }
   0xd   : > { %v1585_v3 = vld [vmem:[%s2315_s1 + $0xf8] sm:$0xff]  ;;  %1032 = vmatpush.msra.mxu2 %v1577_v1  ;;  %v1600_v6 = vld [vmem:[%s2315_s1 + $0xf0] sm:$0xff]  ;;  %v1610_v8 = vld [vmem:[%s2315_s1 + $0xe8] sm:$0xff]  ;;  %s1852_s23 = scalar_lea.vmem %s2317_s3, %s1421_s19 }
   0xe   : > { %811 = vmatpush.msra.mxu1 %v1585_v3  ;;  %603 = vmatpush.msra.mxu0 %v383_v2  ;;  %v381_v9 = vld [vmem:[%s2315_s1 + $0x60] sm:$0xff]  ;;  %v380_v12 = vld [vmem:[%s2315_s1 + $0x58] sm:$0xff]  ;;  %s1638_s18 = scalar_lea.vmem %s2314_s0, %s1524_s13  ;;  %v379_v15 = vld [vmem:[%s2315_s1 + $0x50] sm:$0xff] }
   0xf   : > { %1489 = vmatpush.msra.mxu3 %v383_v2  ;;  %1033 = vmatpush.msra.mxu2 %v1590_v4  ;;  %v1622_v10 = vld [vmem:[%s2315_s1 + $0x100] sm:$0xff]  ;;  %v1643_v13 = vld [vmem:[%s2315_s1 + $0xd8] sm:$0xff]  ;;  %v179_v14 = vld [vmem:[%s1638_s18 + $0x10] sm:$0xff] }
  0x10   : > { %812 = vmatpush.msra.mxu1 %v1600_v6  ;;  %604 = vmatpush.msra.mxu0 %v382_v5  ;;  %v1627_v11 = vld [vmem:[%s2315_s1 + $0xe0] sm:$0xff]  ;;  %v1654_v16 = vld [vmem:[%s2315_s1 + $0xd0] sm:$0xff]  ;;  %v378_v17 = vld [vmem:[%s2315_s1 + $0x48] sm:$0xff] }
  0x11   : > { %1490 = vmatpush.msra.mxu3 %v382_v5  ;;  %1034 = vmatpush.msra.mxu2 %v1605_v7  ;;  %v1664_v18 = vld [vmem:[%s2315_s1 + $0xc8] sm:$0xff]  ;;  %v377_v19 = vld [vmem:[%s2315_s1 + $0x40] sm:$0xff]  ;;  %v376_v21 = vld [vmem:[%s2315_s1 + $0x38] sm:$0xff] }
  0x12   : > { %813 = vmatpush.msra.mxu1 %v1610_v8  ;;  %605 = vmatpush.msra.mxu0 %v381_v9  ;;  %v1673_v20 = vld [vmem:[%s2315_s1 + $0xc0] sm:$0xff]  ;;  %v182_v22 = vld [vmem:[%s1638_s18 + $0x28] sm:$0xff]  ;;  %v1683_v23 = vld [vmem:[%s2315_s1 + $0xb8] sm:$0xff] }
  0x13   : > { %1491 = vmatpush.msra.mxu3 %v381_v9  ;;  %1035 = vmatpush.msra.mxu2 %v1622_v10  ;;  %v375_v24 = vld [vmem:[%s2315_s1 + $0x30] sm:$0xff]  ;;  %v374_v26 = vld [vmem:[%s2315_s1 + $0x28] sm:$0xff]  ;;  %v373_v28 = vld [vmem:[%s2315_s1 + $0x20] sm:$0xff] }
  0x14   : > { %814 = vmatpush.msra.mxu1 %v1627_v11  ;;  %606 = vmatpush.msra.mxu0 %v380_v12  ;;  %v1692_v25 = vld [vmem:[%s2315_s1 + $0xb0] sm:$0xff]  ;;  %v1702_v27 = vld [vmem:[%s2315_s1 + $0xa8] sm:$0xff]  ;;  %v1711_v29 = vld [vmem:[%s2315_s1 + $0xa0] sm:$0xff] }
  0x15   : > { %1492 = vmatpush.msra.mxu3 %v380_v12  ;;  %1422 = vmatmul.msk.f32.vlgmr.msra.gmra.mxu2 %vm409_vm0, %v179_v14  ;;  %v372_v30 = vld [vmem:[%s2315_s1 + $0x18] sm:$0xff]  ;;  %v185_v31 = vld [vmem:[%s1638_s18 + $0x40] sm:$0xff]  ;;  %v371_v33 = vld [vmem:[%s2315_s1 + $0x10] sm:$0xff] }
  0x16   : > { %815 = vmatpush.msra.mxu1 %v1643_v13  ;;  %607 = vmatpush.msra.mxu0 %v379_v15  ;;  %v388_v32 = vld [vmem:[%s2315_s1 + $0x98] sm:$0xff]  ;;  %v387_v34 = vld [vmem:[%s2315_s1 + $0x90] sm:$0xff]  ;;  %v370_v35 = vld [vmem:[%s2315_s1 + $0x8] sm:$0xff] }
  0x17   : > { %1493 = vmatpush.msra.mxu3 %v379_v15  ;;  %v386_v36 = vld [vmem:[%s2315_s1 + $0x88] sm:$0xff]  ;;  %v369_v37 = vld [vmem:[%s2315_s1] sm:$0xff]  ;;  %v188_v41 = vld [vmem:[%s1638_s18 + $0x58] sm:$0xff] }
  0x18   : > { %816 = vmatpush.msra.mxu1 %v1654_v16  ;;  %608 = vmatpush.msra.mxu0 %v378_v17  ;;  %v177_v38 = vld [vmem:[%s1638_s18] sm:$0xff]  ;;  %v178_v42 = vld [vmem:[%s1638_s18 + $0x8] sm:$0xff]  ;;  %v180_v43 = vld [vmem:[%s1638_s18 + $0x18] sm:$0xff] }
  0x19   : > { %1494 = vmatpush.msra.mxu3 %v378_v17  ;;  %v321_v39 = vld [vmem:[%s1638_s18 + $0x480] sm:$0xff]  ;;  %v324_v44 = vld [vmem:[%s1638_s18 + $0x498] sm:$0xff]  ;;  %v191_v45 = vld [vmem:[%s1638_s18 + $0x70] sm:$0xff] }
  0x1a   : > { %817 = vmatpush.msra.mxu1 %v1664_v18  ;;  %609 = vmatpush.msra.mxu0 %v377_v19  ;;  %v385_v40 = vld [vmem:[%s2315_s1 + $0x80] sm:$0xff]  ;;  %v183_v47 = vld [vmem:[%s1638_s18 + $0x30] sm:$0xff]  ;;  %v194_v49 = vld [vmem:[%s1638_s18 + $0x88] sm:$0xff] }
  0x1b   : > { %1495 = vmatpush.msra.mxu3 %v377_v19  ;;  %v181_v46 = vld [vmem:[%s1638_s18 + $0x20] sm:$0xff]  ;;  %v327_v48 = vld [vmem:[%s1638_s18 + $0x4b0] sm:$0xff]  ;;  %v184_v50 = vld [vmem:[%s1638_s18 + $0x38] sm:$0xff] }
  0x1c   : > { %818 = vmatpush.msra.mxu1 %v1673_v20  ;;  %610 = vmatpush.msra.mxu0 %v376_v21  ;;  %v186_v51 = vld [vmem:[%s1638_s18 + $0x48] sm:$0xff]  ;;  %v197_v53 = vld [vmem:[%s1638_s18 + $0xa0] sm:$0xff]  ;;  %v187_v54 = vld [vmem:[%s1638_s18 + $0x50] sm:$0xff] }
  0x1d   : > { %1496 = vmatpush.msra.mxu3 %v376_v21  ;;  %1423 = vmatmul.msk.f32.gmra.mxu2 %vm409_vm0, %v182_v22  ;;  %v330_v52 = vld [vmem:[%s1638_s18 + $0x4c8] sm:$0xff]  ;;  %v189_v55 = vld [vmem:[%s1638_s18 + $0x60] sm:$0xff]  ;;  %v200_v57 = vld [vmem:[%s1638_s18 + $0xb8] sm:$0xff] }
  0x1e   : > { %819 = vmatpush.msra.mxu1 %v1683_v23  ;;  %611 = vmatpush.msra.mxu0 %v375_v24  ;;  %v333_v56 = vld [vmem:[%s1638_s18 + $0x4e0] sm:$0xff]  ;;  %v190_v58 = vld [vmem:[%s1638_s18 + $0x68] sm:$0xff]  ;;  %v192_v59 = vld [vmem:[%s1638_s18 + $0x78] sm:$0xff] }
  0x1f   : > { %1497 = vmatpush.msra.mxu3 %v375_v24  ;;  %v336_v60 = vld [vmem:[%s1638_s18 + $0x4f8] sm:$0xff]  ;;  %v203_v61 = vld [vmem:[%s1638_s18 + $0xd0] sm:$0xff]  ;;  %v193_v62 = vld [vmem:[%s1638_s18 + $0x80] sm:$0xff] }
  0x20   : > { %820 = vmatpush.msra.mxu1 %v1692_v25  ;;  %612 = vmatpush.msra.mxu0 %v374_v26  ;;  %v195_v63 = vld [vmem:[%s1638_s18 + $0x90] sm:$0xff]  ;;  %v196_v2 = vld [vmem:[%s1638_s18 + $0x98] sm:$0xff]  ;;  %v209_v5 = vld [vmem:[%s1638_s18 + $0x100] sm:$0xff] }
  0x21   : > { %1498 = vmatpush.msra.mxu3 %v374_v26  ;;  %v339_v0 = vld [vmem:[%s1638_s18 + $0x510] sm:$0xff]  ;;  %v212_v9 = vld [vmem:[%s1638_s18 + $0x118] sm:$0xff]  ;;  %v205_v14 = vld [vmem:[%s1638_s18 + $0xe0] sm:$0xff] }
  0x22   : > { %821 = vmatpush.msra.mxu1 %v1702_v27  ;;  %613 = vmatpush.msra.mxu0 %v373_v28  ;;  %v348_v12 = vld [vmem:[%s1638_s18 + $0x558] sm:$0xff]  ;;  %v207_v15 = vld [vmem:[%s1638_s18 + $0xf0] sm:$0xff]  ;;  %v218_v17 = vld [vmem:[%s1638_s18 + $0x148] sm:$0xff] }
  0x23   : > { %1499 = vmatpush.msra.mxu3 %v373_v28  ;;  %v210_v19 = vld [vmem:[%s1638_s18 + $0x108] sm:$0xff]  ;;  %v221_v21 = vld [vmem:[%s1638_s18 + $0x160] sm:$0xff]  ;;  %v211_v22 = vld [vmem:[%s1638_s18 + $0x110] sm:$0xff] }
  0x24   : > { %822 = vmatpush.msra.mxu1 %v1711_v29  ;;  %614 = vmatpush.msra.mxu0 %v372_v30  ;;  %v357_v24 = vld [vmem:[%s1638_s18 + $0x5a0] sm:$0xff]  ;;  %v214_v26 = vld [vmem:[%s1638_s18 + $0x128] sm:$0xff]  ;;  %v360_v28 = vld [vmem:[%s1638_s18 + $0x5b8] sm:$0xff] }
  0x25   : > { %1500 = vmatpush.msra.mxu3 %v372_v30  ;;  %1424 = vmatmul.msk.f32.gmra.mxu2 %vm409_vm0, %v185_v31  ;;  %v217_v30 = vld [vmem:[%s1638_s18 + $0x140] sm:$0xff] }
  0x26   : > { %823 = vmatpush.msra.mxu1 %v388_v32  ;;  %615 = vmatpush.msra.mxu0 %v371_v33 }
  0x27   : > { %1501 = vmatpush.msra.mxu3 %v371_v33  ;;  %v363_v33 = vld [vmem:[%s1638_s18 + $0x5d0] sm:$0xff] }
  0x28   : > { %824 = vmatpush.msra.mxu1 %v387_v34  ;;  %616 = vmatpush.msra.mxu0 %v370_v35 }
  0x29   : > { %1502 = vmatpush.msra.mxu3 %v370_v35  ;;  %v220_v35 = vld [vmem:[%s1638_s18 + $0x158] sm:$0xff] }
  0x2a   : > { %825 = vmatpush.msra.mxu1 %v386_v36  ;;  %617 = vmatpush.msra.mxu0 %v369_v37 }
  0x2b   : > { %1503 = vmatpush.msra.mxu3 %v369_v37  ;;  %618 = vmatmul.f32.vlgmr.msra.gmra.mxu0 %v177_v38  ;;  %v222_v37 = vld [vmem:[%s1638_s18 + $0x168] sm:$0xff] }
  0x2c   : > { %762 = vmatmul.f32.vlgmr.msra.gmra.mxu3 %v321_v39  ;;  %826 = vmatpush.msra.mxu1 %v385_v40  ;;  %v366_v38 = vld [vmem:[%s1638_s18 + $0x5e8] sm:$0xff]  ;;  %v233_v39 = vld [vmem:[%s1638_s18 + $0x1c0] sm:$0xff] }
  0x2d   : > { %1504 = vmatpush.msrb.mxu3 %v1585_v3  ;;  %1425 = vmatmul.msk.f32.gmra.mxu2 %vm409_vm0, %v188_v41  ;;  %v198_v3 = vld [vmem:[%s1638_s18 + $0xa8] sm:$0xff]  ;;  %v1840_v41 = vld [vmem:[%s2316_s2] ss:$0 sm:$0xff] }
  0x2e   : > { %827 = vmatmul.f32.vlgmr.msra.gmra.mxu1 %v178_v42 }
  0x2f   : > { %1505 = vmatpush.msrb.mxu3 %v1600_v6  ;;  %v199_v6 = vld [vmem:[%s1638_s18 + $0xb0] sm:$0xff] }
  0x31   : > { %1506 = vmatpush.msrb.mxu3 %v1610_v8  ;;  %v345_v8 = vld [vmem:[%s1638_s18 + $0x540] sm:$0xff] }
  0x33   : > { %1507 = vmatpush.msrb.mxu3 %v1627_v11  ;;  %621 = vmatmul.f32.gmra.mxu0 %v180_v43  ;;  %v204_v11 = vld [vmem:[%s1638_s18 + $0xd8] sm:$0xff] }
  0x34   : > { %765 = vmatmul.f32.gmra.mxu3 %v324_v44  ;;  %v225_v44 = vld [vmem:[%s1638_s18 + $0x180] sm:$0xff] }
  0x35   : > { %1508 = vmatpush.msrb.mxu3 %v1643_v13  ;;  %1426 = vmatmul.msk.f32.gmra.mxu2 %vm409_vm0, %v191_v45  ;;  %v215_v13 = vld [vmem:[%s1638_s18 + $0x130] sm:$0xff]  ;;  %v322_v45 = vld [vmem:[%s1638_s18 + $0x488] sm:$0xff] }
  0x36   : > { %830 = vmatmul.f32.gmra.mxu1 %v181_v46 }
  0x37   : > { %1509 = vmatpush.msrb.mxu3 %v1654_v16  ;;  %v351_v16 = vld [vmem:[%s1638_s18 + $0x570] sm:$0xff] }
  0x39   : > { %1510 = vmatpush.msrb.mxu3 %v1664_v18  ;;  %v208_v18 = vld [vmem:[%s1638_s18 + $0xf8] sm:$0xff] }
  0x3b   : > { %1511 = vmatpush.msrb.mxu3 %v1673_v20  ;;  %624 = vmatmul.f32.gmra.mxu0 %v183_v47  ;;  %v354_v20 = vld [vmem:[%s1638_s18 + $0x588] sm:$0xff] }
  0x3c   : > { %768 = vmatmul.f32.gmra.mxu3 %v327_v48  ;;  %v236_v48 = vld [vmem:[%s1638_s18 + $0x1d8] sm:$0xff] }
  0x3d   : > { %1512 = vmatpush.msrb.mxu3 %v1683_v23  ;;  %1427 = vmatmul.msk.f32.gmra.mxu2 %vm409_vm0, %v194_v49  ;;  %v213_v23 = vld [vmem:[%s1638_s18 + $0x120] sm:$0xff]  ;;  %v226_v49 = vld [vmem:[%s1638_s18 + $0x188] sm:$0xff] }
  0x3e   : > { %833 = vmatmul.f32.gmra.mxu1 %v184_v50 }
  0x3f   : > { %1513 = vmatpush.msrb.mxu3 %v1692_v25  ;;  %v224_v25 = vld [vmem:[%s1638_s18 + $0x178] sm:$0xff] }
  0x41   : > { %1514 = vmatpush.msrb.mxu3 %v1702_v27  ;;  %v216_v27 = vld [vmem:[%s1638_s18 + $0x138] sm:$0xff] }
  0x43   : > { %1515 = vmatpush.msrb.mxu3 %v1711_v29  ;;  %627 = vmatmul.f32.gmra.mxu0 %v186_v51  ;;  %v227_v29 = vld [vmem:[%s1638_s18 + $0x190] sm:$0xff] }
  0x44   : > { %771 = vmatmul.f32.gmra.mxu3 %v330_v52 }
  0x45   : > { %1516 = vmatpush.msrb.mxu3 %v388_v32  ;;  %1428 = vmatmul.msk.f32.gmra.mxu2 %vm409_vm0, %v197_v53  ;;  %v219_v32 = vld [vmem:[%s1638_s18 + $0x150] sm:$0xff] }
  0x46   : > { %836 = vmatmul.f32.gmra.mxu1 %v187_v54 }
  0x47   : > { %1517 = vmatpush.msrb.mxu3 %v387_v34  ;;  %v230_v34 = vld [vmem:[%s1638_s18 + $0x1a8] sm:$0xff] }
  0x49   : > { %1518 = vmatpush.msrb.mxu3 %v386_v36 }
  0x4b   : > { %1519 = vmatpush.msrb.mxu3 %v385_v40  ;;  %630 = vmatmul.f32.gmra.mxu0 %v189_v55  ;;  %v223_v40 = vld [vmem:[%s1638_s18 + $0x170] sm:$0xff] }
  0x4c   : > { %774 = vmatmul.f32.gmra.mxu3 %v333_v56  ;;  %v228_v56 = vld [vmem:[%s1638_s18 + $0x198] sm:$0xff] }
  0x4d   : > { %1520 = vmatpush.msra.mxu3 %v1577_v1  ;;  %1429 = vmatmul.msk.f32.gmra.mxu2 %vm409_vm0, %v200_v57  ;;  %v206_v1 = vld [vmem:[%s1638_s18 + $0xe8] sm:$0xff]  ;;  %v325_v57 = vld [vmem:[%s1638_s18 + $0x4a0] sm:$0xff] }
  0x4e   : > { %839 = vmatmul.f32.gmra.mxu1 %v190_v58 }
  0x4f   : > { %1521 = vmatpush.msra.mxu3 %v1590_v4  ;;  %v342_v4 = vld [vmem:[%s1638_s18 + $0x528] sm:$0xff] }
  0x51   : > { %1522 = vmatpush.msra.mxu3 %v1605_v7  ;;  %v201_v7 = vld [vmem:[%s1638_s18 + $0xc0] sm:$0xff] }
  0x53   : > { %1523 = vmatpush.msra.mxu3 %v1622_v10  ;;  %633 = vmatmul.f32.gmra.mxu0 %v192_v59  ;;  %v202_v10 = vld [vmem:[%s1638_s18 + $0xc8] sm:$0xff] }
  0x54   : > { %777 = vmatmul.f32.gmra.mxu3 %v336_v60  ;;  %v239_v60 = vld [vmem:[%s1638_s18 + $0x1f0] sm:$0xff] }
  0x55   : > { %1430 = vmatmul.msk.f32.gmra.mxu2 %vm409_vm0, %v203_v61  ;;  %v229_v61 = vld [vmem:[%s1638_s18 + $0x1a0] sm:$0xff] }
  0x56   : > { %842 = vmatmul.f32.gmra.mxu1 %v193_v62 }
  0x5b   : > { %636 = vmatmul.f32.gmra.mxu0 %v195_v63 }
  0x5c   : > { %780 = vmatmul.f32.gmra.mxu3 %v339_v0 }
  0x5d   : > { %1431 = vmatmul.msk.f32.gmra.mxu2 %vm409_vm0, %v206_v1 }
  0x5e   : > { %845 = vmatmul.f32.gmra.mxu1 %v196_v2 }
  0x63   : > { %639 = vmatmul.f32.gmra.mxu0 %v198_v3 }
  0x64   : > { %783 = vmatmul.f32.gmra.mxu3 %v342_v4  ;;  %v231_v4 = vld [vmem:[%s1638_s18 + $0x1b0] sm:$0xff] }
  0x65   : > { %1432 = vmatmul.msk.f32.gmra.mxu2 %vm409_vm0, %v209_v5  ;;  %v328_v5 = vld [vmem:[%s1638_s18 + $0x4b8] sm:$0xff] }
  0x66   : > { %848 = vmatmul.f32.gmra.mxu1 %v199_v6 }
  0x6b   : > { %642 = vmatmul.f32.gmra.mxu0 %v201_v7 }
  0x6c   : > { %786 = vmatmul.f32.gmra.mxu3 %v345_v8  ;;  %v242_v8 = vld [vmem:[%s1638_s18 + $0x208] sm:$0xff] }
  0x6d   : > { %1433 = vmatmul.msk.f32.gmra.mxu2 %vm409_vm0, %v212_v9  ;;  %v232_v9 = vld [vmem:[%s1638_s18 + $0x1b8] sm:$0xff] }
  0x6e   : > { %851 = vmatmul.f32.gmra.mxu1 %v202_v10 }
  0x73   : > { %645 = vmatmul.f32.gmra.mxu0 %v204_v11 }
  0x74   : > { %789 = vmatmul.f32.gmra.mxu3 %v348_v12 }
  0x75   : > { %1434 = vmatmul.msk.f32.gmra.mxu2 %vm409_vm0, %v215_v13 }
  0x76   : > { %854 = vmatmul.f32.gmra.mxu1 %v205_v14 }
  0x7b   : > { %648 = vmatmul.f32.gmra.mxu0 %v207_v15 }
  0x7c   : > { %792 = vmatmul.f32.gmra.mxu3 %v351_v16  ;;  %v234_v16 = vld [vmem:[%s1638_s18 + $0x1c8] sm:$0xff] }
  0x7d   : > { %1435 = vmatmul.msk.f32.gmra.mxu2 %vm409_vm0, %v218_v17  ;;  %v331_v17 = vld [vmem:[%s1638_s18 + $0x4d0] sm:$0xff] }
  0x7e   : > { %857 = vmatmul.f32.gmra.mxu1 %v208_v18 }
  0x83   : > { %651 = vmatmul.f32.gmra.mxu0 %v210_v19 }
  0x84   : > { %795 = vmatmul.f32.gmra.mxu3 %v354_v20  ;;  %v245_v20 = vld [vmem:[%s1638_s18 + $0x220] sm:$0xff] }
  0x85   : > { %1436 = vmatmul.msk.f32.gmra.mxu2 %vm409_vm0, %v221_v21  ;;  %v235_v21 = vld [vmem:[%s1638_s18 + $0x1d0] sm:$0xff] }
  0x86   : > { %860 = vmatmul.f32.gmra.mxu1 %v211_v22 }
  0x8b   : > { %654 = vmatmul.f32.gmra.mxu0 %v213_v23 }
  0x8c   : > { %798 = vmatmul.f32.gmra.mxu3 %v357_v24 }
  0x8d   : > { %1437 = vmatmul.msk.f32.gmra.mxu2 %vm409_vm0, %v224_v25 }
  0x8e   : > { %863 = vmatmul.f32.gmra.mxu1 %v214_v26 }
  0x93   : > { %657 = vmatmul.f32.gmra.mxu0 %v216_v27 }
  0x94   : > { %801 = vmatmul.f32.gmra.mxu3 %v360_v28  ;;  %v237_v28 = vld [vmem:[%s1638_s18 + $0x1e0] sm:$0xff] }
  0x95   : > { %1438 = vmatmul.msk.f32.gmra.mxu2 %vm409_vm0, %v227_v29  ;;  %v334_v29 = vld [vmem:[%s1638_s18 + $0x4e8] sm:$0xff] }
  0x96   : > { %866 = vmatmul.f32.gmra.mxu1 %v217_v30 }
  0x98   : > { %v1037_v31 = vpop.f32.mrf.mxu2 }
  0x9b   : > { %660 = vmatmul.f32.gmra.mxu0 %v219_v32  ;;  %v248_v32 = vld [vmem:[%s1638_s18 + $0x238] sm:$0xff] }
  0x9c   : > { %804 = vmatmul.f32.gmra.mxu3 %v363_v33  ;;  %v238_v33 = vld [vmem:[%s1638_s18 + $0x1e8] sm:$0xff] }
  0x9d   : > { %1439 = vmatmul.msk.f32.gmra.mxu2 %vm409_vm0, %v230_v34 }
  0x9e   : > { %869 = vmatmul.f32.gmra.mxu1 %v220_v35 }
  0xa0   : > { %v1040_v36 = vpop.f32.mrf.mxu2 }
  0xa3   : > { %663 = vmatmul.f32.gmra.mxu0 %v222_v37 }
  0xa4   : > { %807 = vmatmul.f32.gmra.mxu3 %v366_v38 }
  0xa5   : > { %1440 = vmatmul.msk.f32.gmra.mxu2 %vm409_vm0, %v233_v39 }
  0xa6   : > { %872 = vmatmul.f32.gmra.mxu1 %v223_v40  ;;  %v240_v40 = vld [vmem:[%s1638_s18 + $0x1f8] sm:$0xff] }
  0xa8   : > { %v1043_v42 = vpop.f32.mrf.mxu2  ;;  %v619_v43 = vpop.f32.mrf.mxu0 }
  0xa9   : > { %v620_v46 = vadd.f32 %v1840_v41, %v619_v43 }
  0xab   : > { %v828_v47 = vpop.f32.mrf.mxu1  ;;  %666 = vmatmul.f32.gmra.mxu0 %v225_v44 }
  0xac   : > { %v829_v50 = vadd.f32 %v828_v47, %v620_v46  ;;  %971 = vmatmul.f32.vlgmr.msrb.gmra.mxu3 %v322_v45  ;;  %v251_v45 = vld [vmem:[%s1638_s18 + $0x250] sm:$0xff]  ;;  %v241_v46 = vld [vmem:[%s1638_s18 + $0x200] sm:$0xff] }
  0xad   : > { %1441 = vmatmul.msk.f32.gmra.mxu2 %vm409_vm0, %v236_v48 }
  0xae   : > { %v1038_v51 = vadd.f32 %v1037_v31, %v829_v50  ;;  %875 = vmatmul.f32.gmra.mxu1 %v226_v49 }
  0xaf   : > { %v1854_v52 = vpop.f32.mrf.mxu3 }
  0xb0   : > { %v1229_v53 = vmax.f32 %v1038_v51, 0.0  ;;  %v1046_v54 = vpop.f32.mrf.mxu2  ;;  %v622_v55 = vpop.f32.mrf.mxu0 }
  0xb1   : > { %v623_v58 = vadd.f32 %v1840_v41, %v622_v55  ;;  %v340_v55 = vld [vmem:[%s1638_s18 + $0x518] sm:$0xff] }
  0xb2   : > { %1293 = vst.msk [vmem:[%s1852_s23] sm:$0xff] %vm409_vm0, %v1229_v53 }
  0xb3   : > { %v831_v59 = vpop.f32.mrf.mxu1  ;;  %669 = vmatmul.f32.gmra.mxu0 %v228_v56 }
  0xb4   : > { %v832_v62 = vadd.f32 %v831_v59, %v623_v58  ;;  %974 = vmatmul.f32.gmra.mxu3 %v325_v57  ;;  %v254_v58 = vld [vmem:[%s1638_s18 + $0x268] sm:$0xff]  ;;  %v244_v59 = vld [vmem:[%s1638_s18 + $0x218] sm:$0xff] }
  0xb5   : > { %1442 = vmatmul.msk.f32.gmra.mxu2 %vm409_vm0, %v239_v60 }
  0xb6   : > { %v1041_v63 = vadd.f32 %v1040_v36, %v832_v62  ;;  %878 = vmatmul.f32.gmra.mxu1 %v229_v61 }
  0xb7   : > { %v1864_v0 = vpop.f32.mrf.mxu3 }
  0xb8   : > { %v1230_v1 = vmax.f32 %v1041_v63, 0.0  ;;  %v1049_v2 = vpop.f32.mrf.mxu2  ;;  %v625_v3 = vpop.f32.mrf.mxu0 }
  0xb9   : > { %v626_v6 = vadd.f32 %v1840_v41, %v625_v3  ;;  %v246_v3 = vld [vmem:[%s1638_s18 + $0x228] sm:$0xff] }
  0xba   : > { %1294 = vst.msk [vmem:[%s1852_s23 + $0x8] sm:$0xff] %vm409_vm0, %v1230_v1 }
  0xbb   : > { %v834_v7 = vpop.f32.mrf.mxu1  ;;  %672 = vmatmul.f32.gmra.mxu0 %v231_v4  ;;  %v343_v4 = vld [vmem:[%s1638_s18 + $0x530] sm:$0xff] }
  0xbc   : > { %v835_v10 = vadd.f32 %v834_v7, %v626_v6  ;;  %977 = vmatmul.f32.gmra.mxu3 %v328_v5  ;;  %v257_v7 = vld [vmem:[%s1638_s18 + $0x280] sm:$0xff] }
  0xbd   : > { %1443 = vmatmul.msk.f32.gmra.mxu2 %vm409_vm0, %v242_v8  ;;  %v247_v8 = vld [vmem:[%s1638_s18 + $0x230] sm:$0xff] }
  0xbe   : > { %v1044_v11 = vadd.f32 %v1043_v42, %v835_v10  ;;  %881 = vmatmul.f32.gmra.mxu1 %v232_v9  ;;  %v337_v42 = vld [vmem:[%s1638_s18 + $0x500] sm:$0xff] }
  0xbf   : > { %v1874_v12 = vpop.f32.mrf.mxu3 }
  0xc0   : > { %v1231_v13 = vmax.f32 %v1044_v11, 0.0  ;;  %v1052_v14 = vpop.f32.mrf.mxu2  ;;  %v628_v15 = vpop.f32.mrf.mxu0 }
  0xc1   : > { %v629_v18 = vadd.f32 %v1840_v41, %v628_v15 }
  0xc2   : > { %1295 = vst.msk [vmem:[%s1852_s23 + $0x10] sm:$0xff] %vm409_vm0, %v1231_v13 }
  0xc3   : > { %v837_v19 = vpop.f32.mrf.mxu1  ;;  %675 = vmatmul.f32.gmra.mxu0 %v234_v16  ;;  %v249_v16 = vld [vmem:[%s1638_s18 + $0x240] sm:$0xff] }
  0xc4   : > { %v838_v22 = vadd.f32 %v837_v19, %v629_v18  ;;  %980 = vmatmul.f32.gmra.mxu3 %v331_v17  ;;  %v346_v17 = vld [vmem:[%s1638_s18 + $0x548] sm:$0xff] }
  0xc5   : > { %1444 = vmatmul.msk.f32.gmra.mxu2 %vm409_vm0, %v245_v20  ;;  %v260_v20 = vld [vmem:[%s1638_s18 + $0x298] sm:$0xff] }
  0xc6   : > { %v1047_v23 = vadd.f32 %v1046_v54, %v838_v22  ;;  %884 = vmatmul.f32.gmra.mxu1 %v235_v21  ;;  %v243_v54 = vld [vmem:[%s1638_s18 + $0x210] sm:$0xff]  ;;  %v250_v21 = vld [vmem:[%s1638_s18 + $0x248] sm:$0xff] }
  0xc7   : > { %v1884_v24 = vpop.f32.mrf.mxu3 }
  0xc8   : > { %v1232_v25 = vmax.f32 %v1047_v23, 0.0  ;;  %v1055_v26 = vpop.f32.mrf.mxu2  ;;  %v631_v27 = vpop.f32.mrf.mxu0 }
  0xc9   : > { %v632_v30 = vadd.f32 %v1840_v41, %v631_v27 }
  0xca   : > { %1296 = vst.msk [vmem:[%s1852_s23 + $0x18] sm:$0xff] %vm409_vm0, %v1232_v25 }
  0xcb   : > { %v840_v31 = vpop.f32.mrf.mxu1  ;;  %678 = vmatmul.f32.gmra.mxu0 %v237_v28 }
  0xcc   : > { %v841_v34 = vadd.f32 %v840_v31, %v632_v30  ;;  %983 = vmatmul.f32.gmra.mxu3 %v334_v29  ;;  %v252_v29 = vld [vmem:[%s1638_s18 + $0x258] sm:$0xff]  ;;  %v349_v30 = vld [vmem:[%s1638_s18 + $0x560] sm:$0xff] }
  0xcd   : > { %1445 = vmatmul.msk.f32.gmra.mxu2 %vm409_vm0, %v248_v32 }
  0xce   : > { %v1050_v35 = vadd.f32 %v1049_v2, %v841_v34  ;;  %887 = vmatmul.f32.gmra.mxu1 %v238_v33  ;;  %v263_v33 = vld [vmem:[%s1638_s18 + $0x2b0] sm:$0xff]  ;;  %v253_v34 = vld [vmem:[%s1638_s18 + $0x260] sm:$0xff] }
  0xcf   : > { %v1894_v36 = vpop.f32.mrf.mxu3 }
  0xd0   : > { %v1233_v37 = vmax.f32 %v1050_v35, 0.0  ;;  %v1058_v38 = vpop.f32.mrf.mxu2  ;;  %v634_v39 = vpop.f32.mrf.mxu0 }
  0xd1   : > { %v635_v43 = vadd.f32 %v1840_v41, %v634_v39 }
  0xd2   : > { %1297 = vst.msk [vmem:[%s1852_s23 + $0x20] sm:$0xff] %vm409_vm0, %v1233_v37 }
  0xd3   : > { %v843_v44 = vpop.f32.mrf.mxu1  ;;  %681 = vmatmul.f32.gmra.mxu0 %v240_v40 }
  0xd4   : > { %v844_v47 = vadd.f32 %v843_v44, %v635_v43  ;;  %986 = vmatmul.f32.gmra.mxu3 %v337_v42  ;;  %v255_v43 = vld [vmem:[%s1638_s18 + $0x270] sm:$0xff]  ;;  %v352_v44 = vld [vmem:[%s1638_s18 + $0x578] sm:$0xff] }
  0xd5   : > { %1446 = vmatmul.msk.f32.gmra.mxu2 %vm409_vm0, %v251_v45 }
  0xd6   : > { %v1053_v48 = vadd.f32 %v1052_v14, %v844_v47  ;;  %890 = vmatmul.f32.gmra.mxu1 %v241_v46  ;;  %v266_v47 = vld [vmem:[%s1638_s18 + $0x2c8] sm:$0xff] }
  0xd7   : > { %v1904_v49 = vpop.f32.mrf.mxu3 }
  0xd8   : > { %v1234_v50 = vmax.f32 %v1053_v48, 0.0  ;;  %v1061_v51 = vpop.f32.mrf.mxu2  ;;  %v637_v53 = vpop.f32.mrf.mxu0  ;;  %v256_v48 = vld [vmem:[%s1638_s18 + $0x278] sm:$0xff] }
  0xd9   : > { %v638_v56 = vadd.f32 %v1840_v41, %v637_v53 }
  0xda   : > { %1298 = vst.msk [vmem:[%s1852_s23 + $0x28] sm:$0xff] %vm409_vm0, %v1234_v50 }
  0xdb   : > { %v846_v57 = vpop.f32.mrf.mxu1  ;;  %684 = vmatmul.f32.gmra.mxu0 %v243_v54 }
  0xdc   : > { %v847_v60 = vadd.f32 %v846_v57, %v638_v56  ;;  %989 = vmatmul.f32.gmra.mxu3 %v340_v55  ;;  %v258_v57 = vld [vmem:[%s1638_s18 + $0x288] sm:$0xff] }
  0xdd   : > { %1447 = vmatmul.msk.f32.gmra.mxu2 %vm409_vm0, %v254_v58  ;;  %v355_v58 = vld [vmem:[%s1638_s18 + $0x590] sm:$0xff] }
  0xde   : > { %v1056_v61 = vadd.f32 %v1055_v26, %v847_v60  ;;  %893 = vmatmul.f32.gmra.mxu1 %v244_v59 }
  0xdf   : > { %v1914_v62 = vpop.f32.mrf.mxu3 }
  0xe0   : > { %v1235_v63 = vmax.f32 %v1056_v61, 0.0  ;;  %v1064_v1 = vpop.f32.mrf.mxu2  ;;  %v640_v2 = vpop.f32.mrf.mxu0  ;;  %v269_v61 = vld [vmem:[%s1638_s18 + $0x2e0] sm:$0xff] }
  0xe1   : > { %v641_v5 = vadd.f32 %v1840_v41, %v640_v2 }
  0xe2   : > { %1299 = vst.msk [vmem:[%s1852_s23 + $0x30] sm:$0xff] %vm409_vm0, %v1235_v63  ;;  %v259_v63 = vld [vmem:[%s1638_s18 + $0x290] sm:$0xff] }
  0xe3   : > { %v849_v6 = vpop.f32.mrf.mxu1  ;;  %687 = vmatmul.f32.gmra.mxu0 %v246_v3 }
  0xe4   : > { %v850_v9 = vadd.f32 %v849_v6, %v641_v5  ;;  %992 = vmatmul.f32.gmra.mxu3 %v343_v4 }
  0xe5   : > { %1448 = vmatmul.msk.f32.gmra.mxu2 %vm409_vm0, %v257_v7  ;;  %v261_v7 = vld [vmem:[%s1638_s18 + $0x2a0] sm:$0xff] }
  0xe6   : > { %v1059_v10 = vadd.f32 %v1058_v38, %v850_v9  ;;  %896 = vmatmul.f32.gmra.mxu1 %v247_v8  ;;  %v358_v8 = vld [vmem:[%s1638_s18 + $0x5a8] sm:$0xff] }
  0xe7   : > { %v1924_v11 = vpop.f32.mrf.mxu3 }
  0xe8   : > { %v1236_v13 = vmax.f32 %v1059_v10, 0.0  ;;  %v1067_v14 = vpop.f32.mrf.mxu2  ;;  %v643_v15 = vpop.f32.mrf.mxu0 }
  0xe9   : > { %v644_v18 = vadd.f32 %v1840_v41, %v643_v15 }
  0xea   : > { %1300 = vst.msk [vmem:[%s1852_s23 + $0x38] sm:$0xff] %vm409_vm0, %v1236_v13  ;;  %v272_v13 = vld [vmem:[%s1638_s18 + $0x2f8] sm:$0xff] }
  0xeb   : > { %v852_v19 = vpop.f32.mrf.mxu1  ;;  %690 = vmatmul.f32.gmra.mxu0 %v249_v16 }
  0xec   : > { %v853_v22 = vadd.f32 %v852_v19, %v644_v18  ;;  %995 = vmatmul.f32.gmra.mxu3 %v346_v17 }
  0xed   : > { %1449 = vmatmul.msk.f32.gmra.mxu2 %vm409_vm0, %v260_v20 }
  0xee   : > { %v1062_v23 = vadd.f32 %v1061_v51, %v853_v22  ;;  %899 = vmatmul.f32.gmra.mxu1 %v250_v21  ;;  %v264_v21 = vld [vmem:[%s1638_s18 + $0x2b8] sm:$0xff]  ;;  %v361_v22 = vld [vmem:[%s1638_s18 + $0x5c0] sm:$0xff] }
  0xef   : > { %v1934_v25 = vpop.f32.mrf.mxu3 }
  0xf0   : > { %v1237_v26 = vmax.f32 %v1062_v23, 0.0  ;;  %v1070_v27 = vpop.f32.mrf.mxu2  ;;  %v646_v28 = vpop.f32.mrf.mxu0 }
  0xf1   : > { %v647_v31 = vadd.f32 %v1840_v41, %v646_v28  ;;  %v265_v28 = vld [vmem:[%s1638_s18 + $0x2c0] sm:$0xff] }
  0xf2   : > { %1301 = vst.msk [vmem:[%s1852_s23 + $0x40] sm:$0xff] %vm409_vm0, %v1237_v26 }
  0xf3   : > { %v855_v32 = vpop.f32.mrf.mxu1  ;;  %693 = vmatmul.f32.gmra.mxu0 %v252_v29 }
  0xf4   : > { %v856_v35 = vadd.f32 %v855_v32, %v647_v31  ;;  %998 = vmatmul.f32.gmra.mxu3 %v349_v30 }
  0xf5   : > { %1450 = vmatmul.msk.f32.gmra.mxu2 %vm409_vm0, %v263_v33 }
  0xf6   : > { %v1065_v37 = vadd.f32 %v1064_v1, %v856_v35  ;;  %902 = vmatmul.f32.gmra.mxu1 %v253_v34  ;;  %v267_v35 = vld [vmem:[%s1638_s18 + $0x2d0] sm:$0xff] }
  0xf7   : > { %v1944_v38 = vpop.f32.mrf.mxu3 }
  0xf8   : > { %v1238_v39 = vmax.f32 %v1065_v37, 0.0  ;;  %v1073_v40 = vpop.f32.mrf.mxu2  ;;  %v649_v42 = vpop.f32.mrf.mxu0  ;;  %v364_v37 = vld [vmem:[%s1638_s18 + $0x5d8] sm:$0xff] }
  0xf9   : > { %v650_v45 = vadd.f32 %v1840_v41, %v649_v42  ;;  %v278_v42 = vld [vmem:[%s1638_s18 + $0x328] sm:$0xff] }
  0xfa   : > { %1302 = vst.msk [vmem:[%s1852_s23 + $0x48] sm:$0xff] %vm409_vm0, %v1238_v39 }
  0xfb   : > { %v858_v46 = vpop.f32.mrf.mxu1  ;;  %696 = vmatmul.f32.gmra.mxu0 %v255_v43  ;;  %v268_v43 = vld [vmem:[%s1638_s18 + $0x2d8] sm:$0xff] }
  0xfc   : > { %v859_v50 = vadd.f32 %v858_v46, %v650_v45  ;;  %1001 = vmatmul.f32.gmra.mxu3 %v352_v44 }
  0xfd   : > { %1451 = vmatmul.msk.f32.gmra.mxu2 %vm409_vm0, %v266_v47 }
  0xfe   : > { %v1068_v51 = vadd.f32 %v1067_v14, %v859_v50  ;;  %905 = vmatmul.f32.gmra.mxu1 %v256_v48  ;;  %v262_v14 = vld [vmem:[%s1638_s18 + $0x2a8] sm:$0xff] }
  0xff   : > { %v1954_v53 = vpop.f32.mrf.mxu3 }
 0x100   : > { %v1239_v54 = vmax.f32 %v1068_v51, 0.0  ;;  %v1076_v55 = vpop.f32.mrf.mxu2  ;;  %v652_v56 = vpop.f32.mrf.mxu0  ;;  %v270_v51 = vld [vmem:[%s1638_s18 + $0x2e8] sm:$0xff] }
 0x101   : > { %v653_v59 = vadd.f32 %v1840_v41, %v652_v56 }
 0x102   : > { %1303 = vst.msk [vmem:[%s1852_s23 + $0x50] sm:$0xff] %vm409_vm0, %v1239_v54  ;;  %v367_v54 = vld [vmem:[%s1638_s18 + $0x5f0] sm:$0xff] }
 0x103   : > { %v861_v60 = vpop.f32.mrf.mxu1  ;;  %699 = vmatmul.f32.gmra.mxu0 %v258_v57  ;;  %v281_v57 = vld [vmem:[%s1638_s18 + $0x340] sm:$0xff] }
 0x104   : > { %v862_v1 = vadd.f32 %v861_v60, %v653_v59  ;;  %1004 = vmatmul.f32.gmra.mxu3 %v355_v58  ;;  %v271_v58 = vld [vmem:[%s1638_s18 + $0x2f0] sm:$0xff] }
 0x105   : > { %1452 = vmatmul.msk.f32.gmra.mxu2 %vm409_vm0, %v269_v61 }
 0x106   : > { %v1071_v2 = vadd.f32 %v1070_v27, %v862_v1  ;;  %908 = vmatmul.f32.gmra.mxu1 %v259_v63  ;;  %v275_v27 = vld [vmem:[%s1638_s18 + $0x310] sm:$0xff] }
 0x107   : > { %v1964_v3 = vpop.f32.mrf.mxu3 }
 0x108   : > { %v1240_v4 = vmax.f32 %v1071_v2, 0.0  ;;  %v1079_v5 = vpop.f32.mrf.mxu2  ;;  %v655_v6 = vpop.f32.mrf.mxu0 }
 0x109   : > { %v656_v9 = vadd.f32 %v1840_v41, %v655_v6 }
 0x10a   : > { %1304 = vst.msk [vmem:[%s1852_s23 + $0x58] sm:$0xff] %vm409_vm0, %v1240_v4  ;;  %v273_v4 = vld [vmem:[%s1638_s18 + $0x300] sm:$0xff] }
 0x10b   : > { %v864_v10 = vpop.f32.mrf.mxu1  ;;  %702 = vmatmul.f32.gmra.mxu0 %v261_v7 }
 0x10c   : > { %v865_v15 = vadd.f32 %v864_v10, %v656_v9  ;;  %1007 = vmatmul.f32.gmra.mxu3 %v358_v8  ;;  %v284_v8 = vld [vmem:[%s1638_s18 + $0x358] sm:$0xff]  ;;  %v274_v9 = vld [vmem:[%s1638_s18 + $0x308] sm:$0xff] }
 0x10d   : > { %1453 = vmatmul.msk.f32.gmra.mxu2 %vm409_vm0, %v272_v13  ;;  %v764_v13 = vadd.f32 %v1840_v41, %v1854_v52  ;;  %v287_v52 = vld [vmem:[%s1638_s18 + $0x370] sm:$0xff] }
 0x10e   : > { %v1074_v16 = vadd.f32 %v1073_v40, %v865_v15  ;;  %911 = vmatmul.f32.gmra.mxu1 %v262_v14 }
 0x10f   : > { %v1974_v17 = vpop.f32.mrf.mxu3 }
 0x110   : > { %v1241_v18 = vmax.f32 %v1074_v16, 0.0  ;;  %v1082_v19 = vpop.f32.mrf.mxu2  ;;  %v658_v20 = vpop.f32.mrf.mxu0 }
 0x111   : > { %v659_v23 = vadd.f32 %v1840_v41, %v658_v20 }
 0x112   : > { %1305 = vst.msk [vmem:[%s1852_s23 + $0x60] sm:$0xff] %vm409_vm0, %v1241_v18 }
 0x113   : > { %v867_v26 = vpop.f32.mrf.mxu1  ;;  %705 = vmatmul.f32.gmra.mxu0 %v264_v21  ;;  %v276_v21 = vld [vmem:[%s1638_s18 + $0x318] sm:$0xff] }
 0x114   : > { %v868_v29 = vadd.f32 %v867_v26, %v659_v23  ;;  %1010 = vmatmul.f32.gmra.mxu3 %v361_v22  ;;  %v335_v22 = vld [vmem:[%s1638_s18 + $0x4f0] sm:$0xff] }
 0x115   : > { %1454 = vmatmul.msk.f32.gmra.mxu2 %vm409_vm0, %v275_v27  ;;  %v277_v27 = vld [vmem:[%s1638_s18 + $0x320] sm:$0xff] }
 0x116   : > { %v1077_v30 = vadd.f32 %v1076_v55, %v868_v29  ;;  %914 = vmatmul.f32.gmra.mxu1 %v265_v28  ;;  %v767_v29 = vadd.f32 %v1840_v41, %v1864_v0  ;;  %v290_v0 = vld [vmem:[%s1638_s18 + $0x388] sm:$0xff] }
 0x117   : > { %v1984_v31 = vpop.f32.mrf.mxu3 }
 0x118   : > { %v1242_v32 = vmax.f32 %v1077_v30, 0.0  ;;  %v1085_v33 = vpop.f32.mrf.mxu2  ;;  %v661_v34 = vpop.f32.mrf.mxu0 }
 0x119   : > { %v662_v39 = vadd.f32 %v1840_v41, %v661_v34 }
 0x11a   : > { %1306 = vst.msk [vmem:[%s1852_s23 + $0x68] sm:$0xff] %vm409_vm0, %v1242_v32 }
 0x11b   : > { %v870_v40 = vpop.f32.mrf.mxu1  ;;  %708 = vmatmul.f32.gmra.mxu0 %v267_v35 }
 0x11c   : > { %v871_v44 = vadd.f32 %v870_v40, %v662_v39  ;;  %1013 = vmatmul.f32.gmra.mxu3 %v364_v37  ;;  %v279_v39 = vld [vmem:[%s1638_s18 + $0x330] sm:$0xff]  ;;  %v338_v40 = vld [vmem:[%s1638_s18 + $0x508] sm:$0xff] }
 0x11d   : > { %1455 = vmatmul.msk.f32.gmra.mxu2 %vm409_vm0, %v278_v42 }
 0x11e   : > { %v1080_v45 = vadd.f32 %v1079_v5, %v871_v44  ;;  %917 = vmatmul.f32.gmra.mxu1 %v268_v43  ;;  %v332_v5 = vld [vmem:[%s1638_s18 + $0x4d8] sm:$0xff] }
 0x11f   : > { %v1994_v46 = vpop.f32.mrf.mxu3  ;;  %v280_v44 = vld [vmem:[%s1638_s18 + $0x338] sm:$0xff] }
 0x120   : > { %v1243_v47 = vmax.f32 %v1080_v45, 0.0  ;;  %v1088_v48 = vpop.f32.mrf.mxu2  ;;  %v664_v50 = vpop.f32.mrf.mxu0 }
 0x121   : > { %v665_v55 = vadd.f32 %v1840_v41, %v664_v50 }
 0x122   : > { %1307 = vst.msk [vmem:[%s1852_s23 + $0x70] sm:$0xff] %vm409_vm0, %v1243_v47  ;;  %v770_v47 = vadd.f32 %v1840_v41, %v1874_v12  ;;  %v293_v12 = vld [vmem:[%s1638_s18 + $0x3a0] sm:$0xff] }
 0x123   : > { %v873_v56 = vpop.f32.mrf.mxu1  ;;  %711 = vmatmul.f32.gmra.mxu0 %v270_v51 }
 0x124   : > { %v874_v59 = vadd.f32 %v873_v56, %v665_v55  ;;  %1016 = vmatmul.f32.gmra.mxu3 %v367_v54 }
 0x125   : > { %1456 = vmatmul.msk.f32.gmra.mxu2 %vm409_vm0, %v281_v57  ;;  %v282_v57 = vld [vmem:[%s1638_s18 + $0x348] sm:$0xff] }
 0x126   : > { %v1083_v60 = vadd.f32 %v1082_v19, %v874_v59  ;;  %920 = vmatmul.f32.gmra.mxu1 %v271_v58  ;;  %v341_v58 = vld [vmem:[%s1638_s18 + $0x520] sm:$0xff] }
 0x127   : > { %v2004_v61 = vpop.f32.mrf.mxu3 }
 0x128   : > { %v1244_v63 = vmax.f32 %v1083_v60, 0.0  ;;  %v1091_v1 = vpop.f32.mrf.mxu2  ;;  %v667_v2 = vpop.f32.mrf.mxu0 }
 0x129   : > { %v668_v6 = vadd.f32 %v1840_v41, %v667_v2  ;;  %v773_v2 = vadd.f32 %v1840_v41, %v1884_v24  ;;  %v296_v24 = vld [vmem:[%s1638_s18 + $0x3b8] sm:$0xff] }
 0x12a   : > { %1308 = vst.msk [vmem:[%s1852_s23 + $0x78] sm:$0xff] %vm409_vm0, %v1244_v63  ;;  %v283_v63 = vld [vmem:[%s1638_s18 + $0x350] sm:$0xff] }
 0x12b   : > { %v876_v7 = vpop.f32.mrf.mxu1  ;;  %714 = vmatmul.f32.gmra.mxu0 %v273_v4 }
 0x12c   : > { %v877_v10 = vadd.f32 %v876_v7, %v668_v6  ;;  %1473 = vmatmul.msk.f32.vlgmr.msra.gmra.mxu3 %vm409_vm0, %v332_v5 }
 0x12d   : > { %1457 = vmatmul.msk.f32.gmra.mxu2 %vm409_vm0, %v284_v8 }
 0x12e   : > { %v1086_v14 = vadd.f32 %v1085_v33, %v877_v10  ;;  %923 = vmatmul.f32.gmra.mxu1 %v274_v9  ;;  %v285_v10 = vld [vmem:[%s1638_s18 + $0x360] sm:$0xff] }
 0x12f   : > { %v972_v15 = vpop.f32.mrf.mxu3 }
 0x130   : > { %v1245_v16 = vmax.f32 %v1086_v14, 0.0  ;;  %v2017_v18 = vadd.f32 %v972_v15, %v764_v13  ;;  %v1094_v19 = vpop.f32.mrf.mxu2  ;;  %v670_v20 = vpop.f32.mrf.mxu0  ;;  %v344_v13 = vld [vmem:[%s1638_s18 + $0x538] sm:$0xff] }
 0x131   : > { %v671_v23 = vadd.f32 %v1840_v41, %v670_v20  ;;  %v776_v20 = vadd.f32 %v1840_v41, %v1894_v36  ;;  %v299_v36 = vld [vmem:[%s1638_s18 + $0x3d0] sm:$0xff] }
 0x132   : > { %1309 = vst.msk [vmem:[%s1852_s23 + $0x80] sm:$0xff] %vm409_vm0, %v1245_v16  ;;  %v286_v16 = vld [vmem:[%s1638_s18 + $0x368] sm:$0xff] }
 0x133   : > { %v879_v26 = vpop.f32.mrf.mxu1  ;;  %717 = vmatmul.f32.gmra.mxu0 %v276_v21 }
 0x134   : > { %v880_v28 = vadd.f32 %v879_v26, %v671_v23  ;;  %1474 = vmatmul.msk.f32.gmra.mxu3 %vm409_vm0, %v335_v22 }
 0x135   : > { %1458 = vmatmul.msk.f32.gmra.mxu2 %vm409_vm0, %v287_v52 }
 0x136   : > { %v1089_v30 = vadd.f32 %v1088_v48, %v880_v28  ;;  %926 = vmatmul.f32.gmra.mxu1 %v277_v27  ;;  %v288_v28 = vld [vmem:[%s1638_s18 + $0x378] sm:$0xff] }
 0x137   : > { %v975_v32 = vpop.f32.mrf.mxu3 }
 0x138   : > { %v1246_v33 = vmax.f32 %v1089_v30, 0.0  ;;  %v2030_v34 = vadd.f32 %v975_v32, %v767_v29  ;;  %v1097_v35 = vpop.f32.mrf.mxu2  ;;  %v673_v37 = vpop.f32.mrf.mxu0  ;;  %v347_v29 = vld [vmem:[%s1638_s18 + $0x550] sm:$0xff] }
 0x139   : > { %v674_v42 = vadd.f32 %v1840_v41, %v673_v37  ;;  %v779_v37 = vadd.f32 %v1840_v41, %v1904_v49  ;;  %v302_v49 = vld [vmem:[%s1638_s18 + $0x3e8] sm:$0xff] }
 0x13a   : > { %1310 = vst.msk [vmem:[%s1852_s23 + $0x88] sm:$0xff] %vm409_vm0, %v1246_v33  ;;  %v289_v33 = vld [vmem:[%s1638_s18 + $0x380] sm:$0xff] }
 0x13b   : > { %v882_v43 = vpop.f32.mrf.mxu1  ;;  %720 = vmatmul.f32.gmra.mxu0 %v279_v39 }
 0x13c   : > { %v883_v45 = vadd.f32 %v882_v43, %v674_v42  ;;  %1475 = vmatmul.msk.f32.gmra.mxu3 %vm409_vm0, %v338_v40 }
 0x13d   : > { %1459 = vmatmul.msk.f32.gmra.mxu2 %vm409_vm0, %v290_v0 }
 0x13e   : > { %v1092_v48 = vadd.f32 %v1091_v1, %v883_v45  ;;  %929 = vmatmul.f32.gmra.mxu1 %v280_v44  ;;  %v291_v45 = vld [vmem:[%s1638_s18 + $0x390] sm:$0xff] }
 0x13f   : > { %v978_v50 = vpop.f32.mrf.mxu3 }
 0x140   : > { %v1247_v51 = vmax.f32 %v1092_v48, 0.0  ;;  %v2043_v54 = vadd.f32 %v978_v50, %v770_v47  ;;  %v1100_v55 = vpop.f32.mrf.mxu2  ;;  %v676_v56 = vpop.f32.mrf.mxu0  ;;  %v350_v47 = vld [vmem:[%s1638_s18 + $0x568] sm:$0xff] }
 0x141   : > { %v677_v59 = vadd.f32 %v1840_v41, %v676_v56  ;;  %v782_v56 = vadd.f32 %v1840_v41, %v1914_v62  ;;  %v305_v62 = vld [vmem:[%s1638_s18 + $0x400] sm:$0xff] }
 0x142   : > { %1311 = vst.msk [vmem:[%s1852_s23 + $0x90] sm:$0xff] %vm409_vm0, %v1247_v51  ;;  %v292_v51 = vld [vmem:[%s1638_s18 + $0x398] sm:$0xff] }
 0x143   : > { %v885_v60 = vpop.f32.mrf.mxu1  ;;  %723 = vmatmul.f32.gmra.mxu0 %v282_v57 }
 0x144   : > { %v886_v1 = vadd.f32 %v885_v60, %v677_v59  ;;  %1476 = vmatmul.msk.f32.gmra.mxu3 %vm409_vm0, %v341_v58 }
 0x145   : > { %1460 = vmatmul.msk.f32.gmra.mxu2 %vm409_vm0, %v293_v12 }
 0x146   : > { %v1095_v4 = vadd.f32 %v1094_v19, %v886_v1  ;;  %932 = vmatmul.f32.gmra.mxu1 %v283_v63  ;;  %v294_v1 = vld [vmem:[%s1638_s18 + $0x3a8] sm:$0xff] }
 0x147   : > { %v981_v5 = vpop.f32.mrf.mxu3 }
 0x148   : > { %v1248_v6 = vmax.f32 %v1095_v4, 0.0  ;;  %v2056_v7 = vadd.f32 %v981_v5, %v773_v2  ;;  %v1103_v8 = vpop.f32.mrf.mxu2  ;;  %v679_v9 = vpop.f32.mrf.mxu0  ;;  %v353_v2 = vld [vmem:[%s1638_s18 + $0x580] sm:$0xff] }
 0x149   : > { %v680_v14 = vadd.f32 %v1840_v41, %v679_v9  ;;  %v785_v9 = vadd.f32 %v1840_v41, %v1924_v11  ;;  %v308_v11 = vld [vmem:[%s1638_s18 + $0x418] sm:$0xff] }
 0x14a   : > { %1312 = vst.msk [vmem:[%s1852_s23 + $0x98] sm:$0xff] %vm409_vm0, %v1248_v6  ;;  %v295_v6 = vld [vmem:[%s1638_s18 + $0x3b0] sm:$0xff] }
 0x14b   : > { %v888_v15 = vpop.f32.mrf.mxu1  ;;  %726 = vmatmul.f32.gmra.mxu0 %v285_v10 }
 0x14c   : > { %v889_v19 = vadd.f32 %v888_v15, %v680_v14  ;;  %1477 = vmatmul.msk.f32.gmra.mxu3 %vm409_vm0, %v344_v13 }
 0x14d   : > { %1461 = vmatmul.msk.f32.gmra.mxu2 %vm409_vm0, %v296_v24 }
 0x14e   : > { %v1098_v21 = vadd.f32 %v1097_v35, %v889_v19  ;;  %935 = vmatmul.f32.gmra.mxu1 %v286_v16  ;;  %v297_v19 = vld [vmem:[%s1638_s18 + $0x3c0] sm:$0xff] }
 0x14f   : > { %v984_v22 = vpop.f32.mrf.mxu3 }
 0x150   : > { %v1249_v23 = vmax.f32 %v1098_v21, 0.0  ;;  %v2069_v26 = vadd.f32 %v984_v22, %v776_v20  ;;  %v1106_v52 = vpop.f32.mrf.mxu2  ;;  %v682_v27 = vpop.f32.mrf.mxu0  ;;  %v356_v20 = vld [vmem:[%s1638_s18 + $0x598] sm:$0xff] }
 0x151   : > { %v683_v30 = vadd.f32 %v1840_v41, %v682_v27  ;;  %v788_v27 = vadd.f32 %v1840_v41, %v1934_v25  ;;  %v311_v25 = vld [vmem:[%s1638_s18 + $0x430] sm:$0xff] }
 0x152   : > { %1313 = vst.msk [vmem:[%s1852_s23 + $0xa0] sm:$0xff] %vm409_vm0, %v1249_v23  ;;  %v298_v23 = vld [vmem:[%s1638_s18 + $0x3c8] sm:$0xff] }
 0x153   : > { %v891_v32 = vpop.f32.mrf.mxu1  ;;  %729 = vmatmul.f32.gmra.mxu0 %v288_v28 }
 0x154   : > { %v892_v35 = vadd.f32 %v891_v32, %v683_v30  ;;  %1478 = vmatmul.msk.f32.gmra.mxu3 %vm409_vm0, %v347_v29 }
 0x155   : > { %1462 = vmatmul.msk.f32.gmra.mxu2 %vm409_vm0, %v299_v36 }
 0x156   : > { %v1101_v39 = vadd.f32 %v1100_v55, %v892_v35  ;;  %938 = vmatmul.f32.gmra.mxu1 %v289_v33  ;;  %v300_v35 = vld [vmem:[%s1638_s18 + $0x3d8] sm:$0xff] }
 0x157   : > { %v987_v40 = vpop.f32.mrf.mxu3 }
 0x158   : > { %v1250_v42 = vmax.f32 %v1101_v39, 0.0  ;;  %v2082_v43 = vadd.f32 %v987_v40, %v779_v37  ;;  %v1109_v0 = vpop.f32.mrf.mxu2  ;;  %v685_v44 = vpop.f32.mrf.mxu0  ;;  %v359_v37 = vld [vmem:[%s1638_s18 + $0x5b0] sm:$0xff] }
 0x159   : > { %v686_v48 = vadd.f32 %v1840_v41, %v685_v44  ;;  %v791_v44 = vadd.f32 %v1840_v41, %v1944_v38  ;;  %v314_v38 = vld [vmem:[%s1638_s18 + $0x448] sm:$0xff] }
 0x15a   : > { %1314 = vst.msk [vmem:[%s1852_s23 + $0xa8] sm:$0xff] %vm409_vm0, %v1250_v42  ;;  %v301_v42 = vld [vmem:[%s1638_s18 + $0x3e0] sm:$0xff] }
 0x15b   : > { %v894_v50 = vpop.f32.mrf.mxu1  ;;  %732 = vmatmul.f32.gmra.mxu0 %v291_v45 }
 0x15c   : > { %v895_v55 = vadd.f32 %v894_v50, %v686_v48  ;;  %1479 = vmatmul.msk.f32.gmra.mxu3 %vm409_vm0, %v350_v47 }
 0x15d   : > { %1463 = vmatmul.msk.f32.gmra.mxu2 %vm409_vm0, %v302_v49 }
 0x15e   : > { %v1104_v57 = vadd.f32 %v1103_v8, %v895_v55  ;;  %941 = vmatmul.f32.gmra.mxu1 %v292_v51  ;;  %v303_v55 = vld [vmem:[%s1638_s18 + $0x3f0] sm:$0xff] }
 0x15f   : > { %v990_v58 = vpop.f32.mrf.mxu3 }
 0x160   : > { %v1251_v59 = vmax.f32 %v1104_v57, 0.0  ;;  %v2095_v60 = vadd.f32 %v990_v58, %v782_v56  ;;  %v1112_v12 = vpop.f32.mrf.mxu2  ;;  %v688_v63 = vpop.f32.mrf.mxu0  ;;  %v362_v56 = vld [vmem:[%s1638_s18 + $0x5c8] sm:$0xff] }
 0x161   : > { %v689_v4 = vadd.f32 %v1840_v41, %v688_v63  ;;  %v794_v63 = vadd.f32 %v1840_v41, %v1954_v53  ;;  %v317_v53 = vld [vmem:[%s1638_s18 + $0x460] sm:$0xff] }
 0x162   : > { %1315 = vst.msk [vmem:[%s1852_s23 + $0xb0] sm:$0xff] %vm409_vm0, %v1251_v59  ;;  %v304_v59 = vld [vmem:[%s1638_s18 + $0x3f8] sm:$0xff] }
 0x163   : > { %v897_v5 = vpop.f32.mrf.mxu1  ;;  %735 = vmatmul.f32.gmra.mxu0 %v294_v1 }
 0x164   : > { %v898_v8 = vadd.f32 %v897_v5, %v689_v4  ;;  %1480 = vmatmul.msk.f32.gmra.mxu3 %vm409_vm0, %v353_v2 }
 0x165   : > { %1464 = vmatmul.msk.f32.gmra.mxu2 %vm409_vm0, %v305_v62 }
 0x166   : > { %v1107_v10 = vadd.f32 %v1106_v52, %v898_v8  ;;  %944 = vmatmul.f32.gmra.mxu1 %v295_v6  ;;  %v306_v8 = vld [vmem:[%s1638_s18 + $0x408] sm:$0xff] }
 0x167   : > { %v993_v13 = vpop.f32.mrf.mxu3 }
 0x168   : > { %v1252_v14 = vmax.f32 %v1107_v10, 0.0  ;;  %v2108_v15 = vadd.f32 %v993_v13, %v785_v9  ;;  %v1115_v24 = vpop.f32.mrf.mxu2  ;;  %v691_v16 = vpop.f32.mrf.mxu0  ;;  %v365_v9 = vld [vmem:[%s1638_s18 + $0x5e0] sm:$0xff] }
 0x169   : > { %v692_v21 = vadd.f32 %v1840_v41, %v691_v16  ;;  %v797_v16 = vadd.f32 %v1840_v41, %v1964_v3  ;;  %v310_v3 = vld [vmem:[%s1638_s18 + $0x428] sm:$0xff] }
 0x16a   : > { %1316 = vst.msk [vmem:[%s1852_s23 + $0xb8] sm:$0xff] %vm409_vm0, %v1252_v14  ;;  %v307_v14 = vld [vmem:[%s1638_s18 + $0x410] sm:$0xff] }
 0x16b   : > { %v900_v22 = vpop.f32.mrf.mxu1  ;;  %738 = vmatmul.f32.gmra.mxu0 %v297_v19 }
 0x16c   : > { %v901_v52 = vadd.f32 %v900_v22, %v692_v21  ;;  %1481 = vmatmul.msk.f32.gmra.mxu3 %vm409_vm0, %v356_v20 }
 0x16d   : > { %1465 = vmatmul.msk.f32.gmra.mxu2 %vm409_vm0, %v308_v11 }
 0x16e   : > { %v1110_v28 = vadd.f32 %v1109_v0, %v901_v52  ;;  %947 = vmatmul.f32.gmra.mxu1 %v298_v23  ;;  %v309_v52 = vld [vmem:[%s1638_s18 + $0x420] sm:$0xff] }
 0x16f   : > { %v996_v29 = vpop.f32.mrf.mxu3 }
 0x170   : > { %v1253_v30 = vmax.f32 %v1110_v28, 0.0  ;;  %v2121_v32 = vadd.f32 %v996_v29, %v788_v27  ;;  %v1118_v36 = vpop.f32.mrf.mxu2  ;;  %v694_v33 = vpop.f32.mrf.mxu0  ;;  %v368_v27 = vld [vmem:[%s1638_s18 + $0x5f8] sm:$0xff] }
 0x171   : > { %v695_v39 = vadd.f32 %v1840_v41, %v694_v33  ;;  %v2173_v33 = vld [vmem:[%s2316_s2] ss:$0 sm:$0xff] }
 0x172   : > { %1317 = vst.msk [vmem:[%s1852_s23 + $0xc0] sm:$0xff] %vm409_vm0, %v1253_v30  ;;  %v320_v30 = vld [vmem:[%s1638_s18 + $0x478] sm:$0xff] }
 0x173   : > { %v903_v40 = vpop.f32.mrf.mxu1  ;;  %741 = vmatmul.f32.gmra.mxu0 %v300_v35  ;;  %v800_v35 = vadd.f32 %v2173_v33, %v1974_v17  ;;  %v313_v17 = vld [vmem:[%s1638_s18 + $0x440] sm:$0xff] }
 0x174   : > { %v904_v0 = vadd.f32 %v903_v40, %v695_v39  ;;  %1482 = vmatmul.msk.f32.gmra.mxu3 %vm409_vm0, %v359_v37 }
 0x175   : > { %1466 = vmatmul.msk.f32.gmra.mxu2 %vm409_vm0, %v311_v25 }
 0x176   : > { %v1113_v45 = vadd.f32 %v1112_v12, %v904_v0  ;;  %950 = vmatmul.f32.gmra.mxu1 %v301_v42  ;;  %v312_v0 = vld [vmem:[%s1638_s18 + $0x438] sm:$0xff] }
 0x177   : > { %v999_v47 = vpop.f32.mrf.mxu3 }
 0x178   : > { %v1254_v48 = vmax.f32 %v1113_v45, 0.0  ;;  %v2134_v50 = vadd.f32 %v999_v47, %v791_v44  ;;  %v1121_v49 = vpop.f32.mrf.mxu2  ;;  %v697_v51 = vpop.f32.mrf.mxu0  ;;  %v323_v47 = vld [vmem:[%s1638_s18 + $0x490] sm:$0xff] }
 0x179   : > { %v698_v57 = vadd.f32 %v1840_v41, %v697_v51 }
 0x17a   : > { %1318 = vst.msk [vmem:[%s1852_s23 + $0xc8] sm:$0xff] %vm409_vm0, %v1254_v48 }
 0x17b   : > { %v906_v58 = vpop.f32.mrf.mxu1  ;;  %744 = vmatmul.f32.gmra.mxu0 %v303_v55 }
 0x17c   : > { %v907_v12 = vadd.f32 %v906_v58, %v698_v57  ;;  %1483 = vmatmul.msk.f32.gmra.mxu3 %vm409_vm0, %v362_v56 }
 0x17d   : > { %1467 = vmatmul.msk.f32.gmra.mxu2 %vm409_vm0, %v314_v38 }
 0x17e   : > { %v1116_v1 = vadd.f32 %v1115_v24, %v907_v12  ;;  %953 = vmatmul.f32.gmra.mxu1 %v304_v59  ;;  %v315_v59 = vld [vmem:[%s1638_s18 + $0x450] sm:$0xff] }
 0x17f   : > { %v1002_v2 = vpop.f32.mrf.mxu3 }
 0x180   : > { %v1255_v4 = vmax.f32 %v1116_v1, 0.0  ;;  %v2147_v5 = vadd.f32 %v1002_v2, %v794_v63  ;;  %v1124_v62 = vpop.f32.mrf.mxu2  ;;  %v700_v6 = vpop.f32.mrf.mxu0  ;;  %v326_v1 = vld [vmem:[%s1638_s18 + $0x4a8] sm:$0xff] }
 0x181   : > { %v701_v10 = vadd.f32 %v1840_v41, %v700_v6 }
 0x182   : > { %1319 = vst.msk [vmem:[%s1852_s23 + $0xd0] sm:$0xff] %vm409_vm0, %v1255_v4  ;;  %v806_v4 = vadd.f32 %v2173_v33, %v1994_v46 }
 0x183   : > { %v909_v13 = vpop.f32.mrf.mxu1  ;;  %747 = vmatmul.f32.gmra.mxu0 %v306_v8 }
 0x184   : > { %v910_v24 = vadd.f32 %v909_v13, %v701_v10  ;;  %1484 = vmatmul.msk.f32.gmra.mxu3 %vm409_vm0, %v365_v9 }
 0x185   : > { %1468 = vmatmul.msk.f32.gmra.mxu2 %vm409_vm0, %v317_v53  ;;  %v318_v53 = vld [vmem:[%s1638_s18 + $0x468] sm:$0xff] }
 0x186   : > { %v1119_v19 = vadd.f32 %v1118_v36, %v910_v24  ;;  %956 = vmatmul.f32.gmra.mxu1 %v307_v14 }
 0x187   : > { %v1005_v20 = vpop.f32.mrf.mxu3 }
 0x188   : > { %v1256_v21 = vmax.f32 %v1119_v19, 0.0  ;;  %v2160_v22 = vadd.f32 %v1005_v20, %v797_v16  ;;  %v1127_v11 = vpop.f32.mrf.mxu2  ;;  %v703_v23 = vpop.f32.mrf.mxu0  ;;  %v329_v16 = vld [vmem:[%s1638_s18 + $0x4c0] sm:$0xff]  ;;  %v319_v19 = vld [vmem:[%s1638_s18 + $0x470] sm:$0xff]  ;;  %v809_v20 = vadd.f32 %v2173_v33, %v2004_v61 }
 0x189   : > { %v704_v28 = vadd.f32 %v1840_v41, %v703_v23 }
 0x18a   : > { %1320 = vst.msk [vmem:[%s1852_s23 + $0xd8] sm:$0xff] %vm409_vm0, %v1256_v21 }
 0x18b   : > { %v912_v29 = vpop.f32.mrf.mxu1  ;;  %750 = vmatmul.f32.gmra.mxu0 %v309_v52 }
 0x18c   : > { %v913_v36 = vadd.f32 %v912_v29, %v704_v28  ;;  %1485 = vmatmul.msk.f32.gmra.mxu3 %vm409_vm0, %v368_v27 }
 0x18d   : > { %1469 = vmatmul.msk.f32.gmra.mxu2 %vm409_vm0, %v320_v30 }
 0x18e   : > { %v1122_v41 = vadd.f32 %v1121_v49, %v913_v36  ;;  %959 = vmatmul.f32.gmra.mxu1 %v310_v3  ;;  %v803_v49 = vadd.f32 %v2173_v33, %v1984_v31  ;;  %v316_v31 = vld [vmem:[%s1638_s18 + $0x458] sm:$0xff] }
 0x18f   : > { %v1008_v37 = vpop.f32.mrf.mxu3 }
 0x190   : > { %v1257_v39 = vmax.f32 %v1122_v41, 0.0  ;;  %v2178_v40 = vadd.f32 %v1008_v37, %v800_v35  ;;  %v1130_v25 = vpop.f32.mrf.mxu2  ;;  %v706_v42 = vpop.f32.mrf.mxu0 }
 0x191   : > { %v707_v44 = vadd.f32 %v2173_v33, %v706_v42 }
 0x192   : > { %1321 = vst.msk [vmem:[%s1852_s23 + $0xe0] sm:$0xff] %vm409_vm0, %v1257_v39 }
 0x193   : > { %v915_v45 = vpop.f32.mrf.mxu1  ;;  %753 = vmatmul.f32.gmra.mxu0 %v312_v0 }
 0x194   : > { %v916_v48 = vadd.f32 %v915_v45, %v707_v44 }
 0x195   : > { %1470 = vmatmul.msk.f32.gmra.mxu2 %vm409_vm0, %v323_v47 }
 0x196   : > { %v1125_v51 = vadd.f32 %v1124_v62, %v916_v48  ;;  %962 = vmatmul.f32.gmra.mxu1 %v313_v17 }
 0x197   : > { %v1011_v55 = vpop.f32.mrf.mxu3 }
 0x198   : > { %v1258_v56 = vmax.f32 %v1125_v51, 0.0  ;;  %v2189_v57 = vadd.f32 %v1011_v55, %v803_v49  ;;  %v1133_v58 = vpop.f32.mrf.mxu2  ;;  %v709_v38 = vpop.f32.mrf.mxu0 }
 0x199   : > { %v710_v12 = vadd.f32 %v2173_v33, %v709_v38 }
 0x19a   : > { %1322 = vst.msk [vmem:[%s1852_s23 + $0xe8] sm:$0xff] %vm409_vm0, %v1258_v56 }
 0x19b   : > { %v918_v63 = vpop.f32.mrf.mxu1  ;;  %756 = vmatmul.f32.gmra.mxu0 %v315_v59 }
 0x19c   : > { %v919_v2 = vadd.f32 %v918_v63, %v710_v12 }
 0x19d   : > { %1471 = vmatmul.msk.f32.gmra.mxu2 %vm409_vm0, %v326_v1 }
 0x19e   : > { %v1128_v62 = vadd.f32 %v1127_v11, %v919_v2  ;;  %965 = vmatmul.f32.gmra.mxu1 %v316_v31 }
 0x19f   : > { %v1014_v6 = vpop.f32.mrf.mxu3 }
 0x1a0   : > { %v1259_v8 = vmax.f32 %v1128_v62, 0.0  ;;  %v2200_v9 = vadd.f32 %v1014_v6, %v806_v4  ;;  %v1136_v10 = vpop.f32.mrf.mxu2  ;;  %v712_v13 = vpop.f32.mrf.mxu0 }
 0x1a1   : > { %v713_v14 = vadd.f32 %v2173_v33, %v712_v13 }
 0x1a2   : > { %1323 = vst.msk [vmem:[%s1852_s23 + $0xf0] sm:$0xff] %vm409_vm0, %v1259_v8 }
 0x1a3   : > { %v921_v24 = vpop.f32.mrf.mxu1  ;;  %759 = vmatmul.f32.gmra.mxu0 %v318_v53 }
 0x1a4   : > { %v922_v46 = vadd.f32 %v921_v24, %v713_v14 }
 0x1a5   : > { %1472 = vmatmul.msk.f32.gmra.mxu2 %vm409_vm0, %v329_v16 }
 0x1a6   : > { %v1131_v21 = vadd.f32 %v1130_v25, %v922_v46  ;;  %968 = vmatmul.f32.gmra.mxu1 %v319_v19 }
 0x1a7   : > { %v1017_v11 = vpop.f32.mrf.mxu3 }
 0x1a8   : > { %v1260_v23 = vmax.f32 %v1131_v21, 0.0  ;;  %v2211_v52 = vadd.f32 %v1017_v11, %v809_v20  ;;  %v1139_v27 = vpop.f32.mrf.mxu2  ;;  %v715_v28 = vpop.f32.mrf.mxu0 }
 0x1a9   : > { %v716_v29 = vadd.f32 %v2173_v33, %v715_v28 }
 0x1aa   : > { %1324 = vst.msk [vmem:[%s1852_s23 + $0xf8] sm:$0xff] %vm409_vm0, %v1260_v23 }
 0x1ab   : > { %v924_v30 = vpop.f32.mrf.mxu1 }
 0x1ac   : > { %v925_v3 = vadd.f32 %v924_v30, %v716_v29 }
 0x1ae   : > { %v1134_v36 = vadd.f32 %v1133_v58, %v925_v3 }
 0x1af   : > { %v1190_v61 = vpop.f32.mrf.mxu3 }
 0x1b0   : > { %v1261_v35 = vmax.f32 %v1134_v36, 0.0  ;;  %v1191_v41 = vadd.f32 %v1190_v61, %v2056_v7  ;;  %v1142_v37 = vpop.f32.mrf.mxu2  ;;  %v718_v39 = vpop.f32.mrf.mxu0 }
 0x1b1   : > { %v719_v42 = vadd.f32 %v2173_v33, %v718_v39 }
 0x1b2   : > { %1325 = vst.msk [vmem:[%s1852_s23 + $0x100] sm:$0xff] %vm409_vm0, %v1261_v35  ;;  %v1280_v25 = vmax.f32 %v1191_v41, 0.0 }
 0x1b3   : > { %v927_v0 = vpop.f32.mrf.mxu1 }
 0x1b4   : > { %1344 = vst.msk [vmem:[%s1852_s23 + $0x198] sm:$0xff] %vm409_vm0, %v1280_v25  ;;  %v928_v44 = vadd.f32 %v927_v0, %v719_v42 }
 0x1b6   : > { %v1137_v45 = vadd.f32 %v1136_v10, %v928_v44 }
 0x1b7   : > { %v1193_v47 = vpop.f32.mrf.mxu3 }
 0x1b8   : > { %v1262_v17 = vmax.f32 %v1137_v45, 0.0  ;;  %v1194_v48 = vadd.f32 %v1193_v47, %v2069_v26  ;;  %v1145_v49 = vpop.f32.mrf.mxu2  ;;  %v721_v7 = vpop.f32.mrf.mxu0 }
 0x1b9   : > { %v722_v55 = vadd.f32 %v2173_v33, %v721_v7 }
 0x1ba   : > { %1326 = vst.msk [vmem:[%s1852_s23 + $0x108] sm:$0xff] %vm409_vm0, %v1262_v17  ;;  %v1281_v51 = vmax.f32 %v1194_v48, 0.0 }
 0x1bb   : > { %v930_v56 = vpop.f32.mrf.mxu1 }
 0x1bc   : > { %1345 = vst.msk [vmem:[%s1852_s23 + $0x1a0] sm:$0xff] %vm409_vm0, %v1281_v51  ;;  %v931_v58 = vadd.f32 %v930_v56, %v722_v55 }
 0x1be   : > { %v1140_v38 = vadd.f32 %v1139_v27, %v931_v58 }
 0x1bf   : > { %v1196_v59 = vpop.f32.mrf.mxu3 }
 0x1c0   : > { %v1263_v12 = vmax.f32 %v1140_v38, 0.0  ;;  %v1197_v63 = vadd.f32 %v1196_v59, %v2082_v43  ;;  %v1148_v1 = vpop.f32.mrf.mxu2  ;;  %v724_v26 = vpop.f32.mrf.mxu0 }
 0x1c1   : > { %v725_v2 = vadd.f32 %v2173_v33, %v724_v26 }
 0x1c2   : > { %1327 = vst.msk [vmem:[%s1852_s23 + $0x110] sm:$0xff] %vm409_vm0, %v1263_v12  ;;  %v1282_v31 = vmax.f32 %v1197_v63, 0.0 }
 0x1c3   : > { %v933_v4 = vpop.f32.mrf.mxu1 }
 0x1c4   : > { %1346 = vst.msk [vmem:[%s1852_s23 + $0x1a8] sm:$0xff] %vm409_vm0, %v1282_v31  ;;  %v934_v62 = vadd.f32 %v933_v4, %v725_v2 }
 0x1c6   : > { %v1143_v6 = vadd.f32 %v1142_v37, %v934_v62 }
 0x1c7   : > { %v1199_v8 = vpop.f32.mrf.mxu3 }
 0x1c8   : > { %v1264_v10 = vmax.f32 %v1143_v6, 0.0  ;;  %v1200_v13 = vadd.f32 %v1199_v8, %v2095_v60  ;;  %v1151_v53 = vpop.f32.mrf.mxu2  ;;  %v727_v43 = vpop.f32.mrf.mxu0 }
 0x1c9   : > { %v728_v24 = vadd.f32 %v2173_v33, %v727_v43 }
 0x1ca   : > { %1328 = vst.msk [vmem:[%s1852_s23 + $0x118] sm:$0xff] %vm409_vm0, %v1264_v10  ;;  %v1283_v14 = vmax.f32 %v1200_v13, 0.0 }
 0x1cb   : > { %v936_v16 = vpop.f32.mrf.mxu1 }
 0x1cc   : > { %1347 = vst.msk [vmem:[%s1852_s23 + $0x1b0] sm:$0xff] %vm409_vm0, %v1283_v14  ;;  %v937_v19 = vadd.f32 %v936_v16, %v728_v24 }
 0x1ce   : > { %v1146_v46 = vadd.f32 %v1145_v49, %v937_v19 }
 0x1cf   : > { %v1202_v20 = vpop.f32.mrf.mxu3 }
 0x1d0   : > { %v1265_v21 = vmax.f32 %v1146_v46, 0.0  ;;  %v1203_v11 = vadd.f32 %v1202_v20, %v2108_v15  ;;  %v1154_v23 = vpop.f32.mrf.mxu2  ;;  %v730_v60 = vpop.f32.mrf.mxu0 }
 0x1d1   : > { %v731_v28 = vadd.f32 %v2173_v33, %v730_v60 }
 0x1d2   : > { %1329 = vst.msk [vmem:[%s1852_s23 + $0x120] sm:$0xff] %vm409_vm0, %v1265_v21  ;;  %v1284_v27 = vmax.f32 %v1203_v11, 0.0 }
 0x1d3   : > { %v939_v29 = vpop.f32.mrf.mxu1 }
 0x1d4   : > { %1348 = vst.msk [vmem:[%s1852_s23 + $0x1b8] sm:$0xff] %vm409_vm0, %v1284_v27  ;;  %v940_v30 = vadd.f32 %v939_v29, %v731_v28 }
 0x1d6   : > { %v1149_v3 = vadd.f32 %v1148_v1, %v940_v30 }
 0x1d7   : > { %v1205_v36 = vpop.f32.mrf.mxu3 }
 0x1d8   : > { %v1266_v61 = vmax.f32 %v1149_v3, 0.0  ;;  %v1206_v35 = vadd.f32 %v1205_v36, %v2121_v32  ;;  %v1157_v41 = vpop.f32.mrf.mxu2  ;;  %v733_v15 = vpop.f32.mrf.mxu0 }
 0x1d9   : > { %v734_v39 = vadd.f32 %v2173_v33, %v733_v15 }
 0x1da   : > { %1330 = vst.msk [vmem:[%s1852_s23 + $0x128] sm:$0xff] %vm409_vm0, %v1266_v61  ;;  %v1285_v37 = vmax.f32 %v1206_v35, 0.0 }
 0x1db   : > { %v942_v25 = vpop.f32.mrf.mxu1 }
 0x1dc   : > { %1349 = vst.msk [vmem:[%s1852_s23 + $0x1c0] sm:$0xff] %vm409_vm0, %v1285_v37  ;;  %v943_v42 = vadd.f32 %v942_v25, %v734_v39 }
 0x1de   : > { %v1152_v0 = vadd.f32 %v1151_v53, %v943_v42 }
 0x1df   : > { %v1208_v44 = vpop.f32.mrf.mxu3 }
 0x1e0   : > { %v1267_v45 = vmax.f32 %v1152_v0, 0.0  ;;  %v1209_v47 = vadd.f32 %v1208_v44, %v2134_v50  ;;  %v1160_v17 = vpop.f32.mrf.mxu2  ;;  %v736_v32 = vpop.f32.mrf.mxu0 }
 0x1e1   : > { %v737_v49 = vadd.f32 %v2173_v33, %v736_v32 }
 0x1e2   : > { %1331 = vst.msk [vmem:[%s1852_s23 + $0x130] sm:$0xff] %vm409_vm0, %v1267_v45  ;;  %v1286_v48 = vmax.f32 %v1209_v47, 0.0 }
 0x1e3   : > { %v945_v7 = vpop.f32.mrf.mxu1 }
 0x1e4   : > { %1350 = vst.msk [vmem:[%s1852_s23 + $0x1c8] sm:$0xff] %vm409_vm0, %v1286_v48  ;;  %v946_v51 = vadd.f32 %v945_v7, %v737_v49 }
 0x1e6   : > { %v1155_v55 = vadd.f32 %v1154_v23, %v946_v51 }
 0x1e7   : > { %v1211_v56 = vpop.f32.mrf.mxu3 }
 0x1e8   : > { %v1268_v58 = vmax.f32 %v1155_v55, 0.0  ;;  %v1212_v38 = vadd.f32 %v1211_v56, %v2147_v5  ;;  %v1163_v59 = vpop.f32.mrf.mxu2  ;;  %v739_v50 = vpop.f32.mrf.mxu0 }
 0x1e9   : > { %v740_v63 = vadd.f32 %v2173_v33, %v739_v50 }
 0x1ea   : > { %1332 = vst.msk [vmem:[%s1852_s23 + $0x138] sm:$0xff] %vm409_vm0, %v1268_v58  ;;  %v1287_v12 = vmax.f32 %v1212_v38, 0.0 }
 0x1eb   : > { %v948_v1 = vpop.f32.mrf.mxu1 }
 0x1ec   : > { %1351 = vst.msk [vmem:[%s1852_s23 + $0x1d0] sm:$0xff] %vm409_vm0, %v1287_v12  ;;  %v949_v26 = vadd.f32 %v948_v1, %v740_v63 }
 0x1ee   : > { %v1158_v31 = vadd.f32 %v1157_v41, %v949_v26 }
 0x1ef   : > { %v1214_v2 = vpop.f32.mrf.mxu3 }
 0x1f0   : > { %v1269_v4 = vmax.f32 %v1158_v31, 0.0  ;;  %v1215_v62 = vadd.f32 %v1214_v2, %v2160_v22  ;;  %v1166_v6 = vpop.f32.mrf.mxu2  ;;  %v742_v5 = vpop.f32.mrf.mxu0 }
 0x1f1   : > { %v743_v10 = vadd.f32 %v2173_v33, %v742_v5 }
 0x1f2   : > { %1333 = vst.msk [vmem:[%s1852_s23 + $0x140] sm:$0xff] %vm409_vm0, %v1269_v4  ;;  %v1288_v8 = vmax.f32 %v1215_v62, 0.0 }
 0x1f3   : > { %v951_v13 = vpop.f32.mrf.mxu1 }
 0x1f4   : > { %1352 = vst.msk [vmem:[%s1852_s23 + $0x1d8] sm:$0xff] %vm409_vm0, %v1288_v8  ;;  %v952_v53 = vadd.f32 %v951_v13, %v743_v10 }
 0x1f6   : > { %v1161_v43 = vadd.f32 %v1160_v17, %v952_v53 }
 0x1f7   : > { %v1217_v14 = vpop.f32.mrf.mxu3 }
 0x1f8   : > { %v1270_v24 = vmax.f32 %v1161_v43, 0.0  ;;  %v1218_v16 = vadd.f32 %v1217_v14, %v2178_v40  ;;  %v1169_v19 = vpop.f32.mrf.mxu2  ;;  %v745_v22 = vpop.f32.mrf.mxu0 }
 0x1f9   : > { %v746_v20 = vadd.f32 %v2173_v33, %v745_v22 }
 0x1fa   : > { %1334 = vst.msk [vmem:[%s1852_s23 + $0x148] sm:$0xff] %vm409_vm0, %v1270_v24  ;;  %v1289_v46 = vmax.f32 %v1218_v16, 0.0 }
 0x1fb   : > { %v954_v21 = vpop.f32.mrf.mxu1 }
 0x1fc   : > { %1353 = vst.msk [vmem:[%s1852_s23 + $0x1e0] sm:$0xff] %vm409_vm0, %v1289_v46  ;;  %v955_v11 = vadd.f32 %v954_v21, %v746_v20 }
 0x1fe   : > { %v1164_v23 = vadd.f32 %v1163_v59, %v955_v11 }
 0x1ff   : > { %v1220_v60 = vpop.f32.mrf.mxu3 }
 0x200   : > { %v1271_v27 = vmax.f32 %v1164_v23, 0.0  ;;  %v1221_v28 = vadd.f32 %v1220_v60, %v2189_v57  ;;  %v1172_v29 = vpop.f32.mrf.mxu2  ;;  %v748_v40 = vpop.f32.mrf.mxu0 }
 0x201   : > { %v749_v3 = vadd.f32 %v2173_v33, %v748_v40 }
 0x202   : > { %1335 = vst.msk [vmem:[%s1852_s23 + $0x150] sm:$0xff] %vm409_vm0, %v1271_v27  ;;  %v1290_v30 = vmax.f32 %v1221_v28, 0.0 }
 0x203   : > { %v957_v36 = vpop.f32.mrf.mxu1 }
 0x204   : > { %1354 = vst.msk [vmem:[%s1852_s23 + $0x1e8] sm:$0xff] %vm409_vm0, %v1290_v30  ;;  %v958_v61 = vadd.f32 %v957_v36, %v749_v3 }
 0x206   : > { %v1167_v35 = vadd.f32 %v1166_v6, %v958_v61 }
 0x207   : > { %v1223_v41 = vpop.f32.mrf.mxu3 }
 0x208   : > { %v1272_v15 = vmax.f32 %v1167_v35, 0.0  ;;  %v1224_v37 = vadd.f32 %v1223_v41, %v2200_v9  ;;  %v1175_v39 = vpop.f32.mrf.mxu2  ;;  %v751_v57 = vpop.f32.mrf.mxu0 }
 0x209   : > { %v752_v42 = vadd.f32 %v2173_v33, %v751_v57 }
 0x20a   : > { %1336 = vst.msk [vmem:[%s1852_s23 + $0x158] sm:$0xff] %vm409_vm0, %v1272_v15  ;;  %v1291_v25 = vmax.f32 %v1224_v37, 0.0 }
 0x20b   : > { %v960_v0 = vpop.f32.mrf.mxu1 }
 0x20c   : > { %1355 = vst.msk [vmem:[%s1852_s23 + $0x1f0] sm:$0xff] %vm409_vm0, %v1291_v25  ;;  %v961_v44 = vadd.f32 %v960_v0, %v752_v42 }
 0x20e   : > { %v1170_v45 = vadd.f32 %v1169_v19, %v961_v44 }
 0x20f   : > { %v1226_v47 = vpop.f32.mrf.mxu3 }
 0x210   : > { %v1273_v17 = vmax.f32 %v1170_v45, 0.0  ;;  %v1227_v32 = vadd.f32 %v1226_v47, %v2211_v52  ;;  %v1178_v48 = vpop.f32.mrf.mxu2  ;;  %v754_v9 = vpop.f32.mrf.mxu0 }
 0x211   : > { %v755_v7 = vadd.f32 %v2173_v33, %v754_v9 }
 0x212   : > { %1337 = vst.msk [vmem:[%s1852_s23 + $0x160] sm:$0xff] %vm409_vm0, %v1273_v17  ;;  %v1292_v49 = vmax.f32 %v1227_v32, 0.0 }
 0x213   : > { %v963_v51 = vpop.f32.mrf.mxu1 }
 0x214   : > { %1356 = vst.msk [vmem:[%s1852_s23 + $0x1f8] sm:$0xff] %vm409_vm0, %v1292_v49  ;;  %v964_v55 = vadd.f32 %v963_v51, %v755_v7 }
 0x216   : > { %v1173_v56 = vadd.f32 %v1172_v29, %v964_v55 }
 0x218   : > { %v1274_v58 = vmax.f32 %v1173_v56, 0.0  ;;  %v1181_v38 = vpop.f32.mrf.mxu2  ;;  %v757_v59 = vpop.f32.mrf.mxu0 }
 0x219   : > { %v1182_v52 = vadd.f32 %v1181_v38, %v2017_v18  ;;  %v758_v50 = vadd.f32 %v2173_v33, %v757_v59 }
 0x21a   : > { %1338 = vst.msk [vmem:[%s1852_s23 + $0x168] sm:$0xff] %vm409_vm0, %v1274_v58 }
 0x21b   : > { %v966_v12 = vpop.f32.mrf.mxu1  ;;  %v1277_v63 = vmax.f32 %v1182_v52, 0.0 }
 0x21c   : > { %v967_v1 = vadd.f32 %v966_v12, %v758_v50 }
 0x21d   : > { %1341 = vst.msk [vmem:[%s1852_s23 + $0x180] sm:$0xff] %vm409_vm0, %v1277_v63 }
 0x21e   : > { %v1176_v26 = vadd.f32 %v1175_v39, %v967_v1 }
 0x220   : > { %v1275_v31 = vmax.f32 %v1176_v26, 0.0  ;;  %v1184_v2 = vpop.f32.mrf.mxu2  ;;  %v760_v4 = vpop.f32.mrf.mxu0 }
 0x221   : > { %v1185_v62 = vadd.f32 %v1184_v2, %v2030_v34  ;;  %v761_v18 = vadd.f32 %v2173_v33, %v760_v4 }
 0x222   : > { %1339 = vst.msk [vmem:[%s1852_s23 + $0x170] sm:$0xff] %vm409_vm0, %v1275_v31 }
 0x223   : > { %v969_v6 = vpop.f32.mrf.mxu1  ;;  %v1278_v5 = vmax.f32 %v1185_v62, 0.0 }
 0x224   : > { %v970_v8 = vadd.f32 %v969_v6, %v761_v18 }
 0x225   : > { %1342 = vst.msk [vmem:[%s1852_s23 + $0x188] sm:$0xff] %vm409_vm0, %v1278_v5 }
 0x226   : > { %v1179_v10 = vadd.f32 %v1178_v48, %v970_v8 }
 0x228   : > { %v1276_v13 = vmax.f32 %v1179_v10, 0.0  ;;  %v1187_v53 = vpop.f32.mrf.mxu2 }
 0x229   : > { %v1188_v43 = vadd.f32 %v1187_v53, %v2043_v54 }
 0x22a   : > { %1340 = vst.msk [vmem:[%s1852_s23 + $0x178] sm:$0xff] %vm409_vm0, %v1276_v13 }
 0x22b   : > { %v1279_v14 = vmax.f32 %v1188_v43, 0.0 }
 0x22d   : > { %1343 = vst.msk [vmem:[%s1852_s23 + $0x190] sm:$0xff] %vm409_vm0, %v1279_v14 }
 0x22e PF: > { %s13_s12 = sadd.s32 1, %s1541_s12  }
 0x22f   : > { %p10_p4 = scmp.ge.s32.totalorder %s13_s12, 4  }
 0x231   :  { %12 = sbr.rel (!%p10_p4) target bundleno = 1 (0x1), region = 62 }

// kernel: _lambda_.8
= control target key start
LH: loop header
LB: loop body
LE: loop exit
PB: predicated region body
PF: predicated region fallthrough
CT: control target
= control target key end

     0   :  { %vm147_vm0 = vcmask 261120   ;;  %s1407_s1 = inlined_call_operand.vmem [shape: f32[288,32], index: 1, kind: input, shape index: {}]   ;;  %s1408_s0 = inlined_call_operand.vmem [shape: f32[248,288], index: 0, kind: input, shape index: {}]   ;;  %s1409_s2 = inlined_call_operand.vmem [shape: f32[1,32], index: 2, kind: input, shape index: {}]   ;;  %s1410_s3 = inlined_call_operand.vmem [shape: f32[248,32], index: 3, kind: output, shape index: {}]  }
   0x1   :  { %v122_v0 = vld [vmem:[%s1407_s1 + $0x78] sm:$0xff]  ;;  %v121_v2 = vld [vmem:[%s1407_s1 + $0x70] sm:$0xff]  ;;  %v120_v5 = vld [vmem:[%s1407_s1 + $0x68] sm:$0xff] }
   0x2   :  { %v731_v1 = vld [vmem:[%s1407_s1 + $0x118] sm:$0xff]  ;;  %241 = vmatpush.msra.mxu0 %v122_v0  ;;  %668 = vmatpush.msra.mxu3 %v122_v0  ;;  %v744_v4 = vld [vmem:[%s1407_s1 + $0x110] sm:$0xff]  ;;  %v759_v7 = vld [vmem:[%s1407_s1 + $0x108] sm:$0xff] }
   0x3   :  { %v739_v3 = vld [vmem:[%s1407_s1 + $0xf8] sm:$0xff]  ;;  %473 = vmatpush.msra.mxu2 %v731_v1  ;;  %v754_v6 = vld [vmem:[%s1407_s1 + $0xf0] sm:$0xff]  ;;  %v764_v8 = vld [vmem:[%s1407_s1 + $0xe8] sm:$0xff] }
   0x4   :  { %351 = vmatpush.msra.mxu1 %v739_v3  ;;  %242 = vmatpush.msra.mxu0 %v121_v2  ;;  %v119_v9 = vld [vmem:[%s1407_s1 + $0x60] sm:$0xff]  ;;  %v16_v12 = vld [vmem:[%s1408_s0 + $0x10] sm:$0xff]  ;;  %v118_v13 = vld [vmem:[%s1407_s1 + $0x58] sm:$0xff] }
   0x5   :  { %669 = vmatpush.msra.mxu3 %v121_v2  ;;  %474 = vmatpush.msra.mxu2 %v744_v4  ;;  %v774_v10 = vld [vmem:[%s1407_s1 + $0x100] sm:$0xff]  ;;  %v792_v14 = vld [vmem:[%s1407_s1 + $0xd8] sm:$0xff]  ;;  %v117_v15 = vld [vmem:[%s1407_s1 + $0x50] sm:$0xff] }
   0x6   :  { %352 = vmatpush.msra.mxu1 %v754_v6  ;;  %243 = vmatpush.msra.mxu0 %v120_v5  ;;  %v779_v11 = vld [vmem:[%s1407_s1 + $0xe0] sm:$0xff]  ;;  %v803_v16 = vld [vmem:[%s1407_s1 + $0xd0] sm:$0xff]  ;;  %v116_v17 = vld [vmem:[%s1407_s1 + $0x48] sm:$0xff] }
   0x7   :  { %670 = vmatpush.msra.mxu3 %v120_v5  ;;  %475 = vmatpush.msra.mxu2 %v759_v7  ;;  %v812_v18 = vld [vmem:[%s1407_s1 + $0xc8] sm:$0xff]  ;;  %v115_v19 = vld [vmem:[%s1407_s1 + $0x40] sm:$0xff]  ;;  %v114_v22 = vld [vmem:[%s1407_s1 + $0x38] sm:$0xff] }
   0x8   :  { %353 = vmatpush.msra.mxu1 %v764_v8  ;;  %244 = vmatpush.msra.mxu0 %v119_v9  ;;  %v821_v20 = vld [vmem:[%s1407_s1 + $0xc0] sm:$0xff]  ;;  %v19_v21 = vld [vmem:[%s1408_s0 + $0x28] sm:$0xff]  ;;  %v833_v23 = vld [vmem:[%s1407_s1 + $0xb8] sm:$0xff] }
   0x9   :  { %671 = vmatpush.msra.mxu3 %v119_v9  ;;  %476 = vmatpush.msra.mxu2 %v774_v10  ;;  %v113_v24 = vld [vmem:[%s1407_s1 + $0x30] sm:$0xff]  ;;  %v112_v26 = vld [vmem:[%s1407_s1 + $0x28] sm:$0xff]  ;;  %v111_v28 = vld [vmem:[%s1407_s1 + $0x20] sm:$0xff] }
   0xa   :  { %354 = vmatpush.msra.mxu1 %v779_v11  ;;  %637 = vmatmul.msk.f32.vlgmr.msra.gmra.mxu2 %vm147_vm0, %v16_v12  ;;  %v843_v25 = vld [vmem:[%s1407_s1 + $0xb0] sm:$0xff]  ;;  %v852_v27 = vld [vmem:[%s1407_s1 + $0xa8] sm:$0xff]  ;;  %v861_v29 = vld [vmem:[%s1407_s1 + $0xa0] sm:$0xff] }
   0xb   :  { %245 = vmatpush.msra.mxu0 %v118_v13  ;;  %672 = vmatpush.msra.mxu3 %v118_v13  ;;  %v22_v30 = vld [vmem:[%s1408_s0 + $0x40] sm:$0xff]  ;;  %v110_v31 = vld [vmem:[%s1407_s1 + $0x18] sm:$0xff]  ;;  %v109_v33 = vld [vmem:[%s1407_s1 + $0x10] sm:$0xff] }
   0xc   :  { %355 = vmatpush.msra.mxu1 %v792_v14  ;;  %v873_v32 = vld [vmem:[%s1407_s1 + $0x98] sm:$0xff]  ;;  %v125_v34 = vld [vmem:[%s1407_s1 + $0x90] sm:$0xff]  ;;  %v108_v35 = vld [vmem:[%s1407_s1 + $0x8] sm:$0xff] }
   0xd   :  { %246 = vmatpush.msra.mxu0 %v117_v15  ;;  %673 = vmatpush.msra.mxu3 %v117_v15  ;;  %v124_v36 = vld [vmem:[%s1407_s1 + $0x88] sm:$0xff]  ;;  %v107_v37 = vld [vmem:[%s1407_s1] sm:$0xff]  ;;  %v25_v40 = vld [vmem:[%s1408_s0 + $0x58] sm:$0xff] }
   0xe   :  { %356 = vmatpush.msra.mxu1 %v803_v16  ;;  %v14_v38 = vld [vmem:[%s1408_s0] sm:$0xff]  ;;  %v83_v39 = vld [vmem:[%s1408_s0 + $0x228] sm:$0xff]  ;;  %v17_v43 = vld [vmem:[%s1408_s0 + $0x18] sm:$0xff] }
   0xf   :  { %247 = vmatpush.msra.mxu0 %v116_v17  ;;  %674 = vmatpush.msra.mxu3 %v116_v17  ;;  %v123_v41 = vld [vmem:[%s1407_s1 + $0x80] sm:$0xff]  ;;  %v15_v42 = vld [vmem:[%s1408_s0 + $0x8] sm:$0xff]  ;;  %v28_v45 = vld [vmem:[%s1408_s0 + $0x70] sm:$0xff] }
  0x10   :  { %357 = vmatpush.msra.mxu1 %v812_v18  ;;  %v86_v44 = vld [vmem:[%s1408_s0 + $0x240] sm:$0xff]  ;;  %v20_v47 = vld [vmem:[%s1408_s0 + $0x30] sm:$0xff]  ;;  %v89_v48 = vld [vmem:[%s1408_s0 + $0x258] sm:$0xff] }
  0x11   :  { %248 = vmatpush.msra.mxu0 %v115_v19  ;;  %675 = vmatpush.msra.mxu3 %v115_v19  ;;  %v18_v46 = vld [vmem:[%s1408_s0 + $0x20] sm:$0xff]  ;;  %v31_v49 = vld [vmem:[%s1408_s0 + $0x88] sm:$0xff]  ;;  %v21_v50 = vld [vmem:[%s1408_s0 + $0x38] sm:$0xff] }
  0x12   :  { %358 = vmatpush.msra.mxu1 %v821_v20  ;;  %638 = vmatmul.msk.f32.gmra.mxu2 %vm147_vm0, %v19_v21  ;;  %v23_v51 = vld [vmem:[%s1408_s0 + $0x48] sm:$0xff]  ;;  %v92_v52 = vld [vmem:[%s1408_s0 + $0x270] sm:$0xff]  ;;  %v34_v53 = vld [vmem:[%s1408_s0 + $0xa0] sm:$0xff] }
  0x13   :  { %249 = vmatpush.msra.mxu0 %v114_v22  ;;  %676 = vmatpush.msra.mxu3 %v114_v22  ;;  %v24_v54 = vld [vmem:[%s1408_s0 + $0x50] sm:$0xff]  ;;  %v26_v55 = vld [vmem:[%s1408_s0 + $0x60] sm:$0xff]  ;;  %v95_v56 = vld [vmem:[%s1408_s0 + $0x288] sm:$0xff] }
  0x14   :  { %359 = vmatpush.msra.mxu1 %v833_v23  ;;  %v37_v57 = vld [vmem:[%s1408_s0 + $0xb8] sm:$0xff]  ;;  %v27_v58 = vld [vmem:[%s1408_s0 + $0x68] sm:$0xff]  ;;  %v98_v60 = vld [vmem:[%s1408_s0 + $0x2a0] sm:$0xff] }
  0x15   :  { %250 = vmatpush.msra.mxu0 %v113_v24  ;;  %677 = vmatpush.msra.mxu3 %v113_v24  ;;  %v29_v59 = vld [vmem:[%s1408_s0 + $0x78] sm:$0xff]  ;;  %v40_v61 = vld [vmem:[%s1408_s0 + $0xd0] sm:$0xff]  ;;  %v30_v62 = vld [vmem:[%s1408_s0 + $0x80] sm:$0xff] }
  0x16   :  { %360 = vmatpush.msra.mxu1 %v843_v25  ;;  %v32_v63 = vld [vmem:[%s1408_s0 + $0x90] sm:$0xff]  ;;  %v101_v0 = vld [vmem:[%s1408_s0 + $0x2b8] sm:$0xff]  ;;  %v46_v5 = vld [vmem:[%s1408_s0 + $0x100] sm:$0xff] }
  0x17   :  { %251 = vmatpush.msra.mxu0 %v112_v26  ;;  %678 = vmatpush.msra.mxu3 %v112_v26  ;;  %v33_v2 = vld [vmem:[%s1408_s0 + $0x98] sm:$0xff]  ;;  %v87_v12 = vld [vmem:[%s1408_s0 + $0x248] sm:$0xff]  ;;  %v52_v13 = vld [vmem:[%s1408_s0 + $0x130] sm:$0xff] }
  0x18   :  { %361 = vmatpush.msra.mxu1 %v852_v27  ;;  %v49_v9 = vld [vmem:[%s1408_s0 + $0x118] sm:$0xff]  ;;  %v44_v15 = vld [vmem:[%s1408_s0 + $0xf0] sm:$0xff]  ;;  %v55_v17 = vld [vmem:[%s1408_s0 + $0x148] sm:$0xff] }
  0x19   :  { %252 = vmatpush.msra.mxu0 %v111_v28  ;;  %679 = vmatpush.msra.mxu3 %v111_v28  ;;  %v47_v19 = vld [vmem:[%s1408_s0 + $0x108] sm:$0xff]  ;;  %v58_v21 = vld [vmem:[%s1408_s0 + $0x160] sm:$0xff]  ;;  %v48_v22 = vld [vmem:[%s1408_s0 + $0x110] sm:$0xff] }
  0x1a   :  { %362 = vmatpush.msra.mxu1 %v861_v29  ;;  %639 = vmatmul.msk.f32.gmra.mxu2 %vm147_vm0, %v22_v30  ;;  %v96_v24 = vld [vmem:[%s1408_s0 + $0x290] sm:$0xff]  ;;  %v51_v26 = vld [vmem:[%s1408_s0 + $0x128] sm:$0xff]  ;;  %v54_v30 = vld [vmem:[%s1408_s0 + $0x140] sm:$0xff] }
  0x1b   :  { %253 = vmatpush.msra.mxu0 %v110_v31  ;;  %680 = vmatpush.msra.mxu3 %v110_v31  ;;  %v99_v28 = vld [vmem:[%s1408_s0 + $0x2a8] sm:$0xff] }
  0x1c   :  { %363 = vmatpush.msra.mxu1 %v873_v32 }
  0x1d   :  { %254 = vmatpush.msra.mxu0 %v109_v33  ;;  %681 = vmatpush.msra.mxu3 %v109_v33  ;;  %v102_v33 = vld [vmem:[%s1408_s0 + $0x2c0] sm:$0xff] }
  0x1e   :  { %364 = vmatpush.msra.mxu1 %v125_v34 }
  0x1f   :  { %255 = vmatpush.msra.mxu0 %v108_v35  ;;  %682 = vmatpush.msra.mxu3 %v108_v35  ;;  %v57_v35 = vld [vmem:[%s1408_s0 + $0x158] sm:$0xff] }
  0x20   :  { %365 = vmatpush.msra.mxu1 %v124_v36 }
  0x21   :  { %256 = vmatpush.msra.mxu0 %v107_v37  ;;  %683 = vmatpush.msra.mxu3 %v107_v37  ;;  %v59_v37 = vld [vmem:[%s1408_s0 + $0x168] sm:$0xff] }
  0x22   :  { %257 = vmatmul.f32.vlgmr.msra.gmra.mxu0 %v14_v38  ;;  %326 = vmatmul.f32.vlgmr.msra.gmra.mxu3 %v83_v39  ;;  %v105_v38 = vld [vmem:[%s1408_s0 + $0x2d8] sm:$0xff]  ;;  %v70_v39 = vld [vmem:[%s1408_s0 + $0x1c0] sm:$0xff] }
  0x23   :  { %640 = vmatmul.msk.f32.gmra.mxu2 %vm147_vm0, %v25_v40  ;;  %366 = vmatpush.msra.mxu1 %v123_v41  ;;  %v60_v40 = vld [vmem:[%s1408_s0 + $0x170] sm:$0xff] }
  0x24   :  { %684 = vmatpush.msrb.mxu3 %v739_v3  ;;  %367 = vmatmul.f32.vlgmr.msra.gmra.mxu1 %v15_v42  ;;  %v35_v3 = vld [vmem:[%s1408_s0 + $0xa8] sm:$0xff] }
  0x26   :  { %685 = vmatpush.msrb.mxu3 %v754_v6  ;;  %v36_v6 = vld [vmem:[%s1408_s0 + $0xb0] sm:$0xff] }
  0x28   :  { %686 = vmatpush.msrb.mxu3 %v764_v8  ;;  %v84_v8 = vld [vmem:[%s1408_s0 + $0x230] sm:$0xff] }
  0x2a   :  { %260 = vmatmul.f32.gmra.mxu0 %v17_v43  ;;  %687 = vmatpush.msrb.mxu3 %v779_v11  ;;  %v41_v11 = vld [vmem:[%s1408_s0 + $0xd8] sm:$0xff] }
  0x2b   :  { %329 = vmatmul.f32.gmra.mxu3 %v86_v44  ;;  %641 = vmatmul.msk.f32.gmra.mxu2 %vm147_vm0, %v28_v45  ;;  %v62_v44 = vld [vmem:[%s1408_s0 + $0x180] sm:$0xff] }
  0x2c   :  { %688 = vmatpush.msrb.mxu3 %v792_v14  ;;  %370 = vmatmul.f32.gmra.mxu1 %v18_v46  ;;  %v42_v14 = vld [vmem:[%s1408_s0 + $0xe0] sm:$0xff]  ;;  %v73_v46 = vld [vmem:[%s1408_s0 + $0x1d8] sm:$0xff] }
  0x2e   :  { %689 = vmatpush.msrb.mxu3 %v803_v16  ;;  %v90_v16 = vld [vmem:[%s1408_s0 + $0x260] sm:$0xff] }
  0x30   :  { %690 = vmatpush.msrb.mxu3 %v812_v18  ;;  %v45_v18 = vld [vmem:[%s1408_s0 + $0xf8] sm:$0xff] }
  0x32   :  { %263 = vmatmul.f32.gmra.mxu0 %v20_v47  ;;  %691 = vmatpush.msrb.mxu3 %v821_v20  ;;  %v93_v20 = vld [vmem:[%s1408_s0 + $0x278] sm:$0xff]  ;;  %v94_v47 = vld [vmem:[%s1408_s0 + $0x280] sm:$0xff] }
  0x33   :  { %332 = vmatmul.f32.gmra.mxu3 %v89_v48  ;;  %642 = vmatmul.msk.f32.gmra.mxu2 %vm147_vm0, %v31_v49  ;;  %v63_v49 = vld [vmem:[%s1408_s0 + $0x188] sm:$0xff] }
  0x34   :  { %692 = vmatpush.msrb.mxu3 %v833_v23  ;;  %373 = vmatmul.f32.gmra.mxu1 %v21_v50  ;;  %v50_v23 = vld [vmem:[%s1408_s0 + $0x120] sm:$0xff] }
  0x36   :  { %693 = vmatpush.msrb.mxu3 %v843_v25  ;;  %v61_v25 = vld [vmem:[%s1408_s0 + $0x178] sm:$0xff] }
  0x38   :  { %694 = vmatpush.msrb.mxu3 %v852_v27  ;;  %v53_v27 = vld [vmem:[%s1408_s0 + $0x138] sm:$0xff] }
  0x3a   :  { %266 = vmatmul.f32.gmra.mxu0 %v23_v51  ;;  %695 = vmatpush.msrb.mxu3 %v861_v29  ;;  %v64_v29 = vld [vmem:[%s1408_s0 + $0x190] sm:$0xff] }
  0x3b   :  { %335 = vmatmul.f32.gmra.mxu3 %v92_v52  ;;  %643 = vmatmul.msk.f32.gmra.mxu2 %vm147_vm0, %v34_v53 }
  0x3c   :  { %696 = vmatpush.msrb.mxu3 %v873_v32  ;;  %376 = vmatmul.f32.gmra.mxu1 %v24_v54  ;;  %v56_v32 = vld [vmem:[%s1408_s0 + $0x150] sm:$0xff] }
  0x3e   :  { %697 = vmatpush.msrb.mxu3 %v125_v34  ;;  %v67_v34 = vld [vmem:[%s1408_s0 + $0x1a8] sm:$0xff] }
  0x40   :  { %698 = vmatpush.msrb.mxu3 %v124_v36 }
  0x42   :  { %269 = vmatmul.f32.gmra.mxu0 %v26_v55  ;;  %699 = vmatpush.msrb.mxu3 %v123_v41  ;;  %v1124_v41 = vld [vmem:[%s1409_s2] ss:$0 sm:$0xff] }
  0x43   :  { %338 = vmatmul.f32.gmra.mxu3 %v95_v56  ;;  %644 = vmatmul.msk.f32.gmra.mxu2 %vm147_vm0, %v37_v57  ;;  %v65_v56 = vld [vmem:[%s1408_s0 + $0x198] sm:$0xff] }
  0x44   :  { %700 = vmatpush.msra.mxu3 %v731_v1  ;;  %379 = vmatmul.f32.gmra.mxu1 %v27_v58  ;;  %v43_v1 = vld [vmem:[%s1408_s0 + $0xe8] sm:$0xff]  ;;  %v76_v58 = vld [vmem:[%s1408_s0 + $0x1f0] sm:$0xff] }
  0x46   :  { %701 = vmatpush.msra.mxu3 %v744_v4  ;;  %v104_v4 = vld [vmem:[%s1408_s0 + $0x2d0] sm:$0xff] }
  0x48   :  { %702 = vmatpush.msra.mxu3 %v759_v7  ;;  %v38_v7 = vld [vmem:[%s1408_s0 + $0xc0] sm:$0xff] }
  0x4a   :  { %272 = vmatmul.f32.gmra.mxu0 %v29_v59  ;;  %703 = vmatpush.msra.mxu3 %v774_v10  ;;  %v39_v10 = vld [vmem:[%s1408_s0 + $0xc8] sm:$0xff]  ;;  %v97_v59 = vld [vmem:[%s1408_s0 + $0x298] sm:$0xff] }
  0x4b   :  { %341 = vmatmul.f32.gmra.mxu3 %v98_v60  ;;  %645 = vmatmul.msk.f32.gmra.mxu2 %vm147_vm0, %v40_v61  ;;  %v66_v61 = vld [vmem:[%s1408_s0 + $0x1a0] sm:$0xff] }
  0x4c   :  { %382 = vmatmul.f32.gmra.mxu1 %v30_v62 }
  0x52   :  { %275 = vmatmul.f32.gmra.mxu0 %v32_v63 }
  0x53   :  { %344 = vmatmul.f32.gmra.mxu3 %v101_v0  ;;  %646 = vmatmul.msk.f32.gmra.mxu2 %vm147_vm0, %v43_v1 }
  0x54   :  { %385 = vmatmul.f32.gmra.mxu1 %v33_v2 }
  0x5a   :  { %278 = vmatmul.f32.gmra.mxu0 %v35_v3 }
  0x5b   :  { %347 = vmatmul.f32.gmra.mxu3 %v104_v4  ;;  %647 = vmatmul.msk.f32.gmra.mxu2 %vm147_vm0, %v46_v5  ;;  %v68_v4 = vld [vmem:[%s1408_s0 + $0x1b0] sm:$0xff] }
  0x5c   :  { %388 = vmatmul.f32.gmra.mxu1 %v36_v6  ;;  %v79_v6 = vld [vmem:[%s1408_s0 + $0x208] sm:$0xff] }
  0x62   :  { %281 = vmatmul.f32.gmra.mxu0 %v38_v7  ;;  %v100_v7 = vld [vmem:[%s1408_s0 + $0x2b0] sm:$0xff] }
  0x63   :  { %436 = vmatmul.f32.vlgmr.msrb.gmra.mxu3 %v84_v8  ;;  %648 = vmatmul.msk.f32.gmra.mxu2 %vm147_vm0, %v49_v9  ;;  %v69_v9 = vld [vmem:[%s1408_s0 + $0x1b8] sm:$0xff] }
  0x64   :  { %391 = vmatmul.f32.gmra.mxu1 %v39_v10 }
  0x6a   :  { %284 = vmatmul.f32.gmra.mxu0 %v41_v11 }
  0x6b   :  { %439 = vmatmul.f32.gmra.mxu3 %v87_v12  ;;  %649 = vmatmul.msk.f32.gmra.mxu2 %vm147_vm0, %v52_v13 }
  0x6c   :  { %394 = vmatmul.f32.gmra.mxu1 %v42_v14 }
  0x72   :  { %287 = vmatmul.f32.gmra.mxu0 %v44_v15 }
  0x73   :  { %442 = vmatmul.f32.gmra.mxu3 %v90_v16  ;;  %650 = vmatmul.msk.f32.gmra.mxu2 %vm147_vm0, %v55_v17  ;;  %v71_v16 = vld [vmem:[%s1408_s0 + $0x1c8] sm:$0xff] }
  0x74   :  { %397 = vmatmul.f32.gmra.mxu1 %v45_v18  ;;  %v82_v18 = vld [vmem:[%s1408_s0 + $0x220] sm:$0xff] }
  0x7a   :  { %290 = vmatmul.f32.gmra.mxu0 %v47_v19  ;;  %v103_v19 = vld [vmem:[%s1408_s0 + $0x2c8] sm:$0xff] }
  0x7b   :  { %445 = vmatmul.f32.gmra.mxu3 %v93_v20  ;;  %651 = vmatmul.msk.f32.gmra.mxu2 %vm147_vm0, %v58_v21  ;;  %v72_v21 = vld [vmem:[%s1408_s0 + $0x1d0] sm:$0xff] }
  0x7c   :  { %400 = vmatmul.f32.gmra.mxu1 %v48_v22 }
  0x82   :  { %293 = vmatmul.f32.gmra.mxu0 %v50_v23 }
  0x83   :  { %448 = vmatmul.f32.gmra.mxu3 %v96_v24  ;;  %652 = vmatmul.msk.f32.gmra.mxu2 %vm147_vm0, %v61_v25 }
  0x84   :  { %403 = vmatmul.f32.gmra.mxu1 %v51_v26 }
  0x8a   :  { %296 = vmatmul.f32.gmra.mxu0 %v53_v27 }
  0x8b   :  { %451 = vmatmul.f32.gmra.mxu3 %v99_v28  ;;  %653 = vmatmul.msk.f32.gmra.mxu2 %vm147_vm0, %v64_v29  ;;  %v74_v28 = vld [vmem:[%s1408_s0 + $0x1e0] sm:$0xff] }
  0x8c   :  { %406 = vmatmul.f32.gmra.mxu1 %v54_v30  ;;  %v85_v30 = vld [vmem:[%s1408_s0 + $0x238] sm:$0xff] }
  0x8d   :  { %v478_v31 = vpop.f32.mrf.mxu2 }
  0x92   :  { %299 = vmatmul.f32.gmra.mxu0 %v56_v32 }
  0x93   :  { %454 = vmatmul.f32.gmra.mxu3 %v102_v33  ;;  %654 = vmatmul.msk.f32.gmra.mxu2 %vm147_vm0, %v67_v34  ;;  %v75_v33 = vld [vmem:[%s1408_s0 + $0x1e8] sm:$0xff] }
  0x94   :  { %409 = vmatmul.f32.gmra.mxu1 %v57_v35 }
  0x95   :  { %v481_v36 = vpop.f32.mrf.mxu2 }
  0x9a   :  { %302 = vmatmul.f32.gmra.mxu0 %v59_v37 }
  0x9b   :  { %457 = vmatmul.f32.gmra.mxu3 %v105_v38  ;;  %655 = vmatmul.msk.f32.gmra.mxu2 %vm147_vm0, %v70_v39 }
  0x9c   :  { %412 = vmatmul.f32.gmra.mxu1 %v60_v40  ;;  %v77_v40 = vld [vmem:[%s1408_s0 + $0x1f8] sm:$0xff] }
  0x9d   :  { %v484_v42 = vpop.f32.mrf.mxu2 }
  0x9f   :  { %v258_v43 = vpop.f32.mrf.mxu0 }
  0xa0   :  { %v259_v45 = vadd.f32 %v1124_v41, %v258_v43  ;;  %v88_v43 = vld [vmem:[%s1408_s0 + $0x250] sm:$0xff] }
  0xa1   :  { %v368_v48 = vpop.f32.mrf.mxu1 }
  0xa2   :  { %305 = vmatmul.f32.gmra.mxu0 %v62_v44  ;;  %v369_v50 = vadd.f32 %v368_v48, %v259_v45  ;;  %v78_v45 = vld [vmem:[%s1408_s0 + $0x200] sm:$0xff] }
  0xa3   :  { %656 = vmatmul.msk.f32.gmra.mxu2 %vm147_vm0, %v73_v46  ;;  %663 = vmatmul.msk.f32.vlgmr.msra.gmra.mxu3 %vm147_vm0, %v94_v47 }
  0xa4   :  { %v479_v51 = vadd.f32 %v478_v31, %v369_v50  ;;  %415 = vmatmul.f32.gmra.mxu1 %v63_v49  ;;  %v106_v31 = vld [vmem:[%s1408_s0 + $0x2e0] sm:$0xff] }
  0xa5   :  { %v1141_v52 = vpop.f32.mrf.mxu3 }
  0xa6   :  { %v487_v53 = vpop.f32.mrf.mxu2  ;;  %v571_v54 = vmax.f32 %v479_v51, 0.0 }
  0xa7   :  { %v261_v55 = vpop.f32.mrf.mxu0 }
  0xa8   :  { %v262_v57 = vadd.f32 %v1124_v41, %v261_v55  ;;  %602 = vst.msk [vmem:[%s1410_s3] sm:$0xff] %vm147_vm0, %v571_v54  ;;  %v91_v55 = vld [vmem:[%s1408_s0 + $0x268] sm:$0xff] }
  0xa9   :  { %v371_v60 = vpop.f32.mrf.mxu1 }
  0xaa   :  { %308 = vmatmul.f32.gmra.mxu0 %v65_v56  ;;  %v372_v62 = vadd.f32 %v371_v60, %v262_v57  ;;  %v81_v57 = vld [vmem:[%s1408_s0 + $0x218] sm:$0xff] }
  0xab   :  { %657 = vmatmul.msk.f32.gmra.mxu2 %vm147_vm0, %v76_v58  ;;  %664 = vmatmul.msk.f32.gmra.mxu3 %vm147_vm0, %v97_v59 }
  0xac   :  { %v482_v63 = vadd.f32 %v481_v36, %v372_v62  ;;  %418 = vmatmul.f32.gmra.mxu1 %v66_v61 }
  0xae   :  { %v1162_v0 = vpop.f32.mrf.mxu3  ;;  %v490_v1 = vpop.f32.mrf.mxu2  ;;  %v572_v2 = vmax.f32 %v482_v63, 0.0 }
  0xaf   :  { %v264_v3 = vpop.f32.mrf.mxu0 }
  0xb0   :  { %v265_v5 = vadd.f32 %v1124_v41, %v264_v3  ;;  %603 = vst.msk [vmem:[%s1410_s3 + $0x8] sm:$0xff] %vm147_vm0, %v572_v2 }
  0xb1   :  { %v374_v8 = vpop.f32.mrf.mxu1 }
  0xb2   :  { %311 = vmatmul.f32.gmra.mxu0 %v68_v4  ;;  %v375_v10 = vadd.f32 %v374_v8, %v265_v5 }
  0xb3   :  { %658 = vmatmul.msk.f32.gmra.mxu2 %vm147_vm0, %v79_v6  ;;  %665 = vmatmul.msk.f32.gmra.mxu3 %vm147_vm0, %v100_v7 }
  0xb4   :  { %v485_v11 = vadd.f32 %v484_v42, %v375_v10  ;;  %421 = vmatmul.f32.gmra.mxu1 %v69_v9 }
  0xb6   :  { %v1183_v12 = vpop.f32.mrf.mxu3  ;;  %v493_v13 = vpop.f32.mrf.mxu2  ;;  %v573_v14 = vmax.f32 %v485_v11, 0.0 }
  0xb7   :  { %v267_v15 = vpop.f32.mrf.mxu0 }
  0xb8   :  { %v268_v17 = vadd.f32 %v1124_v41, %v267_v15  ;;  %604 = vst.msk [vmem:[%s1410_s3 + $0x10] sm:$0xff] %vm147_vm0, %v573_v14 }
  0xb9   :  { %v377_v20 = vpop.f32.mrf.mxu1 }
  0xba   :  { %314 = vmatmul.f32.gmra.mxu0 %v71_v16  ;;  %v378_v22 = vadd.f32 %v377_v20, %v268_v17 }
  0xbb   :  { %659 = vmatmul.msk.f32.gmra.mxu2 %vm147_vm0, %v82_v18  ;;  %666 = vmatmul.msk.f32.gmra.mxu3 %vm147_vm0, %v103_v19 }
  0xbc   :  { %v488_v23 = vadd.f32 %v487_v53, %v378_v22  ;;  %424 = vmatmul.f32.gmra.mxu1 %v72_v21  ;;  %v80_v53 = vld [vmem:[%s1408_s0 + $0x210] sm:$0xff] }
  0xbe   :  { %v1204_v24 = vpop.f32.mrf.mxu3  ;;  %v496_v25 = vpop.f32.mrf.mxu2  ;;  %v574_v26 = vmax.f32 %v488_v23, 0.0  ;;  %v331_v23 = vadd.f32 %v1124_v41, %v1162_v0 }
  0xbf   :  { %v270_v27 = vpop.f32.mrf.mxu0 }
  0xc0   :  { %v271_v29 = vadd.f32 %v1124_v41, %v270_v27  ;;  %605 = vst.msk [vmem:[%s1410_s3 + $0x18] sm:$0xff] %vm147_vm0, %v574_v26 }
  0xc1   :  { %v380_v32 = vpop.f32.mrf.mxu1 }
  0xc2   :  { %317 = vmatmul.f32.gmra.mxu0 %v74_v28  ;;  %v381_v34 = vadd.f32 %v380_v32, %v271_v29 }
  0xc3   :  { %660 = vmatmul.msk.f32.gmra.mxu2 %vm147_vm0, %v85_v30  ;;  %667 = vmatmul.msk.f32.gmra.mxu3 %vm147_vm0, %v106_v31 }
  0xc4   :  { %v491_v35 = vadd.f32 %v490_v1, %v381_v34  ;;  %427 = vmatmul.f32.gmra.mxu1 %v75_v33  ;;  %v334_v33 = vadd.f32 %v1124_v41, %v1183_v12 }
  0xc6   :  { %v1225_v36 = vpop.f32.mrf.mxu3  ;;  %v499_v37 = vpop.f32.mrf.mxu2  ;;  %v575_v38 = vmax.f32 %v491_v35, 0.0 }
  0xc7   :  { %v273_v39 = vpop.f32.mrf.mxu0 }
  0xc8   :  { %v274_v42 = vadd.f32 %v1124_v41, %v273_v39  ;;  %606 = vst.msk [vmem:[%s1410_s3 + $0x20] sm:$0xff] %vm147_vm0, %v575_v38 }
  0xc9   :  { %v383_v44 = vpop.f32.mrf.mxu1 }
  0xca   :  { %320 = vmatmul.f32.gmra.mxu0 %v77_v40  ;;  %v384_v46 = vadd.f32 %v383_v44, %v274_v42 }
  0xcb   :  { %661 = vmatmul.msk.f32.gmra.mxu2 %vm147_vm0, %v88_v43 }
  0xcc   :  { %v494_v47 = vadd.f32 %v493_v13, %v384_v46  ;;  %430 = vmatmul.f32.gmra.mxu1 %v78_v45  ;;  %v328_v13 = vadd.f32 %v1124_v41, %v1141_v52 }
  0xce   :  { %v1242_v48 = vpop.f32.mrf.mxu3  ;;  %v502_v49 = vpop.f32.mrf.mxu2  ;;  %v576_v50 = vmax.f32 %v494_v47, 0.0 }
  0xcf   :  { %v276_v51 = vpop.f32.mrf.mxu0 }
  0xd0   :  { %v277_v54 = vadd.f32 %v1124_v41, %v276_v51  ;;  %607 = vst.msk [vmem:[%s1410_s3 + $0x28] sm:$0xff] %vm147_vm0, %v576_v50 }
  0xd1   :  { %v386_v56 = vpop.f32.mrf.mxu1 }
  0xd2   :  { %323 = vmatmul.f32.gmra.mxu0 %v80_v53  ;;  %v387_v58 = vadd.f32 %v386_v56, %v277_v54 }
  0xd3   :  { %662 = vmatmul.msk.f32.gmra.mxu2 %vm147_vm0, %v91_v55 }
  0xd4   :  { %v497_v59 = vadd.f32 %v496_v25, %v387_v58  ;;  %433 = vmatmul.f32.gmra.mxu1 %v81_v57 }
  0xd6   :  { %v1259_v60 = vpop.f32.mrf.mxu3  ;;  %v505_v61 = vpop.f32.mrf.mxu2  ;;  %v577_v62 = vmax.f32 %v497_v59, 0.0 }
  0xd7   :  { %v279_v63 = vpop.f32.mrf.mxu0 }
  0xd8   :  { %v280_v1 = vadd.f32 %v1124_v41, %v279_v63  ;;  %608 = vst.msk [vmem:[%s1410_s3 + $0x30] sm:$0xff] %vm147_vm0, %v577_v62 }
  0xd9   :  { %v389_v2 = vpop.f32.mrf.mxu1 }
  0xda   :  { %v390_v3 = vadd.f32 %v389_v2, %v280_v1 }
  0xdc   :  { %v500_v4 = vadd.f32 %v499_v37, %v390_v3 }
  0xde   :  { %v1266_v5 = vpop.f32.mrf.mxu3  ;;  %v508_v6 = vpop.f32.mrf.mxu2  ;;  %v578_v7 = vmax.f32 %v500_v4, 0.0 }
  0xdf   :  { %v282_v8 = vpop.f32.mrf.mxu0 }
  0xe0   :  { %v283_v9 = vadd.f32 %v1124_v41, %v282_v8  ;;  %609 = vst.msk [vmem:[%s1410_s3 + $0x38] sm:$0xff] %vm147_vm0, %v578_v7 }
  0xe1   :  { %v392_v10 = vpop.f32.mrf.mxu1 }
  0xe2   :  { %v393_v11 = vadd.f32 %v392_v10, %v283_v9 }
  0xe4   :  { %v503_v14 = vadd.f32 %v502_v49, %v393_v11 }
  0xe6   :  { %v437_v15 = vpop.f32.mrf.mxu3  ;;  %v511_v16 = vpop.f32.mrf.mxu2  ;;  %v579_v17 = vmax.f32 %v503_v14, 0.0 }
  0xe7   :  { %v1275_v18 = vadd.f32 %v437_v15, %v328_v13  ;;  %v285_v19 = vpop.f32.mrf.mxu0 }
  0xe8   :  { %v286_v20 = vadd.f32 %v1124_v41, %v285_v19  ;;  %610 = vst.msk [vmem:[%s1410_s3 + $0x40] sm:$0xff] %vm147_vm0, %v579_v17 }
  0xe9   :  { %v395_v21 = vpop.f32.mrf.mxu1 }
  0xea   :  { %v396_v22 = vadd.f32 %v395_v21, %v286_v20 }
  0xec   :  { %v506_v52 = vadd.f32 %v505_v61, %v396_v22 }
  0xee   :  { %v440_v25 = vpop.f32.mrf.mxu3  ;;  %v514_v26 = vpop.f32.mrf.mxu2  ;;  %v580_v27 = vmax.f32 %v506_v52, 0.0 }
  0xef   :  { %v1284_v28 = vadd.f32 %v440_v25, %v331_v23  ;;  %v288_v29 = vpop.f32.mrf.mxu0  ;;  %v337_v25 = vadd.f32 %v1124_v41, %v1204_v24  ;;  %v340_v24 = vadd.f32 %v1124_v41, %v1225_v36 }
  0xf0   :  { %v289_v30 = vadd.f32 %v1124_v41, %v288_v29  ;;  %611 = vst.msk [vmem:[%s1410_s3 + $0x48] sm:$0xff] %vm147_vm0, %v580_v27 }
  0xf1   :  { %v398_v31 = vpop.f32.mrf.mxu1 }
  0xf2   :  { %v399_v32 = vadd.f32 %v398_v31, %v289_v30 }
  0xf4   :  { %v509_v0 = vadd.f32 %v508_v6, %v399_v32 }
  0xf6   :  { %v443_v34 = vpop.f32.mrf.mxu3  ;;  %v517_v35 = vpop.f32.mrf.mxu2  ;;  %v581_v37 = vmax.f32 %v509_v0, 0.0 }
  0xf7   :  { %v1293_v38 = vadd.f32 %v443_v34, %v334_v33  ;;  %v291_v39 = vpop.f32.mrf.mxu0 }
  0xf8   :  { %v292_v40 = vadd.f32 %v1124_v41, %v291_v39  ;;  %612 = vst.msk [vmem:[%s1410_s3 + $0x50] sm:$0xff] %vm147_vm0, %v581_v37 }
  0xf9   :  { %v401_v42 = vpop.f32.mrf.mxu1 }
  0xfa   :  { %v402_v43 = vadd.f32 %v401_v42, %v292_v40 }
  0xfc   :  { %v512_v44 = vadd.f32 %v511_v16, %v402_v43 }
  0xfe   :  { %v446_v45 = vpop.f32.mrf.mxu3  ;;  %v520_v46 = vpop.f32.mrf.mxu2  ;;  %v582_v12 = vmax.f32 %v512_v44, 0.0 }
  0xff   :  { %v294_v47 = vpop.f32.mrf.mxu0  ;;  %v447_v27 = vadd.f32 %v446_v45, %v337_v25 }
 0x100   :  { %v295_v49 = vadd.f32 %v1124_v41, %v294_v47  ;;  %613 = vst.msk [vmem:[%s1410_s3 + $0x58] sm:$0xff] %vm147_vm0, %v582_v12 }
 0x101   :  { %v404_v50 = vpop.f32.mrf.mxu1 }
 0x102   :  { %v405_v51 = vadd.f32 %v404_v50, %v295_v49  ;;  %v343_v50 = vadd.f32 %v1124_v41, %v1242_v48 }
 0x104   :  { %v515_v53 = vadd.f32 %v514_v26, %v405_v51 }
 0x106   :  { %v449_v54 = vpop.f32.mrf.mxu3  ;;  %v523_v55 = vpop.f32.mrf.mxu2  ;;  %v583_v56 = vmax.f32 %v515_v53, 0.0 }
 0x107   :  { %v297_v57 = vpop.f32.mrf.mxu0  ;;  %v450_v40 = vadd.f32 %v449_v54, %v340_v24 }
 0x108   :  { %v298_v58 = vadd.f32 %v1124_v41, %v297_v57  ;;  %614 = vst.msk [vmem:[%s1410_s3 + $0x60] sm:$0xff] %vm147_vm0, %v583_v56 }
 0x109   :  { %v407_v59 = vpop.f32.mrf.mxu1 }
 0x10a   :  { %v408_v61 = vadd.f32 %v407_v59, %v298_v58 }
 0x10c   :  { %v518_v62 = vadd.f32 %v517_v35, %v408_v61 }
 0x10e   :  { %v452_v63 = vpop.f32.mrf.mxu3  ;;  %v526_v1 = vpop.f32.mrf.mxu2  ;;  %v584_v2 = vmax.f32 %v518_v62, 0.0 }
 0x10f   :  { %v300_v3 = vpop.f32.mrf.mxu0  ;;  %v453_v53 = vadd.f32 %v452_v63, %v343_v50 }
 0x110   :  { %v301_v4 = vadd.f32 %v1124_v41, %v300_v3  ;;  %615 = vst.msk [vmem:[%s1410_s3 + $0x68] sm:$0xff] %vm147_vm0, %v584_v2 }
 0x111   :  { %v410_v6 = vpop.f32.mrf.mxu1 }
 0x112   :  { %v411_v7 = vadd.f32 %v410_v6, %v301_v4 }
 0x114   :  { %v521_v8 = vadd.f32 %v520_v46, %v411_v7 }
 0x116   :  { %v455_v9 = vpop.f32.mrf.mxu3  ;;  %v529_v10 = vpop.f32.mrf.mxu2  ;;  %v585_v11 = vmax.f32 %v521_v8, 0.0 }
 0x117   :  { %v303_v13 = vpop.f32.mrf.mxu0 }
 0x118   :  { %v304_v14 = vadd.f32 %v1124_v41, %v303_v13  ;;  %616 = vst.msk [vmem:[%s1410_s3 + $0x70] sm:$0xff] %vm147_vm0, %v585_v11 }
 0x119   :  { %v413_v15 = vpop.f32.mrf.mxu1 }
 0x11a   :  { %v414_v16 = vadd.f32 %v413_v15, %v304_v14  ;;  %v349_v14 = vadd.f32 %v1124_v41, %v1266_v5 }
 0x11c   :  { %v524_v17 = vadd.f32 %v523_v55, %v414_v16 }
 0x11e   :  { %v1320_v19 = vpop.f32.mrf.mxu3  ;;  %v532_v20 = vpop.f32.mrf.mxu2  ;;  %v586_v21 = vmax.f32 %v524_v17, 0.0 }
 0x11f   :  { %v306_v22 = vpop.f32.mrf.mxu0  ;;  %v459_v15 = vadd.f32 %v1320_v19, %v349_v14 }
 0x120   :  { %v307_v23 = vadd.f32 %v1124_v41, %v306_v22  ;;  %617 = vst.msk [vmem:[%s1410_s3 + $0x78] sm:$0xff] %vm147_vm0, %v586_v21 }
 0x121   :  { %v416_v52 = vpop.f32.mrf.mxu1 }
 0x122   :  { %v417_v26 = vadd.f32 %v416_v52, %v307_v23 }
 0x124   :  { %v527_v29 = vadd.f32 %v526_v1, %v417_v26  ;;  %v346_v1 = vadd.f32 %v1124_v41, %v1259_v60 }
 0x126   :  { %v535_v30 = vpop.f32.mrf.mxu2  ;;  %v556_v31 = vpop.f32.mrf.mxu3  ;;  %v587_v32 = vmax.f32 %v527_v29, 0.0  ;;  %v456_v2 = vadd.f32 %v455_v9, %v346_v1 }
 0x127   :  { %v557_v33 = vadd.f32 %v556_v31, %v447_v27  ;;  %v309_v0 = vpop.f32.mrf.mxu0 }
 0x128   :  { %v310_v34 = vadd.f32 %v1124_v41, %v309_v0  ;;  %618 = vst.msk [vmem:[%s1410_s3 + $0x80] sm:$0xff] %vm147_vm0, %v587_v32 }
 0x129   :  { %v597_v35 = vmax.f32 %v557_v33, 0.0  ;;  %v419_v37 = vpop.f32.mrf.mxu1 }
 0x12a   :  { %v420_v39 = vadd.f32 %v419_v37, %v310_v34 }
 0x12b   :  { %628 = vst.msk [vmem:[%s1410_s3 + $0xd0] sm:$0xff] %vm147_vm0, %v597_v35 }
 0x12c   :  { %v530_v42 = vadd.f32 %v529_v10, %v420_v39 }
 0x12e   :  { %v538_v43 = vpop.f32.mrf.mxu2  ;;  %v559_v44 = vpop.f32.mrf.mxu3  ;;  %v588_v45 = vmax.f32 %v530_v42, 0.0 }
 0x12f   :  { %v560_v46 = vadd.f32 %v559_v44, %v450_v40  ;;  %v312_v12 = vpop.f32.mrf.mxu0 }
 0x130   :  { %v313_v47 = vadd.f32 %v1124_v41, %v312_v12  ;;  %619 = vst.msk [vmem:[%s1410_s3 + $0x88] sm:$0xff] %vm147_vm0, %v588_v45 }
 0x131   :  { %v598_v36 = vmax.f32 %v560_v46, 0.0  ;;  %v422_v49 = vpop.f32.mrf.mxu1 }
 0x132   :  { %v423_v51 = vadd.f32 %v422_v49, %v313_v47 }
 0x133   :  { %629 = vst.msk [vmem:[%s1410_s3 + $0xd8] sm:$0xff] %vm147_vm0, %v598_v36 }
 0x134   :  { %v533_v54 = vadd.f32 %v532_v20, %v423_v51 }
 0x136   :  { %v541_v55 = vpop.f32.mrf.mxu2  ;;  %v562_v56 = vpop.f32.mrf.mxu3  ;;  %v589_v57 = vmax.f32 %v533_v54, 0.0 }
 0x137   :  { %v563_v58 = vadd.f32 %v562_v56, %v453_v53  ;;  %v315_v59 = vpop.f32.mrf.mxu0 }
 0x138   :  { %v316_v61 = vadd.f32 %v1124_v41, %v315_v59  ;;  %620 = vst.msk [vmem:[%s1410_s3 + $0x90] sm:$0xff] %vm147_vm0, %v589_v57 }
 0x139   :  { %v599_v48 = vmax.f32 %v563_v58, 0.0  ;;  %v425_v62 = vpop.f32.mrf.mxu1 }
 0x13a   :  { %v426_v63 = vadd.f32 %v425_v62, %v316_v61 }
 0x13b   :  { %630 = vst.msk [vmem:[%s1410_s3 + $0xe0] sm:$0xff] %vm147_vm0, %v599_v48 }
 0x13c   :  { %v536_v3 = vadd.f32 %v535_v30, %v426_v63 }
 0x13e   :  { %v544_v4 = vpop.f32.mrf.mxu2  ;;  %v565_v6 = vpop.f32.mrf.mxu3  ;;  %v590_v7 = vmax.f32 %v536_v3, 0.0 }
 0x13f   :  { %v566_v8 = vadd.f32 %v565_v6, %v456_v2  ;;  %v318_v10 = vpop.f32.mrf.mxu0 }
 0x140   :  { %v319_v11 = vadd.f32 %v1124_v41, %v318_v10  ;;  %621 = vst.msk [vmem:[%s1410_s3 + $0x98] sm:$0xff] %vm147_vm0, %v590_v7 }
 0x141   :  { %v600_v60 = vmax.f32 %v566_v8, 0.0  ;;  %v428_v13 = vpop.f32.mrf.mxu1 }
 0x142   :  { %v429_v9 = vadd.f32 %v428_v13, %v319_v11 }
 0x143   :  { %631 = vst.msk [vmem:[%s1410_s3 + $0xe8] sm:$0xff] %vm147_vm0, %v600_v60 }
 0x144   :  { %v539_v16 = vadd.f32 %v538_v43, %v429_v9 }
 0x146   :  { %v547_v17 = vpop.f32.mrf.mxu2  ;;  %v568_v20 = vpop.f32.mrf.mxu3  ;;  %v591_v21 = vmax.f32 %v539_v16, 0.0 }
 0x147   :  { %v548_v22 = vadd.f32 %v547_v17, %v1275_v18  ;;  %v569_v23 = vadd.f32 %v568_v20, %v459_v15  ;;  %v321_v52 = vpop.f32.mrf.mxu0 }
 0x148   :  { %v322_v25 = vadd.f32 %v1124_v41, %v321_v52  ;;  %622 = vst.msk [vmem:[%s1410_s3 + $0xa0] sm:$0xff] %vm147_vm0, %v591_v21 }
 0x149   :  { %v594_v5 = vmax.f32 %v548_v22, 0.0  ;;  %v601_v26 = vmax.f32 %v569_v23, 0.0  ;;  %v431_v27 = vpop.f32.mrf.mxu1 }
 0x14a   :  { %v432_v19 = vadd.f32 %v431_v27, %v322_v25 }
 0x14b   :  { %625 = vst.msk [vmem:[%s1410_s3 + $0xb8] sm:$0xff] %vm147_vm0, %v594_v5 }
 0x14c   :  { %632 = vst.msk [vmem:[%s1410_s3 + $0xf0] sm:$0xff] %vm147_vm0, %v601_v26  ;;  %v542_v18 = vadd.f32 %v541_v55, %v432_v19 }
 0x14e   :  { %v550_v29 = vpop.f32.mrf.mxu2  ;;  %v592_v30 = vmax.f32 %v542_v18, 0.0 }
 0x14f   :  { %v551_v31 = vadd.f32 %v550_v29, %v1284_v28  ;;  %v324_v32 = vpop.f32.mrf.mxu0 }
 0x150   :  { %v325_v33 = vadd.f32 %v1124_v41, %v324_v32  ;;  %623 = vst.msk [vmem:[%s1410_s3 + $0xa8] sm:$0xff] %vm147_vm0, %v592_v30 }
 0x151   :  { %v595_v0 = vmax.f32 %v551_v31, 0.0  ;;  %v434_v34 = vpop.f32.mrf.mxu1 }
 0x152   :  { %v435_v35 = vadd.f32 %v434_v34, %v325_v33 }
 0x153   :  { %626 = vst.msk [vmem:[%s1410_s3 + $0xc0] sm:$0xff] %vm147_vm0, %v595_v0 }
 0x154   :  { %v545_v37 = vadd.f32 %v544_v4, %v435_v35 }
 0x156   :  { %v553_v24 = vpop.f32.mrf.mxu2  ;;  %v593_v39 = vmax.f32 %v545_v37, 0.0 }
 0x157   :  { %v554_v28 = vadd.f32 %v553_v24, %v1293_v38 }
 0x158   :  { %624 = vst.msk [vmem:[%s1410_s3 + $0xb0] sm:$0xff] %vm147_vm0, %v593_v39 }
 0x159   :  { %v596_v41 = vmax.f32 %v554_v28, 0.0 }
 0x15b   :  { %627 = vst.msk [vmem:[%s1410_s3 + $0xc8] sm:$0xff] %vm147_vm0, %v596_v41 }

// kernel: _lambda_.9
= control target key start
LH: loop header
LB: loop body
LE: loop exit
PB: predicated region body
PF: predicated region fallthrough
CT: control target
= control target key end

     0   :  { %vm81_vm0 = vcmask 261120   ;;  %s610_s1 = inlined_call_operand.vmem [shape: f32[288,32], index: 1, kind: input, shape index: {}]   ;;  %s611_s0 = inlined_call_operand.vmem [shape: f32[72,288], index: 0, kind: input, shape index: {}]   ;;  %s612_s2 = inlined_call_operand.vmem [shape: f32[1,32], index: 2, kind: input, shape index: {}]   ;;  %s613_s3 = inlined_call_operand.vmem [shape: f32[72,32], index: 3, kind: output, shape index: {}]  }
   0x1   :  { %v56_v0 = vld [vmem:[%s610_s1 + $0x78] sm:$0xff]  ;;  %v55_v3 = vld [vmem:[%s610_s1 + $0x70] sm:$0xff]  ;;  %v54_v6 = vld [vmem:[%s610_s1 + $0x68] sm:$0xff] }
   0x2   :  { %v331_v1 = vld [vmem:[%s610_s1 + $0xf8] sm:$0xff]  ;;  %109 = vmatpush.msra.mxu0 %v56_v0  ;;  %272 = vmatpush.msra.mxu3 %v56_v0  ;;  %v342_v4 = vld [vmem:[%s610_s1 + $0xf0] sm:$0xff]  ;;  %v354_v7 = vld [vmem:[%s610_s1 + $0xe8] sm:$0xff] }
   0x3   :  { %v76_v2 = vld [vmem:[%s610_s1 + $0x118] sm:$0xff]  ;;  %v75_v5 = vld [vmem:[%s610_s1 + $0x110] sm:$0xff]  ;;  %153 = vmatpush.msra.mxu1 %v331_v1  ;;  %v74_v8 = vld [vmem:[%s610_s1 + $0x108] sm:$0xff] }
   0x4   :  { %209 = vmatpush.msra.mxu2 %v76_v2  ;;  %110 = vmatpush.msra.mxu0 %v55_v3  ;;  %v53_v9 = vld [vmem:[%s610_s1 + $0x60] sm:$0xff]  ;;  %v52_v12 = vld [vmem:[%s610_s1 + $0x58] sm:$0xff]  ;;  %v16_v14 = vld [vmem:[%s611_s0 + $0x10] sm:$0xff] }
   0x5   :  { %273 = vmatpush.msra.mxu3 %v55_v3  ;;  %154 = vmatpush.msra.mxu1 %v342_v4  ;;  %v366_v10 = vld [vmem:[%s610_s1 + $0xe0] sm:$0xff]  ;;  %v378_v13 = vld [vmem:[%s610_s1 + $0xd8] sm:$0xff]  ;;  %v51_v15 = vld [vmem:[%s610_s1 + $0x50] sm:$0xff] }
   0x6   :  { %210 = vmatpush.msra.mxu2 %v75_v5  ;;  %111 = vmatpush.msra.mxu0 %v54_v6  ;;  %v73_v11 = vld [vmem:[%s610_s1 + $0x100] sm:$0xff]  ;;  %v390_v16 = vld [vmem:[%s610_s1 + $0xd0] sm:$0xff]  ;;  %v50_v17 = vld [vmem:[%s610_s1 + $0x48] sm:$0xff] }
   0x7   :  { %274 = vmatpush.msra.mxu3 %v54_v6  ;;  %155 = vmatpush.msra.mxu1 %v354_v7  ;;  %v400_v18 = vld [vmem:[%s610_s1 + $0xc8] sm:$0xff]  ;;  %v49_v19 = vld [vmem:[%s610_s1 + $0x40] sm:$0xff]  ;;  %v48_v21 = vld [vmem:[%s610_s1 + $0x38] sm:$0xff] }
   0x8   :  { %211 = vmatpush.msra.mxu2 %v74_v8  ;;  %112 = vmatpush.msra.mxu0 %v53_v9  ;;  %v409_v20 = vld [vmem:[%s610_s1 + $0xc0] sm:$0xff]  ;;  %v418_v22 = vld [vmem:[%s610_s1 + $0xb8] sm:$0xff]  ;;  %v19_v23 = vld [vmem:[%s611_s0 + $0x28] sm:$0xff] }
   0x9   :  { %275 = vmatpush.msra.mxu3 %v53_v9  ;;  %156 = vmatpush.msra.mxu1 %v366_v10  ;;  %v47_v24 = vld [vmem:[%s610_s1 + $0x30] sm:$0xff]  ;;  %v46_v26 = vld [vmem:[%s610_s1 + $0x28] sm:$0xff]  ;;  %v45_v28 = vld [vmem:[%s610_s1 + $0x20] sm:$0xff] }
   0xa   :  { %212 = vmatpush.msra.mxu2 %v73_v11  ;;  %113 = vmatpush.msra.mxu0 %v52_v12  ;;  %v430_v25 = vld [vmem:[%s610_s1 + $0xb0] sm:$0xff]  ;;  %v440_v27 = vld [vmem:[%s610_s1 + $0xa8] sm:$0xff]  ;;  %v449_v29 = vld [vmem:[%s610_s1 + $0xa0] sm:$0xff] }
   0xb   :  { %276 = vmatpush.msra.mxu3 %v52_v12  ;;  %157 = vmatpush.msra.mxu1 %v378_v13  ;;  %v44_v30 = vld [vmem:[%s610_s1 + $0x18] sm:$0xff]  ;;  %v22_v32 = vld [vmem:[%s611_s0 + $0x40] sm:$0xff]  ;;  %v43_v33 = vld [vmem:[%s610_s1 + $0x10] sm:$0xff] }
   0xc   :  { %263 = vmatmul.msk.f32.vlgmr.msra.gmra.mxu2 %vm81_vm0, %v16_v14  ;;  %114 = vmatpush.msra.mxu0 %v51_v15  ;;  %v60_v31 = vld [vmem:[%s610_s1 + $0x98] sm:$0xff]  ;;  %v59_v34 = vld [vmem:[%s610_s1 + $0x90] sm:$0xff]  ;;  %v42_v35 = vld [vmem:[%s610_s1 + $0x8] sm:$0xff] }
   0xd   :  { %277 = vmatpush.msra.mxu3 %v51_v15  ;;  %158 = vmatpush.msra.mxu1 %v390_v16  ;;  %v58_v36 = vld [vmem:[%s610_s1 + $0x88] sm:$0xff]  ;;  %v41_v37 = vld [vmem:[%s610_s1] sm:$0xff]  ;;  %v25_v41 = vld [vmem:[%s611_s0 + $0x58] sm:$0xff] }
   0xe   :  { %115 = vmatpush.msra.mxu0 %v50_v17  ;;  %v57_v38 = vld [vmem:[%s610_s1 + $0x80] sm:$0xff]  ;;  %v15_v40 = vld [vmem:[%s611_s0 + $0x8] sm:$0xff]  ;;  %v32_v42 = vld [vmem:[%s611_s0 + $0x90] sm:$0xff] }
   0xf   :  { %278 = vmatpush.msra.mxu3 %v50_v17  ;;  %159 = vmatpush.msra.mxu1 %v400_v18  ;;  %v14_v39 = vld [vmem:[%s611_s0] sm:$0xff]  ;;  %v17_v43 = vld [vmem:[%s611_s0 + $0x18] sm:$0xff]  ;;  %v28_v45 = vld [vmem:[%s611_s0 + $0x70] sm:$0xff] }
  0x10   :  { %116 = vmatpush.msra.mxu0 %v49_v19  ;;  %v18_v44 = vld [vmem:[%s611_s0 + $0x20] sm:$0xff]  ;;  %v35_v46 = vld [vmem:[%s611_s0 + $0xa8] sm:$0xff]  ;;  %v20_v47 = vld [vmem:[%s611_s0 + $0x30] sm:$0xff] }
  0x11   :  { %279 = vmatpush.msra.mxu3 %v49_v19  ;;  %160 = vmatpush.msra.mxu1 %v409_v20  ;;  %v21_v48 = vld [vmem:[%s611_s0 + $0x38] sm:$0xff]  ;;  %v31_v49 = vld [vmem:[%s611_s0 + $0x88] sm:$0xff]  ;;  %v38_v50 = vld [vmem:[%s611_s0 + $0xc0] sm:$0xff] }
  0x12   :  { %117 = vmatpush.msra.mxu0 %v48_v21  ;;  %v23_v51 = vld [vmem:[%s611_s0 + $0x48] sm:$0xff]  ;;  %v24_v52 = vld [vmem:[%s611_s0 + $0x50] sm:$0xff]  ;;  %v34_v53 = vld [vmem:[%s611_s0 + $0xa0] sm:$0xff] }
  0x13   :  { %280 = vmatpush.msra.mxu3 %v48_v21  ;;  %161 = vmatpush.msra.mxu1 %v418_v22  ;;  %v36_v54 = vld [vmem:[%s611_s0 + $0xb0] sm:$0xff]  ;;  %v26_v55 = vld [vmem:[%s611_s0 + $0x60] sm:$0xff]  ;;  %v27_v56 = vld [vmem:[%s611_s0 + $0x68] sm:$0xff] }
  0x14   :  { %264 = vmatmul.msk.f32.gmra.mxu2 %vm81_vm0, %v19_v23  ;;  %118 = vmatpush.msra.mxu0 %v47_v24  ;;  %v37_v57 = vld [vmem:[%s611_s0 + $0xb8] sm:$0xff]  ;;  %v39_v58 = vld [vmem:[%s611_s0 + $0xc8] sm:$0xff]  ;;  %v30_v60 = vld [vmem:[%s611_s0 + $0x80] sm:$0xff] }
  0x15   :  { %281 = vmatpush.msra.mxu3 %v47_v24  ;;  %162 = vmatpush.msra.mxu1 %v430_v25  ;;  %v29_v59 = vld [vmem:[%s611_s0 + $0x78] sm:$0xff]  ;;  %v40_v61 = vld [vmem:[%s611_s0 + $0xd0] sm:$0xff] }
  0x16   :  { %119 = vmatpush.msra.mxu0 %v46_v26  ;;  %v33_v62 = vld [vmem:[%s611_s0 + $0x98] sm:$0xff] }
  0x17   :  { %282 = vmatpush.msra.mxu3 %v46_v26  ;;  %163 = vmatpush.msra.mxu1 %v440_v27 }
  0x18   :  { %120 = vmatpush.msra.mxu0 %v45_v28 }
  0x19   :  { %283 = vmatpush.msra.mxu3 %v45_v28  ;;  %164 = vmatpush.msra.mxu1 %v449_v29 }
  0x1a   :  { %121 = vmatpush.msra.mxu0 %v44_v30 }
  0x1b   :  { %284 = vmatpush.msra.mxu3 %v44_v30  ;;  %165 = vmatpush.msra.mxu1 %v60_v31 }
  0x1c   :  { %265 = vmatmul.msk.f32.gmra.mxu2 %vm81_vm0, %v22_v32  ;;  %122 = vmatpush.msra.mxu0 %v43_v33 }
  0x1d   :  { %285 = vmatpush.msra.mxu3 %v43_v33  ;;  %166 = vmatpush.msra.mxu1 %v59_v34 }
  0x1e   :  { %123 = vmatpush.msra.mxu0 %v42_v35 }
  0x1f   :  { %286 = vmatpush.msra.mxu3 %v42_v35  ;;  %167 = vmatpush.msra.mxu1 %v58_v36 }
  0x20   :  { %124 = vmatpush.msra.mxu0 %v41_v37 }
  0x21   :  { %287 = vmatpush.msra.mxu3 %v41_v37  ;;  %168 = vmatpush.msra.mxu1 %v57_v38 }
  0x22   :  { %125 = vmatmul.f32.vlgmr.msra.gmra.mxu0 %v14_v39  ;;  %169 = vmatmul.f32.vlgmr.msra.gmra.mxu1 %v15_v40 }
  0x23   :  { %288 = vmatpush.msrb.mxu3 %v331_v1  ;;  %v304_v1 = vld [vmem:[%s612_s2] ss:$0 sm:$0xff] }
  0x24   :  { %266 = vmatmul.msk.f32.gmra.mxu2 %vm81_vm0, %v25_v41  ;;  %143 = vmatmul.f32.vlgmr.msra.gmra.mxu3 %v32_v42 }
  0x25   :  { %289 = vmatpush.msrb.mxu3 %v342_v4 }
  0x27   :  { %290 = vmatpush.msrb.mxu3 %v354_v7 }
  0x29   :  { %291 = vmatpush.msrb.mxu3 %v366_v10 }
  0x2a   :  { %128 = vmatmul.f32.gmra.mxu0 %v17_v43  ;;  %172 = vmatmul.f32.gmra.mxu1 %v18_v44 }
  0x2b   :  { %292 = vmatpush.msrb.mxu3 %v378_v13 }
  0x2c   :  { %267 = vmatmul.msk.f32.gmra.mxu2 %vm81_vm0, %v28_v45  ;;  %146 = vmatmul.f32.gmra.mxu3 %v35_v46 }
  0x2d   :  { %293 = vmatpush.msrb.mxu3 %v390_v16 }
  0x2f   :  { %294 = vmatpush.msrb.mxu3 %v400_v18 }
  0x31   :  { %295 = vmatpush.msrb.mxu3 %v409_v20 }
  0x32   :  { %131 = vmatmul.f32.gmra.mxu0 %v20_v47  ;;  %175 = vmatmul.f32.gmra.mxu1 %v21_v48 }
  0x33   :  { %296 = vmatpush.msrb.mxu3 %v418_v22 }
  0x34   :  { %268 = vmatmul.msk.f32.gmra.mxu2 %vm81_vm0, %v31_v49  ;;  %149 = vmatmul.f32.gmra.mxu3 %v38_v50 }
  0x35   :  { %297 = vmatpush.msrb.mxu3 %v430_v25 }
  0x37   :  { %298 = vmatpush.msrb.mxu3 %v440_v27 }
  0x39   :  { %299 = vmatpush.msrb.mxu3 %v449_v29 }
  0x3a   :  { %134 = vmatmul.f32.gmra.mxu0 %v23_v51  ;;  %178 = vmatmul.f32.gmra.mxu1 %v24_v52 }
  0x3b   :  { %300 = vmatpush.msrb.mxu3 %v60_v31 }
  0x3c   :  { %269 = vmatmul.msk.f32.gmra.mxu2 %vm81_vm0, %v34_v53 }
  0x3d   :  { %301 = vmatpush.msrb.mxu3 %v59_v34 }
  0x3f   :  { %302 = vmatpush.msrb.mxu3 %v58_v36 }
  0x41   :  { %303 = vmatpush.msrb.mxu3 %v57_v38 }
  0x42   :  { %190 = vmatmul.f32.vlgmr.msrb.gmra.mxu3 %v36_v54  ;;  %137 = vmatmul.f32.gmra.mxu0 %v26_v55 }
  0x43   :  { %181 = vmatmul.f32.gmra.mxu1 %v27_v56 }
  0x44   :  { %270 = vmatmul.msk.f32.gmra.mxu2 %vm81_vm0, %v37_v57 }
  0x4a   :  { %193 = vmatmul.f32.gmra.mxu3 %v39_v58  ;;  %140 = vmatmul.f32.gmra.mxu0 %v29_v59 }
  0x4b   :  { %184 = vmatmul.f32.gmra.mxu1 %v30_v60 }
  0x4c   :  { %271 = vmatmul.msk.f32.gmra.mxu2 %vm81_vm0, %v40_v61 }
  0x53   :  { %187 = vmatmul.f32.gmra.mxu1 %v33_v62 }
  0x8f   :  { %v214_v63 = vpop.f32.mrf.mxu2 }
  0x97   :  { %v217_v0 = vpop.f32.mrf.mxu2 }
  0x9f   :  { %v220_v2 = vpop.f32.mrf.mxu2  ;;  %v126_v3 = vpop.f32.mrf.mxu0 }
  0xa0   :  { %v127_v4 = vadd.f32 %v304_v1, %v126_v3  ;;  %v170_v5 = vpop.f32.mrf.mxu1 }
  0xa2   :  { %v171_v6 = vadd.f32 %v170_v5, %v127_v4 }
  0xa4   :  { %v215_v7 = vadd.f32 %v214_v63, %v171_v6 }
  0xa6   :  { %v241_v8 = vmax.f32 %v215_v7, 0.0 }
  0xa7   :  { %v223_v9 = vpop.f32.mrf.mxu2  ;;  %v129_v10 = vpop.f32.mrf.mxu0 }
  0xa8   :  { %250 = vst.msk [vmem:[%s613_s3] sm:$0xff] %vm81_vm0, %v241_v8  ;;  %v130_v11 = vadd.f32 %v304_v1, %v129_v10  ;;  %v173_v12 = vpop.f32.mrf.mxu1  ;;  %v144_v13 = vpop.f32.mrf.mxu3 }
  0xa9   :  { %v145_v55 = vadd.f32 %v304_v1, %v144_v13 }
  0xaa   :  { %v174_v14 = vadd.f32 %v173_v12, %v130_v11 }
  0xac   :  { %v218_v15 = vadd.f32 %v217_v0, %v174_v14 }
  0xae   :  { %v242_v16 = vmax.f32 %v218_v15, 0.0 }
  0xaf   :  { %v226_v17 = vpop.f32.mrf.mxu2  ;;  %v132_v18 = vpop.f32.mrf.mxu0 }
  0xb0   :  { %251 = vst.msk [vmem:[%s613_s3 + $0x8] sm:$0xff] %vm81_vm0, %v242_v16  ;;  %v133_v19 = vadd.f32 %v304_v1, %v132_v18  ;;  %v176_v20 = vpop.f32.mrf.mxu1  ;;  %v147_v21 = vpop.f32.mrf.mxu3 }
  0xb1   :  { %v148_v38 = vadd.f32 %v304_v1, %v147_v21 }
  0xb2   :  { %v177_v22 = vadd.f32 %v176_v20, %v133_v19 }
  0xb4   :  { %v221_v23 = vadd.f32 %v220_v2, %v177_v22 }
  0xb6   :  { %v243_v24 = vmax.f32 %v221_v23, 0.0 }
  0xb7   :  { %v229_v25 = vpop.f32.mrf.mxu2  ;;  %v135_v26 = vpop.f32.mrf.mxu0 }
  0xb8   :  { %252 = vst.msk [vmem:[%s613_s3 + $0x10] sm:$0xff] %vm81_vm0, %v243_v24  ;;  %v136_v27 = vadd.f32 %v304_v1, %v135_v26  ;;  %v179_v28 = vpop.f32.mrf.mxu1  ;;  %v150_v30 = vpop.f32.mrf.mxu3 }
  0xb9   :  { %v151_v50 = vadd.f32 %v304_v1, %v150_v30 }
  0xba   :  { %v180_v29 = vadd.f32 %v179_v28, %v136_v27 }
  0xbc   :  { %v224_v31 = vadd.f32 %v223_v9, %v180_v29 }
  0xbe   :  { %v244_v32 = vmax.f32 %v224_v31, 0.0 }
  0xbf   :  { %v232_v33 = vpop.f32.mrf.mxu2  ;;  %v138_v34 = vpop.f32.mrf.mxu0 }
  0xc0   :  { %253 = vst.msk [vmem:[%s613_s3 + $0x18] sm:$0xff] %vm81_vm0, %v244_v32  ;;  %v139_v35 = vadd.f32 %v304_v1, %v138_v34  ;;  %v182_v36 = vpop.f32.mrf.mxu1 }
  0xc2   :  { %v183_v37 = vadd.f32 %v182_v36, %v139_v35 }
  0xc4   :  { %v227_v39 = vadd.f32 %v226_v17, %v183_v37 }
  0xc5   :  { %v191_v40 = vpop.f32.mrf.mxu3 }
  0xc6   :  { %v245_v41 = vmax.f32 %v227_v39, 0.0  ;;  %v192_v42 = vadd.f32 %v191_v40, %v148_v38 }
  0xc7   :  { %v235_v43 = vpop.f32.mrf.mxu2  ;;  %v141_v44 = vpop.f32.mrf.mxu0 }
  0xc8   :  { %254 = vst.msk [vmem:[%s613_s3 + $0x20] sm:$0xff] %vm81_vm0, %v245_v41  ;;  %v236_v45 = vadd.f32 %v235_v43, %v192_v42  ;;  %v142_v46 = vadd.f32 %v304_v1, %v141_v44  ;;  %v185_v47 = vpop.f32.mrf.mxu1 }
  0xca   :  { %v248_v48 = vmax.f32 %v236_v45, 0.0  ;;  %v186_v49 = vadd.f32 %v185_v47, %v142_v46 }
  0xcc   :  { %257 = vst.msk [vmem:[%s613_s3 + $0x38] sm:$0xff] %vm81_vm0, %v248_v48  ;;  %v230_v51 = vadd.f32 %v229_v25, %v186_v49 }
  0xcd   :  { %v194_v52 = vpop.f32.mrf.mxu3 }
  0xce   :  { %v246_v53 = vmax.f32 %v230_v51, 0.0  ;;  %v195_v54 = vadd.f32 %v194_v52, %v151_v50 }
  0xcf   :  { %v238_v56 = vpop.f32.mrf.mxu2 }
  0xd0   :  { %255 = vst.msk [vmem:[%s613_s3 + $0x28] sm:$0xff] %vm81_vm0, %v246_v53  ;;  %v239_v57 = vadd.f32 %v238_v56, %v195_v54  ;;  %v188_v58 = vpop.f32.mrf.mxu1 }
  0xd1   :  { %v189_v59 = vadd.f32 %v188_v58, %v145_v55 }
  0xd2   :  { %v249_v60 = vmax.f32 %v239_v57, 0.0 }
  0xd3   :  { %v233_v61 = vadd.f32 %v232_v33, %v189_v59 }
  0xd4   :  { %258 = vst.msk [vmem:[%s613_s3 + $0x40] sm:$0xff] %vm81_vm0, %v249_v60 }
  0xd5   :  { %v247_v62 = vmax.f32 %v233_v61, 0.0 }
  0xd7   :  { %256 = vst.msk [vmem:[%s613_s3 + $0x30] sm:$0xff] %vm81_vm0, %v247_v62 }

// kernel: _lambda_.10
= control target key start
LH: loop header
LB: loop body
LE: loop exit
PB: predicated region body
PF: predicated region fallthrough
CT: control target
= control target key end

     0   :  { %vm32_vm0 = vcmask 261120   ;;  %vm40_vm1 = vcmask 257024   ;;  %v555_v3 = vmov 36.0   ;;  %vm105_vm3 = vcmask 254976   ;;  %s881_s0 = inlined_call_operand.vmem [shape: f32[2,36,32], index: 0, kind: input, shape index: {}]   ;;  %s882_s1 = inlined_call_operand.vmem [shape: f32[2,32], index: 1, kind: input, shape index: {}]   ;;  %s883_s2 = inlined_call_operand.vmem [shape: f32[2,32], index: 2, kind: input, shape index: {}]   ;;  %s884_s3 = inlined_call_operand.vmem [shape: f32[36,36], index: 3, kind: input, shape index: {}]   ;;  %s885_s4 = inlined_call_operand.vmem [shape: f32[36,36], index: 4, kind: input, shape index: {}]   ;;  %s886_s5 = inlined_call_operand.vmem [shape: f32[2,36,32], index: 5, kind: output, shape index: {}]  }
   0x1   :  { %v590_v0 = vld [vmem:[%s881_s0] sm:$0xff]  ;;  %v595_v1 = vld [vmem:[%s881_s0 + $0x8] sm:$0xff]  ;;  %v600_v2 = vld [vmem:[%s881_s0 + $0x10] sm:$0xff]  ;;  %539 = vrcp.f32 %v555_v3  ;;  %vm336_vm12 = vcmask 1043456   ;;  %vm308_vm14 = vcmask 130112   ;;  %vm312_vm15 = vcmask 195712  }
   0x2   :  { %v605_v4 = vld [vmem:[%s881_s0 + $0x18] sm:$0xff]  ;;  %v610_v5 = vld [vmem:[%s881_s0 + $0x20] sm:$0xf]  ;;  %v34_v6 = vsel %vm32_vm0, %v595_v1, 0.0  ;;  %v73_v7 = vsel %vm32_vm0, %v590_v0, -inf  ;;  %v74_v8 = vsel %vm32_vm0, %v595_v1, -inf }
   0x3   :  { %v75_v9 = vsel %vm32_vm0, %v600_v2, -inf  ;;  %v77_v10 = vsel %vm32_vm0, %v605_v4, -inf  ;;  %v625_v11 = vld [vmem:[%s881_s0 + $0x30] sm:$0xff]  ;;  %v79_v14 = vsel %vm40_vm1, %v610_v5, -inf  ;;  %v33_v15 = vsel %vm32_vm0, %v590_v0, 0.0  ;;  %v643_v20 = vld [vmem:[%s881_s0 + $0x28] sm:$0xff] }
   0x4   :  { %v76_v12 = vmax.f32 %v73_v7, %v75_v9  ;;  %v78_v13 = vmax.f32 %v74_v8, %v77_v10  ;;  %v634_v16 = vld [vmem:[%s881_s0 + $0x48] sm:$0xf]  ;;  %v35_v17 = vadd.f32 %v34_v6, %v33_v15  ;;  %v36_v18 = vsel %vm32_vm0, %v600_v2, 0.0  ;;  %v648_v22 = vld [vmem:[%s881_s0 + $0x38] sm:$0xff]  ;;  %v653_v23 = vld [vmem:[%s881_s0 + $0x40] sm:$0xff] }
   0x5   :  { %v38_v19 = vsel %vm32_vm0, %v605_v4, 0.0  ;;  %v50_v24 = vsel %vm32_vm0, %v625_v11, 0.0  ;;  %v88_v25 = vsel %vm32_vm0, %v643_v20, -inf  ;;  %v89_v26 = vsel %vm32_vm0, %v625_v11, -inf  ;;  %v30_v3 = vld [vmem:[%s882_s1] sm:$0x3] }
   0x6   :  { %v80_v21 = vmax.f32 %v76_v12, %v79_v14  ;;  %v37_v28 = vadd.f32 %v36_v18, %v35_v17  ;;  %v90_v29 = vsel %vm32_vm0, %v648_v22, -inf  ;;  %v92_v30 = vsel %vm32_vm0, %v653_v23, -inf }
   0x7   :  { %v540_v27 = vpop.eup %539  ;;  %v94_v31 = vsel %vm40_vm1, %v634_v16, -inf  ;;  %v41_v33 = vsel %vm40_vm1, %v610_v5, 0.0  ;;  %v91_v35 = vmax.f32 %v88_v25, %v90_v29  ;;  %v93_v37 = vmax.f32 %v89_v26, %v92_v30 }
   0x8   :  { %v81_v32 = vmax.f32 %v80_v21, %v78_v13  ;;  %v65_v34 = vmul.f32 36.0, %v540_v27  ;;  %v39_v36 = vadd.f32 %v38_v19, %v37_v28  ;;  %v49_v38 = vsel %vm32_vm0, %v643_v20, 0.0 }
   0x9   :  { %v52_v39 = vsel %vm32_vm0, %v648_v22, 0.0  ;;  %v95_v42 = vmax.f32 %v91_v35, %v94_v31  ;;  %v51_v43 = vadd.f32 %v50_v24, %v49_v38  ;;  %v54_v45 = vsel %vm32_vm0, %v653_v23, 0.0 }
   0xa   :  { %v82_v40 = vrot.slane %v81_v32, 4  ;;  %v66_v41 = vsub.f32 1.0, %v65_v34  ;;  %v42_v44 = vadd.f32 %v41_v33, %v39_v36  ;;  %v56_v50 = vsel %vm40_vm1, %v634_v16, 0.0  ;;  %v31_v34 = vld [vmem:[%s883_s2] sm:$0x3] }
   0xb   :  { %v96_v47 = vmax.f32 %v95_v42, %v93_v37  ;;  %v53_v48 = vadd.f32 %v52_v39, %v51_v43  ;;  %vm69_vm2 = vweird.f32 %v540_v27 }
   0xc   :  { %v83_v46 = vmax.f32 %v81_v32, %v82_v40  ;;  %v43_v49 = vrot.slane %v42_v44, 4  ;;  %v67_v52 = vmul.f32 %v540_v27, %v66_v41 }
   0xd   :  { %v97_v53 = vrot.slane %v96_v47, 4  ;;  %v55_v54 = vadd.f32 %v54_v45, %v53_v48 }
   0xe   :  { %v84_v51 = vrot.slane %v83_v46, 2  ;;  %v44_v55 = vadd.f32 %v43_v49, %v42_v44  ;;  %v68_v61 = vadd.f32 %v540_v27, %v67_v52 }
   0xf   :  { %v98_v57 = vmax.f32 %v96_v47, %v97_v53  ;;  %v57_v58 = vadd.f32 %v56_v50, %v55_v54 }
  0x10   :  { %v85_v56 = vmax.f32 %v83_v46, %v84_v51  ;;  %v45_v59 = vrot.slane %v44_v55, 2  ;;  %v70_v13 = vsel %vm69_vm2, %v540_v27, %v68_v61  ;;  %vm316_vm2 = vcmask 261312  }
  0x11   :  { %v99_v62 = vrot.slane %v98_v57, 2  ;;  %v58_v63 = vrot.slane %v57_v58, 4 }
  0x12   :  { %v86_v60 = vrot.slane %v85_v56, 1  ;;  %v46_v6 = vadd.f32 %v45_v59, %v44_v55 }
  0x13   :  { %v100_v8 = vmax.f32 %v98_v57, %v99_v62  ;;  %v59_v9 = vadd.f32 %v58_v63, %v57_v58 }
  0x14   :  { %v87_v7 = vmax.f32 %v85_v56, %v86_v60  ;;  %v47_v10 = vrot.slane %v46_v6, 1 }
  0x15   :  { %v101_v14 = vrot.slane %v100_v8, 1  ;;  %v60_v15 = vrot.slane %v59_v9, 2 }
  0x16   :  { %v130_v12 = vmul.f32 %v87_v7, %v30_v3  ;;  %v48_v17 = vadd.f32 %v47_v10, %v46_v6 }
  0x17   :  { %v102_v19 = vmax.f32 %v100_v8, %v101_v14  ;;  %v61_v21 = vadd.f32 %v60_v15, %v59_v9 }
  0x18   :  { %v132_v18 = vsel %vm105_vm3, %v130_v12, 0.0  ;;  %v71_v24 = vmul.f32 %v70_v13, %v48_v17 }
  0x19   :  { %133 = vadd.xlane.f32.xlu1 %v132_v18  ;;  %v131_v25 = vmul.f32 %v102_v19, %v30_v3  ;;  %v62_v26 = vrot.slane %v61_v21, 1 }
  0x1a   :  { %v103_v28 = vmul.f32 %v71_v24, %v30_v3 }
  0x1b   :  { %v63_v29 = vadd.f32 %v62_v26, %v61_v21  ;;  %v135_v31 = vsel %vm105_vm3, %v131_v25, 0.0 }
  0x1c   :  { %v106_v30 = vsel %vm105_vm3, %v103_v28, 0.0 }
  0x1d   :  { %107 = vadd.xlane.f32.xlu0 %v106_v30  ;;  %v72_v32 = vmul.f32 %v70_v13, %v63_v29 }
  0x1f   :  { %v104_v27 = vmul.f32 %v72_v32, %v30_v3 }
  0x21   :  { %136 = vadd.xlane.f32.xlu1 %v135_v31  ;;  %v109_v33 = vsel %vm105_vm3, %v104_v27, 0.0 }
  0x25   :  { %110 = vadd.xlane.f32.xlu0 %v109_v33 }
  0x8c   :  { %v134_v35 = vpop.xlane.xlu1 %133 }
  0x8d   :  { %v138_v36 = vmax.f32 %v134_v35, 0.0 }
  0x8f   :  { %v140_v37 = vmul.f32 %v138_v36, %v31_v34 }
  0x90   :  { %v108_v39 = vpop.xlane.xlu0 %107 }
  0x91   :  { %v142_v38 = vsel %vm105_vm3, %v140_v37, 0.0  ;;  %v112_v41 = vmax.f32 %v108_v39, 0.0 }
  0x92   :  { %v143_v40 = vrot.slane %v142_v38, 4 }
  0x93   :  { %v114_v43 = vmul.f32 %v112_v41, %v31_v34 }
  0x94   :  { %v144_v42 = vadd.f32 %v143_v40, %v142_v38  ;;  %v137_v44 = vpop.xlane.xlu1 %136 }
  0x95   :  { %v139_v45 = vmax.f32 %v137_v44, 0.0  ;;  %v116_v47 = vsel %vm105_vm3, %v114_v43, 0.0 }
  0x96   :  { %v145_v46 = vrot.slane %v144_v42, 2  ;;  %v117_v48 = vrot.slane %v116_v47, 4 }
  0x97   :  { %v141_v49 = vmul.f32 %v139_v45, %v31_v34 }
  0x98   :  { %v146_v50 = vadd.f32 %v145_v46, %v144_v42  ;;  %v118_v51 = vadd.f32 %v117_v48, %v116_v47  ;;  %v111_v53 = vpop.xlane.xlu0 %110 }
  0x99   :  { %v149_v52 = vsel %vm105_vm3, %v141_v49, 0.0  ;;  %v113_v55 = vmax.f32 %v111_v53, 0.0 }
  0x9a   :  { %v150_v54 = vrot.slane %v149_v52, 4  ;;  %v119_v56 = vrot.slane %v118_v51, 2  ;;  %v147_v59 = vrot.slane %v146_v50, 1 }
  0x9b   :  { %v115_v58 = vmul.f32 %v113_v55, %v31_v34 }
  0x9c   :  { %v151_v57 = vadd.f32 %v150_v54, %v149_v52  ;;  %v120_v60 = vadd.f32 %v119_v56, %v118_v51  ;;  %v148_v7 = vadd.f32 %v147_v59, %v146_v50 }
  0x9d   :  { %v123_v62 = vsel %vm105_vm3, %v115_v58, 0.0  ;;  %vm320_vm3 = vcmask 326912  }
  0x9e   :  { %v152_v61 = vrot.slane %v151_v57, 2  ;;  %v121_v63 = vrot.slane %v120_v60, 1  ;;  %v124_v3 = vrot.slane %v123_v62, 4 }
  0xa0   :  { %v153_v6 = vadd.f32 %v152_v61, %v151_v57  ;;  %v122_v8 = vadd.f32 %v121_v63, %v120_v60  ;;  %v125_v9 = vadd.f32 %v124_v3, %v123_v62 }
  0xa2   :  { %v156_v10 = vadd.f32 %v148_v7, %v122_v8  ;;  %v154_v12 = vrot.slane %v153_v6, 1  ;;  %v126_v13 = vrot.slane %v125_v9, 2 }
  0xa4   :  { %v519_v14 = vmul.f32 -1.442695, %v156_v10  ;;  %v127_v15 = vadd.f32 %v126_v13, %v125_v9  ;;  %v155_v17 = vadd.f32 %v154_v12, %v153_v6  ;;  %v287_v12 = vld [vmem:[%s884_s3 + $0x20] sm:$0xf]  ;;  %v286_v13 = vld [vmem:[%s884_s3 + $0x18] sm:$0xff] }
  0xa5   :  { %523 = vmatpush.msk.msra.mxu1 %vm336_vm12, %v287_v12 }
  0xa6   :  { %541 = vpow2.f32 %v519_v14  ;;  %v128_v18 = vrot.slane %v127_v15, 1  ;;  %v556_v14 = vmov 32.0  }
  0xa7   :  { %406 = vmatpush.msra.mxu1 %v286_v13 }
  0xa8   :  { %v129_v19 = vadd.f32 %v128_v18, %v127_v15 }
  0xaa   :  { %v157_v21 = vadd.f32 %v155_v17, %v129_v19  ;;  %v285_v19 = vld [vmem:[%s884_s3 + $0x10] sm:$0xff] }
  0xab   :  { %407 = vmatpush.msra.mxu1 %v285_v19 }
  0xac   :  { %v542_v24 = vpop.eup %541  ;;  %v520_v25 = vmul.f32 -1.442695, %v157_v21 }
  0xad   :  { %v164_v26 = vadd.f32 1.0, %v542_v24  ;;  %v284_v24 = vld [vmem:[%s884_s3 + $0x8] sm:$0xff] }
  0xae   :  { %543 = vpow2.f32 %v520_v25  ;;  %v283_v25 = vld [vmem:[%s884_s3] sm:$0xff]  ;;  %408 = vmatpush.msra.mxu1 %v284_v24 }
  0xaf   :  { %545 = vrcp.f32 %v164_v26  ;;  %v177_v27 = vand.u32 2147483648, %v164_v26  ;;  %v175_v34 = vand.u32 2147483647, %v164_v26  ;;  %vm171_vm5 = vweird.f32 %v164_v26 }
  0xb0   :  { %409 = vmatpush.msra.mxu1 %v283_v25 }
  0xb1   :  { %v178_v37 = vor.u32 1.1754944e-38, %v177_v27  ;;  %vm176_vm7 = vcmp.eq.f32.partialorder %v175_v34, 8.507059e+37  ;;  %v291_v27 = vld [vmem:[%s885_s4 + $0x18] sm:$0xff] }
  0xb4   :  { %v544_v28 = vpop.eup %543 }
  0xb5   :  { %v546_v29 = vpop.eup %545  ;;  %v165_v30 = vadd.f32 1.0, %v544_v28 }
  0xb6   :  { %v167_v31 = vmul.f32 %v546_v29, %v164_v26  ;;  %vm172_vm4 = vweird.f32 %v546_v29 }
  0xb7   :  { %547 = vrcp.f32 %v165_v30  ;;  %vm173_vm6 = vmor %vm171_vm5, %vm172_vm4  ;;  %v192_v43 = vand.u32 2147483648, %v165_v30  ;;  %v190_v46 = vand.u32 2147483647, %v165_v30  ;;  %vm186_vm9 = vweird.f32 %v165_v30 }
  0xb8   :  { %v168_v32 = vsub.f32 1.0, %v167_v31  ;;  %549 = vrcp.f32 %v556_v14  ;;  %vm331_vm4 = vcmask 1041409   ;;  %vm333_vm5 = vcmask 293888  }
  0xb9   :  { %v193_v48 = vor.u32 1.1754944e-38, %v192_v43  ;;  %vm191_vm11 = vcmp.eq.f32.partialorder %v190_v46, 8.507059e+37 }
  0xba   :  { %v169_v33 = vmul.f32 %v546_v29, %v168_v32  ;;  %v292_v32 = vld [vmem:[%s885_s4 + $0x20] sm:$0xf] }
  0xbb   :  { %521 = vmatpush.msk.msra.mxu0 %vm336_vm12, %v292_v32 }
  0xbc   :  { %v170_v35 = vadd.f32 %v546_v29, %v169_v33  ;;  %v290_v33 = vld [vmem:[%s885_s4 + $0x10] sm:$0xff] }
  0xbd   :  { %v548_v36 = vpop.eup %547  ;;  %352 = vmatpush.msra.mxu0 %v291_v27 }
  0xbe   :  { %v174_v38 = vsel %vm173_vm6, %v546_v29, %v170_v35  ;;  %v182_v39 = vmul.f32 %v548_v36, %v165_v30  ;;  %vm187_vm8 = vweird.f32 %v548_v36  ;;  %v550_v21 = vpop.eup %549 }
  0xbf   :  { %v179_v40 = vsel %vm176_vm7, %v178_v37, %v174_v38  ;;  %vm188_vm10 = vmor %vm186_vm9, %vm187_vm8  ;;  %v237_v26 = vmul.f32 32.0, %v550_v21  ;;  %353 = vmatpush.msra.mxu0 %v290_v33  ;;  %v289_v38 = vld [vmem:[%s885_s4 + $0x8] sm:$0xff]  ;;  %vm241_vm13 = vweird.f32 %v550_v21 }
  0xc0   :  { %v692_v41 = vmul.f32 %v179_v40, %v590_v0  ;;  %v183_v42 = vsub.f32 1.0, %v182_v39  ;;  %v697_v49 = vmul.f32 %v179_v40, %v595_v1  ;;  %v712_v1 = vmul.f32 %v179_v40, %v600_v2 }
  0xc1   :  { %v736_v60 = vmul.f32 %v179_v40, %v610_v5  ;;  %v238_v31 = vsub.f32 1.0, %v237_v26  ;;  %v303_v39 = vlaneseq  ;;  %354 = vmatpush.msra.mxu0 %v289_v38 }
  0xc2   :  { %v206_v44 = vsel %vm32_vm0, %v692_v41, 0.0  ;;  %v184_v45 = vmul.f32 %v548_v36, %v183_v42  ;;  %v209_v53 = vsel %vm32_vm0, %v697_v49, 0.0  ;;  %v212_v56 = vsel %vm32_vm0, %v712_v1, 0.0 }
  0xc3   :  { %207 = vadd.xlane.f32.xlu2 %v206_v44  ;;  %v253_v59 = vsel %vm32_vm0, %v692_v41, -inf  ;;  %v218_v61 = vsel %vm40_vm1, %v736_v60, 0.0  ;;  %v259_v6 = vsel %vm32_vm0, %v712_v1, -inf  ;;  %v265_v7 = vsel %vm40_vm1, %v736_v60, -inf }
  0xc4   :  { %v185_v47 = vadd.f32 %v548_v36, %v184_v45  ;;  %v239_v34 = vmul.f32 %v550_v21, %v238_v31  ;;  %v798_v43 = vand.u32 127, %v303_v39 }
  0xc6   :  { %v189_v50 = vsel %vm188_vm10, %v548_v36, %v185_v47  ;;  %v240_v42 = vadd.f32 %v550_v21, %v239_v34  ;;  %v306_v45 = vadd.s32 4294967288, %v798_v43 }
  0xc7   :  { %v194_v0 = vsel %vm191_vm11, %v193_v48, %v189_v50  ;;  %v310_v50 = vadd.s32 4294967280, %v798_v43 }
  0xc8   :  { %v700_v51 = vmul.f32 %v194_v0, %v625_v11  ;;  %v703_v52 = vmul.f32 %v194_v0, %v643_v20  ;;  %v715_v11 = vmul.f32 %v179_v40, %v605_v4  ;;  %v718_v20 = vmul.f32 %v194_v0, %v648_v22  ;;  %v288_v40 = vld [vmem:[%s885_s4] sm:$0xff] }
  0xc9   :  { %v727_v2 = vmul.f32 %v194_v0, %v653_v23  ;;  %v256_v22 = vsel %vm32_vm0, %v697_v49, -inf  ;;  %v745_v63 = vmul.f32 %v194_v0, %v634_v16  ;;  %355 = vmatpush.msra.mxu0 %v288_v40  ;;  %v242_v44 = vsel %vm241_vm13, %v550_v21, %v240_v42 }
  0xca   :  { %v224_v54 = vsel %vm32_vm0, %v700_v51, 0.0  ;;  %v221_v55 = vsel %vm32_vm0, %v703_v52, 0.0  ;;  %v215_v57 = vsel %vm32_vm0, %v715_v11, 0.0  ;;  %v227_v58 = vsel %vm32_vm0, %v718_v20, 0.0 }
  0xcb   :  { %210 = vadd.xlane.f32.xlu2 %v209_v53  ;;  %225 = vadd.xlane.f32.xlu1 %v224_v54  ;;  %v230_v4 = vsel %vm32_vm0, %v727_v2, 0.0  ;;  %v268_v23 = vsel %vm32_vm0, %v703_v52, -inf  ;;  %v271_v62 = vsel %vm32_vm0, %v700_v51, -inf  ;;  %v274_v3 = vsel %vm32_vm0, %v718_v20, -inf }
  0xcc   :  { %222 = vadd.xlane.f32.xlu0 %v221_v55  ;;  %v233_v5 = vsel %vm40_vm1, %v745_v63, 0.0  ;;  %v262_v8 = vsel %vm32_vm0, %v715_v11, -inf  ;;  %v277_v16 = vsel %vm32_vm0, %v727_v2, -inf  ;;  %v280_v9 = vsel %vm40_vm1, %v745_v63, -inf }
  0xd3   :  { %213 = vadd.xlane.f32.xlu2 %v212_v56  ;;  %216 = vadd.xlane.f32.xlu1 %v215_v57 }
  0xd4   :  { %228 = vadd.xlane.f32.xlu0 %v227_v58 }
  0xdb   :  { %231 = vadd.xlane.f32.xlu2 %v230_v4  ;;  %257 = vmax.xlane.f32.xlu1 %v256_v22  ;;  %v314_v4 = vadd.s32 4294967272, %v798_v43 }
  0xdc   :  { %254 = vmax.xlane.f32.xlu0 %v253_v59 }
  0xe3   :  { %219 = vadd.xlane.f32.xlu1 %v218_v61  ;;  %269 = vmax.xlane.f32.xlu2 %v268_v23  ;;  %v318_v23 = vadd.s32 4294967264, %v798_v43 }
  0xe4   :  { %272 = vmax.xlane.f32.xlu0 %v271_v62 }
  0xeb   :  { %275 = vmax.xlane.f32.xlu1 %v274_v3  ;;  %234 = vadd.xlane.f32.xlu2 %v233_v5 }
  0xec   :  { %260 = vmax.xlane.f32.xlu0 %v259_v6 }
  0xf3   :  { %266 = vmax.xlane.f32.xlu1 %v265_v7  ;;  %263 = vmax.xlane.f32.xlu2 %v262_v8 }
  0xf4   :  { %278 = vmax.xlane.f32.xlu0 %v277_v16 }
  0xfb   :  { %281 = vmax.xlane.f32.xlu2 %v280_v9 }
 0x136   :  { %v208_v10 = vpop.xlane.xlu2 %207 }
 0x137   :  { %v243_v54 = vmul.f32 %v242_v44, %v208_v10 }
 0x139   :  { %v370_v3 = vperm.slane %v243_v54, %v798_v43 }
 0x13e   :  { %v211_v15 = vpop.xlane.xlu2 %210  ;;  %v226_v17 = vpop.xlane.xlu1 %225 }
 0x13f   :  { %v223_v18 = vpop.xlane.xlu0 %222  ;;  %v244_v46 = vmul.f32 %v242_v44, %v211_v15  ;;  %v249_v55 = vmul.f32 %v242_v44, %v226_v17 }
 0x140   :  { %v248_v56 = vmul.f32 %v242_v44, %v223_v18 }
 0x141   :  { %v371_v58 = vperm.slane %v244_v46, %v306_v45  ;;  %v380_v5 = vperm.slane %v249_v55, %v306_v45 }
 0x142   :  { %v379_v6 = vperm.slane %v248_v56, %v798_v43 }
 0x143   :  { %v372_v8 = vsel %vm308_vm14, %v371_v58, %v370_v3 }
 0x144   :  { %v381_v17 = vsel %vm308_vm14, %v380_v5, %v379_v6 }
 0x146   :  { %v214_v28 = vpop.xlane.xlu2 %213  ;;  %v217_v29 = vpop.xlane.xlu1 %216 }
 0x147   :  { %v229_v30 = vpop.xlane.xlu0 %228  ;;  %v245_v0 = vmul.f32 %v242_v44, %v214_v28  ;;  %v246_v22 = vmul.f32 %v242_v44, %v217_v29 }
 0x148   :  { %v250_v57 = vmul.f32 %v242_v44, %v229_v30 }
 0x149   :  { %v373_v61 = vperm.slane %v245_v0, %v310_v50  ;;  %v375_v16 = vperm.slane %v246_v22, %v314_v4 }
 0x14a   :  { %v382_v7 = vperm.slane %v250_v57, %v310_v50 }
 0x14b   :  { %v374_v12 = vsel %vm312_vm15, %v373_v61, %v372_v8 }
 0x14c   :  { %v383_v19 = vsel %vm312_vm15, %v382_v7, %v381_v17  ;;  %v376_v24 = vsel %vm316_vm2, %v375_v16, %v374_v12 }
 0x14e   :  { %v232_v35 = vpop.xlane.xlu2 %231  ;;  %v787_v36 = vpop.xlane.xlu1 %257 }
 0x14f   :  { %v789_v37 = vpop.xlane.xlu0 %254  ;;  %v251_v59 = vmul.f32 %v242_v44, %v232_v35  ;;  %v307_v31 = vperm.slane %v787_v36, %v306_v45 }
 0x150   :  { %v305_v32 = vperm.slane %v789_v37, %v798_v43 }
 0x151   :  { %v384_v9 = vperm.slane %v251_v59, %v314_v4 }
 0x153   :  { %v385_v25 = vsel %vm316_vm2, %v384_v9, %v383_v19 }
 0x156   :  { %v220_v47 = vpop.xlane.xlu1 %219  ;;  %v270_v48 = vpop.xlane.xlu2 %269 }
 0x157   :  { %v273_v53 = vpop.xlane.xlu0 %272  ;;  %v247_v62 = vmul.f32 %v242_v44, %v220_v47  ;;  %v322_v34 = vperm.slane %v270_v48, %v798_v43 }
 0x158   :  { %v323_v35 = vperm.slane %v273_v53, %v306_v45  ;;  %v435_v53 = vshrl.u32 %v303_v39, 7 }
 0x159   :  { %v377_v13 = vperm.slane %v247_v62, %v318_v23 }
 0x15a   :  { %v324_v54 = vsel %vm308_vm14, %v323_v35, %v322_v34  ;;  %528 = vset.pattern.permute.xlu0 %v435_v53  ;;  %v448_v57 = vadd.s32 16, %v435_v53  ;;  %v442_v58 = vadd.s32 8, %v435_v53 }
 0x15b   :  { %v378_v26 = vsel %vm320_vm3, %v377_v13, %v376_v24 }
 0x15c   :  { %530 = vset.pattern.permute.xlu2 %v448_v57  ;;  %529 = vset.pattern.permute.xlu1 %v442_v58 }
 0x15e   :  { %v235_v10 = vpop.xlane.xlu2 %234  ;;  %v276_v18 = vpop.xlane.xlu1 %275 }
 0x15f   :  { %v252_v14 = vmul.f32 %v242_v44, %v235_v10  ;;  %v261_v15 = vpop.xlane.xlu0 %260  ;;  %v325_v42 = vperm.slane %v276_v18, %v310_v50  ;;  %v309_v44 = vsel %vm308_vm14, %v307_v31, %v305_v32 }
 0x160   :  { %v311_v27 = vperm.slane %v261_v15, %v310_v50  ;;  %v460_v15 = vadd.s32 32, %v435_v53 }
 0x161   :  { %v386_v21 = vperm.slane %v252_v14, %v318_v23  ;;  %v326_v37 = vsel %vm312_vm15, %v325_v42, %v324_v54  ;;  %v454_v14 = vadd.s32 24, %v435_v53 }
 0x162   :  { %v313_v47 = vsel %vm312_vm15, %v311_v27, %v309_v44 }
 0x163   :  { %v387_v28 = vsel %vm320_vm3, %v386_v21, %v385_v25 }
 0x164   :  { %v388_v29 = vsel %vm331_vm4, %v387_v28, %v378_v26 }
 0x165   :  { %524 = vmatmul.msk.f32.vlgmr.msra.gmra.mxu1 %vm333_vm5, %v388_v29 }
 0x166   :  { %v264_v30 = vpop.xlane.xlu2 %263  ;;  %v267_v38 = vpop.xlane.xlu1 %266 }
 0x167   :  { %v279_v33 = vpop.xlane.xlu0 %278  ;;  %v315_v40 = vperm.slane %v264_v30, %v314_v4  ;;  %v319_v0 = vperm.slane %v267_v38, %v318_v23 }
 0x168   :  { %v327_v46 = vperm.slane %v279_v33, %v314_v4 }
 0x169   :  { %v317_v36 = vsel %vm316_vm2, %v315_v40, %v313_v47 }
 0x16a   :  { %v328_v43 = vsel %vm316_vm2, %v327_v46, %v326_v37  ;;  %v321_v45 = vsel %vm320_vm3, %v319_v0, %v317_v36 }
 0x16e   :  { %v282_v55 = vpop.xlane.xlu2 %281 }
 0x16f   :  { %v329_v56 = vperm.slane %v282_v55, %v318_v23 }
 0x171   :  { %v330_v48 = vsel %vm320_vm3, %v329_v56, %v328_v43 }
 0x172   :  { %v332_v50 = vsel %vm331_vm4, %v330_v48, %v321_v45 }
 0x173   :  { %522 = vmatmul.msk.f32.vlgmr.msra.gmra.mxu0 %vm333_vm5, %v332_v50 }
 0x1e2   :  { %v411_v4 = vpop.f32.mrf.mxu1 }
 0x1f0   :  { %v357_v22 = vpop.f32.mrf.mxu0 }
 0x1f1   :  { %v412_v59 = vadd.f32 %v411_v4, %v357_v22 }
 0x1f3   :  { %v525_v61 = vmul.f32 -1.442695, %v412_v59 }
 0x1f5   :  { %551 = vpow2.f32 %v525_v61 }
 0x1fb   :  { %v552_v23 = vpop.eup %551 }
 0x1fc   :  { %v417_v62 = vadd.f32 1.0, %v552_v23 }
 0x1fe   :  { %553 = vrcp.f32 %v417_v62  ;;  %v429_v7 = vand.u32 2147483648, %v417_v62  ;;  %v427_v39 = vand.u32 2147483647, %v417_v62  ;;  %vm423_vm7 = vweird.f32 %v417_v62 }
 0x200   :  { %v430_v9 = vor.u32 1.1754944e-38, %v429_v7  ;;  %vm428_vm9 = vcmp.eq.f32.partialorder %v427_v39, 8.507059e+37 }
 0x204   :  { %v554_v3 = vpop.eup %553 }
 0x205   :  { %v419_v5 = vmul.f32 %v554_v3, %v417_v62  ;;  %vm424_vm6 = vweird.f32 %v554_v3 }
 0x206   :  { %vm425_vm8 = vmor %vm423_vm7, %vm424_vm6 }
 0x207   :  { %v420_v6 = vsub.f32 1.0, %v419_v5 }
 0x209   :  { %v421_v8 = vmul.f32 %v554_v3, %v420_v6 }
 0x20b   :  { %v422_v16 = vadd.f32 %v554_v3, %v421_v8 }
 0x20d   :  { %v426_v10 = vsel %vm425_vm8, %v554_v3, %v422_v16 }
 0x20e   :  { %v431_v12 = vsel %vm428_vm9, %v430_v9, %v426_v10 }
 0x20f   :  { %v433_v13 = vperm.slane %v431_v12, 0  ;;  %v464_v17 = vperm.slane %v431_v12, 1 }
 0x211   :  { %450 = vperm.xlu2 %530, %v433_v13   ;;  %444 = vperm.xlu1 %529, %v433_v13  }
 0x212   :  { %438 = vperm.xlu0 %528, %v433_v13  }
 0x219   :  { %531 = vset.pattern.permute.xlu2 %v454_v14  ;;  %532 = vset.pattern.permute.xlu1 %v460_v15 }
 0x21a   :  { %535 = vset.pattern.permute.xlu0 %v448_v57 }
 0x221   :  { %456 = vperm.xlu2 %531, %v433_v13   ;;  %462 = vperm.xlu1 %532, %v433_v13  }
 0x222   :  { %481 = vperm.xlu0 %535, %v464_v17  }
 0x229   :  { %533 = vset.pattern.permute.xlu2 %v435_v53  ;;  %534 = vset.pattern.permute.xlu1 %v442_v58 }
 0x22a   :  { %538 = vset.pattern.permute.xlu0 %v460_v15 }
 0x231   :  { %469 = vperm.xlu2 %533, %v464_v17   ;;  %475 = vperm.xlu1 %534, %v464_v17  }
 0x239   :  { %536 = vset.pattern.permute.xlu2 %v454_v14  ;;  %537 = vset.pattern.permute.xlu1 %v460_v15 }
 0x241   :  { %487 = vperm.xlu2 %536, %v464_v17   ;;  %493 = vperm.xlu1 %537, %v464_v17  }
 0x26b   :  { %v451_v18 = vpop.permute.xlu2 %450 }
 0x26c   :  { %v497_v19 = vmul.f32 %v451_v18, %v712_v1 }
 0x26e   :  { %507 = vst.msk [vmem:[%s886_s5 + $0x10] sm:$0xff] %vm32_vm0, %v497_v19 }
 0x27b   :  { %v457_v21 = vpop.permute.xlu2 %456 }
 0x27c   :  { %v498_v24 = vmul.f32 %v457_v21, %v715_v11 }
 0x27e   :  { %508 = vst.msk [vmem:[%s886_s5 + $0x18] sm:$0xff] %vm32_vm0, %v498_v24 }
 0x283   :  { %v445_v25 = vpop.permute.xlu1 %444 }
 0x284   :  { %v496_v26 = vmul.f32 %v445_v25, %v697_v49  ;;  %v439_v28 = vpop.permute.xlu0 %438 }
 0x285   :  { %v495_v29 = vmul.f32 %v439_v28, %v692_v41 }
 0x286   :  { %506 = vst.msk [vmem:[%s886_s5 + $0x8] sm:$0xff] %vm32_vm0, %v496_v26 }
 0x287   :  { %505 = vst.msk [vmem:[%s886_s5] sm:$0xff] %vm32_vm0, %v495_v29 }
 0x28b   :  { %v470_v1 = vpop.permute.xlu2 %469 }
 0x28c   :  { %v500_v11 = vmul.f32 %v470_v1, %v703_v52 }
 0x28e   :  { %510 = vst.msk [vmem:[%s886_s5 + $0x28] sm:$0xff] %vm32_vm0, %v500_v11 }
 0x293   :  { %v463_v49 = vpop.permute.xlu1 %462 }
 0x294   :  { %v499_v41 = vmul.f32 %v463_v49, %v736_v60  ;;  %v482_v30 = vpop.permute.xlu0 %481 }
 0x295   :  { %v502_v31 = vmul.f32 %v482_v30, %v718_v20 }
 0x296   :  { %509 = vst.msk [vmem:[%s886_s5 + $0x20] sm:$0xf] %vm40_vm1, %v499_v41 }
 0x297   :  { %512 = vst.msk [vmem:[%s886_s5 + $0x38] sm:$0xff] %vm32_vm0, %v502_v31 }
 0x29b   :  { %v488_v52 = vpop.permute.xlu2 %487 }
 0x29c   :  { %v503_v32 = vmul.f32 %v488_v52, %v727_v2 }
 0x29e   :  { %513 = vst.msk [vmem:[%s886_s5 + $0x40] sm:$0xff] %vm32_vm0, %v503_v32 }
 0x2a3   :  { %v476_v60 = vpop.permute.xlu1 %475 }
 0x2a4   :  { %v501_v20 = vmul.f32 %v476_v60, %v700_v51 }
 0x2a6   :  { %511 = vst.msk [vmem:[%s886_s5 + $0x30] sm:$0xff] %vm32_vm0, %v501_v20 }
 0x2b3   :  { %v494_v27 = vpop.permute.xlu1 %493 }
 0x2b4   :  { %v504_v33 = vmul.f32 %v494_v27, %v745_v63 }
 0x2b6   :  { %514 = vst.msk [vmem:[%s886_s5 + $0x48] sm:$0xf] %vm40_vm1, %v504_v33 }

// kernel: _lambda_.11
= control target key start
LH: loop header
LB: loop body
LE: loop exit
PB: predicated region body
PF: predicated region fallthrough
CT: control target
= control target key end

     0   :  { %s3624_s0 = inlined_call_operand.vmem [shape: f32[2,1152], index: 0, kind: input, shape index: {}]   ;;  %s3625_s1 = inlined_call_operand.vmem [shape: f32[1152,512], index: 1, kind: input, shape index: {}]   ;;  %s3626_s2 = inlined_call_operand.vmem [shape: f32[1,512], index: 2, kind: input, shape index: {}]   ;;  %s3627_s3 = inlined_call_operand.vmem [shape: f32[512,6], index: 3, kind: input, shape index: {}]   ;;  %s3628_s4 = inlined_call_operand.vmem [shape: f32[1,6], index: 4, kind: input, shape index: {}]   ;;  %s3629_s5 = inlined_call_operand.hbm [shape: f32[2,6], index: 5, kind: output, shape index: {}]  }
   0x1   :  { %v84_v0 = vld [vmem:[%s3625_s1 + $0x1e0] sm:$0xff] }
   0x2   :  { %v148_v1 = vld [vmem:[%s3625_s1 + $0x3e0] sm:$0xff]  ;;  %635 = vmatpush.msra.mxu0 %v84_v0 }
   0x3   :  { %v212_v2 = vld [vmem:[%s3625_s1 + $0x5e0] sm:$0xff]  ;;  %655 = vmatpush.msra.mxu1 %v148_v1 }
   0x4   :  { %v80_v3 = vld [vmem:[%s3625_s1 + $0x1c0] sm:$0xff]  ;;  %675 = vmatpush.msra.mxu2 %v212_v2 }
   0x5   :  { %v144_v4 = vld [vmem:[%s3625_s1 + $0x3c0] sm:$0xff]  ;;  %636 = vmatpush.msra.mxu0 %v80_v3 }
   0x6   :  { %v208_v5 = vld [vmem:[%s3625_s1 + $0x5c0] sm:$0xff]  ;;  %656 = vmatpush.msra.mxu1 %v144_v4 }
   0x7   :  { %v276_v6 = vld [vmem:[%s3625_s1 + $0x7e0] sm:$0xff]  ;;  %676 = vmatpush.msra.mxu2 %v208_v5 }
   0x8   :  { %v76_v7 = vld [vmem:[%s3625_s1 + $0x1a0] sm:$0xff]  ;;  %695 = vmatpush.msra.mxu3 %v276_v6 }
   0x9   :  { %v140_v8 = vld [vmem:[%s3625_s1 + $0x3a0] sm:$0xff]  ;;  %637 = vmatpush.msra.mxu0 %v76_v7 }
   0xa   :  { %v204_v9 = vld [vmem:[%s3625_s1 + $0x5a0] sm:$0xff]  ;;  %657 = vmatpush.msra.mxu1 %v140_v8 }
   0xb   :  { %v272_v10 = vld [vmem:[%s3625_s1 + $0x7c0] sm:$0xff]  ;;  %677 = vmatpush.msra.mxu2 %v204_v9 }
   0xc   :  { %v72_v11 = vld [vmem:[%s3625_s1 + $0x180] sm:$0xff]  ;;  %696 = vmatpush.msra.mxu3 %v272_v10 }
   0xd   :  { %v136_v12 = vld [vmem:[%s3625_s1 + $0x380] sm:$0xff]  ;;  %638 = vmatpush.msra.mxu0 %v72_v11 }
   0xe   :  { %v200_v13 = vld [vmem:[%s3625_s1 + $0x580] sm:$0xff]  ;;  %658 = vmatpush.msra.mxu1 %v136_v12 }
   0xf   :  { %v268_v14 = vld [vmem:[%s3625_s1 + $0x7a0] sm:$0xff]  ;;  %678 = vmatpush.msra.mxu2 %v200_v13 }
  0x10   :  { %v68_v15 = vld [vmem:[%s3625_s1 + $0x160] sm:$0xff]  ;;  %697 = vmatpush.msra.mxu3 %v268_v14 }
  0x11   :  { %v132_v16 = vld [vmem:[%s3625_s1 + $0x360] sm:$0xff]  ;;  %639 = vmatpush.msra.mxu0 %v68_v15 }
  0x12   :  { %v196_v17 = vld [vmem:[%s3625_s1 + $0x560] sm:$0xff]  ;;  %659 = vmatpush.msra.mxu1 %v132_v16 }
  0x13   :  { %v264_v18 = vld [vmem:[%s3625_s1 + $0x780] sm:$0xff]  ;;  %679 = vmatpush.msra.mxu2 %v196_v17 }
  0x14   :  { %v64_v19 = vld [vmem:[%s3625_s1 + $0x140] sm:$0xff]  ;;  %698 = vmatpush.msra.mxu3 %v264_v18 }
  0x15   :  { %v128_v20 = vld [vmem:[%s3625_s1 + $0x340] sm:$0xff]  ;;  %640 = vmatpush.msra.mxu0 %v64_v19 }
  0x16   :  { %v192_v21 = vld [vmem:[%s3625_s1 + $0x540] sm:$0xff]  ;;  %660 = vmatpush.msra.mxu1 %v128_v20 }
  0x17   :  { %v260_v22 = vld [vmem:[%s3625_s1 + $0x760] sm:$0xff]  ;;  %680 = vmatpush.msra.mxu2 %v192_v21 }
  0x18   :  { %v60_v23 = vld [vmem:[%s3625_s1 + $0x120] sm:$0xff]  ;;  %699 = vmatpush.msra.mxu3 %v260_v22 }
  0x19   :  { %v124_v24 = vld [vmem:[%s3625_s1 + $0x320] sm:$0xff]  ;;  %641 = vmatpush.msra.mxu0 %v60_v23 }
  0x1a   :  { %v188_v25 = vld [vmem:[%s3625_s1 + $0x520] sm:$0xff]  ;;  %661 = vmatpush.msra.mxu1 %v124_v24 }
  0x1b   :  { %v256_v26 = vld [vmem:[%s3625_s1 + $0x740] sm:$0xff]  ;;  %681 = vmatpush.msra.mxu2 %v188_v25 }
  0x1c   :  { %v56_v27 = vld [vmem:[%s3625_s1 + $0x100] sm:$0xff]  ;;  %700 = vmatpush.msra.mxu3 %v256_v26 }
  0x1d   :  { %v120_v28 = vld [vmem:[%s3625_s1 + $0x300] sm:$0xff]  ;;  %642 = vmatpush.msra.mxu0 %v56_v27 }
  0x1e   :  { %v184_v29 = vld [vmem:[%s3625_s1 + $0x500] sm:$0xff]  ;;  %662 = vmatpush.msra.mxu1 %v120_v28 }
  0x1f   :  { %v252_v30 = vld [vmem:[%s3625_s1 + $0x720] sm:$0xff]  ;;  %682 = vmatpush.msra.mxu2 %v184_v29 }
  0x20   :  { %v52_v31 = vld [vmem:[%s3625_s1 + $0xe0] sm:$0xff]  ;;  %701 = vmatpush.msra.mxu3 %v252_v30 }
  0x21   :  { %v116_v32 = vld [vmem:[%s3625_s1 + $0x2e0] sm:$0xff]  ;;  %643 = vmatpush.msra.mxu0 %v52_v31 }
  0x22   :  { %v180_v33 = vld [vmem:[%s3625_s1 + $0x4e0] sm:$0xff]  ;;  %663 = vmatpush.msra.mxu1 %v116_v32 }
  0x23   :  { %v248_v34 = vld [vmem:[%s3625_s1 + $0x700] sm:$0xff]  ;;  %683 = vmatpush.msra.mxu2 %v180_v33 }
  0x24   :  { %v48_v35 = vld [vmem:[%s3625_s1 + $0xc0] sm:$0xff]  ;;  %702 = vmatpush.msra.mxu3 %v248_v34 }
  0x25   :  { %v112_v36 = vld [vmem:[%s3625_s1 + $0x2c0] sm:$0xff]  ;;  %644 = vmatpush.msra.mxu0 %v48_v35 }
  0x26   :  { %v176_v37 = vld [vmem:[%s3625_s1 + $0x4c0] sm:$0xff]  ;;  %664 = vmatpush.msra.mxu1 %v112_v36 }
  0x27   :  { %v244_v38 = vld [vmem:[%s3625_s1 + $0x6e0] sm:$0xff]  ;;  %684 = vmatpush.msra.mxu2 %v176_v37 }
  0x28   :  { %v44_v39 = vld [vmem:[%s3625_s1 + $0xa0] sm:$0xff]  ;;  %703 = vmatpush.msra.mxu3 %v244_v38 }
  0x29   :  { %v108_v40 = vld [vmem:[%s3625_s1 + $0x2a0] sm:$0xff]  ;;  %645 = vmatpush.msra.mxu0 %v44_v39 }
  0x2a   :  { %v172_v41 = vld [vmem:[%s3625_s1 + $0x4a0] sm:$0xff]  ;;  %665 = vmatpush.msra.mxu1 %v108_v40 }
  0x2b   :  { %v240_v42 = vld [vmem:[%s3625_s1 + $0x6c0] sm:$0xff]  ;;  %685 = vmatpush.msra.mxu2 %v172_v41 }
  0x2c   :  { %v40_v43 = vld [vmem:[%s3625_s1 + $0x80] sm:$0xff]  ;;  %704 = vmatpush.msra.mxu3 %v240_v42  ;;  %v22_v42 = vld [vmem:[%s3624_s0 + $0x8] sm:$0xff] }
  0x2d   :  { %v104_v44 = vld [vmem:[%s3625_s1 + $0x280] sm:$0xff]  ;;  %646 = vmatpush.msra.mxu0 %v40_v43  ;;  %615 = vst [vmem:[#allocation1 + $0x20] ss:$4 sm:$0xff] %v22_v42 }
  0x2e   :  { %v168_v45 = vld [vmem:[%s3625_s1 + $0x480] sm:$0xff]  ;;  %666 = vmatpush.msra.mxu1 %v104_v44 }
  0x2f   :  { %v236_v46 = vld [vmem:[%s3625_s1 + $0x6a0] sm:$0xff]  ;;  %686 = vmatpush.msra.mxu2 %v168_v45  ;;  %v23_v45 = vld [vmem:[%s3624_s0 + $0x10] sm:$0x3] }
  0x30   :  { %v36_v47 = vld [vmem:[%s3625_s1 + $0x60] sm:$0xff]  ;;  %705 = vmatpush.msra.mxu3 %v236_v46 }
  0x31   :  { %v100_v48 = vld [vmem:[%s3625_s1 + $0x260] sm:$0xff]  ;;  %647 = vmatpush.msra.mxu0 %v36_v47 }
  0x32   :  { %v164_v49 = vld [vmem:[%s3625_s1 + $0x460] sm:$0xff]  ;;  %667 = vmatpush.msra.mxu1 %v100_v48 }
  0x33   :  { %v232_v50 = vld [vmem:[%s3625_s1 + $0x680] sm:$0xff]  ;;  %687 = vmatpush.msra.mxu2 %v164_v49 }
  0x34   :  { %v32_v51 = vld [vmem:[%s3625_s1 + $0x40] sm:$0xff]  ;;  %706 = vmatpush.msra.mxu3 %v232_v50 }
  0x35   :  { %v96_v52 = vld [vmem:[%s3625_s1 + $0x240] sm:$0xff]  ;;  %648 = vmatpush.msra.mxu0 %v32_v51 }
  0x36   :  { %v160_v53 = vld [vmem:[%s3625_s1 + $0x440] sm:$0xff]  ;;  %668 = vmatpush.msra.mxu1 %v96_v52 }
  0x37   :  { %v228_v54 = vld [vmem:[%s3625_s1 + $0x660] sm:$0xff]  ;;  %688 = vmatpush.msra.mxu2 %v160_v53 }
  0x38   :  { %v28_v55 = vld [vmem:[%s3625_s1 + $0x20] sm:$0xff]  ;;  %707 = vmatpush.msra.mxu3 %v228_v54 }
  0x39   :  { %v92_v56 = vld [vmem:[%s3625_s1 + $0x220] sm:$0xff]  ;;  %649 = vmatpush.msra.mxu0 %v28_v55 }
  0x3a   :  { %v156_v57 = vld [vmem:[%s3625_s1 + $0x420] sm:$0xff]  ;;  %669 = vmatpush.msra.mxu1 %v92_v56 }
  0x3b   :  { %v224_v58 = vld [vmem:[%s3625_s1 + $0x640] sm:$0xff]  ;;  %689 = vmatpush.msra.mxu2 %v156_v57 }
  0x3c   :  { %v24_v59 = vld [vmem:[%s3625_s1] sm:$0xff]  ;;  %708 = vmatpush.msra.mxu3 %v224_v58 }
  0x3d   :  { %v88_v60 = vld [vmem:[%s3625_s1 + $0x200] sm:$0xff]  ;;  %650 = vmatpush.msra.mxu0 %v24_v59 }
  0x3e   :  { %v152_v61 = vld [vmem:[%s3625_s1 + $0x400] sm:$0xff]  ;;  %670 = vmatpush.msra.mxu1 %v88_v60 }
  0x3f   :  { %v220_v62 = vld [vmem:[%s3625_s1 + $0x620] sm:$0xff]  ;;  %690 = vmatpush.msra.mxu2 %v152_v61 }
  0x40   :  { %v340_v63 = vld [vmem:[%s3625_s1 + $0x9e0] sm:$0xff]  ;;  %709 = vmatpush.msra.mxu3 %v220_v62 }
  0x41   :  { %v404_v0 = vld [vmem:[%s3625_s1 + $0xbe0] sm:$0xff]  ;;  %715 = vmatpush.msrb.mxu0 %v340_v63 }
  0x42   :  { %v468_v1 = vld [vmem:[%s3625_s1 + $0xde0] sm:$0xff]  ;;  %735 = vmatpush.msrb.mxu1 %v404_v0 }
  0x43   :  { %v216_v2 = vld [vmem:[%s3625_s1 + $0x600] sm:$0xff]  ;;  %755 = vmatpush.msrb.mxu2 %v468_v1 }
  0x44   :  { %v336_v3 = vld [vmem:[%s3625_s1 + $0x9c0] sm:$0xff]  ;;  %710 = vmatpush.msra.mxu3 %v216_v2 }
  0x45   :  { %v400_v4 = vld [vmem:[%s3625_s1 + $0xbc0] sm:$0xff]  ;;  %716 = vmatpush.msrb.mxu0 %v336_v3 }
  0x46   :  { %v464_v5 = vld [vmem:[%s3625_s1 + $0xdc0] sm:$0xff]  ;;  %736 = vmatpush.msrb.mxu1 %v400_v4 }
  0x47   :  { %v532_v6 = vld [vmem:[%s3625_s1 + $0xfe0] sm:$0xff]  ;;  %756 = vmatpush.msrb.mxu2 %v464_v5 }
  0x48   :  { %v332_v7 = vld [vmem:[%s3625_s1 + $0x9a0] sm:$0xff]  ;;  %775 = vmatpush.msrb.mxu3 %v532_v6 }
  0x49   :  { %v396_v8 = vld [vmem:[%s3625_s1 + $0xba0] sm:$0xff]  ;;  %717 = vmatpush.msrb.mxu0 %v332_v7  ;;  %v85_v7 = vld [vmem:[%s3625_s1 + $0x1e8] sm:$0xff] }
  0x4a   :  { %v460_v9 = vld [vmem:[%s3625_s1 + $0xda0] sm:$0xff]  ;;  %737 = vmatpush.msrb.mxu1 %v396_v8  ;;  %v149_v8 = vld [vmem:[%s3625_s1 + $0x3e8] sm:$0xff] }
  0x4b   :  { %v528_v10 = vld [vmem:[%s3625_s1 + $0xfc0] sm:$0xff]  ;;  %757 = vmatpush.msrb.mxu2 %v460_v9 }
  0x4c   :  { %v328_v11 = vld [vmem:[%s3625_s1 + $0x980] sm:$0xff]  ;;  %776 = vmatpush.msrb.mxu3 %v528_v10 }
  0x4d   :  { %v392_v12 = vld [vmem:[%s3625_s1 + $0xb80] sm:$0xff]  ;;  %718 = vmatpush.msrb.mxu0 %v328_v11  ;;  %v81_v11 = vld [vmem:[%s3625_s1 + $0x1c8] sm:$0xff] }
  0x4e   :  { %v456_v13 = vld [vmem:[%s3625_s1 + $0xd80] sm:$0xff]  ;;  %738 = vmatpush.msrb.mxu1 %v392_v12  ;;  %v145_v12 = vld [vmem:[%s3625_s1 + $0x3c8] sm:$0xff] }
  0x4f   :  { %v524_v14 = vld [vmem:[%s3625_s1 + $0xfa0] sm:$0xff]  ;;  %758 = vmatpush.msrb.mxu2 %v456_v13  ;;  %v213_v13 = vld [vmem:[%s3625_s1 + $0x5e8] sm:$0xff] }
  0x50   :  { %v324_v15 = vld [vmem:[%s3625_s1 + $0x960] sm:$0xff]  ;;  %777 = vmatpush.msrb.mxu3 %v524_v14 }
  0x51   :  { %v388_v16 = vld [vmem:[%s3625_s1 + $0xb60] sm:$0xff]  ;;  %719 = vmatpush.msrb.mxu0 %v324_v15  ;;  %v77_v15 = vld [vmem:[%s3625_s1 + $0x1a8] sm:$0xff] }
  0x52   :  { %v452_v17 = vld [vmem:[%s3625_s1 + $0xd60] sm:$0xff]  ;;  %739 = vmatpush.msrb.mxu1 %v388_v16  ;;  %v141_v16 = vld [vmem:[%s3625_s1 + $0x3a8] sm:$0xff] }
  0x53   :  { %v520_v18 = vld [vmem:[%s3625_s1 + $0xf80] sm:$0xff]  ;;  %759 = vmatpush.msrb.mxu2 %v452_v17  ;;  %v209_v17 = vld [vmem:[%s3625_s1 + $0x5c8] sm:$0xff] }
  0x54   :  { %v320_v19 = vld [vmem:[%s3625_s1 + $0x940] sm:$0xff]  ;;  %778 = vmatpush.msrb.mxu3 %v520_v18 }
  0x55   :  { %v384_v20 = vld [vmem:[%s3625_s1 + $0xb40] sm:$0xff]  ;;  %720 = vmatpush.msrb.mxu0 %v320_v19  ;;  %v73_v19 = vld [vmem:[%s3625_s1 + $0x188] sm:$0xff] }
  0x56   :  { %v448_v21 = vld [vmem:[%s3625_s1 + $0xd40] sm:$0xff]  ;;  %740 = vmatpush.msrb.mxu1 %v384_v20 }
  0x57   :  { %v516_v22 = vld [vmem:[%s3625_s1 + $0xf60] sm:$0xff]  ;;  %760 = vmatpush.msrb.mxu2 %v448_v21 }
  0x58   :  { %v316_v23 = vld [vmem:[%s3625_s1 + $0x920] sm:$0xff]  ;;  %779 = vmatpush.msrb.mxu3 %v516_v22 }
  0x59   :  { %v380_v24 = vld [vmem:[%s3625_s1 + $0xb20] sm:$0xff]  ;;  %721 = vmatpush.msrb.mxu0 %v316_v23 }
  0x5a   :  { %v21_v25 = vld [vmem:[%s3624_s0] sm:$0xff]  ;;  %741 = vmatpush.msrb.mxu1 %v380_v24 }
  0x5b   :  { %v444_v26 = vld [vmem:[%s3625_s1 + $0xd20] sm:$0xff]  ;;  %613 = vst [vmem:[#allocation1] ss:$4 sm:$0xff] %v21_v25 }
  0x5c   :  { %v512_v27 = vld [vmem:[%s3625_s1 + $0xf40] sm:$0xff]  ;;  %761 = vmatpush.msrb.mxu2 %v444_v26 }
  0x5d   :  { %v312_v28 = vld [vmem:[%s3625_s1 + $0x900] sm:$0xff]  ;;  %780 = vmatpush.msrb.mxu3 %v512_v27 }
  0x5e   :  { %v376_v29 = vld [vmem:[%s3625_s1 + $0xb00] sm:$0xff]  ;;  %722 = vmatpush.msrb.mxu0 %v312_v28 }
  0x5f   :  { %v440_v30 = vld [vmem:[%s3625_s1 + $0xd00] sm:$0xff]  ;;  %742 = vmatpush.msrb.mxu1 %v376_v29 }
  0x60   :  { %v508_v31 = vld [vmem:[%s3625_s1 + $0xf20] sm:$0xff]  ;;  %762 = vmatpush.msrb.mxu2 %v440_v30 }
  0x61   :  { %v308_v32 = vld [vmem:[%s3625_s1 + $0x8e0] sm:$0xff]  ;;  %781 = vmatpush.msrb.mxu3 %v508_v31 }
  0x62   :  { %v372_v33 = vld [vmem:[%s3625_s1 + $0xae0] sm:$0xff]  ;;  %723 = vmatpush.msrb.mxu0 %v308_v32  ;;  %v1921_v47 = vld.sshfl [vmem:[#allocation1 + $0x8] sm:$0xff pattern:$0x73625140] }
  0x63   :  { %v436_v34 = vld [vmem:[%s3625_s1 + $0xce0] sm:$0xff]  ;;  %743 = vmatpush.msrb.mxu1 %v372_v33  ;;  %v1923_v48 = vld.sshfl [vmem:[#allocation1 + $0x10] sm:$0xff pattern:$0x73625140] }
  0x64   :  { %v504_v35 = vld [vmem:[%s3625_s1 + $0xf00] sm:$0xff]  ;;  %763 = vmatpush.msrb.mxu2 %v436_v34  ;;  %v1925_v49 = vld.sshfl [vmem:[#allocation1 + $0x18] sm:$0xff pattern:$0x73625140]  ;;  %671 = vmatmul.f32.vlgmr.msra.gmra.mxu1 %v1921_v47 }
  0x65   :  { %v304_v36 = vld [vmem:[%s3625_s1 + $0x8c0] sm:$0xff]  ;;  %782 = vmatpush.msrb.mxu3 %v504_v35  ;;  %691 = vmatmul.f32.vlgmr.msra.gmra.mxu2 %v1923_v48 }
  0x66   :  { %v368_v37 = vld [vmem:[%s3625_s1 + $0xac0] sm:$0xff]  ;;  %724 = vmatpush.msrb.mxu0 %v304_v36  ;;  %711 = vmatmul.f32.vlgmr.msra.gmra.mxu3 %v1925_v49 }
  0x67   :  { %v432_v38 = vld [vmem:[%s3625_s1 + $0xcc0] sm:$0xff]  ;;  %744 = vmatpush.msrb.mxu1 %v368_v37 }
  0x68   :  { %v500_v39 = vld [vmem:[%s3625_s1 + $0xee0] sm:$0xff]  ;;  %764 = vmatpush.msrb.mxu2 %v432_v38 }
  0x69   :  { %v300_v40 = vld [vmem:[%s3625_s1 + $0x8a0] sm:$0xff]  ;;  %783 = vmatpush.msrb.mxu3 %v500_v39 }
  0x6a   :  { %v364_v41 = vld [vmem:[%s3625_s1 + $0xaa0] sm:$0xff]  ;;  %725 = vmatpush.msrb.mxu0 %v300_v40 }
  0x6b   :  { %v428_v43 = vld [vmem:[%s3625_s1 + $0xca0] sm:$0xff]  ;;  %745 = vmatpush.msrb.mxu1 %v364_v41 }
  0x6c   :  { %v496_v44 = vld [vmem:[%s3625_s1 + $0xec0] sm:$0xff]  ;;  %765 = vmatpush.msrb.mxu2 %v428_v43 }
  0x6d   :  { %v1919_v46 = vld.sshfl [vmem:[#allocation1] sm:$0xff pattern:$0x73625140]  ;;  %784 = vmatpush.msrb.mxu3 %v496_v44 }
  0x6e   :  { %v296_v50 = vld [vmem:[%s3625_s1 + $0x880] sm:$0xff]  ;;  %624 = vst [vmem:[#allocation1] ss:$4 sm:$0xff] %v23_v45  ;;  %651 = vmatmul.f32.vlgmr.msra.gmra.mxu0 %v1919_v46 }
  0x6f   :  { %v360_v51 = vld [vmem:[%s3625_s1 + $0xa80] sm:$0xff]  ;;  %726 = vmatpush.msrb.mxu0 %v296_v50 }
  0x70   :  { %v424_v52 = vld [vmem:[%s3625_s1 + $0xc80] sm:$0xff]  ;;  %746 = vmatpush.msrb.mxu1 %v360_v51 }
  0x71   :  { %v492_v53 = vld [vmem:[%s3625_s1 + $0xea0] sm:$0xff]  ;;  %766 = vmatpush.msrb.mxu2 %v424_v52 }
  0x72   :  { %v292_v54 = vld [vmem:[%s3625_s1 + $0x860] sm:$0xff]  ;;  %785 = vmatpush.msrb.mxu3 %v492_v53 }
  0x73   :  { %v356_v55 = vld [vmem:[%s3625_s1 + $0xa60] sm:$0xff]  ;;  %727 = vmatpush.msrb.mxu0 %v292_v54 }
  0x74   :  { %v420_v56 = vld [vmem:[%s3625_s1 + $0xc60] sm:$0xff]  ;;  %747 = vmatpush.msrb.mxu1 %v356_v55 }
  0x75   :  { %v488_v57 = vld [vmem:[%s3625_s1 + $0xe80] sm:$0xff]  ;;  %767 = vmatpush.msrb.mxu2 %v420_v56 }
  0x76   :  { %v288_v58 = vld [vmem:[%s3625_s1 + $0x840] sm:$0xff]  ;;  %786 = vmatpush.msrb.mxu3 %v488_v57 }
  0x77   :  { %v352_v59 = vld [vmem:[%s3625_s1 + $0xa40] sm:$0xff]  ;;  %728 = vmatpush.msrb.mxu0 %v288_v58 }
  0x78   :  { %v416_v60 = vld [vmem:[%s3625_s1 + $0xc40] sm:$0xff]  ;;  %748 = vmatpush.msrb.mxu1 %v352_v59 }
  0x79   :  { %v484_v61 = vld [vmem:[%s3625_s1 + $0xe60] sm:$0xff]  ;;  %768 = vmatpush.msrb.mxu2 %v416_v60 }
  0x7a   :  { %v284_v62 = vld [vmem:[%s3625_s1 + $0x820] sm:$0xff]  ;;  %787 = vmatpush.msrb.mxu3 %v484_v61 }
  0x7b   :  { %v348_v63 = vld [vmem:[%s3625_s1 + $0xa20] sm:$0xff]  ;;  %729 = vmatpush.msrb.mxu0 %v284_v62 }
  0x7c   :  { %v412_v0 = vld [vmem:[%s3625_s1 + $0xc20] sm:$0xff]  ;;  %749 = vmatpush.msrb.mxu1 %v348_v63 }
  0x7d   :  { %v480_v1 = vld [vmem:[%s3625_s1 + $0xe40] sm:$0xff]  ;;  %769 = vmatpush.msrb.mxu2 %v412_v0 }
  0x7e   :  { %v280_v2 = vld [vmem:[%s3625_s1 + $0x800] sm:$0xff]  ;;  %788 = vmatpush.msrb.mxu3 %v480_v1 }
  0x7f   :  { %v344_v3 = vld [vmem:[%s3625_s1 + $0xa00] sm:$0xff]  ;;  %730 = vmatpush.msrb.mxu0 %v280_v2 }
  0x80   :  { %v408_v4 = vld [vmem:[%s3625_s1 + $0xc00] sm:$0xff]  ;;  %750 = vmatpush.msrb.mxu1 %v344_v3 }
  0x81   :  { %v476_v5 = vld [vmem:[%s3625_s1 + $0xe20] sm:$0xff]  ;;  %770 = vmatpush.msrb.mxu2 %v408_v4 }
  0x82   :  { %v596_v6 = vld [vmem:[%s3625_s1 + $0x11e0] sm:$0xff]  ;;  %789 = vmatpush.msrb.mxu3 %v476_v5  ;;  %815 = vmatpush.msra.mxu1 %v85_v7 }
  0x83   :  { %v472_v9 = vld [vmem:[%s3625_s1 + $0xe00] sm:$0xff]  ;;  %795 = vmatpush.msra.mxu0 %v596_v6  ;;  %835 = vmatpush.msra.mxu2 %v149_v8 }
  0x84   :  { %v592_v10 = vld [vmem:[%s3625_s1 + $0x11c0] sm:$0xff]  ;;  %790 = vmatpush.msrb.mxu3 %v472_v9  ;;  %816 = vmatpush.msra.mxu1 %v81_v11 }
  0x85   :  { %796 = vmatpush.msra.mxu0 %v592_v10  ;;  %v588_v14 = vld [vmem:[%s3625_s1 + $0x11a0] sm:$0xff]  ;;  %836 = vmatpush.msra.mxu2 %v145_v12 }
  0x86   :  { %v584_v18 = vld [vmem:[%s3625_s1 + $0x1180] sm:$0xff]  ;;  %855 = vmatpush.msra.mxu3 %v213_v13 }
  0x87   :  { %10 = vsyncpa [#allocation3], 0  ;;  %797 = vmatpush.msra.mxu0 %v588_v14  ;;  %817 = vmatpush.msra.mxu1 %v77_v15  ;;  %v137_v20 = vld [vmem:[%s3625_s1 + $0x388] sm:$0xff]  ;;  %v2039_v22 = vld.sshfl [vmem:[#allocation1 + $0x30] sm:$0xff pattern:$0x73625140] }
  0x88   :  { %v205_v21 = vld [vmem:[%s3625_s1 + $0x5a8] sm:$0xff]  ;;  %837 = vmatpush.msra.mxu2 %v141_v16  ;;  %856 = vmatpush.msra.mxu3 %v209_v17  ;;  %v580_v23 = vld [vmem:[%s3625_s1 + $0x1160] sm:$0xff]  ;;  %v2056_v28 = vld.sshfl [vmem:[#allocation1 + $0x38] sm:$0xff pattern:$0x73625140]  ;;  %s1558_s30 = smov [#allocation2]  }
  0x89   :  { %798 = vmatpush.msra.mxu0 %v584_v18  ;;  %818 = vmatpush.msra.mxu1 %v73_v19  ;;  %v69_v24 = vld [vmem:[%s3625_s1 + $0x168] sm:$0xff]  ;;  %v2053_v27 = vld.sshfl [vmem:[#allocation1 + $0x20] sm:$0xff pattern:$0x73625140]  ;;  %s1514_s6 = sshll.u32 %s1558_s30, 4  ;;  %s1516_s9 = sshll.u32 %s3629_s5, 4  ;;  %s1515_s6 = int_to_ptr.vmem [resolvable:$true] %s1514_s6  ;;  %s1517_s9 = int_to_ptr.hbm [resolvable:$true] %s1516_s9 }
  0x8a   :  { %v133_v25 = vld [vmem:[%s3625_s1 + $0x368] sm:$0xff]  ;;  %838 = vmatpush.msra.mxu2 %v137_v20  ;;  %857 = vmatpush.msra.mxu3 %v205_v21  ;;  %v576_v29 = vld [vmem:[%s3625_s1 + $0x1140] sm:$0xff]  ;;  %vm1507_vm0 = vcmask 41984  }
  0x8b   :  { %v201_v26 = vld [vmem:[%s3625_s1 + $0x588] sm:$0xff]  ;;  %771 = vmatmul.f32.vlgmr.msrb.gmra.mxu2 %v2039_v22  ;;  %799 = vmatpush.msra.mxu0 %v580_v23  ;;  %v572_v34 = vld [vmem:[%s3625_s1 + $0x1120] sm:$0xff] }
  0x8c   :  { %819 = vmatpush.msra.mxu1 %v69_v24  ;;  %839 = vmatpush.msra.mxu2 %v133_v25  ;;  %v65_v30 = vld [vmem:[%s3625_s1 + $0x148] sm:$0xff]  ;;  %v568_v38 = vld [vmem:[%s3625_s1 + $0x1100] sm:$0xff] }
  0x8d   :  { %v129_v31 = vld [vmem:[%s3625_s1 + $0x348] sm:$0xff]  ;;  %858 = vmatpush.msra.mxu3 %v201_v26  ;;  %731 = vmatmul.f32.vlgmr.msrb.gmra.mxu0 %v2053_v27  ;;  %v564_v42 = vld [vmem:[%s3625_s1 + $0x10e0] sm:$0xff] }
  0x8e   :  { %v197_v32 = vld [vmem:[%s3625_s1 + $0x568] sm:$0xff]  ;;  %791 = vmatmul.f32.vlgmr.msrb.gmra.mxu3 %v2056_v28  ;;  %800 = vmatpush.msra.mxu0 %v576_v29  ;;  %v560_v50 = vld [vmem:[%s3625_s1 + $0x10c0] sm:$0xff] }
  0x8f   :  { %v2071_v33 = vld.sshfl [vmem:[#allocation1 + $0x28] sm:$0xff pattern:$0x73625140]  ;;  %820 = vmatpush.msra.mxu1 %v65_v30  ;;  %840 = vmatpush.msra.mxu2 %v129_v31  ;;  %v556_v54 = vld [vmem:[%s3625_s1 + $0x10a0] sm:$0xff] }
  0x90   :  { %v61_v35 = vld [vmem:[%s3625_s1 + $0x128] sm:$0xff]  ;;  %859 = vmatpush.msra.mxu3 %v197_v32  ;;  %751 = vmatmul.f32.vlgmr.msrb.gmra.mxu1 %v2071_v33  ;;  %v552_v58 = vld [vmem:[%s3625_s1 + $0x1080] sm:$0xff] }
  0x91   :  { %v125_v36 = vld [vmem:[%s3625_s1 + $0x328] sm:$0xff]  ;;  %801 = vmatpush.msra.mxu0 %v572_v34  ;;  %821 = vmatpush.msra.mxu1 %v61_v35  ;;  %v548_v62 = vld [vmem:[%s3625_s1 + $0x1060] sm:$0xff] }
  0x92   :  { %v193_v37 = vld [vmem:[%s3625_s1 + $0x548] sm:$0xff]  ;;  %841 = vmatpush.msra.mxu2 %v125_v36  ;;  %v544_v2 = vld [vmem:[%s3625_s1 + $0x1040] sm:$0xff] }
  0x93   :  { %v57_v39 = vld [vmem:[%s3625_s1 + $0x108] sm:$0xff]  ;;  %860 = vmatpush.msra.mxu3 %v193_v37  ;;  %802 = vmatpush.msra.mxu0 %v568_v38  ;;  %v540_v6 = vld [vmem:[%s3625_s1 + $0x1020] sm:$0xff] }
  0x94   :  { %v121_v40 = vld [vmem:[%s3625_s1 + $0x308] sm:$0xff]  ;;  %822 = vmatpush.msra.mxu1 %v57_v39  ;;  %v536_v10 = vld [vmem:[%s3625_s1 + $0x1000] sm:$0xff] }
  0x95   :  { %v189_v41 = vld [vmem:[%s3625_s1 + $0x528] sm:$0xff]  ;;  %842 = vmatpush.msra.mxu2 %v121_v40  ;;  %803 = vmatpush.msra.mxu0 %v564_v42  ;;  %v2195_v14 = vld.sshfl [vmem:[#allocation1] sm:$0xff pattern:$0x73625140] }
  0x96   :  { %v53_v43 = vld [vmem:[%s3625_s1 + $0xe8] sm:$0xff]  ;;  %861 = vmatpush.msra.mxu3 %v189_v41 }
  0x97   :  { %v117_v44 = vld [vmem:[%s3625_s1 + $0x2e8] sm:$0xff]  ;;  %823 = vmatpush.msra.mxu1 %v53_v43  ;;  %804 = vmatpush.msra.mxu0 %v560_v50 }
  0x98   :  { %v185_v45 = vld [vmem:[%s3625_s1 + $0x508] sm:$0xff]  ;;  %843 = vmatpush.msra.mxu2 %v117_v44 }
  0x99   :  { %v49_v51 = vld [vmem:[%s3625_s1 + $0xc8] sm:$0xff]  ;;  %862 = vmatpush.msra.mxu3 %v185_v45  ;;  %805 = vmatpush.msra.mxu0 %v556_v54 }
  0x9a   :  { %v113_v52 = vld [vmem:[%s3625_s1 + $0x2c8] sm:$0xff]  ;;  %824 = vmatpush.msra.mxu1 %v49_v51 }
  0x9b   :  { %v181_v53 = vld [vmem:[%s3625_s1 + $0x4e8] sm:$0xff]  ;;  %844 = vmatpush.msra.mxu2 %v113_v52  ;;  %806 = vmatpush.msra.mxu0 %v552_v58 }
  0x9c   :  { %v45_v55 = vld [vmem:[%s3625_s1 + $0xa8] sm:$0xff]  ;;  %863 = vmatpush.msra.mxu3 %v181_v53 }
  0x9d   :  { %v109_v56 = vld [vmem:[%s3625_s1 + $0x2a8] sm:$0xff]  ;;  %825 = vmatpush.msra.mxu1 %v45_v55  ;;  %807 = vmatpush.msra.mxu0 %v548_v62 }
  0x9e   :  { %v177_v57 = vld [vmem:[%s3625_s1 + $0x4c8] sm:$0xff]  ;;  %845 = vmatpush.msra.mxu2 %v109_v56 }
  0x9f   :  { %v41_v59 = vld [vmem:[%s3625_s1 + $0x88] sm:$0xff]  ;;  %864 = vmatpush.msra.mxu3 %v177_v57  ;;  %808 = vmatpush.msra.mxu0 %v544_v2 }
  0xa0   :  { %v105_v60 = vld [vmem:[%s3625_s1 + $0x288] sm:$0xff]  ;;  %826 = vmatpush.msra.mxu1 %v41_v59 }
  0xa1   :  { %v173_v61 = vld [vmem:[%s3625_s1 + $0x4a8] sm:$0xff]  ;;  %846 = vmatpush.msra.mxu2 %v105_v60  ;;  %809 = vmatpush.msra.mxu0 %v540_v6 }
  0xa2   :  { %v37_v63 = vld [vmem:[%s3625_s1 + $0x68] sm:$0xff]  ;;  %865 = vmatpush.msra.mxu3 %v173_v61 }
  0xa3   :  { %v101_v0 = vld [vmem:[%s3625_s1 + $0x268] sm:$0xff]  ;;  %827 = vmatpush.msra.mxu1 %v37_v63  ;;  %810 = vmatpush.msra.mxu0 %v536_v10 }
  0xa4   :  { %v169_v1 = vld [vmem:[%s3625_s1 + $0x488] sm:$0xff]  ;;  %847 = vmatpush.msra.mxu2 %v101_v0  ;;  %811 = vmatmul.f32.vlgmr.msra.gmra.mxu0 %v2195_v14 }
  0xa5   :  { %v33_v3 = vld [vmem:[%s3625_s1 + $0x48] sm:$0xff]  ;;  %866 = vmatpush.msra.mxu3 %v169_v1 }
  0xa6   :  { %v97_v4 = vld [vmem:[%s3625_s1 + $0x248] sm:$0xff]  ;;  %828 = vmatpush.msra.mxu1 %v33_v3 }
  0xa7   :  { %v165_v5 = vld [vmem:[%s3625_s1 + $0x468] sm:$0xff]  ;;  %848 = vmatpush.msra.mxu2 %v97_v4 }
  0xa8   :  { %v29_v7 = vld [vmem:[%s3625_s1 + $0x28] sm:$0xff]  ;;  %867 = vmatpush.msra.mxu3 %v165_v5 }
  0xa9   :  { %v93_v8 = vld [vmem:[%s3625_s1 + $0x228] sm:$0xff]  ;;  %829 = vmatpush.msra.mxu1 %v29_v7 }
  0xaa   :  { %v161_v9 = vld [vmem:[%s3625_s1 + $0x448] sm:$0xff]  ;;  %849 = vmatpush.msra.mxu2 %v93_v8 }
  0xab   :  { %v25_v11 = vld [vmem:[%s3625_s1 + $0x8] sm:$0xff]  ;;  %868 = vmatpush.msra.mxu3 %v161_v9 }
  0xac   :  { %v89_v12 = vld [vmem:[%s3625_s1 + $0x208] sm:$0xff]  ;;  %830 = vmatpush.msra.mxu1 %v25_v11 }
  0xad   :  { %v157_v13 = vld [vmem:[%s3625_s1 + $0x428] sm:$0xff]  ;;  %850 = vmatpush.msra.mxu2 %v89_v12  ;;  %831 = vmatmul.f32.vlgmr.msra.gmra.mxu1 %v1919_v46 }
  0xae   :  { %v341_v15 = vld [vmem:[%s3625_s1 + $0x9e8] sm:$0xff]  ;;  %869 = vmatpush.msra.mxu3 %v157_v13  ;;  %851 = vmatmul.f32.vlgmr.msra.gmra.mxu2 %v1921_v47 }
  0xaf   :  { %v277_v16 = vld [vmem:[%s3625_s1 + $0x7e8] sm:$0xff]  ;;  %895 = vmatpush.msrb.mxu1 %v341_v15 }
  0xb0   :  { %v405_v17 = vld [vmem:[%s3625_s1 + $0xbe8] sm:$0xff]  ;;  %875 = vmatpush.msrb.mxu0 %v277_v16 }
  0xb1   :  { %v153_v18 = vld [vmem:[%s3625_s1 + $0x408] sm:$0xff]  ;;  %915 = vmatpush.msrb.mxu2 %v405_v17 }
  0xb2   :  { %v337_v19 = vld [vmem:[%s3625_s1 + $0x9c8] sm:$0xff]  ;;  %870 = vmatpush.msra.mxu3 %v153_v18 }
  0xb3   :  { %v273_v20 = vld [vmem:[%s3625_s1 + $0x7c8] sm:$0xff]  ;;  %896 = vmatpush.msrb.mxu1 %v337_v19  ;;  %871 = vmatmul.f32.vlgmr.msra.gmra.mxu3 %v1923_v48 }
  0xb4   :  { %v401_v21 = vld [vmem:[%s3625_s1 + $0xbc8] sm:$0xff]  ;;  %876 = vmatpush.msrb.mxu0 %v273_v20 }
  0xb5   :  { %v469_v23 = vld [vmem:[%s3625_s1 + $0xde8] sm:$0xff]  ;;  %916 = vmatpush.msrb.mxu2 %v401_v21 }
  0xb6   :  { %v333_v24 = vld [vmem:[%s3625_s1 + $0x9a8] sm:$0xff]  ;;  %935 = vmatpush.msrb.mxu3 %v469_v23 }
  0xb7   :  { %v269_v25 = vld [vmem:[%s3625_s1 + $0x7a8] sm:$0xff]  ;;  %897 = vmatpush.msrb.mxu1 %v333_v24 }
  0xb8   :  { %v397_v26 = vld [vmem:[%s3625_s1 + $0xba8] sm:$0xff]  ;;  %877 = vmatpush.msrb.mxu0 %v269_v25 }
  0xb9   :  { %v465_v29 = vld [vmem:[%s3625_s1 + $0xdc8] sm:$0xff]  ;;  %917 = vmatpush.msrb.mxu2 %v397_v26 }
  0xba   :  { %v329_v30 = vld [vmem:[%s3625_s1 + $0x988] sm:$0xff]  ;;  %936 = vmatpush.msrb.mxu3 %v465_v29  ;;  %v86_v29 = vld [vmem:[%s3625_s1 + $0x1f0] sm:$0xff] }
  0xbb   :  { %v265_v31 = vld [vmem:[%s3625_s1 + $0x788] sm:$0xff]  ;;  %898 = vmatpush.msrb.mxu1 %v329_v30 }
  0xbc   :  { %v393_v32 = vld [vmem:[%s3625_s1 + $0xb88] sm:$0xff]  ;;  %878 = vmatpush.msrb.mxu0 %v265_v31 }
  0xbd   :  { %v461_v34 = vld [vmem:[%s3625_s1 + $0xda8] sm:$0xff]  ;;  %918 = vmatpush.msrb.mxu2 %v393_v32 }
  0xbe   :  { %v325_v35 = vld [vmem:[%s3625_s1 + $0x968] sm:$0xff]  ;;  %937 = vmatpush.msrb.mxu3 %v461_v34  ;;  %v82_v34 = vld [vmem:[%s3625_s1 + $0x1d0] sm:$0xff] }
  0xbf   :  { %v261_v36 = vld [vmem:[%s3625_s1 + $0x768] sm:$0xff]  ;;  %899 = vmatpush.msrb.mxu1 %v325_v35  ;;  %v150_v35 = vld [vmem:[%s3625_s1 + $0x3f0] sm:$0xff] }
  0xc0   :  { %v389_v37 = vld [vmem:[%s3625_s1 + $0xb68] sm:$0xff]  ;;  %879 = vmatpush.msrb.mxu0 %v261_v36 }
  0xc1   :  { %v457_v38 = vld [vmem:[%s3625_s1 + $0xd88] sm:$0xff]  ;;  %919 = vmatpush.msrb.mxu2 %v389_v37 }
  0xc2   :  { %v321_v39 = vld [vmem:[%s3625_s1 + $0x948] sm:$0xff]  ;;  %938 = vmatpush.msrb.mxu3 %v457_v38  ;;  %v78_v38 = vld [vmem:[%s3625_s1 + $0x1b0] sm:$0xff] }
  0xc3   :  { %v257_v40 = vld [vmem:[%s3625_s1 + $0x748] sm:$0xff]  ;;  %900 = vmatpush.msrb.mxu1 %v321_v39  ;;  %v146_v39 = vld [vmem:[%s3625_s1 + $0x3d0] sm:$0xff] }
  0xc4   :  { %v385_v41 = vld [vmem:[%s3625_s1 + $0xb48] sm:$0xff]  ;;  %880 = vmatpush.msrb.mxu0 %v257_v40 }
  0xc5   :  { %v453_v42 = vld [vmem:[%s3625_s1 + $0xd68] sm:$0xff]  ;;  %920 = vmatpush.msrb.mxu2 %v385_v41 }
  0xc6   :  { %v317_v43 = vld [vmem:[%s3625_s1 + $0x928] sm:$0xff]  ;;  %939 = vmatpush.msrb.mxu3 %v453_v42  ;;  %v74_v42 = vld [vmem:[%s3625_s1 + $0x190] sm:$0xff] }
  0xc7   :  { %v253_v44 = vld [vmem:[%s3625_s1 + $0x728] sm:$0xff]  ;;  %901 = vmatpush.msrb.mxu1 %v317_v43  ;;  %v142_v43 = vld [vmem:[%s3625_s1 + $0x3b0] sm:$0xff] }
  0xc8   :  { %v381_v45 = vld [vmem:[%s3625_s1 + $0xb28] sm:$0xff]  ;;  %881 = vmatpush.msrb.mxu0 %v253_v44 }
  0xc9   :  { %v449_v50 = vld [vmem:[%s3625_s1 + $0xd48] sm:$0xff]  ;;  %921 = vmatpush.msrb.mxu2 %v381_v45 }
  0xca   :  { %v313_v51 = vld [vmem:[%s3625_s1 + $0x908] sm:$0xff]  ;;  %940 = vmatpush.msrb.mxu3 %v449_v50  ;;  %v70_v50 = vld [vmem:[%s3625_s1 + $0x170] sm:$0xff] }
  0xcb   :  { %v249_v52 = vld [vmem:[%s3625_s1 + $0x708] sm:$0xff]  ;;  %902 = vmatpush.msrb.mxu1 %v313_v51  ;;  %v138_v51 = vld [vmem:[%s3625_s1 + $0x390] sm:$0xff] }
  0xcc   :  { %v377_v53 = vld [vmem:[%s3625_s1 + $0xb08] sm:$0xff]  ;;  %882 = vmatpush.msrb.mxu0 %v249_v52 }
  0xcd   :  { %v445_v54 = vld [vmem:[%s3625_s1 + $0xd28] sm:$0xff]  ;;  %922 = vmatpush.msrb.mxu2 %v377_v53 }
  0xce   :  { %v309_v55 = vld [vmem:[%s3625_s1 + $0x8e8] sm:$0xff]  ;;  %941 = vmatpush.msrb.mxu3 %v445_v54  ;;  %v66_v54 = vld [vmem:[%s3625_s1 + $0x150] sm:$0xff] }
  0xcf   :  { %v245_v56 = vld [vmem:[%s3625_s1 + $0x6e8] sm:$0xff]  ;;  %903 = vmatpush.msrb.mxu1 %v309_v55 }
  0xd0   :  { %v373_v57 = vld [vmem:[%s3625_s1 + $0xae8] sm:$0xff]  ;;  %883 = vmatpush.msrb.mxu0 %v245_v56 }
  0xd1   :  { %v441_v58 = vld [vmem:[%s3625_s1 + $0xd08] sm:$0xff]  ;;  %923 = vmatpush.msrb.mxu2 %v373_v57  ;;  %v62_v57 = vld [vmem:[%s3625_s1 + $0x130] sm:$0xff] }
  0xd2   :  { %v305_v59 = vld [vmem:[%s3625_s1 + $0x8c8] sm:$0xff]  ;;  %942 = vmatpush.msrb.mxu3 %v441_v58  ;;  %v130_v58 = vld [vmem:[%s3625_s1 + $0x350] sm:$0xff] }
  0xd3   :  { %v241_v60 = vld [vmem:[%s3625_s1 + $0x6c8] sm:$0xff]  ;;  %904 = vmatpush.msrb.mxu1 %v305_v59 }
  0xd4   :  { %v369_v61 = vld [vmem:[%s3625_s1 + $0xac8] sm:$0xff]  ;;  %884 = vmatpush.msrb.mxu0 %v241_v60  ;;  %v58_v60 = vld [vmem:[%s3625_s1 + $0x110] sm:$0xff] }
  0xd5   :  { %v437_v62 = vld [vmem:[%s3625_s1 + $0xce8] sm:$0xff]  ;;  %924 = vmatpush.msrb.mxu2 %v369_v61  ;;  %v126_v61 = vld [vmem:[%s3625_s1 + $0x330] sm:$0xff] }
  0xd6   :  { %v301_v63 = vld [vmem:[%s3625_s1 + $0x8a8] sm:$0xff]  ;;  %943 = vmatpush.msrb.mxu3 %v437_v62 }
  0xd7   :  { %v237_v0 = vld [vmem:[%s3625_s1 + $0x6a8] sm:$0xff]  ;;  %905 = vmatpush.msrb.mxu1 %v301_v63  ;;  %v54_v63 = vld [vmem:[%s3625_s1 + $0xf0] sm:$0xff] }
  0xd8   :  { %v365_v1 = vld [vmem:[%s3625_s1 + $0xaa8] sm:$0xff]  ;;  %885 = vmatpush.msrb.mxu0 %v237_v0  ;;  %v122_v0 = vld [vmem:[%s3625_s1 + $0x310] sm:$0xff] }
  0xd9   :  { %v433_v2 = vld [vmem:[%s3625_s1 + $0xcc8] sm:$0xff]  ;;  %925 = vmatpush.msrb.mxu2 %v365_v1 }
  0xda   :  { %v297_v3 = vld [vmem:[%s3625_s1 + $0x888] sm:$0xff]  ;;  %944 = vmatpush.msrb.mxu3 %v433_v2 }
  0xdb   :  { %v233_v4 = vld [vmem:[%s3625_s1 + $0x688] sm:$0xff]  ;;  %906 = vmatpush.msrb.mxu1 %v297_v3  ;;  %v50_v3 = vld [vmem:[%s3625_s1 + $0xd0] sm:$0xff] }
  0xdc   :  { %v361_v5 = vld [vmem:[%s3625_s1 + $0xa88] sm:$0xff]  ;;  %886 = vmatpush.msrb.mxu0 %v233_v4  ;;  %v118_v4 = vld [vmem:[%s3625_s1 + $0x2f0] sm:$0xff] }
  0xdd   :  { %v429_v6 = vld [vmem:[%s3625_s1 + $0xca8] sm:$0xff]  ;;  %926 = vmatpush.msrb.mxu2 %v361_v5 }
  0xde   :  { %v293_v7 = vld [vmem:[%s3625_s1 + $0x868] sm:$0xff]  ;;  %945 = vmatpush.msrb.mxu3 %v429_v6 }
  0xdf   :  { %v229_v8 = vld [vmem:[%s3625_s1 + $0x668] sm:$0xff]  ;;  %907 = vmatpush.msrb.mxu1 %v293_v7  ;;  %v46_v7 = vld [vmem:[%s3625_s1 + $0xb0] sm:$0xff] }
  0xe0   :  { %v357_v9 = vld [vmem:[%s3625_s1 + $0xa68] sm:$0xff]  ;;  %887 = vmatpush.msrb.mxu0 %v229_v8  ;;  %v114_v8 = vld [vmem:[%s3625_s1 + $0x2d0] sm:$0xff] }
  0xe1   :  { %v425_v10 = vld [vmem:[%s3625_s1 + $0xc88] sm:$0xff]  ;;  %927 = vmatpush.msrb.mxu2 %v357_v9 }
  0xe2   :  { %v289_v11 = vld [vmem:[%s3625_s1 + $0x848] sm:$0xff]  ;;  %946 = vmatpush.msrb.mxu3 %v425_v10 }
  0xe3   :  { %v225_v12 = vld [vmem:[%s3625_s1 + $0x648] sm:$0xff]  ;;  %908 = vmatpush.msrb.mxu1 %v289_v11  ;;  %v42_v11 = vld [vmem:[%s3625_s1 + $0x90] sm:$0xff] }
  0xe4   :  { %v353_v13 = vld [vmem:[%s3625_s1 + $0xa48] sm:$0xff]  ;;  %888 = vmatpush.msrb.mxu0 %v225_v12  ;;  %v110_v12 = vld [vmem:[%s3625_s1 + $0x2b0] sm:$0xff] }
  0xe5   :  { %v421_v15 = vld [vmem:[%s3625_s1 + $0xc68] sm:$0xff]  ;;  %928 = vmatpush.msrb.mxu2 %v353_v13 }
  0xe6   :  { %v285_v16 = vld [vmem:[%s3625_s1 + $0x828] sm:$0xff]  ;;  %947 = vmatpush.msrb.mxu3 %v421_v15 }
  0xe7   :  { %v221_v17 = vld [vmem:[%s3625_s1 + $0x628] sm:$0xff]  ;;  %909 = vmatpush.msrb.mxu1 %v285_v16  ;;  %v38_v16 = vld [vmem:[%s3625_s1 + $0x70] sm:$0xff] }
  0xe8   :  { %v349_v18 = vld [vmem:[%s3625_s1 + $0xa28] sm:$0xff]  ;;  %889 = vmatpush.msrb.mxu0 %v221_v17  ;;  %v106_v17 = vld [vmem:[%s3625_s1 + $0x290] sm:$0xff] }
  0xe9   :  { %v417_v19 = vld [vmem:[%s3625_s1 + $0xc48] sm:$0xff]  ;;  %929 = vmatpush.msrb.mxu2 %v349_v18 }
  0xea   :  { %v281_v20 = vld [vmem:[%s3625_s1 + $0x808] sm:$0xff]  ;;  %948 = vmatpush.msrb.mxu3 %v417_v19 }
  0xeb   :  { %v217_v21 = vld [vmem:[%s3625_s1 + $0x608] sm:$0xff]  ;;  %910 = vmatpush.msrb.mxu1 %v281_v20  ;;  %v34_v20 = vld [vmem:[%s3625_s1 + $0x50] sm:$0xff] }
  0xec   :  { %v345_v23 = vld [vmem:[%s3625_s1 + $0xa08] sm:$0xff]  ;;  %890 = vmatpush.msrb.mxu0 %v217_v21  ;;  %911 = vmatmul.f32.vlgmr.msrb.gmra.mxu1 %v2053_v27  ;;  %v102_v21 = vld [vmem:[%s3625_s1 + $0x270] sm:$0xff] }
  0xed   :  { %v413_v24 = vld [vmem:[%s3625_s1 + $0xc28] sm:$0xff]  ;;  %930 = vmatpush.msrb.mxu2 %v345_v23  ;;  %891 = vmatmul.f32.vlgmr.msrb.gmra.mxu0 %v1925_v49 }
  0xee   :  { %v533_v25 = vld [vmem:[%s3625_s1 + $0xfe8] sm:$0xff]  ;;  %949 = vmatpush.msrb.mxu3 %v413_v24  ;;  %931 = vmatmul.f32.vlgmr.msrb.gmra.mxu2 %v2071_v33  ;;  %v134_v33 = vld [vmem:[%s3625_s1 + $0x370] sm:$0xff] }
  0xef   :  { %v597_v26 = vld [vmem:[%s3625_s1 + $0x11e8] sm:$0xff]  ;;  %955 = vmatpush.msra.mxu0 %v533_v25  ;;  %995 = vmatpush.msra.mxu2 %v86_v29  ;;  %v30_v25 = vld [vmem:[%s3625_s1 + $0x30] sm:$0xff] }
  0xf0   :  { %v409_v30 = vld [vmem:[%s3625_s1 + $0xc08] sm:$0xff]  ;;  %975 = vmatpush.msra.mxu1 %v597_v26  ;;  %v98_v26 = vld [vmem:[%s3625_s1 + $0x250] sm:$0xff] }
  0xf1   :  { %v529_v31 = vld [vmem:[%s3625_s1 + $0xfc8] sm:$0xff]  ;;  %950 = vmatpush.msrb.mxu3 %v409_v30  ;;  %996 = vmatpush.msra.mxu2 %v82_v34  ;;  %v278_v34 = vld [vmem:[%s3625_s1 + $0x7f0] sm:$0xff] }
  0xf2   :  { %v593_v32 = vld [vmem:[%s3625_s1 + $0x11c8] sm:$0xff]  ;;  %956 = vmatpush.msra.mxu0 %v529_v31  ;;  %951 = vmatmul.f32.vlgmr.msrb.gmra.mxu3 %v2039_v22  ;;  %v26_v31 = vld [vmem:[%s3625_s1 + $0x10] sm:$0xff] }
  0xf3   :  { %v525_v36 = vld [vmem:[%s3625_s1 + $0xfa8] sm:$0xff]  ;;  %976 = vmatpush.msra.mxu1 %v593_v32  ;;  %1015 = vmatpush.msra.mxu3 %v150_v35  ;;  %v94_v32 = vld [vmem:[%s3625_s1 + $0x230] sm:$0xff] }
  0xf4   :  { %v589_v37 = vld [vmem:[%s3625_s1 + $0x11a8] sm:$0xff]  ;;  %957 = vmatpush.msra.mxu0 %v525_v36  ;;  %997 = vmatpush.msra.mxu2 %v78_v38  ;;  %v214_v35 = vld [vmem:[%s3625_s1 + $0x5f0] sm:$0xff] }
  0xf5   :  { %v521_v40 = vld [vmem:[%s3625_s1 + $0xf88] sm:$0xff]  ;;  %977 = vmatpush.msra.mxu1 %v589_v37  ;;  %1016 = vmatpush.msra.mxu3 %v146_v39  ;;  %v342_v36 = vld [vmem:[%s3625_s1 + $0x9f0] sm:$0xff] }
  0xf6   :  { %v585_v41 = vld [vmem:[%s3625_s1 + $0x1188] sm:$0xff]  ;;  %958 = vmatpush.msra.mxu0 %v521_v40  ;;  %998 = vmatpush.msra.mxu2 %v74_v42  ;;  %v90_v37 = vld [vmem:[%s3625_s1 + $0x210] sm:$0xff] }
  0xf7   :  { %v517_v44 = vld [vmem:[%s3625_s1 + $0xf68] sm:$0xff]  ;;  %978 = vmatpush.msra.mxu1 %v585_v41  ;;  %1017 = vmatpush.msra.mxu3 %v142_v43  ;;  %v210_v38 = vld [vmem:[%s3625_s1 + $0x5d0] sm:$0xff] }
  0xf8   :  { %v581_v45 = vld [vmem:[%s3625_s1 + $0x1168] sm:$0xff]  ;;  %959 = vmatpush.msra.mxu0 %v517_v44  ;;  %999 = vmatpush.msra.mxu2 %v70_v50  ;;  %v274_v39 = vld [vmem:[%s3625_s1 + $0x7d0] sm:$0xff] }
  0xf9   :  { %v513_v52 = vld [vmem:[%s3625_s1 + $0xf48] sm:$0xff]  ;;  %979 = vmatpush.msra.mxu1 %v581_v45  ;;  %1018 = vmatpush.msra.mxu3 %v138_v51  ;;  %v338_v40 = vld [vmem:[%s3625_s1 + $0x9d0] sm:$0xff] }
  0xfa   :  { %v577_v53 = vld [vmem:[%s3625_s1 + $0x1148] sm:$0xff]  ;;  %960 = vmatpush.msra.mxu0 %v513_v52  ;;  %1000 = vmatpush.msra.mxu2 %v66_v54  ;;  %v406_v41 = vld [vmem:[%s3625_s1 + $0xbf0] sm:$0xff] }
  0xfb   :  { %v509_v55 = vld [vmem:[%s3625_s1 + $0xf28] sm:$0xff]  ;;  %980 = vmatpush.msra.mxu1 %v577_v53  ;;  %1019 = vmatpush.msra.mxu3 %v134_v33  ;;  %v270_v42 = vld [vmem:[%s3625_s1 + $0x7b0] sm:$0xff] }
  0xfc   :  { %v573_v56 = vld [vmem:[%s3625_s1 + $0x1128] sm:$0xff]  ;;  %961 = vmatpush.msra.mxu0 %v509_v55  ;;  %1001 = vmatpush.msra.mxu2 %v62_v57  ;;  %v334_v43 = vld [vmem:[%s3625_s1 + $0x9b0] sm:$0xff] }
  0xfd   :  { %v505_v22 = vld [vmem:[%s3625_s1 + $0xf08] sm:$0xff]  ;;  %981 = vmatpush.msra.mxu1 %v573_v56  ;;  %1020 = vmatpush.msra.mxu3 %v130_v58  ;;  %v402_v44 = vld [vmem:[%s3625_s1 + $0xbd0] sm:$0xff] }
  0xfe   :  { %v569_v59 = vld [vmem:[%s3625_s1 + $0x1108] sm:$0xff]  ;;  %962 = vmatpush.msra.mxu0 %v505_v22  ;;  %1002 = vmatpush.msra.mxu2 %v58_v60  ;;  %v266_v45 = vld [vmem:[%s3625_s1 + $0x790] sm:$0xff] }
  0xff   :  { %v501_v27 = vld [vmem:[%s3625_s1 + $0xee8] sm:$0xff]  ;;  %982 = vmatpush.msra.mxu1 %v569_v59  ;;  %1021 = vmatpush.msra.mxu3 %v126_v61  ;;  %v330_v50 = vld [vmem:[%s3625_s1 + $0x990] sm:$0xff] }
 0x100   :  { %v565_v62 = vld [vmem:[%s3625_s1 + $0x10e8] sm:$0xff]  ;;  %963 = vmatpush.msra.mxu0 %v501_v27  ;;  %1003 = vmatpush.msra.mxu2 %v54_v63  ;;  %v398_v51 = vld [vmem:[%s3625_s1 + $0xbb0] sm:$0xff] }
 0x101   :  { %v497_v1 = vld [vmem:[%s3625_s1 + $0xec8] sm:$0xff]  ;;  %983 = vmatpush.msra.mxu1 %v565_v62  ;;  %1022 = vmatpush.msra.mxu3 %v122_v0  ;;  %v198_v52 = vld [vmem:[%s3625_s1 + $0x570] sm:$0xff] }
 0x102   :  { %v561_v2 = vld [vmem:[%s3625_s1 + $0x10c8] sm:$0xff]  ;;  %964 = vmatpush.msra.mxu0 %v497_v1  ;;  %1004 = vmatpush.msra.mxu2 %v50_v3  ;;  %v262_v53 = vld [vmem:[%s3625_s1 + $0x770] sm:$0xff] }
 0x103   :  { %v493_v5 = vld [vmem:[%s3625_s1 + $0xea8] sm:$0xff]  ;;  %984 = vmatpush.msra.mxu1 %v561_v2  ;;  %1023 = vmatpush.msra.mxu3 %v118_v4  ;;  %v326_v54 = vld [vmem:[%s3625_s1 + $0x970] sm:$0xff] }
 0x104   :  { %v557_v6 = vld [vmem:[%s3625_s1 + $0x10a8] sm:$0xff]  ;;  %965 = vmatpush.msra.mxu0 %v493_v5  ;;  %1005 = vmatpush.msra.mxu2 %v46_v7  ;;  %v394_v33 = vld [vmem:[%s3625_s1 + $0xb90] sm:$0xff] }
 0x105   :  { %v489_v9 = vld [vmem:[%s3625_s1 + $0xe88] sm:$0xff]  ;;  %985 = vmatpush.msra.mxu1 %v557_v6  ;;  %1024 = vmatpush.msra.mxu3 %v114_v8  ;;  %v194_v55 = vld [vmem:[%s3625_s1 + $0x550] sm:$0xff] }
 0x106   :  { %v553_v10 = vld [vmem:[%s3625_s1 + $0x1088] sm:$0xff]  ;;  %966 = vmatpush.msra.mxu0 %v489_v9  ;;  %1006 = vmatpush.msra.mxu2 %v42_v11  ;;  %v258_v56 = vld [vmem:[%s3625_s1 + $0x750] sm:$0xff] }
 0x107   :  { %v485_v13 = vld [vmem:[%s3625_s1 + $0xe68] sm:$0xff]  ;;  %986 = vmatpush.msra.mxu1 %v553_v10  ;;  %1025 = vmatpush.msra.mxu3 %v110_v12  ;;  %v322_v57 = vld [vmem:[%s3625_s1 + $0x950] sm:$0xff] }
 0x108   :  { %v549_v15 = vld [vmem:[%s3625_s1 + $0x1068] sm:$0xff]  ;;  %967 = vmatpush.msra.mxu0 %v485_v13  ;;  %1007 = vmatpush.msra.mxu2 %v38_v16  ;;  %v390_v58 = vld [vmem:[%s3625_s1 + $0xb70] sm:$0xff] }
 0x109   :  { %v481_v18 = vld [vmem:[%s3625_s1 + $0xe48] sm:$0xff]  ;;  %987 = vmatpush.msra.mxu1 %v549_v15  ;;  %1026 = vmatpush.msra.mxu3 %v106_v17  ;;  %v190_v22 = vld [vmem:[%s3625_s1 + $0x530] sm:$0xff] }
 0x10a   :  { %v545_v19 = vld [vmem:[%s3625_s1 + $0x1048] sm:$0xff]  ;;  %968 = vmatpush.msra.mxu0 %v481_v18  ;;  %1008 = vmatpush.msra.mxu2 %v34_v20  ;;  %v254_v59 = vld [vmem:[%s3625_s1 + $0x730] sm:$0xff] }
 0x10b   :  { %v477_v23 = vld [vmem:[%s3625_s1 + $0xe28] sm:$0xff]  ;;  %988 = vmatpush.msra.mxu1 %v545_v19  ;;  %1027 = vmatpush.msra.mxu3 %v102_v21  ;;  %v318_v60 = vld [vmem:[%s3625_s1 + $0x930] sm:$0xff] }
 0x10c   :  { %v541_v24 = vld [vmem:[%s3625_s1 + $0x1028] sm:$0xff]  ;;  %969 = vmatpush.msra.mxu0 %v477_v23  ;;  %1009 = vmatpush.msra.mxu2 %v30_v25  ;;  %v386_v61 = vld [vmem:[%s3625_s1 + $0xb50] sm:$0xff] }
 0x10d   :  { %v473_v29 = vld [vmem:[%s3625_s1 + $0xe08] sm:$0xff]  ;;  %989 = vmatpush.msra.mxu1 %v541_v24  ;;  %1028 = vmatpush.msra.mxu3 %v98_v26  ;;  %v186_v27 = vld [vmem:[%s3625_s1 + $0x510] sm:$0xff] }
 0x10e   :  { %v537_v30 = vld [vmem:[%s3625_s1 + $0x1008] sm:$0xff]  ;;  %970 = vmatpush.msra.mxu0 %v473_v29  ;;  %1010 = vmatpush.msra.mxu2 %v26_v31  ;;  %v250_v62 = vld [vmem:[%s3625_s1 + $0x710] sm:$0xff] }
 0x10f   :  { %990 = vmatpush.msra.mxu1 %v537_v30  ;;  %1029 = vmatpush.msra.mxu3 %v94_v32  ;;  %v314_v63 = vld [vmem:[%s3625_s1 + $0x910] sm:$0xff] }
 0x110   :  { %971 = vmatmul.f32.vlgmr.msra.gmra.mxu0 %v2056_v28  ;;  %1075 = vmatpush.msrb.mxu2 %v342_v36  ;;  %v206_v28 = vld [vmem:[%s3625_s1 + $0x5b0] sm:$0xff] }
 0x111   :  { %1055 = vmatpush.msrb.mxu1 %v278_v34  ;;  %1035 = vmatpush.msrb.mxu0 %v214_v35  ;;  %v382_v0 = vld [vmem:[%s3625_s1 + $0xb30] sm:$0xff] }
 0x112   :  { %1030 = vmatpush.msra.mxu3 %v90_v37  ;;  %991 = vmatmul.f32.vlgmr.msra.gmra.mxu1 %v2195_v14  ;;  %v202_v14 = vld [vmem:[%s3625_s1 + $0x590] sm:$0xff] }
 0x113   :  { %1036 = vmatpush.msrb.mxu0 %v210_v38  ;;  %1056 = vmatpush.msrb.mxu1 %v274_v39  ;;  %v182_v1 = vld [vmem:[%s3625_s1 + $0x4f0] sm:$0xff] }
 0x114   :  { %1076 = vmatpush.msrb.mxu2 %v338_v40  ;;  %1095 = vmatpush.msrb.mxu3 %v406_v41  ;;  %v246_v2 = vld [vmem:[%s3625_s1 + $0x6f0] sm:$0xff] }
 0x115   :  { %1037 = vmatpush.msrb.mxu0 %v206_v28  ;;  %1057 = vmatpush.msrb.mxu1 %v270_v42  ;;  %v310_v3 = vld [vmem:[%s3625_s1 + $0x8f0] sm:$0xff] }
 0x116   :  { %1077 = vmatpush.msrb.mxu2 %v334_v43  ;;  %1096 = vmatpush.msrb.mxu3 %v402_v44  ;;  %v378_v4 = vld [vmem:[%s3625_s1 + $0xb10] sm:$0xff]  ;;  %v87_v44 = vld [vmem:[%s3625_s1 + $0x1f8] sm:$0xff] }
 0x117   :  { %1038 = vmatpush.msrb.mxu0 %v202_v14  ;;  %1058 = vmatpush.msrb.mxu1 %v266_v45  ;;  %v178_v5 = vld [vmem:[%s3625_s1 + $0x4d0] sm:$0xff] }
 0x118   :  { %1078 = vmatpush.msrb.mxu2 %v330_v50  ;;  %1097 = vmatpush.msrb.mxu3 %v398_v51  ;;  %v242_v6 = vld [vmem:[%s3625_s1 + $0x6d0] sm:$0xff]  ;;  %v83_v51 = vld [vmem:[%s3625_s1 + $0x1d8] sm:$0xff] }
 0x119   :  { %1039 = vmatpush.msrb.mxu0 %v198_v52  ;;  %1059 = vmatpush.msrb.mxu1 %v262_v53  ;;  %v306_v7 = vld [vmem:[%s3625_s1 + $0x8d0] sm:$0xff] }
 0x11a   :  { %1079 = vmatpush.msrb.mxu2 %v326_v54  ;;  %1098 = vmatpush.msrb.mxu3 %v394_v33  ;;  %v374_v8 = vld [vmem:[%s3625_s1 + $0xaf0] sm:$0xff]  ;;  %v79_v33 = vld [vmem:[%s3625_s1 + $0x1b8] sm:$0xff] }
 0x11b   :  { %1040 = vmatpush.msrb.mxu0 %v194_v55  ;;  %1060 = vmatpush.msrb.mxu1 %v258_v56  ;;  %v174_v9 = vld [vmem:[%s3625_s1 + $0x4b0] sm:$0xff] }
 0x11c   :  { %1080 = vmatpush.msrb.mxu2 %v322_v57  ;;  %1099 = vmatpush.msrb.mxu3 %v390_v58  ;;  %v238_v10 = vld [vmem:[%s3625_s1 + $0x6b0] sm:$0xff]  ;;  %v75_v58 = vld [vmem:[%s3625_s1 + $0x198] sm:$0xff] }
 0x11d   :  { %1041 = vmatpush.msrb.mxu0 %v190_v22  ;;  %1061 = vmatpush.msrb.mxu1 %v254_v59  ;;  %v302_v11 = vld [vmem:[%s3625_s1 + $0x8b0] sm:$0xff]  ;;  %v2845_v22 = vld.sshfl [vmem:[#allocation1 + $0x20] sm:$0xff pattern:$0x73625140] }
 0x11e   :  { %1081 = vmatpush.msrb.mxu2 %v318_v60  ;;  %1100 = vmatpush.msrb.mxu3 %v386_v61  ;;  %v370_v12 = vld [vmem:[%s3625_s1 + $0xad0] sm:$0xff] }
 0x11f   :  { %1042 = vmatpush.msrb.mxu0 %v186_v27  ;;  %1062 = vmatpush.msrb.mxu1 %v250_v62  ;;  %v170_v13 = vld [vmem:[%s3625_s1 + $0x490] sm:$0xff]  ;;  %v71_v27 = vld [vmem:[%s3625_s1 + $0x178] sm:$0xff]  ;;  %v2861_v62 = vld.sshfl [vmem:[#allocation1 + $0x28] sm:$0xff pattern:$0x73625140] }
 0x120   :  { %1082 = vmatpush.msrb.mxu2 %v314_v63  ;;  %1101 = vmatpush.msrb.mxu3 %v382_v0  ;;  %v234_v15 = vld [vmem:[%s3625_s1 + $0x690] sm:$0xff] }
 0x121   :  { %1043 = vmatpush.msrb.mxu0 %v182_v1  ;;  %1063 = vmatpush.msrb.mxu1 %v246_v2  ;;  %v298_v16 = vld [vmem:[%s3625_s1 + $0x890] sm:$0xff]  ;;  %v67_v2 = vld [vmem:[%s3625_s1 + $0x158] sm:$0xff] }
 0x122   :  { %1083 = vmatpush.msrb.mxu2 %v310_v3  ;;  %1102 = vmatpush.msrb.mxu3 %v378_v4  ;;  %v366_v17 = vld [vmem:[%s3625_s1 + $0xab0] sm:$0xff] }
 0x123   :  { %1044 = vmatpush.msrb.mxu0 %v178_v5  ;;  %1064 = vmatpush.msrb.mxu1 %v242_v6  ;;  %v166_v18 = vld [vmem:[%s3625_s1 + $0x470] sm:$0xff]  ;;  %v63_v6 = vld [vmem:[%s3625_s1 + $0x138] sm:$0xff] }
 0x124   :  { %1084 = vmatpush.msrb.mxu2 %v306_v7  ;;  %1103 = vmatpush.msrb.mxu3 %v374_v8  ;;  %v230_v19 = vld [vmem:[%s3625_s1 + $0x670] sm:$0xff] }
 0x125   :  { %1045 = vmatpush.msrb.mxu0 %v174_v9  ;;  %1065 = vmatpush.msrb.mxu1 %v238_v10  ;;  %v294_v20 = vld [vmem:[%s3625_s1 + $0x870] sm:$0xff]  ;;  %v59_v10 = vld [vmem:[%s3625_s1 + $0x118] sm:$0xff] }
 0x126   :  { %1085 = vmatpush.msrb.mxu2 %v302_v11  ;;  %1104 = vmatpush.msrb.mxu3 %v370_v12  ;;  %v362_v21 = vld [vmem:[%s3625_s1 + $0xa90] sm:$0xff] }
 0x127   :  { %1046 = vmatpush.msrb.mxu0 %v170_v13  ;;  %1066 = vmatpush.msrb.mxu1 %v234_v15  ;;  %v162_v23 = vld [vmem:[%s3625_s1 + $0x450] sm:$0xff]  ;;  %v55_v15 = vld [vmem:[%s3625_s1 + $0xf8] sm:$0xff] }
 0x128   :  { %1086 = vmatpush.msrb.mxu2 %v298_v16  ;;  %1105 = vmatpush.msrb.mxu3 %v366_v17  ;;  %v226_v24 = vld [vmem:[%s3625_s1 + $0x650] sm:$0xff] }
 0x129   :  { %1047 = vmatpush.msrb.mxu0 %v166_v18  ;;  %1067 = vmatpush.msrb.mxu1 %v230_v19  ;;  %v290_v25 = vld [vmem:[%s3625_s1 + $0x850] sm:$0xff]  ;;  %v51_v19 = vld [vmem:[%s3625_s1 + $0xd8] sm:$0xff] }
 0x12a   :  { %v358_v26 = vld [vmem:[%s3625_s1 + $0xa70] sm:$0xff]  ;;  %1087 = vmatpush.msrb.mxu2 %v294_v20  ;;  %1106 = vmatpush.msrb.mxu3 %v362_v21 }
 0x12b   :  { %v158_v29 = vld [vmem:[%s3625_s1 + $0x430] sm:$0xff]  ;;  %1048 = vmatpush.msrb.mxu0 %v162_v23  ;;  %1068 = vmatpush.msrb.mxu1 %v226_v24  ;;  %v47_v24 = vld [vmem:[%s3625_s1 + $0xb8] sm:$0xff] }
 0x12c   :  { %v222_v30 = vld [vmem:[%s3625_s1 + $0x630] sm:$0xff]  ;;  %1088 = vmatpush.msrb.mxu2 %v290_v25  ;;  %1107 = vmatpush.msrb.mxu3 %v358_v26 }
 0x12d   :  { %v286_v31 = vld [vmem:[%s3625_s1 + $0x830] sm:$0xff]  ;;  %1049 = vmatpush.msrb.mxu0 %v158_v29  ;;  %1069 = vmatpush.msrb.mxu1 %v222_v30  ;;  %v43_v30 = vld [vmem:[%s3625_s1 + $0x98] sm:$0xff] }
 0x12e   :  { %v354_v32 = vld [vmem:[%s3625_s1 + $0xa50] sm:$0xff]  ;;  %1089 = vmatpush.msrb.mxu2 %v286_v31  ;;  %1031 = vmatmul.f32.vlgmr.msra.gmra.mxu3 %v1921_v47 }
 0x12f   :  { %v154_v34 = vld [vmem:[%s3625_s1 + $0x410] sm:$0xff]  ;;  %1108 = vmatpush.msrb.mxu3 %v354_v32  ;;  %1011 = vmatmul.f32.vlgmr.msra.gmra.mxu2 %v1919_v46 }
 0x130   :  { %v218_v35 = vld [vmem:[%s3625_s1 + $0x610] sm:$0xff]  ;;  %1050 = vmatpush.msrb.mxu0 %v154_v34 }
 0x131   :  { %v282_v36 = vld [vmem:[%s3625_s1 + $0x810] sm:$0xff]  ;;  %1070 = vmatpush.msrb.mxu1 %v218_v35  ;;  %1051 = vmatmul.f32.vlgmr.msrb.gmra.mxu0 %v1923_v48  ;;  %v39_v35 = vld [vmem:[%s3625_s1 + $0x78] sm:$0xff] }
 0x132   :  { %v350_v37 = vld [vmem:[%s3625_s1 + $0xa30] sm:$0xff]  ;;  %1090 = vmatpush.msrb.mxu2 %v282_v36  ;;  %1071 = vmatmul.f32.vlgmr.msrb.gmra.mxu1 %v1925_v49 }
 0x133   :  { %v470_v38 = vld [vmem:[%s3625_s1 + $0xdf0] sm:$0xff]  ;;  %1109 = vmatpush.msrb.mxu3 %v350_v37 }
 0x134   :  { %v534_v39 = vld [vmem:[%s3625_s1 + $0xff0] sm:$0xff]  ;;  %1115 = vmatpush.msra.mxu0 %v470_v38 }
 0x135   :  { %v598_v40 = vld [vmem:[%s3625_s1 + $0x11f0] sm:$0xff]  ;;  %1135 = vmatpush.msra.mxu1 %v534_v39  ;;  %v35_v39 = vld [vmem:[%s3625_s1 + $0x58] sm:$0xff] }
 0x136   :  { %v346_v41 = vld [vmem:[%s3625_s1 + $0xa10] sm:$0xff]  ;;  %1155 = vmatpush.msra.mxu2 %v598_v40 }
 0x137   :  { %v466_v28 = vld [vmem:[%s3625_s1 + $0xdd0] sm:$0xff]  ;;  %1110 = vmatpush.msrb.mxu3 %v346_v41  ;;  %1091 = vmatmul.f32.vlgmr.msrb.gmra.mxu2 %v2845_v22 }
 0x138   :  { %v530_v42 = vld [vmem:[%s3625_s1 + $0xfd0] sm:$0xff]  ;;  %1116 = vmatpush.msra.mxu0 %v466_v28  ;;  %1111 = vmatmul.f32.vlgmr.msrb.gmra.mxu3 %v2861_v62 }
 0x139   :  { %v594_v43 = vld [vmem:[%s3625_s1 + $0x11d0] sm:$0xff]  ;;  %1136 = vmatpush.msra.mxu1 %v530_v42  ;;  %1175 = vmatpush.msra.mxu3 %v87_v44  ;;  %v31_v42 = vld [vmem:[%s3625_s1 + $0x38] sm:$0xff] }
 0x13a   :  { %v462_v14 = vld [vmem:[%s3625_s1 + $0xdb0] sm:$0xff]  ;;  %1156 = vmatpush.msra.mxu2 %v594_v43  ;;  %v151_v43 = vld [vmem:[%s3625_s1 + $0x3f8] sm:$0xff] }
 0x13b   :  { %v526_v45 = vld [vmem:[%s3625_s1 + $0xfb0] sm:$0xff]  ;;  %1117 = vmatpush.msra.mxu0 %v462_v14  ;;  %1176 = vmatpush.msra.mxu3 %v83_v51  ;;  %v215_v44 = vld [vmem:[%s3625_s1 + $0x5f8] sm:$0xff]  ;;  %v3000_v51 = vld.sshfl [vmem:[#allocation1] sm:$0xff pattern:$0x73625140] }
 0x13c   :  { %v590_v50 = vld [vmem:[%s3625_s1 + $0x11b0] sm:$0xff]  ;;  %1137 = vmatpush.msra.mxu1 %v526_v45  ;;  %v279_v14 = vld [vmem:[%s3625_s1 + $0x7f8] sm:$0xff] }
 0x13d   :  { %v458_v52 = vld [vmem:[%s3625_s1 + $0xd90] sm:$0xff]  ;;  %1157 = vmatpush.msra.mxu2 %v590_v50  ;;  %1177 = vmatpush.msra.mxu3 %v79_v33  ;;  %v27_v45 = vld [vmem:[%s3625_s1 + $0x18] sm:$0xff] }
 0x13e   :  { %v522_v53 = vld [vmem:[%s3625_s1 + $0xf90] sm:$0xff]  ;;  %1118 = vmatpush.msra.mxu0 %v458_v52  ;;  %v147_v52 = vld [vmem:[%s3625_s1 + $0x3d8] sm:$0xff] }
 0x13f   :  { %v586_v54 = vld [vmem:[%s3625_s1 + $0x1190] sm:$0xff]  ;;  %1138 = vmatpush.msra.mxu1 %v522_v53  ;;  %1178 = vmatpush.msra.mxu3 %v75_v58  ;;  %v211_v53 = vld [vmem:[%s3625_s1 + $0x5d8] sm:$0xff] }
 0x140   :  { %v454_v55 = vld [vmem:[%s3625_s1 + $0xd70] sm:$0xff]  ;;  %1158 = vmatpush.msra.mxu2 %v586_v54  ;;  %v275_v54 = vld [vmem:[%s3625_s1 + $0x7d8] sm:$0xff] }
 0x141   :  { %v518_v56 = vld [vmem:[%s3625_s1 + $0xf70] sm:$0xff]  ;;  %1119 = vmatpush.msra.mxu0 %v454_v55  ;;  %1179 = vmatpush.msra.mxu3 %v71_v27  ;;  %v343_v33 = vld [vmem:[%s3625_s1 + $0x9f8] sm:$0xff] }
 0x142   :  { %v582_v57 = vld [vmem:[%s3625_s1 + $0x1170] sm:$0xff]  ;;  %1139 = vmatpush.msra.mxu1 %v518_v56  ;;  %v143_v55 = vld [vmem:[%s3625_s1 + $0x3b8] sm:$0xff] }
 0x143   :  { %v450_v59 = vld [vmem:[%s3625_s1 + $0xd50] sm:$0xff]  ;;  %1159 = vmatpush.msra.mxu2 %v582_v57  ;;  %1180 = vmatpush.msra.mxu3 %v67_v2  ;;  %v3018_v56 = vld.sshfl [vmem:[#allocation1 + $0x38] sm:$0xff pattern:$0x73625140] }
 0x144   :  { %v514_v60 = vld [vmem:[%s3625_s1 + $0xf50] sm:$0xff]  ;;  %1120 = vmatpush.msra.mxu0 %v450_v59  ;;  %v207_v57 = vld [vmem:[%s3625_s1 + $0x5b8] sm:$0xff] }
 0x145   :  { %v578_v61 = vld [vmem:[%s3625_s1 + $0x1150] sm:$0xff]  ;;  %1140 = vmatpush.msra.mxu1 %v514_v60  ;;  %1181 = vmatpush.msra.mxu3 %v63_v6  ;;  %v271_v58 = vld [vmem:[%s3625_s1 + $0x7b8] sm:$0xff] }
 0x146   :  { %v446_v63 = vld [vmem:[%s3625_s1 + $0xd30] sm:$0xff]  ;;  %1160 = vmatpush.msra.mxu2 %v578_v61  ;;  %v339_v59 = vld [vmem:[%s3625_s1 + $0x9d8] sm:$0xff] }
 0x147   :  { %v510_v0 = vld [vmem:[%s3625_s1 + $0xf30] sm:$0xff]  ;;  %1121 = vmatpush.msra.mxu0 %v446_v63  ;;  %1182 = vmatpush.msra.mxu3 %v59_v10  ;;  %v139_v60 = vld [vmem:[%s3625_s1 + $0x398] sm:$0xff] }
 0x148   :  { %v574_v1 = vld [vmem:[%s3625_s1 + $0x1130] sm:$0xff]  ;;  %1141 = vmatpush.msra.mxu1 %v510_v0  ;;  %v203_v61 = vld [vmem:[%s3625_s1 + $0x598] sm:$0xff] }
 0x149   :  { %v442_v3 = vld [vmem:[%s3625_s1 + $0xd10] sm:$0xff]  ;;  %1161 = vmatpush.msra.mxu2 %v574_v1  ;;  %1183 = vmatpush.msra.mxu3 %v55_v15  ;;  %v267_v27 = vld [vmem:[%s3625_s1 + $0x798] sm:$0xff] }
 0x14a   :  { %v506_v4 = vld [vmem:[%s3625_s1 + $0xf10] sm:$0xff]  ;;  %1122 = vmatpush.msra.mxu0 %v442_v3  ;;  %v335_v63 = vld [vmem:[%s3625_s1 + $0x9b8] sm:$0xff] }
 0x14b   :  { %v570_v5 = vld [vmem:[%s3625_s1 + $0x1110] sm:$0xff]  ;;  %1142 = vmatpush.msra.mxu1 %v506_v4  ;;  %1184 = vmatpush.msra.mxu3 %v51_v19  ;;  %v135_v0 = vld [vmem:[%s3625_s1 + $0x378] sm:$0xff] }
 0x14c   :  { %v438_v7 = vld [vmem:[%s3625_s1 + $0xcf0] sm:$0xff]  ;;  %1162 = vmatpush.msra.mxu2 %v570_v5  ;;  %v199_v1 = vld [vmem:[%s3625_s1 + $0x578] sm:$0xff] }
 0x14d   :  { %v502_v8 = vld [vmem:[%s3625_s1 + $0xef0] sm:$0xff]  ;;  %1123 = vmatpush.msra.mxu0 %v438_v7  ;;  %1185 = vmatpush.msra.mxu3 %v47_v24  ;;  %v263_v2 = vld [vmem:[%s3625_s1 + $0x778] sm:$0xff] }
 0x14e   :  { %v566_v9 = vld [vmem:[%s3625_s1 + $0x10f0] sm:$0xff]  ;;  %1143 = vmatpush.msra.mxu1 %v502_v8  ;;  %v331_v3 = vld [vmem:[%s3625_s1 + $0x998] sm:$0xff] }
 0x14f   :  { %v434_v11 = vld [vmem:[%s3625_s1 + $0xcd0] sm:$0xff]  ;;  %1163 = vmatpush.msra.mxu2 %v566_v9  ;;  %1186 = vmatpush.msra.mxu3 %v43_v30  ;;  %v131_v4 = vld [vmem:[%s3625_s1 + $0x358] sm:$0xff] }
 0x150   :  { %v498_v12 = vld [vmem:[%s3625_s1 + $0xed0] sm:$0xff]  ;;  %1124 = vmatpush.msra.mxu0 %v434_v11  ;;  %v195_v5 = vld [vmem:[%s3625_s1 + $0x558] sm:$0xff] }
 0x151   :  { %v562_v13 = vld [vmem:[%s3625_s1 + $0x10d0] sm:$0xff]  ;;  %1144 = vmatpush.msra.mxu1 %v498_v12  ;;  %1187 = vmatpush.msra.mxu3 %v39_v35  ;;  %v259_v6 = vld [vmem:[%s3625_s1 + $0x758] sm:$0xff] }
 0x152   :  { %v430_v16 = vld [vmem:[%s3625_s1 + $0xcb0] sm:$0xff]  ;;  %1164 = vmatpush.msra.mxu2 %v562_v13  ;;  %v327_v7 = vld [vmem:[%s3625_s1 + $0x978] sm:$0xff] }
 0x153   :  { %v494_v17 = vld [vmem:[%s3625_s1 + $0xeb0] sm:$0xff]  ;;  %1125 = vmatpush.msra.mxu0 %v430_v16  ;;  %1188 = vmatpush.msra.mxu3 %v35_v39  ;;  %v127_v8 = vld [vmem:[%s3625_s1 + $0x338] sm:$0xff] }
 0x154   :  { %v558_v18 = vld [vmem:[%s3625_s1 + $0x10b0] sm:$0xff]  ;;  %1145 = vmatpush.msra.mxu1 %v494_v17  ;;  %v191_v9 = vld [vmem:[%s3625_s1 + $0x538] sm:$0xff] }
 0x155   :  { %v426_v20 = vld [vmem:[%s3625_s1 + $0xc90] sm:$0xff]  ;;  %1165 = vmatpush.msra.mxu2 %v558_v18  ;;  %1189 = vmatpush.msra.mxu3 %v31_v42  ;;  %v255_v10 = vld [vmem:[%s3625_s1 + $0x738] sm:$0xff] }
 0x156   :  { %v490_v21 = vld [vmem:[%s3625_s1 + $0xe90] sm:$0xff]  ;;  %1126 = vmatpush.msra.mxu0 %v426_v20  ;;  %v323_v11 = vld [vmem:[%s3625_s1 + $0x958] sm:$0xff] }
 0x157   :  { %v554_v23 = vld [vmem:[%s3625_s1 + $0x1090] sm:$0xff]  ;;  %1146 = vmatpush.msra.mxu1 %v490_v21  ;;  %1190 = vmatpush.msra.mxu3 %v27_v45  ;;  %v123_v12 = vld [vmem:[%s3625_s1 + $0x318] sm:$0xff] }
 0x158   :  { %v422_v25 = vld [vmem:[%s3625_s1 + $0xc70] sm:$0xff]  ;;  %1166 = vmatpush.msra.mxu2 %v554_v23  ;;  %v187_v13 = vld [vmem:[%s3625_s1 + $0x518] sm:$0xff]  ;;  %1191 = vmatmul.f32.vlgmr.msra.gmra.mxu3 %v1919_v46 }
 0x159   :  { %v486_v26 = vld [vmem:[%s3625_s1 + $0xe70] sm:$0xff]  ;;  %1127 = vmatpush.msra.mxu0 %v422_v25  ;;  %1255 = vmatpush.msrb.mxu3 %v343_v33  ;;  %v251_v15 = vld [vmem:[%s3625_s1 + $0x718] sm:$0xff] }
 0x15a   :  { %v550_v29 = vld [vmem:[%s3625_s1 + $0x1070] sm:$0xff]  ;;  %1147 = vmatpush.msra.mxu1 %v486_v26  ;;  %v319_v16 = vld [vmem:[%s3625_s1 + $0x938] sm:$0xff] }
 0x15b   :  { %v418_v31 = vld [vmem:[%s3625_s1 + $0xc50] sm:$0xff]  ;;  %1167 = vmatpush.msra.mxu2 %v550_v29  ;;  %1256 = vmatpush.msrb.mxu3 %v339_v59  ;;  %v119_v17 = vld [vmem:[%s3625_s1 + $0x2f8] sm:$0xff] }
 0x15c   :  { %v482_v32 = vld [vmem:[%s3625_s1 + $0xe50] sm:$0xff]  ;;  %1128 = vmatpush.msra.mxu0 %v418_v31  ;;  %v183_v18 = vld [vmem:[%s3625_s1 + $0x4f8] sm:$0xff] }
 0x15d   :  { %v546_v34 = vld [vmem:[%s3625_s1 + $0x1050] sm:$0xff]  ;;  %1148 = vmatpush.msra.mxu1 %v482_v32  ;;  %1257 = vmatpush.msrb.mxu3 %v335_v63  ;;  %v247_v19 = vld [vmem:[%s3625_s1 + $0x6f8] sm:$0xff] }
 0x15e   :  { %v414_v36 = vld [vmem:[%s3625_s1 + $0xc30] sm:$0xff]  ;;  %1168 = vmatpush.msra.mxu2 %v546_v34  ;;  %v315_v20 = vld [vmem:[%s3625_s1 + $0x918] sm:$0xff] }
 0x15f   :  { %v478_v37 = vld [vmem:[%s3625_s1 + $0xe30] sm:$0xff]  ;;  %1129 = vmatpush.msra.mxu0 %v414_v36  ;;  %1258 = vmatpush.msrb.mxu3 %v331_v3  ;;  %v115_v21 = vld [vmem:[%s3625_s1 + $0x2d8] sm:$0xff] }
 0x160   :  { %v542_v38 = vld [vmem:[%s3625_s1 + $0x1030] sm:$0xff]  ;;  %1149 = vmatpush.msra.mxu1 %v478_v37  ;;  %v179_v23 = vld [vmem:[%s3625_s1 + $0x4d8] sm:$0xff] }
 0x161   :  { %v410_v40 = vld [vmem:[%s3625_s1 + $0xc10] sm:$0xff]  ;;  %1169 = vmatpush.msra.mxu2 %v542_v38  ;;  %1259 = vmatpush.msrb.mxu3 %v327_v7  ;;  %v243_v24 = vld [vmem:[%s3625_s1 + $0x6d8] sm:$0xff] }
 0x162   :  { %v474_v41 = vld [vmem:[%s3625_s1 + $0xe10] sm:$0xff]  ;;  %1130 = vmatpush.msra.mxu0 %v410_v40  ;;  %v311_v25 = vld [vmem:[%s3625_s1 + $0x8f8] sm:$0xff] }
 0x163   :  { %v538_v28 = vld [vmem:[%s3625_s1 + $0x1010] sm:$0xff]  ;;  %1150 = vmatpush.msra.mxu1 %v474_v41  ;;  %1260 = vmatpush.msrb.mxu3 %v323_v11  ;;  %v111_v26 = vld [vmem:[%s3625_s1 + $0x2b8] sm:$0xff] }
 0x164   :  { %1170 = vmatpush.msra.mxu2 %v538_v28  ;;  %v2997_v50 = vld.sshfl [vmem:[#allocation1 + $0x30] sm:$0xff pattern:$0x73625140]  ;;  %1195 = vmatpush.msrb.mxu0 %v151_v43  ;;  %v175_v29 = vld [vmem:[%s3625_s1 + $0x4b8] sm:$0xff] }
 0x165   :  { %1131 = vmatmul.f32.vlgmr.msra.gmra.mxu0 %v2997_v50  ;;  %1171 = vmatmul.f32.vlgmr.msra.gmra.mxu2 %v3000_v51  ;;  %v239_v30 = vld [vmem:[%s3625_s1 + $0x6b8] sm:$0xff] }
 0x166   :  { %1215 = vmatpush.msrb.mxu1 %v215_v44  ;;  %1235 = vmatpush.msrb.mxu2 %v279_v14  ;;  %v307_v31 = vld [vmem:[%s3625_s1 + $0x8d8] sm:$0xff] }
 0x167   :  { %1151 = vmatmul.f32.vlgmr.msra.gmra.mxu1 %v3018_v56  ;;  %1196 = vmatpush.msrb.mxu0 %v147_v52  ;;  %v107_v32 = vld [vmem:[%s3625_s1 + $0x298] sm:$0xff] }
 0x168   :  { %1216 = vmatpush.msrb.mxu1 %v211_v53  ;;  %1236 = vmatpush.msrb.mxu2 %v275_v54  ;;  %v171_v34 = vld [vmem:[%s3625_s1 + $0x498] sm:$0xff] }
 0x169   :  { %1197 = vmatpush.msrb.mxu0 %v143_v55  ;;  %1261 = vmatpush.msrb.mxu3 %v319_v16  ;;  %v235_v35 = vld [vmem:[%s3625_s1 + $0x698] sm:$0xff]  ;;  %v3257_v16 = vpop.f32.mrf.mxu1 }
 0x16a   :  { %1217 = vmatpush.msrb.mxu1 %v207_v57  ;;  %1237 = vmatpush.msrb.mxu2 %v271_v58  ;;  %v303_v36 = vld [vmem:[%s3625_s1 + $0x8b8] sm:$0xff] }
 0x16b   :  { %1198 = vmatpush.msrb.mxu0 %v139_v60  ;;  %1262 = vmatpush.msrb.mxu3 %v315_v20  ;;  %v103_v37 = vld [vmem:[%s3625_s1 + $0x278] sm:$0xff] }
 0x16c   :  { %1218 = vmatpush.msrb.mxu1 %v203_v61  ;;  %1238 = vmatpush.msrb.mxu2 %v267_v27  ;;  %v167_v38 = vld [vmem:[%s3625_s1 + $0x478] sm:$0xff] }
 0x16d   :  { %1199 = vmatpush.msrb.mxu0 %v135_v0  ;;  %1263 = vmatpush.msrb.mxu3 %v311_v25  ;;  %v231_v39 = vld [vmem:[%s3625_s1 + $0x678] sm:$0xff] }
 0x16e   :  { %1219 = vmatpush.msrb.mxu1 %v199_v1  ;;  %1239 = vmatpush.msrb.mxu2 %v263_v2  ;;  %v299_v40 = vld [vmem:[%s3625_s1 + $0x898] sm:$0xff] }
 0x16f   :  { %1200 = vmatpush.msrb.mxu0 %v131_v4  ;;  %1264 = vmatpush.msrb.mxu3 %v307_v31  ;;  %v99_v41 = vld [vmem:[%s3625_s1 + $0x258] sm:$0xff] }
 0x170   :  { %1220 = vmatpush.msrb.mxu1 %v195_v5  ;;  %1240 = vmatpush.msrb.mxu2 %v259_v6  ;;  %v163_v28 = vld [vmem:[%s3625_s1 + $0x458] sm:$0xff] }
 0x171   :  { %1201 = vmatpush.msrb.mxu0 %v127_v8  ;;  %1265 = vmatpush.msrb.mxu3 %v303_v36  ;;  %v227_v42 = vld [vmem:[%s3625_s1 + $0x658] sm:$0xff] }
 0x172   :  { %1221 = vmatpush.msrb.mxu1 %v191_v9  ;;  %1241 = vmatpush.msrb.mxu2 %v255_v10  ;;  %v295_v43 = vld [vmem:[%s3625_s1 + $0x878] sm:$0xff] }
 0x173   :  { %1202 = vmatpush.msrb.mxu0 %v123_v12  ;;  %v95_v44 = vld [vmem:[%s3625_s1 + $0x238] sm:$0xff]  ;;  %1266 = vmatpush.msrb.mxu3 %v299_v40 }
 0x174   :  { %1222 = vmatpush.msrb.mxu1 %v187_v13  ;;  %1242 = vmatpush.msrb.mxu2 %v251_v15  ;;  %v159_v14 = vld [vmem:[%s3625_s1 + $0x438] sm:$0xff] }
 0x175   :  { %1203 = vmatpush.msrb.mxu0 %v119_v17  ;;  %v223_v45 = vld [vmem:[%s3625_s1 + $0x638] sm:$0xff]  ;;  %1267 = vmatpush.msrb.mxu3 %v295_v43 }
 0x176   :  { %1223 = vmatpush.msrb.mxu1 %v183_v18  ;;  %1243 = vmatpush.msrb.mxu2 %v247_v19  ;;  %v291_v52 = vld [vmem:[%s3625_s1 + $0x858] sm:$0xff] }
 0x177   :  { %1204 = vmatpush.msrb.mxu0 %v115_v21  ;;  %v91_v53 = vld [vmem:[%s3625_s1 + $0x218] sm:$0xff]  ;;  %1268 = vmatpush.msrb.mxu3 %v291_v52  ;;  %v3283_v21 = vpop.f32.mrf.mxu0 }
 0x178   :  { %1224 = vmatpush.msrb.mxu1 %v179_v23  ;;  %1244 = vmatpush.msrb.mxu2 %v243_v24  ;;  %v155_v54 = vld [vmem:[%s3625_s1 + $0x418] sm:$0xff]  ;;  %v3285_v23 = vpop.f32.mrf.mxu2 }
 0x179   :  { %1205 = vmatpush.msrb.mxu0 %v111_v26  ;;  %v219_v33 = vld [vmem:[%s3625_s1 + $0x618] sm:$0xff] }
 0x17a   :  { %1225 = vmatpush.msrb.mxu1 %v175_v29  ;;  %1245 = vmatpush.msrb.mxu2 %v239_v30  ;;  %v287_v55 = vld [vmem:[%s3625_s1 + $0x838] sm:$0xff] }
 0x17b   :  { %1206 = vmatpush.msrb.mxu0 %v107_v32  ;;  %v407_v57 = vld [vmem:[%s3625_s1 + $0xbf8] sm:$0xff]  ;;  %1269 = vmatpush.msrb.mxu3 %v287_v55 }
 0x17c   :  { %1226 = vmatpush.msrb.mxu1 %v171_v34  ;;  %1246 = vmatpush.msrb.mxu2 %v235_v35  ;;  %v471_v58 = vld [vmem:[%s3625_s1 + $0xdf8] sm:$0xff]  ;;  %v3311_v34 = vpop.f32.mrf.mxu3 }
 0x17d   :  { %1207 = vmatpush.msrb.mxu0 %v103_v37  ;;  %v535_v59 = vld [vmem:[%s3625_s1 + $0xff8] sm:$0xff] }
 0x17e   :  { %1227 = vmatpush.msrb.mxu1 %v167_v38  ;;  %1247 = vmatpush.msrb.mxu2 %v231_v39  ;;  %v283_v60 = vld [vmem:[%s3625_s1 + $0x818] sm:$0xff]  ;;  %v3325_v39 = vpop.f32.mrf.mxu1 }
 0x17f   :  { %1208 = vmatpush.msrb.mxu0 %v99_v41  ;;  %v403_v61 = vld [vmem:[%s3625_s1 + $0xbd8] sm:$0xff]  ;;  %1270 = vmatpush.msrb.mxu3 %v283_v60 }
 0x180   :  { %1228 = vmatpush.msrb.mxu1 %v163_v28  ;;  %1248 = vmatpush.msrb.mxu2 %v227_v42  ;;  %v467_v27 = vld [vmem:[%s3625_s1 + $0xdd8] sm:$0xff] }
 0x181   :  { %1209 = vmatpush.msrb.mxu0 %v95_v44  ;;  %v531_v63 = vld [vmem:[%s3625_s1 + $0xfd8] sm:$0xff]  ;;  %1271 = vmatmul.f32.vlgmr.msrb.gmra.mxu3 %v2845_v22 }
 0x182   :  { %1229 = vmatpush.msrb.mxu1 %v159_v14  ;;  %1249 = vmatpush.msrb.mxu2 %v223_v45  ;;  %v599_v0 = vld [vmem:[%s3625_s1 + $0x11f8] sm:$0xff]  ;;  %v3348_v14 = vld [vmem:[%s3626_s2] sm:$0xf] }
 0x183   :  { %1210 = vmatpush.msrb.mxu0 %v91_v53  ;;  %v399_v1 = vld [vmem:[%s3625_s1 + $0xbb8] sm:$0xff]  ;;  %1335 = vmatpush.msra.mxu3 %v599_v0  ;;  %v3356_v53 = vpop.f32.mrf.mxu0 }
 0x184   :  { %1230 = vmatpush.msrb.mxu1 %v155_v54  ;;  %1250 = vmatpush.msrb.mxu2 %v219_v33  ;;  %v463_v2 = vld [vmem:[%s3625_s1 + $0xdb8] sm:$0xff]  ;;  %v3358_v54 = vpop.f32.mrf.mxu2 }
 0x185   :  { %1275 = vmatpush.msra.mxu0 %v407_v57  ;;  %v527_v3 = vld [vmem:[%s3625_s1 + $0xfb8] sm:$0xff]  ;;  %1251 = vmatmul.f32.vlgmr.msrb.gmra.mxu2 %v1925_v49 }
 0x186   :  { %1295 = vmatpush.msra.mxu1 %v471_v58  ;;  %1315 = vmatpush.msra.mxu2 %v535_v59  ;;  %v595_v4 = vld [vmem:[%s3625_s1 + $0x11d8] sm:$0xff]  ;;  %v602_v59 = vperm.slane %v3348_v14, 0 }
 0x187   :  { %1276 = vmatpush.msra.mxu0 %v403_v61  ;;  %v395_v5 = vld [vmem:[%s3625_s1 + $0xb98] sm:$0xff]  ;;  %1336 = vmatpush.msra.mxu3 %v595_v4 }
 0x188   :  { %1296 = vmatpush.msra.mxu1 %v467_v27  ;;  %1316 = vmatpush.msra.mxu2 %v531_v63  ;;  %v459_v6 = vld [vmem:[%s3625_s1 + $0xd98] sm:$0xff]  ;;  %v603_v27 = vperm.slane %v3348_v14, 1 }
 0x189   :  { %1277 = vmatpush.msra.mxu0 %v399_v1  ;;  %v523_v46 = vld [vmem:[%s3625_s1 + $0xf98] sm:$0xff]  ;;  %1231 = vmatmul.f32.vlgmr.msrb.gmra.mxu1 %v1923_v48  ;;  %v3386_v1 = vpop.f32.mrf.mxu3 }
 0x18a   :  { %1297 = vmatpush.msra.mxu1 %v463_v2  ;;  %v591_v7 = vld [vmem:[%s3625_s1 + $0x11b8] sm:$0xff]  ;;  %1317 = vmatpush.msra.mxu2 %v527_v3  ;;  %v832_v2 = vpop.f32.mrf.mxu1 }
 0x18b   :  { %v391_v8 = vld [vmem:[%s3625_s1 + $0xb78] sm:$0xff]  ;;  %1278 = vmatpush.msra.mxu0 %v395_v5  ;;  %1337 = vmatpush.msra.mxu3 %v591_v7 }
 0x18c   :  { %1298 = vmatpush.msra.mxu1 %v459_v6  ;;  %v455_v9 = vld [vmem:[%s3625_s1 + $0xd78] sm:$0xff]  ;;  %1318 = vmatpush.msra.mxu2 %v523_v46  ;;  %v653_v46 = vadd.f32 %v3283_v21, %v602_v59  ;;  %v1387_v21 = vld [vmem:[%s3627_s3 + $0xe0] sm:$0xff] }
 0x18d   :  { %v519_v10 = vld [vmem:[%s3625_s1 + $0xf78] sm:$0xff]  ;;  %1279 = vmatpush.msra.mxu0 %v391_v8 }
 0x18e   :  { %v587_v11 = vld [vmem:[%s3625_s1 + $0x1198] sm:$0xff]  ;;  %1299 = vmatpush.msra.mxu1 %v455_v9  ;;  %1319 = vmatpush.msra.mxu2 %v519_v10  ;;  %v833_v9 = vadd.f32 %v832_v2, %v603_v27  ;;  %v3407_v10 = vpop.f32.mrf.mxu0  ;;  %v1397_v27 = vld [vmem:[%s3627_s3 + $0x130] sm:$0xff]  ;;  %v1363_v2 = vld [vmem:[%s3627_s3 + $0x20] sm:$0xff] }
 0x18f   :  { %v387_v12 = vld [vmem:[%s3625_s1 + $0xb58] sm:$0xff]  ;;  %1338 = vmatpush.msra.mxu3 %v587_v11  ;;  %1211 = vmatmul.f32.vlgmr.msrb.gmra.mxu0 %v1921_v47  ;;  %v852_v11 = vpop.f32.mrf.mxu2 }
 0x190   :  { %v451_v13 = vld [vmem:[%s3625_s1 + $0xd58] sm:$0xff]  ;;  %1280 = vmatpush.msra.mxu0 %v387_v12 }
 0x191   :  { %v515_v15 = vld [vmem:[%s3625_s1 + $0xf58] sm:$0xff]  ;;  %1300 = vmatpush.msra.mxu1 %v451_v13 }
 0x192   :  { %v583_v49 = vld [vmem:[%s3625_s1 + $0x1178] sm:$0xff]  ;;  %1320 = vmatpush.msra.mxu2 %v515_v15 }
 0x193   :  { %v383_v17 = vld [vmem:[%s3625_s1 + $0xb38] sm:$0xff]  ;;  %1339 = vmatpush.msra.mxu3 %v583_v49  ;;  %v673_v49 = vadd.f32 %v3257_v16, %v653_v46  ;;  %v1388_v16 = vld [vmem:[%s3627_s3 + $0xe8] sm:$0xff] }
 0x194   :  { %v447_v18 = vld [vmem:[%s3625_s1 + $0xd38] sm:$0xff]  ;;  %1281 = vmatpush.msra.mxu0 %v383_v17  ;;  %v1373_v17 = vld [vmem:[%s3627_s3 + $0x70] sm:$0xff] }
 0x195   :  { %v511_v47 = vld [vmem:[%s3625_s1 + $0xf38] sm:$0xff]  ;;  %1301 = vmatpush.msra.mxu1 %v447_v18  ;;  %v853_v18 = vadd.f32 %v852_v11, %v833_v9  ;;  %v1377_v9 = vld [vmem:[%s3627_s3 + $0x90] sm:$0xff] }
 0x196   :  { %v579_v19 = vld [vmem:[%s3625_s1 + $0x1158] sm:$0xff]  ;;  %1321 = vmatpush.msra.mxu2 %v511_v47  ;;  %v1389_v47 = vld [vmem:[%s3627_s3 + $0xf0] sm:$0xff] }
 0x197   :  { %v379_v22 = vld [vmem:[%s3625_s1 + $0xb18] sm:$0xff]  ;;  %1340 = vmatpush.msra.mxu3 %v579_v19  ;;  %v872_v19 = vpop.f32.mrf.mxu3 }
 0x198   :  { %v443_v20 = vld [vmem:[%s3625_s1 + $0xd18] sm:$0xff]  ;;  %1282 = vmatpush.msra.mxu0 %v379_v22  ;;  %v693_v22 = vadd.f32 %v3285_v23, %v673_v49  ;;  %v1375_v49 = vld [vmem:[%s3627_s3 + $0x80] sm:$0xff] }
 0x199   :  { %v507_v24 = vld [vmem:[%s3625_s1 + $0xf18] sm:$0xff]  ;;  %1302 = vmatpush.msra.mxu1 %v443_v20  ;;  %v873_v20 = vadd.f32 %v872_v19, %v853_v18 }
 0x19a   :  { %v575_v48 = vld [vmem:[%s3625_s1 + $0x1138] sm:$0xff]  ;;  %1322 = vmatpush.msra.mxu2 %v507_v24  ;;  %v892_v24 = vpop.f32.mrf.mxu0 }
 0x19b   :  { %v375_v25 = vld [vmem:[%s3625_s1 + $0xaf8] sm:$0xff]  ;;  %1341 = vmatpush.msra.mxu3 %v575_v48 }
 0x19c   :  { %v439_v26 = vld [vmem:[%s3625_s1 + $0xcf8] sm:$0xff]  ;;  %1283 = vmatpush.msra.mxu0 %v375_v25  ;;  %v1404_v25 = vld [vmem:[%s3627_s3 + $0x168] sm:$0xff] }
 0x19d   :  { %v503_v29 = vld [vmem:[%s3625_s1 + $0xef8] sm:$0xff]  ;;  %1303 = vmatpush.msra.mxu1 %v439_v26  ;;  %v713_v26 = vadd.f32 %v3311_v34, %v693_v22  ;;  %v1392_v22 = vld [vmem:[%s3627_s3 + $0x108] sm:$0xff] }
 0x19e   :  { %v571_v30 = vld [vmem:[%s3625_s1 + $0x1118] sm:$0xff]  ;;  %1323 = vmatpush.msra.mxu2 %v503_v29  ;;  %v1369_v29 = vld [vmem:[%s3627_s3 + $0x50] sm:$0xff] }
 0x19f   :  { %v371_v31 = vld [vmem:[%s3625_s1 + $0xad8] sm:$0xff]  ;;  %1342 = vmatpush.msra.mxu3 %v571_v30  ;;  %v893_v30 = vadd.f32 %v892_v24, %v873_v20  ;;  %v1391_v20 = vld [vmem:[%s3627_s3 + $0x100] sm:$0xff] }
 0x1a0   :  { %v435_v32 = vld [vmem:[%s3625_s1 + $0xcd8] sm:$0xff]  ;;  %1284 = vmatpush.msra.mxu0 %v371_v31  ;;  %v1385_v31 = vld [vmem:[%s3627_s3 + $0xd0] sm:$0xff] }
 0x1a1   :  { %v499_v35 = vld [vmem:[%s3625_s1 + $0xed8] sm:$0xff]  ;;  %1304 = vmatpush.msra.mxu1 %v435_v32  ;;  %v1403_v32 = vld [vmem:[%s3627_s3 + $0x160] sm:$0xff] }
 0x1a2   :  { %v567_v36 = vld [vmem:[%s3625_s1 + $0x10f8] sm:$0xff]  ;;  %1324 = vmatpush.msra.mxu2 %v499_v35  ;;  %v912_v35 = vpop.f32.mrf.mxu1 }
 0x1a3   :  { %v367_v37 = vld [vmem:[%s3625_s1 + $0xab8] sm:$0xff]  ;;  %1343 = vmatpush.msra.mxu3 %v567_v36  ;;  %v1368_v36 = vld [vmem:[%s3627_s3 + $0x48] sm:$0xff] }
 0x1a4   :  { %v431_v38 = vld [vmem:[%s3625_s1 + $0xcb8] sm:$0xff]  ;;  %1285 = vmatpush.msra.mxu0 %v367_v37  ;;  %v1384_v37 = vld [vmem:[%s3627_s3 + $0xc8] sm:$0xff] }
 0x1a5   :  { %v495_v40 = vld [vmem:[%s3625_s1 + $0xeb8] sm:$0xff]  ;;  %1305 = vmatpush.msra.mxu1 %v431_v38  ;;  %v1401_v38 = vld [vmem:[%s3627_s3 + $0x150] sm:$0xff] }
 0x1a6   :  { %v563_v41 = vld [vmem:[%s3625_s1 + $0x10d8] sm:$0xff]  ;;  %1325 = vmatpush.msra.mxu2 %v495_v40  ;;  %v733_v40 = vadd.f32 %v3356_v53, %v713_v26  ;;  %v1399_v53 = vld [vmem:[%s3627_s3 + $0x140] sm:$0xff] }
 0x1a7   :  { %v363_v28 = vld [vmem:[%s3625_s1 + $0xa98] sm:$0xff]  ;;  %1344 = vmatpush.msra.mxu3 %v563_v41  ;;  %v1367_v41 = vld [vmem:[%s3627_s3 + $0x40] sm:$0xff] }
 0x1a8   :  { %v427_v42 = vld [vmem:[%s3625_s1 + $0xc98] sm:$0xff]  ;;  %1286 = vmatpush.msra.mxu0 %v363_v28  ;;  %v913_v28 = vadd.f32 %v912_v35, %v893_v30 }
 0x1a9   :  { %v491_v43 = vld [vmem:[%s3625_s1 + $0xe98] sm:$0xff]  ;;  %1306 = vmatpush.msra.mxu1 %v427_v42  ;;  %v1383_v42 = vld [vmem:[%s3627_s3 + $0xc0] sm:$0xff] }
 0x1aa   :  { %v559_v44 = vld [vmem:[%s3625_s1 + $0x10b8] sm:$0xff]  ;;  %1326 = vmatpush.msra.mxu2 %v491_v43  ;;  %v1400_v43 = vld [vmem:[%s3627_s3 + $0x148] sm:$0xff] }
 0x1ab   :  { %v359_v45 = vld [vmem:[%s3625_s1 + $0xa78] sm:$0xff]  ;;  %1345 = vmatpush.msra.mxu3 %v559_v44  ;;  %v932_v44 = vpop.f32.mrf.mxu2 }
 0x1ac   :  { %v423_v52 = vld [vmem:[%s3625_s1 + $0xc78] sm:$0xff]  ;;  %1287 = vmatpush.msra.mxu0 %v359_v45 }
 0x1ad   :  { %v487_v33 = vld [vmem:[%s3625_s1 + $0xe78] sm:$0xff]  ;;  %1307 = vmatpush.msra.mxu1 %v423_v52 }
 0x1ae   :  { %v555_v55 = vld [vmem:[%s3625_s1 + $0x1098] sm:$0xff]  ;;  %1327 = vmatpush.msra.mxu2 %v487_v33  ;;  %v753_v33 = vadd.f32 %v3325_v39, %v733_v40  ;;  %v1364_v39 = vld [vmem:[%s3627_s3 + $0x28] sm:$0xff] }
 0x1af   :  { %v355_v57 = vld [vmem:[%s3625_s1 + $0xa58] sm:$0xff]  ;;  %1346 = vmatpush.msra.mxu3 %v555_v55  ;;  %v1365_v55 = vld [vmem:[%s3627_s3 + $0x30] sm:$0xff] }
 0x1b0   :  { %v419_v58 = vld [vmem:[%s3625_s1 + $0xc58] sm:$0xff]  ;;  %1288 = vmatpush.msra.mxu0 %v355_v57  ;;  %v933_v57 = vadd.f32 %v932_v44, %v913_v28  ;;  %v1421_v28 = vld [vmem:[%s3627_s3 + $0x1f0] sm:$0xff] }
 0x1b1   :  { %v483_v60 = vld [vmem:[%s3625_s1 + $0xe58] sm:$0xff]  ;;  %1308 = vmatpush.msra.mxu1 %v419_v58  ;;  %v1381_v58 = vld [vmem:[%s3627_s3 + $0xb0] sm:$0xff] }
 0x1b2   :  { %v551_v61 = vld [vmem:[%s3625_s1 + $0x1078] sm:$0xff]  ;;  %1328 = vmatpush.msra.mxu2 %v483_v60  ;;  %v952_v60 = vpop.f32.mrf.mxu3 }
 0x1b3   :  { %v351_v63 = vld [vmem:[%s3625_s1 + $0xa38] sm:$0xff]  ;;  %1347 = vmatpush.msra.mxu3 %v551_v61  ;;  %v1380_v61 = vld [vmem:[%s3627_s3 + $0xa8] sm:$0xff] }
 0x1b4   :  { %v415_v0 = vld [vmem:[%s3625_s1 + $0xc38] sm:$0xff]  ;;  %1289 = vmatpush.msra.mxu0 %v351_v63  ;;  %v773_v63 = vadd.f32 %v3358_v54, %v753_v33 }
 0x1b5   :  { %v479_v3 = vld [vmem:[%s3625_s1 + $0xe38] sm:$0xff]  ;;  %1309 = vmatpush.msra.mxu1 %v415_v0  ;;  %v972_v0 = vpop.f32.mrf.mxu0 }
 0x1b6   :  { %v547_v4 = vld [vmem:[%s3625_s1 + $0x1058] sm:$0xff]  ;;  %1329 = vmatpush.msra.mxu2 %v479_v3  ;;  %v953_v3 = vadd.f32 %v952_v60, %v933_v57  ;;  %v793_v46 = vadd.f32 %v3386_v1, %v773_v63  ;;  %v1396_v1 = vld [vmem:[%s3627_s3 + $0x128] sm:$0xff]  ;;  %v1409_v60 = vld [vmem:[%s3627_s3 + $0x190] sm:$0xff] }
 0x1b7   :  { %v347_v5 = vld [vmem:[%s3625_s1 + $0xa18] sm:$0xff]  ;;  %1348 = vmatpush.msra.mxu3 %v547_v4  ;;  %v1379_v4 = vld [vmem:[%s3627_s3 + $0xa0] sm:$0xff]  ;;  %v1412_v57 = vld [vmem:[%s3627_s3 + $0x1a8] sm:$0xff] }
 0x1b8   :  { %v411_v6 = vld [vmem:[%s3625_s1 + $0xc18] sm:$0xff]  ;;  %1290 = vmatpush.msra.mxu0 %v347_v5  ;;  %v973_v54 = vadd.f32 %v972_v0, %v953_v3  ;;  %v813_v11 = vadd.f32 %v3407_v10, %v793_v46  ;;  %v1359_v10 = vld [vmem:[%s3627_s3] sm:$0xff] }
 0x1b9   :  { %v475_v7 = vld [vmem:[%s3625_s1 + $0xe18] sm:$0xff]  ;;  %1310 = vmatpush.msra.mxu1 %v411_v6  ;;  %1291 = vmatmul.f32.vlgmr.msra.gmra.mxu0 %v2861_v62  ;;  %v1372_v62 = vld [vmem:[%s3627_s3 + $0x68] sm:$0xff]  ;;  %v1407_v63 = vld [vmem:[%s3627_s3 + $0x180] sm:$0xff] }
 0x1ba   :  { %v543_v8 = vld [vmem:[%s3625_s1 + $0x1038] sm:$0xff]  ;;  %1330 = vmatpush.msra.mxu2 %v475_v7  ;;  %1311 = vmatmul.f32.vlgmr.msra.gmra.mxu1 %v2997_v50  ;;  %v1371_v50 = vld [vmem:[%s3627_s3 + $0x60] sm:$0xff]  ;;  %v992_v7 = vpop.f32.mrf.mxu1  ;;  %v1355_v18 = vmax.f32 %v813_v11, 0.0 }
 0x1bb   :  { %v1374_v12 = vld [vmem:[%s3627_s3 + $0x78] sm:$0xff]  ;;  %1349 = vmatpush.msra.mxu3 %v543_v8  ;;  %1331 = vmatmul.f32.vlgmr.msra.gmra.mxu2 %v3018_v56  ;;  %v1361_v8 = vld [vmem:[%s3627_s3 + $0x10] sm:$0xff] }
 0x1bc   :  { %v1390_v13 = vld [vmem:[%s3627_s3 + $0xf8] sm:$0xff]  ;;  %1427 = vmatpush.msrb.mxu0 %v1374_v12  ;;  %v1360_v12 = vld [vmem:[%s3627_s3 + $0x8] sm:$0xff] }
 0x1bd   :  { %v539_v15 = vld [vmem:[%s3625_s1 + $0x1018] sm:$0xff]  ;;  %1447 = vmatpush.msrb.mxu1 %v1390_v13  ;;  %v993_v13 = vadd.f32 %v992_v7, %v973_v54  ;;  %v1052_v24 = vpop.f32.mrf.mxu0 }
 0x1be   :  { %1350 = vmatpush.msra.mxu3 %v539_v15  ;;  %v1406_v56 = vld [vmem:[%s3627_s3 + $0x178] sm:$0xff]  ;;  %1428 = vmatpush.msrb.mxu0 %v1373_v17  ;;  %v1376_v15 = vld [vmem:[%s3627_s3 + $0x88] sm:$0xff]  ;;  %v1395_v17 = vld [vmem:[%s3627_s3 + $0x120] sm:$0xff] }
 0x1bf   :  { %1351 = vmatmul.f32.vlgmr.msra.gmra.mxu3 %v3000_v51  ;;  %1448 = vmatpush.msrb.mxu1 %v1389_v47  ;;  %v1405_v51 = vld [vmem:[%s3627_s3 + $0x170] sm:$0xff]  ;;  %v1370_v23 = vld [vmem:[%s3627_s3 + $0x58] sm:$0xff]  ;;  %v1356_v19 = vmax.f32 %v993_v13, 0.0 }
 0x1c0   :  { %1467 = vmatpush.msrb.mxu2 %v1406_v56  ;;  %1429 = vmatpush.msrb.mxu0 %v1372_v62  ;;  %v1386_v48 = vld [vmem:[%s3627_s3 + $0xd8] sm:$0xff]  ;;  %v604_v62 = vperm.slane %v3348_v14, 2  ;;  %v1012_v56 = vpop.f32.mrf.mxu2 }
 0x1c1   :  { %1449 = vmatpush.msrb.mxu1 %v1388_v16  ;;  %v1402_v34 = vld [vmem:[%s3627_s3 + $0x158] sm:$0xff]  ;;  %v1393_v16 = vld [vmem:[%s3627_s3 + $0x110] sm:$0xff] }
 0x1c2   :  { %1468 = vmatpush.msrb.mxu2 %v1405_v51  ;;  %1430 = vmatpush.msrb.mxu0 %v1371_v50  ;;  %v1366_v45 = vld [vmem:[%s3627_s3 + $0x38] sm:$0xff]  ;;  %v1013_v50 = vadd.f32 %v1012_v56, %v604_v62 }
 0x1c3   :  { %1450 = vmatpush.msrb.mxu1 %v1387_v21  ;;  %v1382_v52 = vld [vmem:[%s3627_s3 + $0xb8] sm:$0xff]  ;;  %v1032_v21 = vpop.f32.mrf.mxu3 }
 0x1c4   :  { %1469 = vmatpush.msrb.mxu2 %v1404_v25  ;;  %1431 = vmatpush.msrb.mxu0 %v1370_v23  ;;  %v1398_v59 = vld [vmem:[%s3627_s3 + $0x138] sm:$0xff]  ;;  %v1033_v51 = vadd.f32 %v1032_v21, %v1013_v50 }
 0x1c5   :  { %1451 = vmatpush.msrb.mxu1 %v1386_v48  ;;  %v1362_v5 = vld [vmem:[%s3627_s3 + $0x18] sm:$0xff]  ;;  %v1072_v48 = vpop.f32.mrf.mxu1 }
 0x1c6   :  { %1470 = vmatpush.msrb.mxu2 %v1403_v32  ;;  %1432 = vmatpush.msrb.mxu0 %v1369_v29  ;;  %v1378_v6 = vld [vmem:[%s3627_s3 + $0x98] sm:$0xff]  ;;  %v1053_v23 = vadd.f32 %v1052_v24, %v1033_v51 }
 0x1c7   :  { %1452 = vmatpush.msrb.mxu1 %v1385_v31  ;;  %v1394_v47 = vld [vmem:[%s3627_s3 + $0x118] sm:$0xff] }
 0x1c8   :  { %1471 = vmatpush.msrb.mxu2 %v1402_v34  ;;  %1433 = vmatpush.msrb.mxu0 %v1368_v36  ;;  %v1073_v25 = vadd.f32 %v1072_v48, %v1053_v23  ;;  %v1092_v26 = vpop.f32.mrf.mxu2  ;;  %v1418_v44 = vld [vmem:[%s3627_s3 + $0x1d8] sm:$0xff] }
 0x1c9   :  { %1453 = vmatpush.msrb.mxu1 %v1384_v37  ;;  %v1414_v33 = vld [vmem:[%s3627_s3 + $0x1b8] sm:$0xff] }
 0x1ca   :  { %1472 = vmatpush.msrb.mxu2 %v1401_v38  ;;  %1434 = vmatpush.msrb.mxu0 %v1367_v41  ;;  %v1093_v29 = vadd.f32 %v1092_v26, %v1073_v25  ;;  %v1422_v41 = vld [vmem:[%s3627_s3 + $0x1f8] sm:$0xff] }
 0x1cb   :  { %1454 = vmatpush.msrb.mxu1 %v1383_v42  ;;  %v1112_v30 = vpop.f32.mrf.mxu3  ;;  %1487 = vmatpush.msrb.mxu3 %v1422_v41  ;;  %v1420_v42 = vld [vmem:[%s3627_s3 + $0x1e8] sm:$0xff] }
 0x1cc   :  { %1473 = vmatpush.msrb.mxu2 %v1400_v43  ;;  %1435 = vmatpush.msrb.mxu0 %v1366_v45  ;;  %v1113_v31 = vadd.f32 %v1112_v30, %v1093_v29  ;;  %v1419_v43 = vld [vmem:[%s3627_s3 + $0x1e0] sm:$0xff]  ;;  %v1417_v45 = vld [vmem:[%s3627_s3 + $0x1d0] sm:$0xff] }
 0x1cd   :  { %1455 = vmatpush.msrb.mxu1 %v1382_v52  ;;  %1488 = vmatpush.msrb.mxu3 %v1421_v28  ;;  %v1416_v52 = vld [vmem:[%s3627_s3 + $0x1c8] sm:$0xff] }
 0x1ce   :  { %1474 = vmatpush.msrb.mxu2 %v1399_v53  ;;  %1436 = vmatpush.msrb.mxu0 %v1365_v55  ;;  %v1415_v53 = vld [vmem:[%s3627_s3 + $0x1c0] sm:$0xff]  ;;  %v1413_v55 = vld [vmem:[%s3627_s3 + $0x1b0] sm:$0xff] }
 0x1cf   :  { %1456 = vmatpush.msrb.mxu1 %v1381_v58  ;;  %1489 = vmatpush.msrb.mxu3 %v1420_v42  ;;  %v1411_v58 = vld [vmem:[%s3627_s3 + $0x1a0] sm:$0xff] }
 0x1d0   :  { %1475 = vmatpush.msrb.mxu2 %v1398_v59  ;;  %1437 = vmatpush.msrb.mxu0 %v1364_v39  ;;  %v1410_v59 = vld [vmem:[%s3627_s3 + $0x198] sm:$0xff]  ;;  %v605_v39 = vperm.slane %v3348_v14, 3 }
 0x1d1   :  { %1457 = vmatpush.msrb.mxu1 %v1380_v61  ;;  %1490 = vmatpush.msrb.mxu3 %v1419_v43  ;;  %v1408_v61 = vld [vmem:[%s3627_s3 + $0x188] sm:$0xff] }
 0x1d2   :  { %1476 = vmatpush.msrb.mxu2 %v1397_v27  ;;  %1438 = vmatpush.msrb.mxu0 %v1363_v2 }
 0x1d3   :  { %1458 = vmatpush.msrb.mxu1 %v1379_v4  ;;  %1491 = vmatpush.msrb.mxu3 %v1418_v44 }
 0x1d4   :  { %1439 = vmatpush.msrb.mxu0 %v1362_v5  ;;  %1477 = vmatpush.msrb.mxu2 %v1396_v1 }
 0x1d5   :  { %1459 = vmatpush.msrb.mxu1 %v1378_v6  ;;  %1492 = vmatpush.msrb.mxu3 %v1417_v45 }
 0x1d6   :  { %1440 = vmatpush.msrb.mxu0 %v1361_v8  ;;  %1478 = vmatpush.msrb.mxu2 %v1395_v17 }
 0x1d7   :  { %1460 = vmatpush.msrb.mxu1 %v1377_v9  ;;  %1493 = vmatpush.msrb.mxu3 %v1416_v52 }
 0x1d8   :  { %1441 = vmatpush.msrb.mxu0 %v1360_v12  ;;  %1479 = vmatpush.msrb.mxu2 %v1394_v47 }
 0x1d9   :  { %1461 = vmatpush.msrb.mxu1 %v1376_v15  ;;  %1494 = vmatpush.msrb.mxu3 %v1415_v53 }
 0x1da   :  { %1442 = vmatpush.msrb.mxu0 %v1359_v10  ;;  %1480 = vmatpush.msrb.mxu2 %v1393_v16 }
 0x1db   :  { %1462 = vmatpush.msrb.mxu1 %v1375_v49  ;;  %1443 = vmatmul.f32.vlgmr.msrb.gmra.mxu0 %v1355_v18  ;;  %v1192_v27 = vpop.f32.mrf.mxu3  ;;  %v1526_v49 = vld [vmem:[%s3628_s4] ss:$0 sm:$0xff] }
 0x1dc   :  { %1463 = vmatmul.f32.vlgmr.msrb.gmra.mxu1 %v1356_v19  ;;  %1481 = vmatpush.msrb.mxu2 %v1392_v22  ;;  %v1193_v0 = vadd.f32 %v1192_v27, %v605_v39 }
 0x1dd   :  { %1495 = vmatpush.msrb.mxu3 %v1414_v33 }
 0x1de   :  { %1482 = vmatpush.msrb.mxu2 %v1391_v20 }
 0x1df   :  { %1496 = vmatpush.msrb.mxu3 %v1413_v55 }
 0x1e1   :  { %1497 = vmatpush.msrb.mxu3 %v1412_v57 }
 0x1e2   :  { %v1132_v32 = vpop.f32.mrf.mxu0 }
 0x1e3   :  { %v1133_v34 = vadd.f32 %v1132_v32, %v1113_v31  ;;  %1498 = vmatpush.msrb.mxu3 %v1411_v58 }
 0x1e4   :  { %v1152_v35 = vpop.f32.mrf.mxu1 }
 0x1e5   :  { %v1153_v36 = vadd.f32 %v1152_v35, %v1133_v34  ;;  %1499 = vmatpush.msrb.mxu3 %v1410_v59 }
 0x1e7   :  { %1500 = vmatpush.msrb.mxu3 %v1409_v60 }
 0x1e8   :  { %v1172_v37 = vpop.f32.mrf.mxu2 }
 0x1e9   :  { %v1173_v38 = vadd.f32 %v1172_v37, %v1153_v36  ;;  %1501 = vmatpush.msrb.mxu3 %v1408_v61 }
 0x1eb   :  { %v1357_v40 = vmax.f32 %v1173_v38, 0.0  ;;  %1502 = vmatpush.msrb.mxu3 %v1407_v63 }
 0x1ed   :  { %1483 = vmatmul.f32.vlgmr.msrb.gmra.mxu2 %v1357_v40 }
 0x204   :  { %v1272_v46 = vpop.f32.mrf.mxu3 }
 0x206   :  { %v1232_v4 = vpop.f32.mrf.mxu1 }
 0x208   :  { %v1252_v54 = vpop.f32.mrf.mxu2 }
 0x20c   :  { %v1212_v2 = vpop.f32.mrf.mxu0 }
 0x20d   :  { %v1213_v3 = vadd.f32 %v1212_v2, %v1193_v0 }
 0x20f   :  { %v1233_v5 = vadd.f32 %v1232_v4, %v1213_v3 }
 0x211   :  { %v1253_v6 = vadd.f32 %v1252_v54, %v1233_v5 }
 0x213   :  { %v1273_v14 = vadd.f32 %v1272_v46, %v1253_v6 }
 0x236   :  { %v1292_v7 = vpop.f32.mrf.mxu0 }
 0x237   :  { %v1293_v8 = vadd.f32 %v1292_v7, %v1273_v14  ;;  %v1312_v9 = vpop.f32.mrf.mxu1 }
 0x239   :  { %v1313_v11 = vadd.f32 %v1312_v9, %v1293_v8 }
 0x23e   :  { %v1332_v12 = vpop.f32.mrf.mxu2 }
 0x23f   :  { %v1333_v1 = vadd.f32 %v1332_v12, %v1313_v11 }
 0x242   :  { %v1352_v13 = vpop.f32.mrf.mxu3 }
 0x243   :  { %v1353_v15 = vadd.f32 %v1352_v13, %v1333_v1 }
 0x245   :  { %v1358_v10 = vmax.f32 %v1353_v15, 0.0 }
 0x247   :  { %1503 = vmatmul.f32.vlgmr.msrb.gmra.mxu3 %v1358_v10 }
 0x258   :  { %v1444_v17 = vpop.f32.mrf.mxu0 }
 0x259   :  { %v1445_v18 = vadd.f32 %v1526_v49, %v1444_v17  ;;  %v1464_v47 = vpop.f32.mrf.mxu1 }
 0x25b   :  { %v1465_v62 = vadd.f32 %v1464_v47, %v1445_v18 }
 0x270   :  { %v1484_v19 = vpop.f32.mrf.mxu2 }
 0x271   :  { %v1485_v56 = vadd.f32 %v1484_v19, %v1465_v62 }
 0x2ca   :  { %v1504_v16 = vpop.f32.mrf.mxu3 }
 0x2cb   :  { %v1505_v22 = vadd.f32 %v1504_v16, %v1485_v56 }
 0x2cd   :  { %1508 = vst.msk [vmem:[#allocation2] sm:$0x3] %vm1507_vm0, %v1505_v22 }
 0x2ce   :  { %1519 = dma.vmem_to_hbm [thread:$0]  %s1515_s6, 32, %s1517_s9, [#allocation3]  }
 0x2cf   :  { %1556 = dma.done.wait [#allocation3], 32  }
 0x2d0   :  { %1557 = vsyncadd [#allocation3], 4294967264 }
 0x2d1   :  { %1524 = vsyncpa [#allocation3], 1 }

</bundles_post_ra>
